<compile_context>
chip_gen: v6e
topology: v6e:2x2x1
jax: 0.10.0
libtpu: 0.0.40
codegen_flags: <defaults>
</compile_context>

<pallas_src>
import functools

import jax
import jax.numpy as jnp
from jax.experimental import pallas as pl
from jax.experimental.pallas import tpu as pltpu

EPS = 1e-5
LAYER_STRIDES = (1, 2, 2, 2)      # resnet18 layer strides
LAYER_BLOCKS = (2, 2, 2, 2)       # resnet18 BasicBlock counts
LANE = 128                        # pad all channel dims to multiples of the lane width

# Tile targets chosen to fit comfortably in v7x's 64 MiB VMEM while still amortizing
# the per-grid-step overhead on v5e/v6e (tiles are double-buffered by the pipeline).
TM_TARGET = 512
TN_TARGET = 512
TK_TARGET = 512
VMEM_LIMIT = 64 * 1024 * 1024


def _ceil_to(x, m):
    return ((x + m - 1) // m) * m


def _pick_tile(dim, target, align):
    """Largest multiple of `align` that divides `dim` and is <= target, else the full dim."""
    if dim <= target:
        return dim
    t = (target // align) * align
    while t >= align:
        if dim % t == 0:
            return t
        t -= align
    return dim


# ---------------------------- Pallas kernels ----------------------------

def _mm_bn_kernel(a_ref, b_ref, shift_ref, o_ref, acc_ref, *, relu):
    # out = relu?( A @ B_scaled + shift ), accumulated over the K grid axis.
    k = pl.program_id(2)

    @pl.when(k == 0)
    def _():
        acc_ref[...] = jnp.zeros_like(acc_ref)

    acc_ref[...] += jnp.dot(a_ref[...], b_ref[...],
                            preferred_element_type=jnp.float32)

    @pl.when(k == pl.num_programs(2) - 1)
    def _():
        y = acc_ref[...] + shift_ref[...]
        if relu:
            y = jnp.maximum(y, 0.0)
        o_ref[...] = y.astype(o_ref.dtype)


def _mm_bn_res_kernel(a_ref, b_ref, shift_ref, res_ref, o_ref, acc_ref, *, relu):
    # out = relu?( A @ B_scaled + shift + residual )  (residual is co-tiled with out)
    k = pl.program_id(2)

    @pl.when(k == 0)
    def _():
        acc_ref[...] = jnp.zeros_like(acc_ref)

    acc_ref[...] += jnp.dot(a_ref[...], b_ref[...],
                            preferred_element_type=jnp.float32)

    @pl.when(k == pl.num_programs(2) - 1)
    def _():
        y = acc_ref[...] + shift_ref[...] + res_ref[...].astype(jnp.float32)
        if relu:
            y = jnp.maximum(y, 0.0)
        o_ref[...] = y.astype(o_ref.dtype)


def _mm_bn_single_kernel(a_ref, b_ref, shift_ref, o_ref, *, relu):
    # single-K-tile fast path: no accumulator scratch, one dot + epilogue
    y = jnp.dot(a_ref[...], b_ref[...], preferred_element_type=jnp.float32)
    y = y + shift_ref[...]
    if relu:
        y = jnp.maximum(y, 0.0)
    o_ref[...] = y.astype(o_ref.dtype)


def _mm_bn_res_single_kernel(a_ref, b_ref, shift_ref, res_ref, o_ref, *, relu):
    y = jnp.dot(a_ref[...], b_ref[...], preferred_element_type=jnp.float32)
    y = y + shift_ref[...] + res_ref[...].astype(jnp.float32)
    if relu:
        y = jnp.maximum(y, 0.0)
    o_ref[...] = y.astype(o_ref.dtype)


def _max_views_kernel(*refs):
    # elementwise tree-max over the k*k shifted window views (each a (TM, TC) tile)
    o_ref = refs[-1]
    vals = [r[...] for r in refs[:-1]]
    while len(vals) > 1:
        nxt = [jnp.maximum(vals[i], vals[i + 1]) for i in range(0, len(vals) - 1, 2)]
        if len(vals) % 2:
            nxt.append(vals[-1])
        vals = nxt
    o_ref[...] = vals[0]


def _avgpool_fc_kernel(x_ref, w_ref, b_ref, o_ref):
    # x: (N, H*W, C) -> sum over H*W (1/(H*W) folded into w) -> (N, C) @ (C, K) + b
    pooled = jnp.sum(x_ref[...].astype(jnp.float32), axis=1)
    o_ref[...] = jnp.dot(pooled.astype(jnp.bfloat16), w_ref[...],
                         preferred_element_type=jnp.float32) + b_ref[...]


# ---------------------------- Pallas wrappers ----------------------------

def matmul_bn_act(a, b, shift, residual=None, relu=True, out_dtype=jnp.bfloat16):
    """Fused (A @ B) + shift (+ residual), optional ReLU.  BN scale pre-folded into B."""
    M, K = a.shape
    Kb, N = b.shape
    assert K == Kb
    a = a.astype(jnp.bfloat16)
    if K % LANE != 0:                       # stem (K = 49*3); keep the K axis 128-aligned
        Kp = _ceil_to(K, LANE)
        a = jnp.pad(a, ((0, 0), (0, Kp - K)))
        b = jnp.pad(b, ((0, Kp - K), (0, 0)))
        K = Kp

    tm = _pick_tile(M, TM_TARGET, 8)
    tn = _pick_tile(N, TN_TARGET, LANE)
    tk = _pick_tile(K, TK_TARGET, LANE)
    nk = K // tk

    shift2 = shift.reshape(1, N).astype(jnp.float32)

    if nk == 1:
        # whole reduction fits one tile: 2-D grid, no scratch accumulator.
        args = [a, b, shift2]
        in_specs = [
            pl.BlockSpec((tm, K), lambda i, j: (i, 0)),
            pl.BlockSpec((K, tn), lambda i, j: (0, j)),
            pl.BlockSpec((1, tn), lambda i, j: (0, j)),
        ]
        if residual is not None:
            args.append(residual.astype(jnp.bfloat16))
            in_specs.append(pl.BlockSpec((tm, tn), lambda i, j: (i, j)))
            kernel = functools.partial(_mm_bn_res_single_kernel, relu=relu)
        else:
            kernel = functools.partial(_mm_bn_single_kernel, relu=relu)
        return pl.pallas_call(
            kernel,
            out_shape=jax.ShapeDtypeStruct((M, N), out_dtype),
            grid=(M // tm, N // tn),
            in_specs=in_specs,
            out_specs=pl.BlockSpec((tm, tn), lambda i, j: (i, j)),
            compiler_params=pltpu.CompilerParams(
                dimension_semantics=("parallel", "parallel"),
                vmem_limit_bytes=VMEM_LIMIT),
        )(*args)

    args = [a, b, shift2]
    in_specs = [
        pl.BlockSpec((tm, tk), lambda i, j, k: (i, k)),
        pl.BlockSpec((tk, tn), lambda i, j, k: (k, j)),
        pl.BlockSpec((1, tn), lambda i, j, k: (0, j)),
    ]
    if residual is not None:
        args.append(residual.astype(jnp.bfloat16))
        in_specs.append(pl.BlockSpec((tm, tn), lambda i, j, k: (i, j)))
        kernel = functools.partial(_mm_bn_res_kernel, relu=relu)
    else:
        kernel = functools.partial(_mm_bn_kernel, relu=relu)

    return pl.pallas_call(
        kernel,
        out_shape=jax.ShapeDtypeStruct((M, N), out_dtype),
        grid=(M // tm, N // tn, nk),
        in_specs=in_specs,
        out_specs=pl.BlockSpec((tm, tn), lambda i, j, k: (i, j)),
        scratch_shapes=[pltpu.VMEM((tm, tn), jnp.float32)],
        compiler_params=pltpu.CompilerParams(
            dimension_semantics=("parallel", "parallel", "arbitrary"),
            vmem_limit_bytes=VMEM_LIMIT),
    )(*args)


def maxpool2d(x, k=3, s=2, p=1):
    N, H, W, C = x.shape
    OH = (H + 2 * p - k) // s + 1
    OW = (W + 2 * p - k) // s + 1
    xp = jnp.pad(x, ((0, 0), (p, p), (p, p), (0, 0)), constant_values=-jnp.inf)
    views = [
        xp[:, di:di + s * OH:s, dj:dj + s * OW:s, :].reshape(N * OH * OW, C)
        for di in range(k) for dj in range(k)
    ]
    M = N * OH * OW
    tm = _pick_tile(M, 1024, 8)
    tc = _pick_tile(C, TN_TARGET, LANE)
    spec = pl.BlockSpec((tm, tc), lambda i, j: (i, j))
    out = pl.pallas_call(
        _max_views_kernel,
        out_shape=jax.ShapeDtypeStruct((M, C), x.dtype),
        grid=(M // tm, C // tc),
        in_specs=[spec] * len(views),
        out_specs=spec,
        compiler_params=pltpu.CompilerParams(
            dimension_semantics=("parallel", "parallel"),
            vmem_limit_bytes=VMEM_LIMIT),
    )(*views)
    return out.reshape(N, OH, OW, C)


def avgpool_fc(x3, fc_w, fc_b):
    # x3: (N, H*W, C) bf16; fc_w: (C_pad, K_pad) f32 (torch (out,in) transposed + padded)
    N, HW, C = x3.shape
    Kout = fc_w.shape[1]
    w = (fc_w * (1.0 / HW)).astype(jnp.bfloat16)     # fold the mean into the fc weights
    b = fc_b.reshape(1, Kout).astype(jnp.float32)
    return pl.pallas_call(
        _avgpool_fc_kernel,
        out_shape=jax.ShapeDtypeStruct((N, Kout), jnp.float32),
        grid=(1,),
        in_specs=[pl.BlockSpec((N, HW, C), lambda i: (0, 0, 0)),
                  pl.BlockSpec(w.shape, lambda i: (0, 0)),
                  pl.BlockSpec((1, Kout), lambda i: (0, 0))],
        out_specs=pl.BlockSpec((N, Kout), lambda i: (0, 0)),
        compiler_params=pltpu.CompilerParams(
            dimension_semantics=("arbitrary",),
            vmem_limit_bytes=VMEM_LIMIT),
    )(x3.astype(jnp.bfloat16), w, b)


# ---------------------------- conv glue (im2col, bf16) ----------------------------

def conv2d_im2col(x_nhwc, kh, kw, stride, padding):
    # TODO(synk): for production shapes, replace the HBM im2col with an in-kernel
    # tap-axis accumulation (manual DMAs of shifted NHWC windows); here the patches
    # are at least emitted in bf16 and built with a single concatenate.
    N, H, W, C = x_nhwc.shape
    OH = (H + 2 * padding - kh) // stride + 1
    OW = (W + 2 * padding - kw) // stride + 1
    xp = x_nhwc
    if padding:
        xp = jnp.pad(x_nhwc, ((0, 0), (padding, padding), (padding, padding), (0, 0)))
    cols = [
        xp[:, di:di + stride * OH:stride, dj:dj + stride * OW:stride, :]
        for di in range(kh) for dj in range(kw)
    ]
    if len(cols) == 1:
        patches = cols[0].reshape(N * OH * OW, C)
    else:
        patches = jnp.concatenate(cols, axis=-1).reshape(N * OH * OW, kh * kw * C)
    return patches, (N, OH, OW)


# ---------------------------- model blocks ----------------------------

def basic_block(x, blk, stride):
    # conv1 3x3 (stride) + BN + ReLU
    p1, (n, oh, ow) = conv2d_im2col(x, 3, 3, stride, 1)
    out = matmul_bn_act(p1, blk['w1'], blk['b1'], relu=True)

    # identity / downsample (1x1 conv, stride, + BN, no ReLU)
    if 'wd' in blk:
        pd, _ = conv2d_im2col(x, 1, 1, stride, 0)
        identity = matmul_bn_act(pd, blk['wd'], blk['bd'], relu=False)
    else:
        identity = x.reshape(-1, x.shape[-1])

    # conv2 3x3 (stride 1) + BN + residual + ReLU, fused in one kernel
    p2, (n2, oh2, ow2) = conv2d_im2col(out.reshape(n, oh, ow, -1), 3, 3, 1, 1)
    out = matmul_bn_act(p2, blk['w2'], blk['b2'], residual=identity, relu=True)
    return out.reshape(n2, oh2, ow2, -1)


def fine_tune_resnet_forward(x_nchw, params, num_classes):
    x = jnp.transpose(x_nchw, (0, 2, 3, 1)).astype(jnp.bfloat16)   # NCHW -> NHWC, bf16

    # stem: 7x7 s2 p3 conv + BN + ReLU, then 3x3 s2 p1 maxpool
    p, (n, oh, ow) = conv2d_im2col(x, 7, 7, 2, 3)
    x = matmul_bn_act(p, params['stem_w'], params['stem_shift'], relu=True)
    x = maxpool2d(x.reshape(n, oh, ow, -1), 3, 2, 1)

    # layer1..layer4 (BasicBlocks)
    for li, blocks in enumerate(params['layers']):
        for bi, blk in enumerate(blocks):
            x = basic_block(x, blk, LAYER_STRIDES[li] if bi == 0 else 1)

    # global avg pool + fc (the replaced nn.Linear(num_features, num_classes))
    n, h, w, c = x.shape
    logits = avgpool_fc(x.reshape(n, h * w, c), params['fc_w'], params['fc_b'])
    return logits[:, :num_classes]          # drop lane-padding columns


# ---------------------------- deterministic params ----------------------------

def _conv_bn_matmul_params(key, cin, cin_pad, cout, cout_pad, k):
    kw_, kg, kb, km, kv = jax.random.split(key, 5)
    w = 0.1 * jax.random.normal(kw_, (cout, cin, k, k), jnp.float32)   # torch OIHW
    gamma = 1.0 + 0.1 * jax.random.normal(kg, (cout,), jnp.float32)
    beta = 0.1 * jax.random.normal(kb, (cout,), jnp.float32)
    mean = 0.1 * jax.random.normal(km, (cout,), jnp.float32)
    var = 1.0 + 0.1 * jnp.abs(jax.random.normal(kv, (cout,), jnp.float32))
    scale = gamma / jnp.sqrt(var + EPS)                 # BN (inference) folded
    shift = beta - mean * scale
    # im2col matmul weight: rows ordered (tap, cin); BN scale folded into the columns;
    # channel dims zero-padded to lane-dense widths.
    wmat = jnp.transpose(w, (2, 3, 1, 0)).reshape(k * k, cin, cout) * scale
    wmat = jnp.pad(wmat, ((0, 0), (0, cin_pad - cin), (0, cout_pad - cout)))
    wmat = wmat.reshape(k * k * cin_pad, cout_pad).astype(jnp.bfloat16)
    shift = jnp.pad(shift, (0, cout_pad - cout)).astype(jnp.float32)
    return wmat, shift


def build_params(key, base=64, num_classes=120):
    # TODO(synk): torchvision `pretrained=True` ImageNet weights cannot be loaded here;
    # deterministic random parameters with the identical structure are used instead.
    widths = [base, base * 2, base * 4, base * 8]
    pwidths = [_ceil_to(w, LANE) for w in widths]
    keys = jax.random.split(key, 32)
    ki = iter(keys)

    p = {}
    p['stem_w'], p['stem_shift'] = _conv_bn_matmul_params(
        next(ki), 3, 3, base, pwidths[0], 7)

    layers = []
    cin, cin_pad = base, pwidths[0]
    for li in range(4):
        cout, cout_pad = widths[li], pwidths[li]
        blocks = []
        for bi in range(LAYER_BLOCKS[li]):
            s = LAYER_STRIDES[li] if bi == 0 else 1
            bcin, bcin_pad = (cin, cin_pad) if bi == 0 else (cout, cout_pad)
            blk = {}
            blk['w1'], blk['b1'] = _conv_bn_matmul_params(
                next(ki), bcin, bcin_pad, cout, cout_pad, 3)
            blk['w2'], blk['b2'] = _conv_bn_matmul_params(
                next(ki), cout, cout_pad, cout, cout_pad, 3)
            if s != 1 or bcin != cout:
                blk['wd'], blk['bd'] = _conv_bn_matmul_params(
                    next(ki), bcin, bcin_pad, cout, cout_pad, 1)
            blocks.append(blk)
        layers.append(blocks)
        cin, cin_pad = cout, cout_pad
    p['layers'] = layers

    kf1, kf2 = jax.random.split(next(ki))
    feat, feat_pad = widths[3], pwidths[3]
    nc_pad = _ceil_to(num_classes, LANE)
    fc_w = 0.1 * jax.random.normal(kf1, (num_classes, feat), jnp.float32)  # torch (out, in)
    fc_b = 0.1 * jax.random.normal(kf2, (num_classes,), jnp.float32)
    p['fc_w'] = jnp.pad(jnp.transpose(fc_w),
                        ((0, feat_pad - feat), (0, nc_pad - num_classes)))
    p['fc_b'] = jnp.pad(fc_b, (0, nc_pad - num_classes))
    return p


# ---------------------------- main ----------------------------

if __name__ == "__main__":
    key = jax.random.PRNGKey(0)
    kx, kp = jax.random.split(key)

    NUM_CLASSES = 120
    # small demo shapes: batch=2, RGB, 32x32 spatial, true resnet18 widths (base=64)
    x = jax.random.normal(kx, (2, 3, 32, 32), jnp.float32)     # NCHW, as in PyTorch
    params = build_params(kp, base=64, num_classes=NUM_CLASSES)

    fwd = jax.jit(lambda inp, prm: fine_tune_resnet_forward(inp, prm, NUM_CLASSES))
    out = fwd(x, params)
    jax.block_until_ready(out)
    assert out.shape == (2, NUM_CLASSES) and out.dtype == jnp.float32
    print("KERNEL_OK")
</pallas_src>

<mosaic_0001>
module attributes {stable_mosaic.version = 11 : i64} {
  func.func @_mm_bn_single_kernel(%arg0: i32, %arg1: i32, %arg2: memref<512x256xbf16, #tpu.memory_space<vmem>>, %arg3: memref<256x128xbf16, #tpu.memory_space<vmem>>, %arg4: memref<1x128xf32, #tpu.memory_space<vmem>>, %arg5: memref<512x128xbf16, #tpu.memory_space<vmem>>) attributes {dimension_semantics = [#tpu.dimension_semantics<parallel>, #tpu.dimension_semantics<parallel>], iteration_bounds = array<i64: 1, 1>, scalar_prefetch = 0 : i64, scratch_operands = 0 : i64, tpu.core_type = #tpu.core_type<tc>, window_params = [{transform_indices = @transform_0, window_bounds = array<i64: 512, 256>}, {transform_indices = @transform_1, window_bounds = array<i64: 256, 128>}, {transform_indices = @transform_2, window_bounds = array<i64: 1, 128>}, {transform_indices = @transform_3, window_bounds = array<i64: 512, 128>}]} {
    %c0 = arith.constant 0 : index
    %c0_0 = arith.constant 0 : index
    %0 = vector.load %arg2[%c0, %c0_0] : memref<512x256xbf16, #tpu.memory_space<vmem>>, vector<512x256xbf16>
    %c0_1 = arith.constant 0 : index
    %c0_2 = arith.constant 0 : index
    %1 = vector.load %arg3[%c0_1, %c0_2] : memref<256x128xbf16, #tpu.memory_space<vmem>>, vector<256x128xbf16>
    %cst = arith.constant dense<0.000000e+00> : vector<512x128xf32>
    %2 = tpu.matmul %0, %1, %cst {dimension_numbers = #tpu.dot_dimension_numbers<[1], [0], [0], [1], [0, 0, 1, 1], [], []>} : vector<512x256xbf16>, vector<256x128xbf16>, vector<512x128xf32> -> vector<512x128xf32>
    %c0_3 = arith.constant 0 : index
    %c0_4 = arith.constant 0 : index
    %3 = vector.load %arg4[%c0_3, %c0_4] : memref<1x128xf32, #tpu.memory_space<vmem>>, vector<1x128xf32>
    %4 = vector.broadcast %3 : vector<1x128xf32> to vector<512x128xf32>
    %5 = arith.addf %2, %4 : vector<512x128xf32>
    %cst_5 = arith.constant 0.000000e+00 : f32
    %6 = vector.broadcast %cst_5 : f32 to vector<512x128xf32>
    %7 = arith.maximumf %5, %6 : vector<512x128xf32>
    %8 = arith.truncf %7 : vector<512x128xf32> to vector<512x128xbf16>
    %c0_6 = arith.constant 0 : index
    %c0_7 = arith.constant 0 : index
    %9 = vector.load %arg5[%c0_6, %c0_7] : memref<512x128xbf16, #tpu.memory_space<vmem>>, vector<512x128xbf16>
    tpu.vector_store %arg5[%c0_6, %c0_7], %8 {strides = array<i32>} : memref<512x128xbf16, #tpu.memory_space<vmem>>, vector<512x128xbf16>,
    return
  }
  func.func @transform_0(%arg0: i32, %arg1: i32) -> (i32, i32) {
    %c0_i32 = arith.constant 0 : i32
    %c0_i32_0 = arith.constant 0 : i32
    return %arg0, %c0_i32 : i32, i32
  }
  func.func @transform_1(%arg0: i32, %arg1: i32) -> (i32, i32) {
    %c0_i32 = arith.constant 0 : i32
    %c0_i32_0 = arith.constant 0 : i32
    return %c0_i32, %arg1 : i32, i32
  }
  func.func @transform_2(%arg0: i32, %arg1: i32) -> (i32, i32) {
    %c0_i32 = arith.constant 0 : i32
    %c0_i32_0 = arith.constant 0 : i32
    return %c0_i32, %arg1 : i32, i32
  }
  func.func @transform_3(%arg0: i32, %arg1: i32) -> (i32, i32) {
    %c0_i32 = arith.constant 0 : i32
    return %arg0, %arg1 : i32, i32
  }
}

module attributes {stable_mosaic.version = 11 : i64} {
  func.func @_max_views_kernel(%arg0: i32, %arg1: i32, %arg2: memref<128x128xbf16, #tpu.memory_space<vmem>>, %arg3: memref<128x128xbf16, #tpu.memory_space<vmem>>, %arg4: memref<128x128xbf16, #tpu.memory_space<vmem>>, %arg5: memref<128x128xbf16, #tpu.memory_space<vmem>>, %arg6: memref<128x128xbf16, #tpu.memory_space<vmem>>, %arg7: memref<128x128xbf16, #tpu.memory_space<vmem>>, %arg8: memref<128x128xbf16, #tpu.memory_space<vmem>>, %arg9: memref<128x128xbf16, #tpu.memory_space<vmem>>, %arg10: memref<128x128xbf16, #tpu.memory_space<vmem>>, %arg11: memref<128x128xbf16, #tpu.memory_space<vmem>>) attributes {dimension_semantics = [#tpu.dimension_semantics<parallel>, #tpu.dimension_semantics<parallel>], iteration_bounds = array<i64: 1, 1>, scalar_prefetch = 0 : i64, scratch_operands = 0 : i64, tpu.core_type = #tpu.core_type<tc>, window_params = [{transform_indices = @transform_0, window_bounds = array<i64: 128, 128>}, {transform_indices = @transform_1, window_bounds = array<i64: 128, 128>}, {transform_indices = @transform_2, window_bounds = array<i64: 128, 128>}, {transform_indices = @transform_3, window_bounds = array<i64: 128, 128>}, {transform_indices = @transform_4, window_bounds = array<i64: 128, 128>}, {transform_indices = @transform_5, window_bounds = array<i64: 128, 128>}, {transform_indices = @transform_6, window_bounds = array<i64: 128, 128>}, {transform_indices = @transform_7, window_bounds = array<i64: 128, 128>}, {transform_indices = @transform_8, window_bounds = array<i64: 128, 128>}, {transform_indices = @transform_9, window_bounds = array<i64: 128, 128>}]} {
    %c0 = arith.constant 0 : index
    %c0_0 = arith.constant 0 : index
    %0 = vector.load %arg2[%c0, %c0_0] : memref<128x128xbf16, #tpu.memory_space<vmem>>, vector<128x128xbf16>
    %c0_1 = arith.constant 0 : index
    %c0_2 = arith.constant 0 : index
    %1 = vector.load %arg3[%c0_1, %c0_2] : memref<128x128xbf16, #tpu.memory_space<vmem>>, vector<128x128xbf16>
    %c0_3 = arith.constant 0 : index
    %c0_4 = arith.constant 0 : index
    %2 = vector.load %arg4[%c0_3, %c0_4] : memref<128x128xbf16, #tpu.memory_space<vmem>>, vector<128x128xbf16>
    %c0_5 = arith.constant 0 : index
    %c0_6 = arith.constant 0 : index
    %3 = vector.load %arg5[%c0_5, %c0_6] : memref<128x128xbf16, #tpu.memory_space<vmem>>, vector<128x128xbf16>
    %c0_7 = arith.constant 0 : index
    %c0_8 = arith.constant 0 : index
    %4 = vector.load %arg6[%c0_7, %c0_8] : memref<128x128xbf16, #tpu.memory_space<vmem>>, vector<128x128xbf16>
    %c0_9 = arith.constant 0 : index
    %c0_10 = arith.constant 0 : index
    %5 = vector.load %arg7[%c0_9, %c0_10] : memref<128x128xbf16, #tpu.memory_space<vmem>>, vector<128x128xbf16>
    %c0_11 = arith.constant 0 : index
    %c0_12 = arith.constant 0 : index
    %6 = vector.load %arg8[%c0_11, %c0_12] : memref<128x128xbf16, #tpu.memory_space<vmem>>, vector<128x128xbf16>
    %c0_13 = arith.constant 0 : index
    %c0_14 = arith.constant 0 : index
    %7 = vector.load %arg9[%c0_13, %c0_14] : memref<128x128xbf16, #tpu.memory_space<vmem>>, vector<128x128xbf16>
    %c0_15 = arith.constant 0 : index
    %c0_16 = arith.constant 0 : index
    %8 = vector.load %arg10[%c0_15, %c0_16] : memref<128x128xbf16, #tpu.memory_space<vmem>>, vector<128x128xbf16>
    %9 = arith.maximumf %0, %1 : vector<128x128xbf16>
    %10 = arith.maximumf %2, %3 : vector<128x128xbf16>
    %11 = arith.maximumf %4, %5 : vector<128x128xbf16>
    %12 = arith.maximumf %6, %7 : vector<128x128xbf16>
    %13 = arith.maximumf %9, %10 : vector<128x128xbf16>
    %14 = arith.maximumf %11, %12 : vector<128x128xbf16>
    %15 = arith.maximumf %13, %14 : vector<128x128xbf16>
    %16 = arith.maximumf %15, %8 : vector<128x128xbf16>
    %c0_17 = arith.constant 0 : index
    %c0_18 = arith.constant 0 : index
    %17 = vector.load %arg11[%c0_17, %c0_18] : memref<128x128xbf16, #tpu.memory_space<vmem>>, vector<128x128xbf16>
    tpu.vector_store %arg11[%c0_17, %c0_18], %16 {strides = array<i32>} : memref<128x128xbf16, #tpu.memory_space<vmem>>, vector<128x128xbf16>,
    return
  }
  func.func @transform_0(%arg0: i32, %arg1: i32) -> (i32, i32) {
    %c0_i32 = arith.constant 0 : i32
    return %arg0, %arg1 : i32, i32
  }
  func.func @transform_1(%arg0: i32, %arg1: i32) -> (i32, i32) {
    %c0_i32 = arith.constant 0 : i32
    return %arg0, %arg1 : i32, i32
  }
  func.func @transform_2(%arg0: i32, %arg1: i32) -> (i32, i32) {
    %c0_i32 = arith.constant 0 : i32
    return %arg0, %arg1 : i32, i32
  }
  func.func @transform_3(%arg0: i32, %arg1: i32) -> (i32, i32) {
    %c0_i32 = arith.constant 0 : i32
    return %arg0, %arg1 : i32, i32
  }
  func.func @transform_4(%arg0: i32, %arg1: i32) -> (i32, i32) {
    %c0_i32 = arith.constant 0 : i32
    return %arg0, %arg1 : i32, i32
  }
  func.func @transform_5(%arg0: i32, %arg1: i32) -> (i32, i32) {
    %c0_i32 = arith.constant 0 : i32
    return %arg0, %arg1 : i32, i32
  }
  func.func @transform_6(%arg0: i32, %arg1: i32) -> (i32, i32) {
    %c0_i32 = arith.constant 0 : i32
    return %arg0, %arg1 : i32, i32
  }
  func.func @transform_7(%arg0: i32, %arg1: i32) -> (i32, i32) {
    %c0_i32 = arith.constant 0 : i32
    return %arg0, %arg1 : i32, i32
  }
  func.func @transform_8(%arg0: i32, %arg1: i32) -> (i32, i32) {
    %c0_i32 = arith.constant 0 : i32
    return %arg0, %arg1 : i32, i32
  }
  func.func @transform_9(%arg0: i32, %arg1: i32) -> (i32, i32) {
    %c0_i32 = arith.constant 0 : i32
    return %arg0, %arg1 : i32, i32
  }
}

module attributes {stable_mosaic.version = 11 : i64} {
  func.func @_mm_bn_res_kernel(%arg0: i32, %arg1: i32, %arg2: i32, %arg3: memref<128x384xbf16, #tpu.memory_space<vmem>>, %arg4: memref<384x128xbf16, #tpu.memory_space<vmem>>, %arg5: memref<1x128xf32, #tpu.memory_space<vmem>>, %arg6: memref<128x128xbf16, #tpu.memory_space<vmem>>, %arg7: memref<128x128xbf16, #tpu.memory_space<vmem>>, %arg8: memref<128x128xf32, #tpu.memory_space<vmem>>) attributes {dimension_semantics = [#tpu.dimension_semantics<parallel>, #tpu.dimension_semantics<parallel>, #tpu.dimension_semantics<arbitrary>], iteration_bounds = array<i64: 1, 1, 3>, scalar_prefetch = 0 : i64, scratch_operands = 1 : i64, tpu.core_type = #tpu.core_type<tc>, window_params = [{transform_indices = @transform_0, window_bounds = array<i64: 128, 384>}, {transform_indices = @transform_1, window_bounds = array<i64: 384, 128>}, {transform_indices = @transform_2, window_bounds = array<i64: 1, 128>}, {transform_indices = @transform_3, window_bounds = array<i64: 128, 128>}, {transform_indices = @transform_4, window_bounds = array<i64: 128, 128>}]} {
    %c0_i32 = arith.constant 0 : i32
    %0 = arith.cmpi eq, %arg2, %c0_i32 : i32
    %1 = arith.extui %0 : i1 to i32
    %c0_i32_0 = arith.constant 0 : i32
    %2 = arith.cmpi ne, %1, %c0_i32_0 : i32
    scf.if %2 {
      %cst_9 = arith.constant 0.000000e+00 : f32
      %12 = vector.broadcast %cst_9 : f32 to vector<128x128xf32>
      %c0_10 = arith.constant 0 : index
      %c0_11 = arith.constant 0 : index
      %13 = vector.load %arg8[%c0_10, %c0_11] : memref<128x128xf32, #tpu.memory_space<vmem>>, vector<128x128xf32>
      tpu.vector_store %arg8[%c0_10, %c0_11], %12 {strides = array<i32>} : memref<128x128xf32, #tpu.memory_space<vmem>>, vector<128x128xf32>,
    } else {
    }
    %c0 = arith.constant 0 : index
    %c0_1 = arith.constant 0 : index
    %3 = vector.load %arg8[%c0, %c0_1] : memref<128x128xf32, #tpu.memory_space<vmem>>, vector<128x128xf32>
    %c0_2 = arith.constant 0 : index
    %c0_3 = arith.constant 0 : index
    %4 = vector.load %arg3[%c0_2, %c0_3] : memref<128x384xbf16, #tpu.memory_space<vmem>>, vector<128x384xbf16>
    %c0_4 = arith.constant 0 : index
    %c0_5 = arith.constant 0 : index
    %5 = vector.load %arg4[%c0_4, %c0_5] : memref<384x128xbf16, #tpu.memory_space<vmem>>, vector<384x128xbf16>
    %cst = arith.constant dense<0.000000e+00> : vector<128x128xf32>
    %6 = tpu.matmul %4, %5, %cst {dimension_numbers = #tpu.dot_dimension_numbers<[1], [0], [0], [1], [0, 0, 1, 1], [], []>} : vector<128x384xbf16>, vector<384x128xbf16>, vector<128x128xf32> -> vector<128x128xf32>
    %7 = arith.addf %3, %6 : vector<128x128xf32>
    %c0_6 = arith.constant 0 : index
    %c0_7 = arith.constant 0 : index
    %8 = vector.load %arg8[%c0_6, %c0_7] : memref<128x128xf32, #tpu.memory_space<vmem>>, vector<128x128xf32>
    tpu.vector_store %arg8[%c0_6, %c0_7], %7 {strides = array<i32>} : memref<128x128xf32, #tpu.memory_space<vmem>>, vector<128x128xf32>,
    %c2_i32 = arith.constant 2 : i32
    %9 = arith.cmpi eq, %arg2, %c2_i32 : i32
    %10 = arith.extui %9 : i1 to i32
    %c0_i32_8 = arith.constant 0 : i32
    %11 = arith.cmpi ne, %10, %c0_i32_8 : i32
    scf.if %11 {
      %c0_9 = arith.constant 0 : index
      %c0_10 = arith.constant 0 : index
      %12 = vector.load %arg8[%c0_9, %c0_10] : memref<128x128xf32, #tpu.memory_space<vmem>>, vector<128x128xf32>
      %c0_11 = arith.constant 0 : index
      %c0_12 = arith.constant 0 : index
      %13 = vector.load %arg5[%c0_11, %c0_12] : memref<1x128xf32, #tpu.memory_space<vmem>>, vector<1x128xf32>
      %14 = vector.broadcast %13 : vector<1x128xf32> to vector<128x128xf32>
      %15 = arith.addf %12, %14 : vector<128x128xf32>
      %c0_13 = arith.constant 0 : index
      %c0_14 = arith.constant 0 : index
      %16 = vector.load %arg6[%c0_13, %c0_14] : memref<128x128xbf16, #tpu.memory_space<vmem>>, vector<128x128xbf16>
      %17 = arith.extf %16 : vector<128x128xbf16> to vector<128x128xf32>
      %18 = arith.addf %15, %17 : vector<128x128xf32>
      %cst_15 = arith.constant 0.000000e+00 : f32
      %19 = vector.broadcast %cst_15 : f32 to vector<128x128xf32>
      %20 = arith.maximumf %18, %19 : vector<128x128xf32>
      %21 = arith.truncf %20 : vector<128x128xf32> to vector<128x128xbf16>
      %c0_16 = arith.constant 0 : index
      %c0_17 = arith.constant 0 : index
      %22 = vector.load %arg7[%c0_16, %c0_17] : memref<128x128xbf16, #tpu.memory_space<vmem>>, vector<128x128xbf16>
      tpu.vector_store %arg7[%c0_16, %c0_17], %21 {strides = array<i32>} : memref<128x128xbf16, #tpu.memory_space<vmem>>, vector<128x128xbf16>,
    } else {
    }
    return
  }
  func.func @transform_0(%arg0: i32, %arg1: i32, %arg2: i32) -> (i32, i32) {
    %c0_i32 = arith.constant 0 : i32
    return %arg0, %arg2 : i32, i32
  }
  func.func @transform_1(%arg0: i32, %arg1: i32, %arg2: i32) -> (i32, i32) {
    %c0_i32 = arith.constant 0 : i32
    return %arg2, %arg1 : i32, i32
  }
  func.func @transform_2(%arg0: i32, %arg1: i32, %arg2: i32) -> (i32, i32) {
    %c0_i32 = arith.constant 0 : i32
    %c0_i32_0 = arith.constant 0 : i32
    return %c0_i32, %arg1 : i32, i32
  }
  func.func @transform_3(%arg0: i32, %arg1: i32, %arg2: i32) -> (i32, i32) {
    %c0_i32 = arith.constant 0 : i32
    return %arg0, %arg1 : i32, i32
  }
  func.func @transform_4(%arg0: i32, %arg1: i32, %arg2: i32) -> (i32, i32) {
    %c0_i32 = arith.constant 0 : i32
    return %arg0, %arg1 : i32, i32
  }
}

module attributes {stable_mosaic.version = 11 : i64} {
  func.func @_mm_bn_kernel(%arg0: i32, %arg1: i32, %arg2: i32, %arg3: memref<128x384xbf16, #tpu.memory_space<vmem>>, %arg4: memref<384x128xbf16, #tpu.memory_space<vmem>>, %arg5: memref<1x128xf32, #tpu.memory_space<vmem>>, %arg6: memref<128x128xbf16, #tpu.memory_space<vmem>>, %arg7: memref<128x128xf32, #tpu.memory_space<vmem>>) attributes {dimension_semantics = [#tpu.dimension_semantics<parallel>, #tpu.dimension_semantics<parallel>, #tpu.dimension_semantics<arbitrary>], iteration_bounds = array<i64: 1, 1, 3>, scalar_prefetch = 0 : i64, scratch_operands = 1 : i64, tpu.core_type = #tpu.core_type<tc>, window_params = [{transform_indices = @transform_0, window_bounds = array<i64: 128, 384>}, {transform_indices = @transform_1, window_bounds = array<i64: 384, 128>}, {transform_indices = @transform_2, window_bounds = array<i64: 1, 128>}, {transform_indices = @transform_3, window_bounds = array<i64: 128, 128>}]} {
    %c0_i32 = arith.constant 0 : i32
    %0 = arith.cmpi eq, %arg2, %c0_i32 : i32
    %1 = arith.extui %0 : i1 to i32
    %c0_i32_0 = arith.constant 0 : i32
    %2 = arith.cmpi ne, %1, %c0_i32_0 : i32
    scf.if %2 {
      %cst_9 = arith.constant 0.000000e+00 : f32
      %12 = vector.broadcast %cst_9 : f32 to vector<128x128xf32>
      %c0_10 = arith.constant 0 : index
      %c0_11 = arith.constant 0 : index
      %13 = vector.load %arg7[%c0_10, %c0_11] : memref<128x128xf32, #tpu.memory_space<vmem>>, vector<128x128xf32>
      tpu.vector_store %arg7[%c0_10, %c0_11], %12 {strides = array<i32>} : memref<128x128xf32, #tpu.memory_space<vmem>>, vector<128x128xf32>,
    } else {
    }
    %c0 = arith.constant 0 : index
    %c0_1 = arith.constant 0 : index
    %3 = vector.load %arg7[%c0, %c0_1] : memref<128x128xf32, #tpu.memory_space<vmem>>, vector<128x128xf32>
    %c0_2 = arith.constant 0 : index
    %c0_3 = arith.constant 0 : index
    %4 = vector.load %arg3[%c0_2, %c0_3] : memref<128x384xbf16, #tpu.memory_space<vmem>>, vector<128x384xbf16>
    %c0_4 = arith.constant 0 : index
    %c0_5 = arith.constant 0 : index
    %5 = vector.load %arg4[%c0_4, %c0_5] : memref<384x128xbf16, #tpu.memory_space<vmem>>, vector<384x128xbf16>
    %cst = arith.constant dense<0.000000e+00> : vector<128x128xf32>
    %6 = tpu.matmul %4, %5, %cst {dimension_numbers = #tpu.dot_dimension_numbers<[1], [0], [0], [1], [0, 0, 1, 1], [], []>} : vector<128x384xbf16>, vector<384x128xbf16>, vector<128x128xf32> -> vector<128x128xf32>
    %7 = arith.addf %3, %6 : vector<128x128xf32>
    %c0_6 = arith.constant 0 : index
    %c0_7 = arith.constant 0 : index
    %8 = vector.load %arg7[%c0_6, %c0_7] : memref<128x128xf32, #tpu.memory_space<vmem>>, vector<128x128xf32>
    tpu.vector_store %arg7[%c0_6, %c0_7], %7 {strides = array<i32>} : memref<128x128xf32, #tpu.memory_space<vmem>>, vector<128x128xf32>,
    %c2_i32 = arith.constant 2 : i32
    %9 = arith.cmpi eq, %arg2, %c2_i32 : i32
    %10 = arith.extui %9 : i1 to i32
    %c0_i32_8 = arith.constant 0 : i32
    %11 = arith.cmpi ne, %10, %c0_i32_8 : i32
    scf.if %11 {
      %c0_9 = arith.constant 0 : index
      %c0_10 = arith.constant 0 : index
      %12 = vector.load %arg7[%c0_9, %c0_10] : memref<128x128xf32, #tpu.memory_space<vmem>>, vector<128x128xf32>
      %c0_11 = arith.constant 0 : index
      %c0_12 = arith.constant 0 : index
      %13 = vector.load %arg5[%c0_11, %c0_12] : memref<1x128xf32, #tpu.memory_space<vmem>>, vector<1x128xf32>
      %14 = vector.broadcast %13 : vector<1x128xf32> to vector<128x128xf32>
      %15 = arith.addf %12, %14 : vector<128x128xf32>
      %cst_13 = arith.constant 0.000000e+00 : f32
      %16 = vector.broadcast %cst_13 : f32 to vector<128x128xf32>
      %17 = arith.maximumf %15, %16 : vector<128x128xf32>
      %18 = arith.truncf %17 : vector<128x128xf32> to vector<128x128xbf16>
      %c0_14 = arith.constant 0 : index
      %c0_15 = arith.constant 0 : index
      %19 = vector.load %arg6[%c0_14, %c0_15] : memref<128x128xbf16, #tpu.memory_space<vmem>>, vector<128x128xbf16>
      tpu.vector_store %arg6[%c0_14, %c0_15], %18 {strides = array<i32>} : memref<128x128xbf16, #tpu.memory_space<vmem>>, vector<128x128xbf16>,
    } else {
    }
    return
  }
  func.func @transform_0(%arg0: i32, %arg1: i32, %arg2: i32) -> (i32, i32) {
    %c0_i32 = arith.constant 0 : i32
    return %arg0, %arg2 : i32, i32
  }
  func.func @transform_1(%arg0: i32, %arg1: i32, %arg2: i32) -> (i32, i32) {
    %c0_i32 = arith.constant 0 : i32
    return %arg2, %arg1 : i32, i32
  }
  func.func @transform_2(%arg0: i32, %arg1: i32, %arg2: i32) -> (i32, i32) {
    %c0_i32 = arith.constant 0 : i32
    %c0_i32_0 = arith.constant 0 : i32
    return %c0_i32, %arg1 : i32, i32
  }
  func.func @transform_3(%arg0: i32, %arg1: i32, %arg2: i32) -> (i32, i32) {
    %c0_i32 = arith.constant 0 : i32
    return %arg0, %arg1 : i32, i32
  }
}

module attributes {stable_mosaic.version = 11 : i64} {
  func.func @_mm_bn_kernel(%arg0: i32, %arg1: i32, %arg2: i32, %arg3: memref<32x384xbf16, #tpu.memory_space<vmem>>, %arg4: memref<384x128xbf16, #tpu.memory_space<vmem>>, %arg5: memref<1x128xf32, #tpu.memory_space<vmem>>, %arg6: memref<32x128xbf16, #tpu.memory_space<vmem>>, %arg7: memref<32x128xf32, #tpu.memory_space<vmem>>) attributes {dimension_semantics = [#tpu.dimension_semantics<parallel>, #tpu.dimension_semantics<parallel>, #tpu.dimension_semantics<arbitrary>], iteration_bounds = array<i64: 1, 1, 3>, scalar_prefetch = 0 : i64, scratch_operands = 1 : i64, tpu.core_type = #tpu.core_type<tc>, window_params = [{transform_indices = @transform_0, window_bounds = array<i64: 32, 384>}, {transform_indices = @transform_1, window_bounds = array<i64: 384, 128>}, {transform_indices = @transform_2, window_bounds = array<i64: 1, 128>}, {transform_indices = @transform_3, window_bounds = array<i64: 32, 128>}]} {
    %c0_i32 = arith.constant 0 : i32
    %0 = arith.cmpi eq, %arg2, %c0_i32 : i32
    %1 = arith.extui %0 : i1 to i32
    %c0_i32_0 = arith.constant 0 : i32
    %2 = arith.cmpi ne, %1, %c0_i32_0 : i32
    scf.if %2 {
      %cst_9 = arith.constant 0.000000e+00 : f32
      %12 = vector.broadcast %cst_9 : f32 to vector<32x128xf32>
      %c0_10 = arith.constant 0 : index
      %c0_11 = arith.constant 0 : index
      %13 = vector.load %arg7[%c0_10, %c0_11] : memref<32x128xf32, #tpu.memory_space<vmem>>, vector<32x128xf32>
      tpu.vector_store %arg7[%c0_10, %c0_11], %12 {strides = array<i32>} : memref<32x128xf32, #tpu.memory_space<vmem>>, vector<32x128xf32>,
    } else {
    }
    %c0 = arith.constant 0 : index
    %c0_1 = arith.constant 0 : index
    %3 = vector.load %arg7[%c0, %c0_1] : memref<32x128xf32, #tpu.memory_space<vmem>>, vector<32x128xf32>
    %c0_2 = arith.constant 0 : index
    %c0_3 = arith.constant 0 : index
    %4 = vector.load %arg3[%c0_2, %c0_3] : memref<32x384xbf16, #tpu.memory_space<vmem>>, vector<32x384xbf16>
    %c0_4 = arith.constant 0 : index
    %c0_5 = arith.constant 0 : index
    %5 = vector.load %arg4[%c0_4, %c0_5] : memref<384x128xbf16, #tpu.memory_space<vmem>>, vector<384x128xbf16>
    %cst = arith.constant dense<0.000000e+00> : vector<32x128xf32>
    %6 = tpu.matmul %4, %5, %cst {dimension_numbers = #tpu.dot_dimension_numbers<[1], [0], [0], [1], [0, 0, 1, 1], [], []>} : vector<32x384xbf16>, vector<384x128xbf16>, vector<32x128xf32> -> vector<32x128xf32>
    %7 = arith.addf %3, %6 : vector<32x128xf32>
    %c0_6 = arith.constant 0 : index
    %c0_7 = arith.constant 0 : index
    %8 = vector.load %arg7[%c0_6, %c0_7] : memref<32x128xf32, #tpu.memory_space<vmem>>, vector<32x128xf32>
    tpu.vector_store %arg7[%c0_6, %c0_7], %7 {strides = array<i32>} : memref<32x128xf32, #tpu.memory_space<vmem>>, vector<32x128xf32>,
    %c2_i32 = arith.constant 2 : i32
    %9 = arith.cmpi eq, %arg2, %c2_i32 : i32
    %10 = arith.extui %9 : i1 to i32
    %c0_i32_8 = arith.constant 0 : i32
    %11 = arith.cmpi ne, %10, %c0_i32_8 : i32
    scf.if %11 {
      %c0_9 = arith.constant 0 : index
      %c0_10 = arith.constant 0 : index
      %12 = vector.load %arg7[%c0_9, %c0_10] : memref<32x128xf32, #tpu.memory_space<vmem>>, vector<32x128xf32>
      %c0_11 = arith.constant 0 : index
      %c0_12 = arith.constant 0 : index
      %13 = vector.load %arg5[%c0_11, %c0_12] : memref<1x128xf32, #tpu.memory_space<vmem>>, vector<1x128xf32>
      %14 = vector.broadcast %13 : vector<1x128xf32> to vector<32x128xf32>
      %15 = arith.addf %12, %14 : vector<32x128xf32>
      %cst_13 = arith.constant 0.000000e+00 : f32
      %16 = vector.broadcast %cst_13 : f32 to vector<32x128xf32>
      %17 = arith.maximumf %15, %16 : vector<32x128xf32>
      %18 = arith.truncf %17 : vector<32x128xf32> to vector<32x128xbf16>
      %c0_14 = arith.constant 0 : index
      %c0_15 = arith.constant 0 : index
      %19 = vector.load %arg6[%c0_14, %c0_15] : memref<32x128xbf16, #tpu.memory_space<vmem>>, vector<32x128xbf16>
      tpu.vector_store %arg6[%c0_14, %c0_15], %18 {strides = array<i32>} : memref<32x128xbf16, #tpu.memory_space<vmem>>, vector<32x128xbf16>,
    } else {
    }
    return
  }
  func.func @transform_0(%arg0: i32, %arg1: i32, %arg2: i32) -> (i32, i32) {
    %c0_i32 = arith.constant 0 : i32
    return %arg0, %arg2 : i32, i32
  }
  func.func @transform_1(%arg0: i32, %arg1: i32, %arg2: i32) -> (i32, i32) {
    %c0_i32 = arith.constant 0 : i32
    return %arg2, %arg1 : i32, i32
  }
  func.func @transform_2(%arg0: i32, %arg1: i32, %arg2: i32) -> (i32, i32) {
    %c0_i32 = arith.constant 0 : i32
    %c0_i32_0 = arith.constant 0 : i32
    return %c0_i32, %arg1 : i32, i32
  }
  func.func @transform_3(%arg0: i32, %arg1: i32, %arg2: i32) -> (i32, i32) {
    %c0_i32 = arith.constant 0 : i32
    return %arg0, %arg1 : i32, i32
  }
}

module attributes {stable_mosaic.version = 11 : i64} {
  func.func @_mm_bn_single_kernel(%arg0: i32, %arg1: i32, %arg2: memref<32x128xbf16, #tpu.memory_space<vmem>>, %arg3: memref<128x128xbf16, #tpu.memory_space<vmem>>, %arg4: memref<1x128xf32, #tpu.memory_space<vmem>>, %arg5: memref<32x128xbf16, #tpu.memory_space<vmem>>) attributes {dimension_semantics = [#tpu.dimension_semantics<parallel>, #tpu.dimension_semantics<parallel>], iteration_bounds = array<i64: 1, 1>, scalar_prefetch = 0 : i64, scratch_operands = 0 : i64, tpu.core_type = #tpu.core_type<tc>, window_params = [{transform_indices = @transform_0, window_bounds = array<i64: 32, 128>}, {transform_indices = @transform_1, window_bounds = array<i64: 128, 128>}, {transform_indices = @transform_2, window_bounds = array<i64: 1, 128>}, {transform_indices = @transform_3, window_bounds = array<i64: 32, 128>}]} {
    %c0 = arith.constant 0 : index
    %c0_0 = arith.constant 0 : index
    %0 = vector.load %arg2[%c0, %c0_0] : memref<32x128xbf16, #tpu.memory_space<vmem>>, vector<32x128xbf16>
    %c0_1 = arith.constant 0 : index
    %c0_2 = arith.constant 0 : index
    %1 = vector.load %arg3[%c0_1, %c0_2] : memref<128x128xbf16, #tpu.memory_space<vmem>>, vector<128x128xbf16>
    %cst = arith.constant dense<0.000000e+00> : vector<32x128xf32>
    %2 = tpu.matmul %0, %1, %cst {dimension_numbers = #tpu.dot_dimension_numbers<[1], [0], [0], [1], [0, 0, 1, 1], [], []>} : vector<32x128xbf16>, vector<128x128xbf16>, vector<32x128xf32> -> vector<32x128xf32>
    %c0_3 = arith.constant 0 : index
    %c0_4 = arith.constant 0 : index
    %3 = vector.load %arg4[%c0_3, %c0_4] : memref<1x128xf32, #tpu.memory_space<vmem>>, vector<1x128xf32>
    %4 = vector.broadcast %3 : vector<1x128xf32> to vector<32x128xf32>
    %5 = arith.addf %2, %4 : vector<32x128xf32>
    %6 = arith.truncf %5 : vector<32x128xf32> to vector<32x128xbf16>
    %c0_5 = arith.constant 0 : index
    %c0_6 = arith.constant 0 : index
    %7 = vector.load %arg5[%c0_5, %c0_6] : memref<32x128xbf16, #tpu.memory_space<vmem>>, vector<32x128xbf16>
    tpu.vector_store %arg5[%c0_5, %c0_6], %6 {strides = array<i32>} : memref<32x128xbf16, #tpu.memory_space<vmem>>, vector<32x128xbf16>,
    return
  }
  func.func @transform_0(%arg0: i32, %arg1: i32) -> (i32, i32) {
    %c0_i32 = arith.constant 0 : i32
    %c0_i32_0 = arith.constant 0 : i32
    return %arg0, %c0_i32 : i32, i32
  }
  func.func @transform_1(%arg0: i32, %arg1: i32) -> (i32, i32) {
    %c0_i32 = arith.constant 0 : i32
    %c0_i32_0 = arith.constant 0 : i32
    return %c0_i32, %arg1 : i32, i32
  }
  func.func @transform_2(%arg0: i32, %arg1: i32) -> (i32, i32) {
    %c0_i32 = arith.constant 0 : i32
    %c0_i32_0 = arith.constant 0 : i32
    return %c0_i32, %arg1 : i32, i32
  }
  func.func @transform_3(%arg0: i32, %arg1: i32) -> (i32, i32) {
    %c0_i32 = arith.constant 0 : i32
    return %arg0, %arg1 : i32, i32
  }
}

module attributes {stable_mosaic.version = 11 : i64} {
  func.func @_mm_bn_res_kernel(%arg0: i32, %arg1: i32, %arg2: i32, %arg3: memref<32x384xbf16, #tpu.memory_space<vmem>>, %arg4: memref<384x128xbf16, #tpu.memory_space<vmem>>, %arg5: memref<1x128xf32, #tpu.memory_space<vmem>>, %arg6: memref<32x128xbf16, #tpu.memory_space<vmem>>, %arg7: memref<32x128xbf16, #tpu.memory_space<vmem>>, %arg8: memref<32x128xf32, #tpu.memory_space<vmem>>) attributes {dimension_semantics = [#tpu.dimension_semantics<parallel>, #tpu.dimension_semantics<parallel>, #tpu.dimension_semantics<arbitrary>], iteration_bounds = array<i64: 1, 1, 3>, scalar_prefetch = 0 : i64, scratch_operands = 1 : i64, tpu.core_type = #tpu.core_type<tc>, window_params = [{transform_indices = @transform_0, window_bounds = array<i64: 32, 384>}, {transform_indices = @transform_1, window_bounds = array<i64: 384, 128>}, {transform_indices = @transform_2, window_bounds = array<i64: 1, 128>}, {transform_indices = @transform_3, window_bounds = array<i64: 32, 128>}, {transform_indices = @transform_4, window_bounds = array<i64: 32, 128>}]} {
    %c0_i32 = arith.constant 0 : i32
    %0 = arith.cmpi eq, %arg2, %c0_i32 : i32
    %1 = arith.extui %0 : i1 to i32
    %c0_i32_0 = arith.constant 0 : i32
    %2 = arith.cmpi ne, %1, %c0_i32_0 : i32
    scf.if %2 {
      %cst_9 = arith.constant 0.000000e+00 : f32
      %12 = vector.broadcast %cst_9 : f32 to vector<32x128xf32>
      %c0_10 = arith.constant 0 : index
      %c0_11 = arith.constant 0 : index
      %13 = vector.load %arg8[%c0_10, %c0_11] : memref<32x128xf32, #tpu.memory_space<vmem>>, vector<32x128xf32>
      tpu.vector_store %arg8[%c0_10, %c0_11], %12 {strides = array<i32>} : memref<32x128xf32, #tpu.memory_space<vmem>>, vector<32x128xf32>,
    } else {
    }
    %c0 = arith.constant 0 : index
    %c0_1 = arith.constant 0 : index
    %3 = vector.load %arg8[%c0, %c0_1] : memref<32x128xf32, #tpu.memory_space<vmem>>, vector<32x128xf32>
    %c0_2 = arith.constant 0 : index
    %c0_3 = arith.constant 0 : index
    %4 = vector.load %arg3[%c0_2, %c0_3] : memref<32x384xbf16, #tpu.memory_space<vmem>>, vector<32x384xbf16>
    %c0_4 = arith.constant 0 : index
    %c0_5 = arith.constant 0 : index
    %5 = vector.load %arg4[%c0_4, %c0_5] : memref<384x128xbf16, #tpu.memory_space<vmem>>, vector<384x128xbf16>
    %cst = arith.constant dense<0.000000e+00> : vector<32x128xf32>
    %6 = tpu.matmul %4, %5, %cst {dimension_numbers = #tpu.dot_dimension_numbers<[1], [0], [0], [1], [0, 0, 1, 1], [], []>} : vector<32x384xbf16>, vector<384x128xbf16>, vector<32x128xf32> -> vector<32x128xf32>
    %7 = arith.addf %3, %6 : vector<32x128xf32>
    %c0_6 = arith.constant 0 : index
    %c0_7 = arith.constant 0 : index
    %8 = vector.load %arg8[%c0_6, %c0_7] : memref<32x128xf32, #tpu.memory_space<vmem>>, vector<32x128xf32>
    tpu.vector_store %arg8[%c0_6, %c0_7], %7 {strides = array<i32>} : memref<32x128xf32, #tpu.memory_space<vmem>>, vector<32x128xf32>,
    %c2_i32 = arith.constant 2 : i32
    %9 = arith.cmpi eq, %arg2, %c2_i32 : i32
    %10 = arith.extui %9 : i1 to i32
    %c0_i32_8 = arith.constant 0 : i32
    %11 = arith.cmpi ne, %10, %c0_i32_8 : i32
    scf.if %11 {
      %c0_9 = arith.constant 0 : index
      %c0_10 = arith.constant 0 : index
      %12 = vector.load %arg8[%c0_9, %c0_10] : memref<32x128xf32, #tpu.memory_space<vmem>>, vector<32x128xf32>
      %c0_11 = arith.constant 0 : index
      %c0_12 = arith.constant 0 : index
      %13 = vector.load %arg5[%c0_11, %c0_12] : memref<1x128xf32, #tpu.memory_space<vmem>>, vector<1x128xf32>
      %14 = vector.broadcast %13 : vector<1x128xf32> to vector<32x128xf32>
      %15 = arith.addf %12, %14 : vector<32x128xf32>
      %c0_13 = arith.constant 0 : index
      %c0_14 = arith.constant 0 : index
      %16 = vector.load %arg6[%c0_13, %c0_14] : memref<32x128xbf16, #tpu.memory_space<vmem>>, vector<32x128xbf16>
      %17 = arith.extf %16 : vector<32x128xbf16> to vector<32x128xf32>
      %18 = arith.addf %15, %17 : vector<32x128xf32>
      %cst_15 = arith.constant 0.000000e+00 : f32
      %19 = vector.broadcast %cst_15 : f32 to vector<32x128xf32>
      %20 = arith.maximumf %18, %19 : vector<32x128xf32>
      %21 = arith.truncf %20 : vector<32x128xf32> to vector<32x128xbf16>
      %c0_16 = arith.constant 0 : index
      %c0_17 = arith.constant 0 : index
      %22 = vector.load %arg7[%c0_16, %c0_17] : memref<32x128xbf16, #tpu.memory_space<vmem>>, vector<32x128xbf16>
      tpu.vector_store %arg7[%c0_16, %c0_17], %21 {strides = array<i32>} : memref<32x128xbf16, #tpu.memory_space<vmem>>, vector<32x128xbf16>,
    } else {
    }
    return
  }
  func.func @transform_0(%arg0: i32, %arg1: i32, %arg2: i32) -> (i32, i32) {
    %c0_i32 = arith.constant 0 : i32
    return %arg0, %arg2 : i32, i32
  }
  func.func @transform_1(%arg0: i32, %arg1: i32, %arg2: i32) -> (i32, i32) {
    %c0_i32 = arith.constant 0 : i32
    return %arg2, %arg1 : i32, i32
  }
  func.func @transform_2(%arg0: i32, %arg1: i32, %arg2: i32) -> (i32, i32) {
    %c0_i32 = arith.constant 0 : i32
    %c0_i32_0 = arith.constant 0 : i32
    return %c0_i32, %arg1 : i32, i32
  }
  func.func @transform_3(%arg0: i32, %arg1: i32, %arg2: i32) -> (i32, i32) {
    %c0_i32 = arith.constant 0 : i32
    return %arg0, %arg1 : i32, i32
  }
  func.func @transform_4(%arg0: i32, %arg1: i32, %arg2: i32) -> (i32, i32) {
    %c0_i32 = arith.constant 0 : i32
    return %arg0, %arg1 : i32, i32
  }
}

module attributes {stable_mosaic.version = 11 : i64} {
  func.func @_mm_bn_kernel(%arg0: i32, %arg1: i32, %arg2: i32, %arg3: memref<8x384xbf16, #tpu.memory_space<vmem>>, %arg4: memref<384x256xbf16, #tpu.memory_space<vmem>>, %arg5: memref<1x256xf32, #tpu.memory_space<vmem>>, %arg6: memref<8x256xbf16, #tpu.memory_space<vmem>>, %arg7: memref<8x256xf32, #tpu.memory_space<vmem>>) attributes {dimension_semantics = [#tpu.dimension_semantics<parallel>, #tpu.dimension_semantics<parallel>, #tpu.dimension_semantics<arbitrary>], iteration_bounds = array<i64: 1, 1, 3>, scalar_prefetch = 0 : i64, scratch_operands = 1 : i64, tpu.core_type = #tpu.core_type<tc>, window_params = [{transform_indices = @transform_0, window_bounds = array<i64: 8, 384>}, {transform_indices = @transform_1, window_bounds = array<i64: 384, 256>}, {transform_indices = @transform_2, window_bounds = array<i64: 1, 256>}, {transform_indices = @transform_3, window_bounds = array<i64: 8, 256>}]} {
    %c0_i32 = arith.constant 0 : i32
    %0 = arith.cmpi eq, %arg2, %c0_i32 : i32
    %1 = arith.extui %0 : i1 to i32
    %c0_i32_0 = arith.constant 0 : i32
    %2 = arith.cmpi ne, %1, %c0_i32_0 : i32
    scf.if %2 {
      %cst_9 = arith.constant 0.000000e+00 : f32
      %12 = vector.broadcast %cst_9 : f32 to vector<8x256xf32>
      %c0_10 = arith.constant 0 : index
      %c0_11 = arith.constant 0 : index
      %13 = vector.load %arg7[%c0_10, %c0_11] : memref<8x256xf32, #tpu.memory_space<vmem>>, vector<8x256xf32>
      tpu.vector_store %arg7[%c0_10, %c0_11], %12 {strides = array<i32>} : memref<8x256xf32, #tpu.memory_space<vmem>>, vector<8x256xf32>,
    } else {
    }
    %c0 = arith.constant 0 : index
    %c0_1 = arith.constant 0 : index
    %3 = vector.load %arg7[%c0, %c0_1] : memref<8x256xf32, #tpu.memory_space<vmem>>, vector<8x256xf32>
    %c0_2 = arith.constant 0 : index
    %c0_3 = arith.constant 0 : index
    %4 = vector.load %arg3[%c0_2, %c0_3] : memref<8x384xbf16, #tpu.memory_space<vmem>>, vector<8x384xbf16>
    %c0_4 = arith.constant 0 : index
    %c0_5 = arith.constant 0 : index
    %5 = vector.load %arg4[%c0_4, %c0_5] : memref<384x256xbf16, #tpu.memory_space<vmem>>, vector<384x256xbf16>
    %cst = arith.constant dense<0.000000e+00> : vector<8x256xf32>
    %6 = tpu.matmul %4, %5, %cst {dimension_numbers = #tpu.dot_dimension_numbers<[1], [0], [0], [1], [0, 0, 1, 1], [], []>} : vector<8x384xbf16>, vector<384x256xbf16>, vector<8x256xf32> -> vector<8x256xf32>
    %7 = arith.addf %3, %6 : vector<8x256xf32>
    %c0_6 = arith.constant 0 : index
    %c0_7 = arith.constant 0 : index
    %8 = vector.load %arg7[%c0_6, %c0_7] : memref<8x256xf32, #tpu.memory_space<vmem>>, vector<8x256xf32>
    tpu.vector_store %arg7[%c0_6, %c0_7], %7 {strides = array<i32>} : memref<8x256xf32, #tpu.memory_space<vmem>>, vector<8x256xf32>,
    %c2_i32 = arith.constant 2 : i32
    %9 = arith.cmpi eq, %arg2, %c2_i32 : i32
    %10 = arith.extui %9 : i1 to i32
    %c0_i32_8 = arith.constant 0 : i32
    %11 = arith.cmpi ne, %10, %c0_i32_8 : i32
    scf.if %11 {
      %c0_9 = arith.constant 0 : index
      %c0_10 = arith.constant 0 : index
      %12 = vector.load %arg7[%c0_9, %c0_10] : memref<8x256xf32, #tpu.memory_space<vmem>>, vector<8x256xf32>
      %c0_11 = arith.constant 0 : index
      %c0_12 = arith.constant 0 : index
      %13 = vector.load %arg5[%c0_11, %c0_12] : memref<1x256xf32, #tpu.memory_space<vmem>>, vector<1x256xf32>
      %14 = vector.broadcast %13 : vector<1x256xf32> to vector<8x256xf32>
      %15 = arith.addf %12, %14 : vector<8x256xf32>
      %cst_13 = arith.constant 0.000000e+00 : f32
      %16 = vector.broadcast %cst_13 : f32 to vector<8x256xf32>
      %17 = arith.maximumf %15, %16 : vector<8x256xf32>
      %18 = arith.truncf %17 : vector<8x256xf32> to vector<8x256xbf16>
      %c0_14 = arith.constant 0 : index
      %c0_15 = arith.constant 0 : index
      %19 = vector.load %arg6[%c0_14, %c0_15] : memref<8x256xbf16, #tpu.memory_space<vmem>>, vector<8x256xbf16>
      tpu.vector_store %arg6[%c0_14, %c0_15], %18 {strides = array<i32>} : memref<8x256xbf16, #tpu.memory_space<vmem>>, vector<8x256xbf16>,
    } else {
    }
    return
  }
  func.func @transform_0(%arg0: i32, %arg1: i32, %arg2: i32) -> (i32, i32) {
    %c0_i32 = arith.constant 0 : i32
    return %arg0, %arg2 : i32, i32
  }
  func.func @transform_1(%arg0: i32, %arg1: i32, %arg2: i32) -> (i32, i32) {
    %c0_i32 = arith.constant 0 : i32
    return %arg2, %arg1 : i32, i32
  }
  func.func @transform_2(%arg0: i32, %arg1: i32, %arg2: i32) -> (i32, i32) {
    %c0_i32 = arith.constant 0 : i32
    %c0_i32_0 = arith.constant 0 : i32
    return %c0_i32, %arg1 : i32, i32
  }
  func.func @transform_3(%arg0: i32, %arg1: i32, %arg2: i32) -> (i32, i32) {
    %c0_i32 = arith.constant 0 : i32
    return %arg0, %arg1 : i32, i32
  }
}

module attributes {stable_mosaic.version = 11 : i64} {
  func.func @_mm_bn_res_kernel(%arg0: i32, %arg1: i32, %arg2: i32, %arg3: memref<8x384xbf16, #tpu.memory_space<vmem>>, %arg4: memref<384x256xbf16, #tpu.memory_space<vmem>>, %arg5: memref<1x256xf32, #tpu.memory_space<vmem>>, %arg6: memref<8x256xbf16, #tpu.memory_space<vmem>>, %arg7: memref<8x256xbf16, #tpu.memory_space<vmem>>, %arg8: memref<8x256xf32, #tpu.memory_space<vmem>>) attributes {dimension_semantics = [#tpu.dimension_semantics<parallel>, #tpu.dimension_semantics<parallel>, #tpu.dimension_semantics<arbitrary>], iteration_bounds = array<i64: 1, 1, 6>, scalar_prefetch = 0 : i64, scratch_operands = 1 : i64, tpu.core_type = #tpu.core_type<tc>, window_params = [{transform_indices = @transform_0, window_bounds = array<i64: 8, 384>}, {transform_indices = @transform_1, window_bounds = array<i64: 384, 256>}, {transform_indices = @transform_2, window_bounds = array<i64: 1, 256>}, {transform_indices = @transform_3, window_bounds = array<i64: 8, 256>}, {transform_indices = @transform_4, window_bounds = array<i64: 8, 256>}]} {
    %c0_i32 = arith.constant 0 : i32
    %0 = arith.cmpi eq, %arg2, %c0_i32 : i32
    %1 = arith.extui %0 : i1 to i32
    %c0_i32_0 = arith.constant 0 : i32
    %2 = arith.cmpi ne, %1, %c0_i32_0 : i32
    scf.if %2 {
      %cst_9 = arith.constant 0.000000e+00 : f32
      %12 = vector.broadcast %cst_9 : f32 to vector<8x256xf32>
      %c0_10 = arith.constant 0 : index
      %c0_11 = arith.constant 0 : index
      %13 = vector.load %arg8[%c0_10, %c0_11] : memref<8x256xf32, #tpu.memory_space<vmem>>, vector<8x256xf32>
      tpu.vector_store %arg8[%c0_10, %c0_11], %12 {strides = array<i32>} : memref<8x256xf32, #tpu.memory_space<vmem>>, vector<8x256xf32>,
    } else {
    }
    %c0 = arith.constant 0 : index
    %c0_1 = arith.constant 0 : index
    %3 = vector.load %arg8[%c0, %c0_1] : memref<8x256xf32, #tpu.memory_space<vmem>>, vector<8x256xf32>
    %c0_2 = arith.constant 0 : index
    %c0_3 = arith.constant 0 : index
    %4 = vector.load %arg3[%c0_2, %c0_3] : memref<8x384xbf16, #tpu.memory_space<vmem>>, vector<8x384xbf16>
    %c0_4 = arith.constant 0 : index
    %c0_5 = arith.constant 0 : index
    %5 = vector.load %arg4[%c0_4, %c0_5] : memref<384x256xbf16, #tpu.memory_space<vmem>>, vector<384x256xbf16>
    %cst = arith.constant dense<0.000000e+00> : vector<8x256xf32>
    %6 = tpu.matmul %4, %5, %cst {dimension_numbers = #tpu.dot_dimension_numbers<[1], [0], [0], [1], [0, 0, 1, 1], [], []>} : vector<8x384xbf16>, vector<384x256xbf16>, vector<8x256xf32> -> vector<8x256xf32>
    %7 = arith.addf %3, %6 : vector<8x256xf32>
    %c0_6 = arith.constant 0 : index
    %c0_7 = arith.constant 0 : index
    %8 = vector.load %arg8[%c0_6, %c0_7] : memref<8x256xf32, #tpu.memory_space<vmem>>, vector<8x256xf32>
    tpu.vector_store %arg8[%c0_6, %c0_7], %7 {strides = array<i32>} : memref<8x256xf32, #tpu.memory_space<vmem>>, vector<8x256xf32>,
    %c5_i32 = arith.constant 5 : i32
    %9 = arith.cmpi eq, %arg2, %c5_i32 : i32
    %10 = arith.extui %9 : i1 to i32
    %c0_i32_8 = arith.constant 0 : i32
    %11 = arith.cmpi ne, %10, %c0_i32_8 : i32
    scf.if %11 {
      %c0_9 = arith.constant 0 : index
      %c0_10 = arith.constant 0 : index
      %12 = vector.load %arg8[%c0_9, %c0_10] : memref<8x256xf32, #tpu.memory_space<vmem>>, vector<8x256xf32>
      %c0_11 = arith.constant 0 : index
      %c0_12 = arith.constant 0 : index
      %13 = vector.load %arg5[%c0_11, %c0_12] : memref<1x256xf32, #tpu.memory_space<vmem>>, vector<1x256xf32>
      %14 = vector.broadcast %13 : vector<1x256xf32> to vector<8x256xf32>
      %15 = arith.addf %12, %14 : vector<8x256xf32>
      %c0_13 = arith.constant 0 : index
      %c0_14 = arith.constant 0 : index
      %16 = vector.load %arg6[%c0_13, %c0_14] : memref<8x256xbf16, #tpu.memory_space<vmem>>, vector<8x256xbf16>
      %17 = arith.extf %16 : vector<8x256xbf16> to vector<8x256xf32>
      %18 = arith.addf %15, %17 : vector<8x256xf32>
      %cst_15 = arith.constant 0.000000e+00 : f32
      %19 = vector.broadcast %cst_15 : f32 to vector<8x256xf32>
      %20 = arith.maximumf %18, %19 : vector<8x256xf32>
      %21 = arith.truncf %20 : vector<8x256xf32> to vector<8x256xbf16>
      %c0_16 = arith.constant 0 : index
      %c0_17 = arith.constant 0 : index
      %22 = vector.load %arg7[%c0_16, %c0_17] : memref<8x256xbf16, #tpu.memory_space<vmem>>, vector<8x256xbf16>
      tpu.vector_store %arg7[%c0_16, %c0_17], %21 {strides = array<i32>} : memref<8x256xbf16, #tpu.memory_space<vmem>>, vector<8x256xbf16>,
    } else {
    }
    return
  }
  func.func @transform_0(%arg0: i32, %arg1: i32, %arg2: i32) -> (i32, i32) {
    %c0_i32 = arith.constant 0 : i32
    return %arg0, %arg2 : i32, i32
  }
  func.func @transform_1(%arg0: i32, %arg1: i32, %arg2: i32) -> (i32, i32) {
    %c0_i32 = arith.constant 0 : i32
    return %arg2, %arg1 : i32, i32
  }
  func.func @transform_2(%arg0: i32, %arg1: i32, %arg2: i32) -> (i32, i32) {
    %c0_i32 = arith.constant 0 : i32
    %c0_i32_0 = arith.constant 0 : i32
    return %c0_i32, %arg1 : i32, i32
  }
  func.func @transform_3(%arg0: i32, %arg1: i32, %arg2: i32) -> (i32, i32) {
    %c0_i32 = arith.constant 0 : i32
    return %arg0, %arg1 : i32, i32
  }
  func.func @transform_4(%arg0: i32, %arg1: i32, %arg2: i32) -> (i32, i32) {
    %c0_i32 = arith.constant 0 : i32
    return %arg0, %arg1 : i32, i32
  }
}

module attributes {stable_mosaic.version = 11 : i64} {
  func.func @_mm_bn_single_kernel(%arg0: i32, %arg1: i32, %arg2: memref<8x128xbf16, #tpu.memory_space<vmem>>, %arg3: memref<128x256xbf16, #tpu.memory_space<vmem>>, %arg4: memref<1x256xf32, #tpu.memory_space<vmem>>, %arg5: memref<8x256xbf16, #tpu.memory_space<vmem>>) attributes {dimension_semantics = [#tpu.dimension_semantics<parallel>, #tpu.dimension_semantics<parallel>], iteration_bounds = array<i64: 1, 1>, scalar_prefetch = 0 : i64, scratch_operands = 0 : i64, tpu.core_type = #tpu.core_type<tc>, window_params = [{transform_indices = @transform_0, window_bounds = array<i64: 8, 128>}, {transform_indices = @transform_1, window_bounds = array<i64: 128, 256>}, {transform_indices = @transform_2, window_bounds = array<i64: 1, 256>}, {transform_indices = @transform_3, window_bounds = array<i64: 8, 256>}]} {
    %c0 = arith.constant 0 : index
    %c0_0 = arith.constant 0 : index
    %0 = vector.load %arg2[%c0, %c0_0] : memref<8x128xbf16, #tpu.memory_space<vmem>>, vector<8x128xbf16>
    %c0_1 = arith.constant 0 : index
    %c0_2 = arith.constant 0 : index
    %1 = vector.load %arg3[%c0_1, %c0_2] : memref<128x256xbf16, #tpu.memory_space<vmem>>, vector<128x256xbf16>
    %cst = arith.constant dense<0.000000e+00> : vector<8x256xf32>
    %2 = tpu.matmul %0, %1, %cst {dimension_numbers = #tpu.dot_dimension_numbers<[1], [0], [0], [1], [0, 0, 1, 1], [], []>} : vector<8x128xbf16>, vector<128x256xbf16>, vector<8x256xf32> -> vector<8x256xf32>
    %c0_3 = arith.constant 0 : index
    %c0_4 = arith.constant 0 : index
    %3 = vector.load %arg4[%c0_3, %c0_4] : memref<1x256xf32, #tpu.memory_space<vmem>>, vector<1x256xf32>
    %4 = vector.broadcast %3 : vector<1x256xf32> to vector<8x256xf32>
    %5 = arith.addf %2, %4 : vector<8x256xf32>
    %6 = arith.truncf %5 : vector<8x256xf32> to vector<8x256xbf16>
    %c0_5 = arith.constant 0 : index
    %c0_6 = arith.constant 0 : index
    %7 = vector.load %arg5[%c0_5, %c0_6] : memref<8x256xbf16, #tpu.memory_space<vmem>>, vector<8x256xbf16>
    tpu.vector_store %arg5[%c0_5, %c0_6], %6 {strides = array<i32>} : memref<8x256xbf16, #tpu.memory_space<vmem>>, vector<8x256xbf16>,
    return
  }
  func.func @transform_0(%arg0: i32, %arg1: i32) -> (i32, i32) {
    %c0_i32 = arith.constant 0 : i32
    %c0_i32_0 = arith.constant 0 : i32
    return %arg0, %c0_i32 : i32, i32
  }
  func.func @transform_1(%arg0: i32, %arg1: i32) -> (i32, i32) {
    %c0_i32 = arith.constant 0 : i32
    %c0_i32_0 = arith.constant 0 : i32
    return %c0_i32, %arg1 : i32, i32
  }
  func.func @transform_2(%arg0: i32, %arg1: i32) -> (i32, i32) {
    %c0_i32 = arith.constant 0 : i32
    %c0_i32_0 = arith.constant 0 : i32
    return %c0_i32, %arg1 : i32, i32
  }
  func.func @transform_3(%arg0: i32, %arg1: i32) -> (i32, i32) {
    %c0_i32 = arith.constant 0 : i32
    return %arg0, %arg1 : i32, i32
  }
}

module attributes {stable_mosaic.version = 11 : i64} {
  func.func @_mm_bn_kernel(%arg0: i32, %arg1: i32, %arg2: i32, %arg3: memref<8x384xbf16, #tpu.memory_space<vmem>>, %arg4: memref<384x256xbf16, #tpu.memory_space<vmem>>, %arg5: memref<1x256xf32, #tpu.memory_space<vmem>>, %arg6: memref<8x256xbf16, #tpu.memory_space<vmem>>, %arg7: memref<8x256xf32, #tpu.memory_space<vmem>>) attributes {dimension_semantics = [#tpu.dimension_semantics<parallel>, #tpu.dimension_semantics<parallel>, #tpu.dimension_semantics<arbitrary>], iteration_bounds = array<i64: 1, 1, 6>, scalar_prefetch = 0 : i64, scratch_operands = 1 : i64, tpu.core_type = #tpu.core_type<tc>, window_params = [{transform_indices = @transform_0, window_bounds = array<i64: 8, 384>}, {transform_indices = @transform_1, window_bounds = array<i64: 384, 256>}, {transform_indices = @transform_2, window_bounds = array<i64: 1, 256>}, {transform_indices = @transform_3, window_bounds = array<i64: 8, 256>}]} {
    %c0_i32 = arith.constant 0 : i32
    %0 = arith.cmpi eq, %arg2, %c0_i32 : i32
    %1 = arith.extui %0 : i1 to i32
    %c0_i32_0 = arith.constant 0 : i32
    %2 = arith.cmpi ne, %1, %c0_i32_0 : i32
    scf.if %2 {
      %cst_9 = arith.constant 0.000000e+00 : f32
      %12 = vector.broadcast %cst_9 : f32 to vector<8x256xf32>
      %c0_10 = arith.constant 0 : index
      %c0_11 = arith.constant 0 : index
      %13 = vector.load %arg7[%c0_10, %c0_11] : memref<8x256xf32, #tpu.memory_space<vmem>>, vector<8x256xf32>
      tpu.vector_store %arg7[%c0_10, %c0_11], %12 {strides = array<i32>} : memref<8x256xf32, #tpu.memory_space<vmem>>, vector<8x256xf32>,
    } else {
    }
    %c0 = arith.constant 0 : index
    %c0_1 = arith.constant 0 : index
    %3 = vector.load %arg7[%c0, %c0_1] : memref<8x256xf32, #tpu.memory_space<vmem>>, vector<8x256xf32>
    %c0_2 = arith.constant 0 : index
    %c0_3 = arith.constant 0 : index
    %4 = vector.load %arg3[%c0_2, %c0_3] : memref<8x384xbf16, #tpu.memory_space<vmem>>, vector<8x384xbf16>
    %c0_4 = arith.constant 0 : index
    %c0_5 = arith.constant 0 : index
    %5 = vector.load %arg4[%c0_4, %c0_5] : memref<384x256xbf16, #tpu.memory_space<vmem>>, vector<384x256xbf16>
    %cst = arith.constant dense<0.000000e+00> : vector<8x256xf32>
    %6 = tpu.matmul %4, %5, %cst {dimension_numbers = #tpu.dot_dimension_numbers<[1], [0], [0], [1], [0, 0, 1, 1], [], []>} : vector<8x384xbf16>, vector<384x256xbf16>, vector<8x256xf32> -> vector<8x256xf32>
    %7 = arith.addf %3, %6 : vector<8x256xf32>
    %c0_6 = arith.constant 0 : index
    %c0_7 = arith.constant 0 : index
    %8 = vector.load %arg7[%c0_6, %c0_7] : memref<8x256xf32, #tpu.memory_space<vmem>>, vector<8x256xf32>
    tpu.vector_store %arg7[%c0_6, %c0_7], %7 {strides = array<i32>} : memref<8x256xf32, #tpu.memory_space<vmem>>, vector<8x256xf32>,
    %c5_i32 = arith.constant 5 : i32
    %9 = arith.cmpi eq, %arg2, %c5_i32 : i32
    %10 = arith.extui %9 : i1 to i32
    %c0_i32_8 = arith.constant 0 : i32
    %11 = arith.cmpi ne, %10, %c0_i32_8 : i32
    scf.if %11 {
      %c0_9 = arith.constant 0 : index
      %c0_10 = arith.constant 0 : index
      %12 = vector.load %arg7[%c0_9, %c0_10] : memref<8x256xf32, #tpu.memory_space<vmem>>, vector<8x256xf32>
      %c0_11 = arith.constant 0 : index
      %c0_12 = arith.constant 0 : index
      %13 = vector.load %arg5[%c0_11, %c0_12] : memref<1x256xf32, #tpu.memory_space<vmem>>, vector<1x256xf32>
      %14 = vector.broadcast %13 : vector<1x256xf32> to vector<8x256xf32>
      %15 = arith.addf %12, %14 : vector<8x256xf32>
      %cst_13 = arith.constant 0.000000e+00 : f32
      %16 = vector.broadcast %cst_13 : f32 to vector<8x256xf32>
      %17 = arith.maximumf %15, %16 : vector<8x256xf32>
      %18 = arith.truncf %17 : vector<8x256xf32> to vector<8x256xbf16>
      %c0_14 = arith.constant 0 : index
      %c0_15 = arith.constant 0 : index
      %19 = vector.load %arg6[%c0_14, %c0_15] : memref<8x256xbf16, #tpu.memory_space<vmem>>, vector<8x256xbf16>
      tpu.vector_store %arg6[%c0_14, %c0_15], %18 {strides = array<i32>} : memref<8x256xbf16, #tpu.memory_space<vmem>>, vector<8x256xbf16>,
    } else {
    }
    return
  }
  func.func @transform_0(%arg0: i32, %arg1: i32, %arg2: i32) -> (i32, i32) {
    %c0_i32 = arith.constant 0 : i32
    return %arg0, %arg2 : i32, i32
  }
  func.func @transform_1(%arg0: i32, %arg1: i32, %arg2: i32) -> (i32, i32) {
    %c0_i32 = arith.constant 0 : i32
    return %arg2, %arg1 : i32, i32
  }
  func.func @transform_2(%arg0: i32, %arg1: i32, %arg2: i32) -> (i32, i32) {
    %c0_i32 = arith.constant 0 : i32
    %c0_i32_0 = arith.constant 0 : i32
    return %c0_i32, %arg1 : i32, i32
  }
  func.func @transform_3(%arg0: i32, %arg1: i32, %arg2: i32) -> (i32, i32) {
    %c0_i32 = arith.constant 0 : i32
    return %arg0, %arg1 : i32, i32
  }
}

module attributes {stable_mosaic.version = 11 : i64} {
  func.func @_mm_bn_single_kernel(%arg0: i32, %arg1: i32, %arg2: memref<2x256xbf16, #tpu.memory_space<vmem>>, %arg3: memref<256x512xbf16, #tpu.memory_space<vmem>>, %arg4: memref<1x512xf32, #tpu.memory_space<vmem>>, %arg5: memref<2x512xbf16, #tpu.memory_space<vmem>>) attributes {dimension_semantics = [#tpu.dimension_semantics<parallel>, #tpu.dimension_semantics<parallel>], iteration_bounds = array<i64: 1, 1>, scalar_prefetch = 0 : i64, scratch_operands = 0 : i64, tpu.core_type = #tpu.core_type<tc>, window_params = [{transform_indices = @transform_0, window_bounds = array<i64: 2, 256>}, {transform_indices = @transform_1, window_bounds = array<i64: 256, 512>}, {transform_indices = @transform_2, window_bounds = array<i64: 1, 512>}, {transform_indices = @transform_3, window_bounds = array<i64: 2, 512>}]} {
    %c0 = arith.constant 0 : index
    %c0_0 = arith.constant 0 : index
    %0 = vector.load %arg2[%c0, %c0_0] : memref<2x256xbf16, #tpu.memory_space<vmem>>, vector<2x256xbf16>
    %c0_1 = arith.constant 0 : index
    %c0_2 = arith.constant 0 : index
    %1 = vector.load %arg3[%c0_1, %c0_2] : memref<256x512xbf16, #tpu.memory_space<vmem>>, vector<256x512xbf16>
    %cst = arith.constant dense<0.000000e+00> : vector<2x512xf32>
    %2 = tpu.matmul %0, %1, %cst {dimension_numbers = #tpu.dot_dimension_numbers<[1], [0], [0], [1], [0, 0, 1, 1], [], []>} : vector<2x256xbf16>, vector<256x512xbf16>, vector<2x512xf32> -> vector<2x512xf32>
    %c0_3 = arith.constant 0 : index
    %c0_4 = arith.constant 0 : index
    %3 = vector.load %arg4[%c0_3, %c0_4] : memref<1x512xf32, #tpu.memory_space<vmem>>, vector<1x512xf32>
    %4 = vector.broadcast %3 : vector<1x512xf32> to vector<2x512xf32>
    %5 = arith.addf %2, %4 : vector<2x512xf32>
    %6 = arith.truncf %5 : vector<2x512xf32> to vector<2x512xbf16>
    %c0_5 = arith.constant 0 : index
    %c0_6 = arith.constant 0 : index
    %7 = vector.load %arg5[%c0_5, %c0_6] : memref<2x512xbf16, #tpu.memory_space<vmem>>, vector<2x512xbf16>
    tpu.vector_store %arg5[%c0_5, %c0_6], %6 {strides = array<i32>} : memref<2x512xbf16, #tpu.memory_space<vmem>>, vector<2x512xbf16>,
    return
  }
  func.func @transform_0(%arg0: i32, %arg1: i32) -> (i32, i32) {
    %c0_i32 = arith.constant 0 : i32
    %c0_i32_0 = arith.constant 0 : i32
    return %arg0, %c0_i32 : i32, i32
  }
  func.func @transform_1(%arg0: i32, %arg1: i32) -> (i32, i32) {
    %c0_i32 = arith.constant 0 : i32
    %c0_i32_0 = arith.constant 0 : i32
    return %c0_i32, %arg1 : i32, i32
  }
  func.func @transform_2(%arg0: i32, %arg1: i32) -> (i32, i32) {
    %c0_i32 = arith.constant 0 : i32
    %c0_i32_0 = arith.constant 0 : i32
    return %c0_i32, %arg1 : i32, i32
  }
  func.func @transform_3(%arg0: i32, %arg1: i32) -> (i32, i32) {
    %c0_i32 = arith.constant 0 : i32
    return %arg0, %arg1 : i32, i32
  }
}

module attributes {stable_mosaic.version = 11 : i64} {
  func.func @_mm_bn_kernel(%arg0: i32, %arg1: i32, %arg2: i32, %arg3: memref<2x384xbf16, #tpu.memory_space<vmem>>, %arg4: memref<384x512xbf16, #tpu.memory_space<vmem>>, %arg5: memref<1x512xf32, #tpu.memory_space<vmem>>, %arg6: memref<2x512xbf16, #tpu.memory_space<vmem>>, %arg7: memref<2x512xf32, #tpu.memory_space<vmem>>) attributes {dimension_semantics = [#tpu.dimension_semantics<parallel>, #tpu.dimension_semantics<parallel>, #tpu.dimension_semantics<arbitrary>], iteration_bounds = array<i64: 1, 1, 6>, scalar_prefetch = 0 : i64, scratch_operands = 1 : i64, tpu.core_type = #tpu.core_type<tc>, window_params = [{transform_indices = @transform_0, window_bounds = array<i64: 2, 384>}, {transform_indices = @transform_1, window_bounds = array<i64: 384, 512>}, {transform_indices = @transform_2, window_bounds = array<i64: 1, 512>}, {transform_indices = @transform_3, window_bounds = array<i64: 2, 512>}]} {
    %c0_i32 = arith.constant 0 : i32
    %0 = arith.cmpi eq, %arg2, %c0_i32 : i32
    %1 = arith.extui %0 : i1 to i32
    %c0_i32_0 = arith.constant 0 : i32
    %2 = arith.cmpi ne, %1, %c0_i32_0 : i32
    scf.if %2 {
      %cst_9 = arith.constant 0.000000e+00 : f32
      %12 = vector.broadcast %cst_9 : f32 to vector<2x512xf32>
      %c0_10 = arith.constant 0 : index
      %c0_11 = arith.constant 0 : index
      %13 = vector.load %arg7[%c0_10, %c0_11] : memref<2x512xf32, #tpu.memory_space<vmem>>, vector<2x512xf32>
      tpu.vector_store %arg7[%c0_10, %c0_11], %12 {strides = array<i32>} : memref<2x512xf32, #tpu.memory_space<vmem>>, vector<2x512xf32>,
    } else {
    }
    %c0 = arith.constant 0 : index
    %c0_1 = arith.constant 0 : index
    %3 = vector.load %arg7[%c0, %c0_1] : memref<2x512xf32, #tpu.memory_space<vmem>>, vector<2x512xf32>
    %c0_2 = arith.constant 0 : index
    %c0_3 = arith.constant 0 : index
    %4 = vector.load %arg3[%c0_2, %c0_3] : memref<2x384xbf16, #tpu.memory_space<vmem>>, vector<2x384xbf16>
    %c0_4 = arith.constant 0 : index
    %c0_5 = arith.constant 0 : index
    %5 = vector.load %arg4[%c0_4, %c0_5] : memref<384x512xbf16, #tpu.memory_space<vmem>>, vector<384x512xbf16>
    %cst = arith.constant dense<0.000000e+00> : vector<2x512xf32>
    %6 = tpu.matmul %4, %5, %cst {dimension_numbers = #tpu.dot_dimension_numbers<[1], [0], [0], [1], [0, 0, 1, 1], [], []>} : vector<2x384xbf16>, vector<384x512xbf16>, vector<2x512xf32> -> vector<2x512xf32>
    %7 = arith.addf %3, %6 : vector<2x512xf32>
    %c0_6 = arith.constant 0 : index
    %c0_7 = arith.constant 0 : index
    %8 = vector.load %arg7[%c0_6, %c0_7] : memref<2x512xf32, #tpu.memory_space<vmem>>, vector<2x512xf32>
    tpu.vector_store %arg7[%c0_6, %c0_7], %7 {strides = array<i32>} : memref<2x512xf32, #tpu.memory_space<vmem>>, vector<2x512xf32>,
    %c5_i32 = arith.constant 5 : i32
    %9 = arith.cmpi eq, %arg2, %c5_i32 : i32
    %10 = arith.extui %9 : i1 to i32
    %c0_i32_8 = arith.constant 0 : i32
    %11 = arith.cmpi ne, %10, %c0_i32_8 : i32
    scf.if %11 {
      %c0_9 = arith.constant 0 : index
      %c0_10 = arith.constant 0 : index
      %12 = vector.load %arg7[%c0_9, %c0_10] : memref<2x512xf32, #tpu.memory_space<vmem>>, vector<2x512xf32>
      %c0_11 = arith.constant 0 : index
      %c0_12 = arith.constant 0 : index
      %13 = vector.load %arg5[%c0_11, %c0_12] : memref<1x512xf32, #tpu.memory_space<vmem>>, vector<1x512xf32>
      %14 = vector.broadcast %13 : vector<1x512xf32> to vector<2x512xf32>
      %15 = arith.addf %12, %14 : vector<2x512xf32>
      %cst_13 = arith.constant 0.000000e+00 : f32
      %16 = vector.broadcast %cst_13 : f32 to vector<2x512xf32>
      %17 = arith.maximumf %15, %16 : vector<2x512xf32>
      %18 = arith.truncf %17 : vector<2x512xf32> to vector<2x512xbf16>
      %c0_14 = arith.constant 0 : index
      %c0_15 = arith.constant 0 : index
      %19 = vector.load %arg6[%c0_14, %c0_15] : memref<2x512xbf16, #tpu.memory_space<vmem>>, vector<2x512xbf16>
      tpu.vector_store %arg6[%c0_14, %c0_15], %18 {strides = array<i32>} : memref<2x512xbf16, #tpu.memory_space<vmem>>, vector<2x512xbf16>,
    } else {
    }
    return
  }
  func.func @transform_0(%arg0: i32, %arg1: i32, %arg2: i32) -> (i32, i32) {
    %c0_i32 = arith.constant 0 : i32
    return %arg0, %arg2 : i32, i32
  }
  func.func @transform_1(%arg0: i32, %arg1: i32, %arg2: i32) -> (i32, i32) {
    %c0_i32 = arith.constant 0 : i32
    return %arg2, %arg1 : i32, i32
  }
  func.func @transform_2(%arg0: i32, %arg1: i32, %arg2: i32) -> (i32, i32) {
    %c0_i32 = arith.constant 0 : i32
    %c0_i32_0 = arith.constant 0 : i32
    return %c0_i32, %arg1 : i32, i32
  }
  func.func @transform_3(%arg0: i32, %arg1: i32, %arg2: i32) -> (i32, i32) {
    %c0_i32 = arith.constant 0 : i32
    return %arg0, %arg1 : i32, i32
  }
}

module attributes {stable_mosaic.version = 11 : i64} {
  func.func @_mm_bn_res_kernel(%arg0: i32, %arg1: i32, %arg2: i32, %arg3: memref<2x512xbf16, #tpu.memory_space<vmem>>, %arg4: memref<512x512xbf16, #tpu.memory_space<vmem>>, %arg5: memref<1x512xf32, #tpu.memory_space<vmem>>, %arg6: memref<2x512xbf16, #tpu.memory_space<vmem>>, %arg7: memref<2x512xbf16, #tpu.memory_space<vmem>>, %arg8: memref<2x512xf32, #tpu.memory_space<vmem>>) attributes {dimension_semantics = [#tpu.dimension_semantics<parallel>, #tpu.dimension_semantics<parallel>, #tpu.dimension_semantics<arbitrary>], iteration_bounds = array<i64: 1, 1, 9>, scalar_prefetch = 0 : i64, scratch_operands = 1 : i64, tpu.core_type = #tpu.core_type<tc>, window_params = [{transform_indices = @transform_0, window_bounds = array<i64: 2, 512>}, {transform_indices = @transform_1, window_bounds = array<i64: 512, 512>}, {transform_indices = @transform_2, window_bounds = array<i64: 1, 512>}, {transform_indices = @transform_3, window_bounds = array<i64: 2, 512>}, {transform_indices = @transform_4, window_bounds = array<i64: 2, 512>}]} {
    %c0_i32 = arith.constant 0 : i32
    %0 = arith.cmpi eq, %arg2, %c0_i32 : i32
    %1 = arith.extui %0 : i1 to i32
    %c0_i32_0 = arith.constant 0 : i32
    %2 = arith.cmpi ne, %1, %c0_i32_0 : i32
    scf.if %2 {
      %cst_9 = arith.constant 0.000000e+00 : f32
      %12 = vector.broadcast %cst_9 : f32 to vector<2x512xf32>
      %c0_10 = arith.constant 0 : index
      %c0_11 = arith.constant 0 : index
      %13 = vector.load %arg8[%c0_10, %c0_11] : memref<2x512xf32, #tpu.memory_space<vmem>>, vector<2x512xf32>
      tpu.vector_store %arg8[%c0_10, %c0_11], %12 {strides = array<i32>} : memref<2x512xf32, #tpu.memory_space<vmem>>, vector<2x512xf32>,
    } else {
    }
    %c0 = arith.constant 0 : index
    %c0_1 = arith.constant 0 : index
    %3 = vector.load %arg8[%c0, %c0_1] : memref<2x512xf32, #tpu.memory_space<vmem>>, vector<2x512xf32>
    %c0_2 = arith.constant 0 : index
    %c0_3 = arith.constant 0 : index
    %4 = vector.load %arg3[%c0_2, %c0_3] : memref<2x512xbf16, #tpu.memory_space<vmem>>, vector<2x512xbf16>
    %c0_4 = arith.constant 0 : index
    %c0_5 = arith.constant 0 : index
    %5 = vector.load %arg4[%c0_4, %c0_5] : memref<512x512xbf16, #tpu.memory_space<vmem>>, vector<512x512xbf16>
    %cst = arith.constant dense<0.000000e+00> : vector<2x512xf32>
    %6 = tpu.matmul %4, %5, %cst {dimension_numbers = #tpu.dot_dimension_numbers<[1], [0], [0], [1], [0, 0, 1, 1], [], []>} : vector<2x512xbf16>, vector<512x512xbf16>, vector<2x512xf32> -> vector<2x512xf32>
    %7 = arith.addf %3, %6 : vector<2x512xf32>
    %c0_6 = arith.constant 0 : index
    %c0_7 = arith.constant 0 : index
    %8 = vector.load %arg8[%c0_6, %c0_7] : memref<2x512xf32, #tpu.memory_space<vmem>>, vector<2x512xf32>
    tpu.vector_store %arg8[%c0_6, %c0_7], %7 {strides = array<i32>} : memref<2x512xf32, #tpu.memory_space<vmem>>, vector<2x512xf32>,
    %c8_i32 = arith.constant 8 : i32
    %9 = arith.cmpi eq, %arg2, %c8_i32 : i32
    %10 = arith.extui %9 : i1 to i32
    %c0_i32_8 = arith.constant 0 : i32
    %11 = arith.cmpi ne, %10, %c0_i32_8 : i32
    scf.if %11 {
      %c0_9 = arith.constant 0 : index
      %c0_10 = arith.constant 0 : index
      %12 = vector.load %arg8[%c0_9, %c0_10] : memref<2x512xf32, #tpu.memory_space<vmem>>, vector<2x512xf32>
      %c0_11 = arith.constant 0 : index
      %c0_12 = arith.constant 0 : index
      %13 = vector.load %arg5[%c0_11, %c0_12] : memref<1x512xf32, #tpu.memory_space<vmem>>, vector<1x512xf32>
      %14 = vector.broadcast %13 : vector<1x512xf32> to vector<2x512xf32>
      %15 = arith.addf %12, %14 : vector<2x512xf32>
      %c0_13 = arith.constant 0 : index
      %c0_14 = arith.constant 0 : index
      %16 = vector.load %arg6[%c0_13, %c0_14] : memref<2x512xbf16, #tpu.memory_space<vmem>>, vector<2x512xbf16>
      %17 = arith.extf %16 : vector<2x512xbf16> to vector<2x512xf32>
      %18 = arith.addf %15, %17 : vector<2x512xf32>
      %cst_15 = arith.constant 0.000000e+00 : f32
      %19 = vector.broadcast %cst_15 : f32 to vector<2x512xf32>
      %20 = arith.maximumf %18, %19 : vector<2x512xf32>
      %21 = arith.truncf %20 : vector<2x512xf32> to vector<2x512xbf16>
      %c0_16 = arith.constant 0 : index
      %c0_17 = arith.constant 0 : index
      %22 = vector.load %arg7[%c0_16, %c0_17] : memref<2x512xbf16, #tpu.memory_space<vmem>>, vector<2x512xbf16>
      tpu.vector_store %arg7[%c0_16, %c0_17], %21 {strides = array<i32>} : memref<2x512xbf16, #tpu.memory_space<vmem>>, vector<2x512xbf16>,
    } else {
    }
    return
  }
  func.func @transform_0(%arg0: i32, %arg1: i32, %arg2: i32) -> (i32, i32) {
    %c0_i32 = arith.constant 0 : i32
    return %arg0, %arg2 : i32, i32
  }
  func.func @transform_1(%arg0: i32, %arg1: i32, %arg2: i32) -> (i32, i32) {
    %c0_i32 = arith.constant 0 : i32
    return %arg2, %arg1 : i32, i32
  }
  func.func @transform_2(%arg0: i32, %arg1: i32, %arg2: i32) -> (i32, i32) {
    %c0_i32 = arith.constant 0 : i32
    %c0_i32_0 = arith.constant 0 : i32
    return %c0_i32, %arg1 : i32, i32
  }
  func.func @transform_3(%arg0: i32, %arg1: i32, %arg2: i32) -> (i32, i32) {
    %c0_i32 = arith.constant 0 : i32
    return %arg0, %arg1 : i32, i32
  }
  func.func @transform_4(%arg0: i32, %arg1: i32, %arg2: i32) -> (i32, i32) {
    %c0_i32 = arith.constant 0 : i32
    return %arg0, %arg1 : i32, i32
  }
}

module attributes {stable_mosaic.version = 11 : i64} {
  func.func @_mm_bn_kernel(%arg0: i32, %arg1: i32, %arg2: i32, %arg3: memref<2x512xbf16, #tpu.memory_space<vmem>>, %arg4: memref<512x512xbf16, #tpu.memory_space<vmem>>, %arg5: memref<1x512xf32, #tpu.memory_space<vmem>>, %arg6: memref<2x512xbf16, #tpu.memory_space<vmem>>, %arg7: memref<2x512xf32, #tpu.memory_space<vmem>>) attributes {dimension_semantics = [#tpu.dimension_semantics<parallel>, #tpu.dimension_semantics<parallel>, #tpu.dimension_semantics<arbitrary>], iteration_bounds = array<i64: 1, 1, 9>, scalar_prefetch = 0 : i64, scratch_operands = 1 : i64, tpu.core_type = #tpu.core_type<tc>, window_params = [{transform_indices = @transform_0, window_bounds = array<i64: 2, 512>}, {transform_indices = @transform_1, window_bounds = array<i64: 512, 512>}, {transform_indices = @transform_2, window_bounds = array<i64: 1, 512>}, {transform_indices = @transform_3, window_bounds = array<i64: 2, 512>}]} {
    %c0_i32 = arith.constant 0 : i32
    %0 = arith.cmpi eq, %arg2, %c0_i32 : i32
    %1 = arith.extui %0 : i1 to i32
    %c0_i32_0 = arith.constant 0 : i32
    %2 = arith.cmpi ne, %1, %c0_i32_0 : i32
    scf.if %2 {
      %cst_9 = arith.constant 0.000000e+00 : f32
      %12 = vector.broadcast %cst_9 : f32 to vector<2x512xf32>
      %c0_10 = arith.constant 0 : index
      %c0_11 = arith.constant 0 : index
      %13 = vector.load %arg7[%c0_10, %c0_11] : memref<2x512xf32, #tpu.memory_space<vmem>>, vector<2x512xf32>
      tpu.vector_store %arg7[%c0_10, %c0_11], %12 {strides = array<i32>} : memref<2x512xf32, #tpu.memory_space<vmem>>, vector<2x512xf32>,
    } else {
    }
    %c0 = arith.constant 0 : index
    %c0_1 = arith.constant 0 : index
    %3 = vector.load %arg7[%c0, %c0_1] : memref<2x512xf32, #tpu.memory_space<vmem>>, vector<2x512xf32>
    %c0_2 = arith.constant 0 : index
    %c0_3 = arith.constant 0 : index
    %4 = vector.load %arg3[%c0_2, %c0_3] : memref<2x512xbf16, #tpu.memory_space<vmem>>, vector<2x512xbf16>
    %c0_4 = arith.constant 0 : index
    %c0_5 = arith.constant 0 : index
    %5 = vector.load %arg4[%c0_4, %c0_5] : memref<512x512xbf16, #tpu.memory_space<vmem>>, vector<512x512xbf16>
    %cst = arith.constant dense<0.000000e+00> : vector<2x512xf32>
    %6 = tpu.matmul %4, %5, %cst {dimension_numbers = #tpu.dot_dimension_numbers<[1], [0], [0], [1], [0, 0, 1, 1], [], []>} : vector<2x512xbf16>, vector<512x512xbf16>, vector<2x512xf32> -> vector<2x512xf32>
    %7 = arith.addf %3, %6 : vector<2x512xf32>
    %c0_6 = arith.constant 0 : index
    %c0_7 = arith.constant 0 : index
    %8 = vector.load %arg7[%c0_6, %c0_7] : memref<2x512xf32, #tpu.memory_space<vmem>>, vector<2x512xf32>
    tpu.vector_store %arg7[%c0_6, %c0_7], %7 {strides = array<i32>} : memref<2x512xf32, #tpu.memory_space<vmem>>, vector<2x512xf32>,
    %c8_i32 = arith.constant 8 : i32
    %9 = arith.cmpi eq, %arg2, %c8_i32 : i32
    %10 = arith.extui %9 : i1 to i32
    %c0_i32_8 = arith.constant 0 : i32
    %11 = arith.cmpi ne, %10, %c0_i32_8 : i32
    scf.if %11 {
      %c0_9 = arith.constant 0 : index
      %c0_10 = arith.constant 0 : index
      %12 = vector.load %arg7[%c0_9, %c0_10] : memref<2x512xf32, #tpu.memory_space<vmem>>, vector<2x512xf32>
      %c0_11 = arith.constant 0 : index
      %c0_12 = arith.constant 0 : index
      %13 = vector.load %arg5[%c0_11, %c0_12] : memref<1x512xf32, #tpu.memory_space<vmem>>, vector<1x512xf32>
      %14 = vector.broadcast %13 : vector<1x512xf32> to vector<2x512xf32>
      %15 = arith.addf %12, %14 : vector<2x512xf32>
      %cst_13 = arith.constant 0.000000e+00 : f32
      %16 = vector.broadcast %cst_13 : f32 to vector<2x512xf32>
      %17 = arith.maximumf %15, %16 : vector<2x512xf32>
      %18 = arith.truncf %17 : vector<2x512xf32> to vector<2x512xbf16>
      %c0_14 = arith.constant 0 : index
      %c0_15 = arith.constant 0 : index
      %19 = vector.load %arg6[%c0_14, %c0_15] : memref<2x512xbf16, #tpu.memory_space<vmem>>, vector<2x512xbf16>
      tpu.vector_store %arg6[%c0_14, %c0_15], %18 {strides = array<i32>} : memref<2x512xbf16, #tpu.memory_space<vmem>>, vector<2x512xbf16>,
    } else {
    }
    return
  }
  func.func @transform_0(%arg0: i32, %arg1: i32, %arg2: i32) -> (i32, i32) {
    %c0_i32 = arith.constant 0 : i32
    return %arg0, %arg2 : i32, i32
  }
  func.func @transform_1(%arg0: i32, %arg1: i32, %arg2: i32) -> (i32, i32) {
    %c0_i32 = arith.constant 0 : i32
    return %arg2, %arg1 : i32, i32
  }
  func.func @transform_2(%arg0: i32, %arg1: i32, %arg2: i32) -> (i32, i32) {
    %c0_i32 = arith.constant 0 : i32
    %c0_i32_0 = arith.constant 0 : i32
    return %c0_i32, %arg1 : i32, i32
  }
  func.func @transform_3(%arg0: i32, %arg1: i32, %arg2: i32) -> (i32, i32) {
    %c0_i32 = arith.constant 0 : i32
    return %arg0, %arg1 : i32, i32
  }
}

module attributes {stable_mosaic.version = 11 : i64} {
  func.func @_avgpool_fc_kernel(%arg0: i32, %arg1: memref<2x1x512xbf16, #tpu.memory_space<vmem>>, %arg2: memref<512x128xbf16, #tpu.memory_space<vmem>>, %arg3: memref<1x128xf32, #tpu.memory_space<vmem>>, %arg4: memref<2x128xf32, #tpu.memory_space<vmem>>) attributes {dimension_semantics = [#tpu.dimension_semantics<arbitrary>], iteration_bounds = array<i64: 1>, scalar_prefetch = 0 : i64, scratch_operands = 0 : i64, tpu.core_type = #tpu.core_type<tc>, window_params = [{pipeline_mode = #tpu.pipeline_mode<synchronous>, transform_indices = @transform_0, window_bounds = array<i64: 2, 1, 512>}, {pipeline_mode = #tpu.pipeline_mode<synchronous>, transform_indices = @transform_1, window_bounds = array<i64: 512, 128>}, {pipeline_mode = #tpu.pipeline_mode<synchronous>, transform_indices = @transform_2, window_bounds = array<i64: 1, 128>}, {pipeline_mode = #tpu.pipeline_mode<synchronous>, transform_indices = @transform_3, window_bounds = array<i64: 2, 128>}]} {
    %c0 = arith.constant 0 : index
    %c0_0 = arith.constant 0 : index
    %c0_1 = arith.constant 0 : index
    %0 = vector.load %arg1[%c0, %c0_0, %c0_1] : memref<2x1x512xbf16, #tpu.memory_space<vmem>>, vector<2x1x512xbf16>
    %1 = arith.extf %0 : vector<2x1x512xbf16> to vector<2x1x512xf32>
    %cst = arith.constant dense<0.000000e+00> : vector<2x512xf32>
    %2 = vector.multi_reduction <add>, %1, %cst [1] : vector<2x1x512xf32> to vector<2x512xf32>
    %3 = arith.truncf %2 : vector<2x512xf32> to vector<2x512xbf16>
    %c0_2 = arith.constant 0 : index
    %c0_3 = arith.constant 0 : index
    %4 = vector.load %arg2[%c0_2, %c0_3] : memref<512x128xbf16, #tpu.memory_space<vmem>>, vector<512x128xbf16>
    %cst_4 = arith.constant dense<0.000000e+00> : vector<2x128xf32>
    %5 = tpu.matmul %3, %4, %cst_4 {dimension_numbers = #tpu.dot_dimension_numbers<[1], [0], [0], [1], [0, 0, 1, 1], [], []>} : vector<2x512xbf16>, vector<512x128xbf16>, vector<2x128xf32> -> vector<2x128xf32>
    %c0_5 = arith.constant 0 : index
    %c0_6 = arith.constant 0 : index
    %6 = vector.load %arg3[%c0_5, %c0_6] : memref<1x128xf32, #tpu.memory_space<vmem>>, vector<1x128xf32>
    %7 = vector.broadcast %6 : vector<1x128xf32> to vector<2x128xf32>
    %8 = arith.addf %5, %7 : vector<2x128xf32>
    %c0_7 = arith.constant 0 : index
    %c0_8 = arith.constant 0 : index
    %9 = vector.load %arg4[%c0_7, %c0_8] : memref<2x128xf32, #tpu.memory_space<vmem>>, vector<2x128xf32>
    tpu.vector_store %arg4[%c0_7, %c0_8], %8 {strides = array<i32>} : memref<2x128xf32, #tpu.memory_space<vmem>>, vector<2x128xf32>,
    return
  }
  func.func @transform_0(%arg0: i32) -> (i32, i32, i32) {
    %c0_i32 = arith.constant 0 : i32
    %c0_i32_0 = arith.constant 0 : i32
    %c0_i32_1 = arith.constant 0 : i32
    %c0_i32_2 = arith.constant 0 : i32
    return %c0_i32, %c0_i32_0, %c0_i32_1 : i32, i32, i32
  }
  func.func @transform_1(%arg0: i32) -> (i32, i32) {
    %c0_i32 = arith.constant 0 : i32
    %c0_i32_0 = arith.constant 0 : i32
    %c0_i32_1 = arith.constant 0 : i32
    return %c0_i32, %c0_i32_0 : i32, i32
  }
  func.func @transform_2(%arg0: i32) -> (i32, i32) {
    %c0_i32 = arith.constant 0 : i32
    %c0_i32_0 = arith.constant 0 : i32
    %c0_i32_1 = arith.constant 0 : i32
    return %c0_i32, %c0_i32_0 : i32, i32
  }
  func.func @transform_3(%arg0: i32) -> (i32, i32) {
    %c0_i32 = arith.constant 0 : i32
    %c0_i32_0 = arith.constant 0 : i32
    %c0_i32_1 = arith.constant 0 : i32
    return %c0_i32, %c0_i32_0 : i32, i32
  }
}

</mosaic_0001>

<bundles_post_ra>
// kernel: _lambda_.22
= control target key start
LH: loop header
LB: loop body
LE: loop exit
PB: predicated region body
PF: predicated region fallthrough
CT: control target
= control target key end

     0   :  { %v1756_v0 = vmov 0   ;;  %s2214_s1 = inlined_call_operand.vmem [shape: bf16[256,128], index: 1, kind: input, shape index: {}]   ;;  %s2215_s0 = inlined_call_operand.vmem [shape: bf16[512,256], index: 0, kind: input, shape index: {}]   ;;  %s2216_s2 = inlined_call_operand.vmem [shape: f32[1,128], index: 2, kind: input, shape index: {}]   ;;  %s2217_s3 = inlined_call_operand.vmem [shape: bf16[512,128], index: 3, kind: output, shape index: {}]  }
   0x1   :  { %534 = vmatprep.subr.bf16.mxu0 %v1756_v0  ;;  %1611 = vmatprep.subr.bf16.mxu1 %v1756_v0  ;;  %v1644_v1 = vld [vmem:[%s2214_s1 + $0x38] sm:$0xff]   ;;  %v1645_v2 = vld [vmem:[%s2214_s1 + $0x30] sm:$0xff]   ;;  %v1646_v3 = vld [vmem:[%s2214_s1 + $0x28] sm:$0xff]  }
   0x2   :  { %535 = vmatpush1.bf16.msra.mxu0 %v1644_v1  ;;  %1627 = vmatpush1.bf16.msra.mxu1 %v1644_v1  ;;  %v1647_v4 = vld [vmem:[%s2214_s1 + $0x20] sm:$0xff]   ;;  %v1648_v5 = vld [vmem:[%s2214_s1 + $0x18] sm:$0xff]   ;;  %v1649_v7 = vld [vmem:[%s2214_s1 + $0x10] sm:$0xff]  }
   0x3   :  { %536 = vmatprep.subr.bf16.mxu0 %v1756_v0  ;;  %1612 = vmatprep.subr.bf16.mxu1 %v1756_v0  ;;  %v1662_v6 = vld [vmem:[%s2215_s0 + $0x4] ss:$8 sps:$4 sm:$0xff]   ;;  %v1652_v11 = vld [vmem:[%s2214_s1 + $0x78] sm:$0xff]   ;;  %v1653_v12 = vld [vmem:[%s2214_s1 + $0x70] sm:$0xff]  }
   0x4   :  { %v1665_v8 = vld [vmem:[%s2215_s0 + $0x104] ss:$8 sps:$4 sm:$0xff]   ;;  %566 = vmatprep.mubr.bf16.mxu0 %v1662_v6  ;;  %v1656_v15 = vld [vmem:[%s2214_s1 + $0x58] sm:$0xff]   ;;  %v1657_v16 = vld [vmem:[%s2214_s1 + $0x50] sm:$0xff]  }
   0x5   :  { %694 = vmatprep.mubr.bf16.mxu1 %v1665_v8  ;;  %v1650_v9 = vld [vmem:[%s2214_s1 + $0x8] sm:$0xff]   ;;  %v1651_v10 = vld [vmem:[%s2214_s1] sm:$0xff]   ;;  %v1666_v21 = vld [vmem:[%s2215_s0 + $0x14] ss:$8 sps:$4 sm:$0xff]  }
   0x6   :  { %537 = vmatpush1.bf16.msra.mxu0 %v1645_v2  ;;  %1628 = vmatpush1.bf16.msra.mxu1 %v1645_v2  ;;  %v1654_v13 = vld [vmem:[%s2214_s1 + $0x68] sm:$0xff]   ;;  %v1655_v14 = vld [vmem:[%s2214_s1 + $0x60] sm:$0xff]   ;;  %v1668_v22 = vld [vmem:[%s2215_s0 + $0x114] ss:$8 sps:$4 sm:$0xff]  }
   0x7   :  { %538 = vmatprep.subr.bf16.mxu0 %v1756_v0  ;;  %1613 = vmatprep.subr.bf16.mxu1 %v1756_v0  ;;  %v1658_v17 = vld [vmem:[%s2214_s1 + $0x48] sm:$0xff]   ;;  %v1659_v18 = vld [vmem:[%s2214_s1 + $0x40] sm:$0xff]   ;;  %v1670_v23 = vld [vmem:[%s2215_s0 + $0x10] ss:$8 sps:$4 sm:$0xff]  }
   0x8   :  { %v1660_v19 = vld [vmem:[%s2215_s0] ss:$8 sps:$4 sm:$0xff]   ;;  %v1671_v24 = vld [vmem:[%s2215_s0 + $0x110] ss:$8 sps:$4 sm:$0xff]   ;;  %v1672_v25 = vld [vmem:[%s2215_s0 + $0x24] ss:$8 sps:$4 sm:$0xff]  }
   0x9   :  { %v1663_v20 = vld [vmem:[%s2215_s0 + $0x100] ss:$8 sps:$4 sm:$0xff]   ;;  %v1674_v26 = vld [vmem:[%s2215_s0 + $0x124] ss:$8 sps:$4 sm:$0xff]   ;;  %v1678_v29 = vld [vmem:[%s2215_s0 + $0x34] ss:$8 sps:$4 sm:$0xff]  }
   0xa   :  { %539 = vmatpush1.bf16.msra.mxu0 %v1646_v3  ;;  %1629 = vmatpush1.bf16.msra.mxu1 %v1646_v3  ;;  %v1676_v27 = vld [vmem:[%s2215_s0 + $0x20] ss:$8 sps:$4 sm:$0xff]   ;;  %v1680_v30 = vld [vmem:[%s2215_s0 + $0x134] ss:$8 sps:$4 sm:$0xff]   ;;  %v1682_v31 = vld [vmem:[%s2215_s0 + $0x30] ss:$8 sps:$4 sm:$0xff]  }
   0xb   :  { %540 = vmatprep.subr.bf16.mxu0 %v1756_v0  ;;  %1614 = vmatprep.subr.bf16.mxu1 %v1756_v0  ;;  %v1677_v28 = vld [vmem:[%s2215_s0 + $0x120] ss:$8 sps:$4 sm:$0xff]   ;;  %v1683_v32 = vld [vmem:[%s2215_s0 + $0x130] ss:$8 sps:$4 sm:$0xff]   ;;  %v1684_v33 = vld [vmem:[%s2215_s0 + $0x44] ss:$8 sps:$4 sm:$0xff]  }
   0xc   :  { %v1686_v34 = vld [vmem:[%s2215_s0 + $0x144] ss:$8 sps:$4 sm:$0xff]   ;;  %v1688_v35 = vld [vmem:[%s2215_s0 + $0x40] ss:$8 sps:$4 sm:$0xff]   ;;  %v1690_v37 = vld [vmem:[%s2215_s0 + $0x54] ss:$8 sps:$4 sm:$0xff]  }
   0xd   :  { %v1689_v36 = vld [vmem:[%s2215_s0 + $0x140] ss:$8 sps:$4 sm:$0xff]   ;;  %v1692_v38 = vld [vmem:[%s2215_s0 + $0x154] ss:$8 sps:$4 sm:$0xff]   ;;  %v1694_v39 = vld [vmem:[%s2215_s0 + $0x50] ss:$8 sps:$4 sm:$0xff]  }
   0xe   :  { %541 = vmatpush1.bf16.msra.mxu0 %v1647_v4  ;;  %1630 = vmatpush1.bf16.msra.mxu1 %v1647_v4  ;;  %v1695_v40 = vld [vmem:[%s2215_s0 + $0x150] ss:$8 sps:$4 sm:$0xff]   ;;  %v1696_v41 = vld [vmem:[%s2215_s0 + $0x64] ss:$8 sps:$4 sm:$0xff]   ;;  %v1700_v43 = vld [vmem:[%s2215_s0 + $0x60] ss:$8 sps:$4 sm:$0xff]  }
   0xf   :  { %542 = vmatprep.subr.bf16.mxu0 %v1756_v0  ;;  %1615 = vmatprep.subr.bf16.mxu1 %v1756_v0  ;;  %v1698_v42 = vld [vmem:[%s2215_s0 + $0x164] ss:$8 sps:$4 sm:$0xff]   ;;  %v1701_v44 = vld [vmem:[%s2215_s0 + $0x160] ss:$8 sps:$4 sm:$0xff]   ;;  %v1702_v45 = vld [vmem:[%s2215_s0 + $0x74] ss:$8 sps:$4 sm:$0xff]  }
  0x10   :  { %v1704_v46 = vld [vmem:[%s2215_s0 + $0x174] ss:$8 sps:$4 sm:$0xff]   ;;  %v1706_v47 = vld [vmem:[%s2215_s0 + $0x70] ss:$8 sps:$4 sm:$0xff]   ;;  %v1708_v49 = vld [vmem:[%s2215_s0 + $0x84] ss:$8 sps:$4 sm:$0xff]  }
  0x11   :  { %v1707_v48 = vld [vmem:[%s2215_s0 + $0x170] ss:$8 sps:$4 sm:$0xff]   ;;  %v1710_v50 = vld [vmem:[%s2215_s0 + $0x184] ss:$8 sps:$4 sm:$0xff]   ;;  %v1712_v51 = vld [vmem:[%s2215_s0 + $0x80] ss:$8 sps:$4 sm:$0xff]  }
  0x12   :  { %543 = vmatpush1.bf16.msra.mxu0 %v1648_v5  ;;  %1631 = vmatpush1.bf16.msra.mxu1 %v1648_v5  ;;  %v1713_v52 = vld [vmem:[%s2215_s0 + $0x180] ss:$8 sps:$4 sm:$0xff]   ;;  %v1714_v53 = vld [vmem:[%s2215_s0 + $0x94] ss:$8 sps:$4 sm:$0xff]   ;;  %v1718_v55 = vld [vmem:[%s2215_s0 + $0x90] ss:$8 sps:$4 sm:$0xff]  }
  0x13   :  { %544 = vmatprep.subr.bf16.mxu0 %v1756_v0  ;;  %1616 = vmatprep.subr.bf16.mxu1 %v1756_v0  ;;  %v1716_v54 = vld [vmem:[%s2215_s0 + $0x194] ss:$8 sps:$4 sm:$0xff]   ;;  %v1719_v56 = vld [vmem:[%s2215_s0 + $0x190] ss:$8 sps:$4 sm:$0xff]   ;;  %v1720_v57 = vld [vmem:[%s2215_s0 + $0xa4] ss:$8 sps:$4 sm:$0xff]  }
  0x14   :  { %v1722_v58 = vld [vmem:[%s2215_s0 + $0x1a4] ss:$8 sps:$4 sm:$0xff]   ;;  %v1724_v59 = vld [vmem:[%s2215_s0 + $0xa0] ss:$8 sps:$4 sm:$0xff]   ;;  %v1726_v61 = vld [vmem:[%s2215_s0 + $0xb4] ss:$8 sps:$4 sm:$0xff]  }
  0x15   :  { %v1725_v60 = vld [vmem:[%s2215_s0 + $0x1a0] ss:$8 sps:$4 sm:$0xff]   ;;  %v1728_v62 = vld [vmem:[%s2215_s0 + $0x1b4] ss:$8 sps:$4 sm:$0xff]   ;;  %v1730_v63 = vld [vmem:[%s2215_s0 + $0xb0] ss:$8 sps:$4 sm:$0xff]  }
  0x16   :  { %545 = vmatpush1.bf16.msra.mxu0 %v1649_v7  ;;  %1632 = vmatpush1.bf16.msra.mxu1 %v1649_v7  ;;  %v1732_v1 = vld [vmem:[%s2215_s0 + $0xc4] ss:$8 sps:$4 sm:$0xff]   ;;  %v1736_v3 = vld [vmem:[%s2215_s0 + $0xc0] ss:$8 sps:$4 sm:$0xff]   ;;  %v1738_v5 = vld [vmem:[%s2215_s0 + $0xd4] ss:$8 sps:$4 sm:$0xff]  }
  0x17   :  { %546 = vmatprep.subr.bf16.mxu0 %v1756_v0  ;;  %1617 = vmatprep.subr.bf16.mxu1 %v1756_v0  ;;  %v1734_v2 = vld [vmem:[%s2215_s0 + $0x1c4] ss:$8 sps:$4 sm:$0xff]   ;;  %v1737_v4 = vld [vmem:[%s2215_s0 + $0x1c0] ss:$8 sps:$4 sm:$0xff]   ;;  %v1740_v6 = vld [vmem:[%s2215_s0 + $0x1d4] ss:$8 sps:$4 sm:$0xff]  }
  0x18   :  { %v1742_v7 = vld [vmem:[%s2215_s0 + $0xd0] ss:$8 sps:$4 sm:$0xff]  }
  0x19   :  { %v1743_v8 = vld [vmem:[%s2215_s0 + $0x1d0] ss:$8 sps:$4 sm:$0xff]  }
  0x1a   :  { %547 = vmatpush1.bf16.msra.mxu0 %v1650_v9  ;;  %1633 = vmatpush1.bf16.msra.mxu1 %v1650_v9  ;;  %v1744_v9 = vld [vmem:[%s2215_s0 + $0xe4] ss:$8 sps:$4 sm:$0xff]  }
  0x1b   :  { %548 = vmatprep.subr.bf16.mxu0 %v1756_v0  ;;  %1618 = vmatprep.subr.bf16.mxu1 %v1756_v0 }
  0x1e   :  { %549 = vmatpush1.bf16.msra.mxu0 %v1651_v10  ;;  %1634 = vmatpush1.bf16.msra.mxu1 %v1651_v10  ;;  %v1746_v10 = vld [vmem:[%s2215_s0 + $0x1e4] ss:$8 sps:$4 sm:$0xff]  }
  0x1f   :  { %550 = vmatprep.subr.bf16.mxu0 %v1756_v0  ;;  %1619 = vmatprep.subr.bf16.mxu1 %v1756_v0 }
  0x22   :  { %551 = vmatpush2.bf16.msra.mxu0 %v1652_v11  ;;  %1635 = vmatpush2.bf16.msra.mxu1 %v1652_v11  ;;  %v1748_v11 = vld [vmem:[%s2215_s0 + $0xe0] ss:$8 sps:$4 sm:$0xff]  }
  0x23   :  { %552 = vmatprep.subr.bf16.mxu0 %v1756_v0  ;;  %1620 = vmatprep.subr.bf16.mxu1 %v1756_v0 }
  0x26   :  { %553 = vmatpush2.bf16.msra.mxu0 %v1653_v12  ;;  %1636 = vmatpush2.bf16.msra.mxu1 %v1653_v12  ;;  %v1749_v12 = vld [vmem:[%s2215_s0 + $0x1e0] ss:$8 sps:$4 sm:$0xff]  }
  0x27   :  { %554 = vmatprep.subr.bf16.mxu0 %v1756_v0  ;;  %1621 = vmatprep.subr.bf16.mxu1 %v1756_v0 }
  0x2a   :  { %555 = vmatpush2.bf16.msra.mxu0 %v1654_v13  ;;  %1637 = vmatpush2.bf16.msra.mxu1 %v1654_v13  ;;  %v1750_v13 = vld [vmem:[%s2215_s0 + $0xf4] ss:$8 sps:$4 sm:$0xff]  }
  0x2b   :  { %556 = vmatprep.subr.bf16.mxu0 %v1756_v0  ;;  %1622 = vmatprep.subr.bf16.mxu1 %v1756_v0 }
  0x2e   :  { %557 = vmatpush2.bf16.msra.mxu0 %v1655_v14  ;;  %1638 = vmatpush2.bf16.msra.mxu1 %v1655_v14  ;;  %v1752_v14 = vld [vmem:[%s2215_s0 + $0x1f4] ss:$8 sps:$4 sm:$0xff]  }
  0x2f   :  { %558 = vmatprep.subr.bf16.mxu0 %v1756_v0  ;;  %1623 = vmatprep.subr.bf16.mxu1 %v1756_v0 }
  0x32   :  { %559 = vmatpush2.bf16.msra.mxu0 %v1656_v15  ;;  %1639 = vmatpush2.bf16.msra.mxu1 %v1656_v15  ;;  %v1754_v15 = vld [vmem:[%s2215_s0 + $0xf0] ss:$8 sps:$4 sm:$0xff]  }
  0x33   :  { %560 = vmatprep.subr.bf16.mxu0 %v1756_v0  ;;  %1624 = vmatprep.subr.bf16.mxu1 %v1756_v0 }
  0x36   :  { %561 = vmatpush2.bf16.msra.mxu0 %v1657_v16  ;;  %1640 = vmatpush2.bf16.msra.mxu1 %v1657_v16  ;;  %v1755_v16 = vld [vmem:[%s2215_s0 + $0x1f0] ss:$8 sps:$4 sm:$0xff]  }
  0x37   :  { %562 = vmatprep.subr.bf16.mxu0 %v1756_v0  ;;  %1625 = vmatprep.subr.bf16.mxu1 %v1756_v0 }
  0x3a   :  { %563 = vmatpush2.bf16.msra.mxu0 %v1658_v17  ;;  %1641 = vmatpush2.bf16.msra.mxu1 %v1658_v17  ;;  %v2052_v17 = vld [vmem:[%s2216_s2] ss:$0 sm:$0xff] }
  0x3b   :  { %564 = vmatprep.subr.bf16.mxu0 %v1756_v0  ;;  %1626 = vmatprep.subr.bf16.mxu1 %v1756_v0  ;;  %v1731_v0 = vld [vmem:[%s2215_s0 + $0x1b0] ss:$8 sps:$4 sm:$0xff]  }
  0x3e   :  { %565 = vmatpush2.bf16.msra.mxu0 %v1659_v18  ;;  %1642 = vmatpush2.bf16.msra.mxu1 %v1659_v18 }
  0x41   :  { %567 = vmatmul.mubr.bf16.vlgmr.msra.gmra.mxu0 %v1660_v19  ;;  %695 = vmatmul.mubr.bf16.vlgmr.msra.gmra.mxu1 %v1663_v20 }
  0x42   :  { %574 = vmatprep.mubr.bf16.mxu0 %v1666_v21  ;;  %702 = vmatprep.mubr.bf16.mxu1 %v1668_v22 }
  0x49   :  { %575 = vmatmul.mubr.bf16.gmra.mxu0 %v1670_v23  ;;  %703 = vmatmul.mubr.bf16.gmra.mxu1 %v1671_v24 }
  0x4a   :  { %582 = vmatprep.mubr.bf16.mxu0 %v1672_v25  ;;  %710 = vmatprep.mubr.bf16.mxu1 %v1674_v26 }
  0x51   :  { %583 = vmatmul.mubr.bf16.gmra.mxu0 %v1676_v27  ;;  %711 = vmatmul.mubr.bf16.gmra.mxu1 %v1677_v28 }
  0x52   :  { %590 = vmatprep.mubr.bf16.mxu0 %v1678_v29  ;;  %718 = vmatprep.mubr.bf16.mxu1 %v1680_v30 }
  0x59   :  { %591 = vmatmul.mubr.bf16.gmra.mxu0 %v1682_v31  ;;  %719 = vmatmul.mubr.bf16.gmra.mxu1 %v1683_v32 }
  0x5a   :  { %598 = vmatprep.mubr.bf16.mxu0 %v1684_v33  ;;  %726 = vmatprep.mubr.bf16.mxu1 %v1686_v34 }
  0x61   :  { %599 = vmatmul.mubr.bf16.gmra.mxu0 %v1688_v35  ;;  %727 = vmatmul.mubr.bf16.gmra.mxu1 %v1689_v36 }
  0x62   :  { %606 = vmatprep.mubr.bf16.mxu0 %v1690_v37  ;;  %734 = vmatprep.mubr.bf16.mxu1 %v1692_v38 }
  0x69   :  { %607 = vmatmul.mubr.bf16.gmra.mxu0 %v1694_v39  ;;  %735 = vmatmul.mubr.bf16.gmra.mxu1 %v1695_v40 }
  0x6a   :  { %614 = vmatprep.mubr.bf16.mxu0 %v1696_v41  ;;  %742 = vmatprep.mubr.bf16.mxu1 %v1698_v42 }
  0x71   :  { %615 = vmatmul.mubr.bf16.gmra.mxu0 %v1700_v43  ;;  %743 = vmatmul.mubr.bf16.gmra.mxu1 %v1701_v44 }
  0x72   :  { %622 = vmatprep.mubr.bf16.mxu0 %v1702_v45  ;;  %750 = vmatprep.mubr.bf16.mxu1 %v1704_v46 }
  0x79   :  { %623 = vmatmul.mubr.bf16.gmra.mxu0 %v1706_v47  ;;  %751 = vmatmul.mubr.bf16.gmra.mxu1 %v1707_v48 }
  0x7a   :  { %630 = vmatprep.mubr.bf16.mxu0 %v1708_v49  ;;  %758 = vmatprep.mubr.bf16.mxu1 %v1710_v50 }
  0x81   :  { %631 = vmatmul.mubr.bf16.gmra.mxu0 %v1712_v51  ;;  %759 = vmatmul.mubr.bf16.gmra.mxu1 %v1713_v52 }
  0x82   :  { %638 = vmatprep.mubr.bf16.mxu0 %v1714_v53  ;;  %766 = vmatprep.mubr.bf16.mxu1 %v1716_v54 }
  0x89   :  { %639 = vmatmul.mubr.bf16.gmra.mxu0 %v1718_v55  ;;  %767 = vmatmul.mubr.bf16.gmra.mxu1 %v1719_v56 }
  0x8a   :  { %646 = vmatprep.mubr.bf16.mxu0 %v1720_v57  ;;  %774 = vmatprep.mubr.bf16.mxu1 %v1722_v58 }
  0x91   :  { %647 = vmatmul.mubr.bf16.gmra.mxu0 %v1724_v59  ;;  %775 = vmatmul.mubr.bf16.gmra.mxu1 %v1725_v60 }
  0x92   :  { %654 = vmatprep.mubr.bf16.mxu0 %v1726_v61  ;;  %782 = vmatprep.mubr.bf16.mxu1 %v1728_v62 }
  0x99   :  { %655 = vmatmul.mubr.bf16.gmra.mxu0 %v1730_v63  ;;  %783 = vmatmul.mubr.bf16.gmra.mxu1 %v1731_v0 }
  0x9a   :  { %662 = vmatprep.mubr.bf16.mxu0 %v1732_v1  ;;  %790 = vmatprep.mubr.bf16.mxu1 %v1734_v2 }
  0xa1   :  { %663 = vmatmul.mubr.bf16.gmra.mxu0 %v1736_v3  ;;  %791 = vmatmul.mubr.bf16.gmra.mxu1 %v1737_v4 }
  0xa2   :  { %670 = vmatprep.mubr.bf16.mxu0 %v1738_v5  ;;  %798 = vmatprep.mubr.bf16.mxu1 %v1740_v6 }
  0xa9   :  { %671 = vmatmul.mubr.bf16.gmra.mxu0 %v1742_v7  ;;  %799 = vmatmul.mubr.bf16.gmra.mxu1 %v1743_v8 }
  0xaa   :  { %678 = vmatprep.mubr.bf16.mxu0 %v1744_v9  ;;  %806 = vmatprep.mubr.bf16.mxu1 %v1746_v10 }
  0xb1   :  { %679 = vmatmul.mubr.bf16.gmra.mxu0 %v1748_v11  ;;  %807 = vmatmul.mubr.bf16.gmra.mxu1 %v1749_v12 }
  0xb2   :  { %686 = vmatprep.mubr.bf16.mxu0 %v1750_v13  ;;  %814 = vmatprep.mubr.bf16.mxu1 %v1752_v14 }
  0xb9   :  { %687 = vmatmul.mubr.bf16.gmra.mxu0 %v1754_v15  ;;  %815 = vmatmul.mubr.bf16.gmra.mxu1 %v1755_v16 }
 0x101   :  { %v568_v18 = vpop.f32.mrf.mxu0  ;;  %v696_v19 = vpop.f32.mrf.mxu1 }
 0x102   :  { %v569_v22 = vadd.f32 %v2052_v17, %v568_v18  ;;  %v697_v23 = vadd.f32 %v2052_v17, %v696_v19 }
 0x103   :  { %v570_v20 = vpop.f32.mrf.mxu0  ;;  %v698_v21 = vpop.f32.mrf.mxu1 }
 0x104   :  { %v823_v30 = vmax.f32 %v569_v22, 0.0  ;;  %v855_v31 = vmax.f32 %v697_v23, 0.0 }
 0x105   :  { %v571_v24 = vpop.f32.mrf.mxu0  ;;  %v699_v25 = vpop.f32.mrf.mxu1 }
 0x106   :  { %v572_v26 = vadd.f32 %v2052_v17, %v571_v24  ;;  %v700_v27 = vadd.f32 %v2052_v17, %v699_v25 }
 0x107   :  { %v573_v28 = vpop.f32.mrf.mxu0  ;;  %v701_v29 = vpop.f32.mrf.mxu1 }
 0x108   :  { %v824_v32 = vmax.f32 %v572_v26, 0.0  ;;  %v856_v33 = vmax.f32 %v700_v27, 0.0 }
 0x109   :  { %v576_v34 = vpop.f32.mrf.mxu0  ;;  %v704_v35 = vpop.f32.mrf.mxu1 }
 0x10a   :  { %v1423_v36 = vpack.c.bf16 %v824_v32, %v823_v30  ;;  %v1503_v37 = vpack.c.bf16 %v856_v33, %v855_v31  ;;  %v577_v40 = vadd.f32 %v2052_v17, %v576_v34  ;;  %v705_v41 = vadd.f32 %v2052_v17, %v704_v35 }
 0x10b   :  { %v578_v38 = vpop.f32.mrf.mxu0  ;;  %v706_v39 = vpop.f32.mrf.mxu1 }
 0x10c   :  { %1424 = vst [vmem:[%s2217_s3] sm:$0xff] %v1423_v36   ;;  %1595 = vst [vmem:[%s2217_s3 + $0x80] sm:$0xff] %v1503_v37   ;;  %v825_v48 = vmax.f32 %v577_v40, 0.0  ;;  %v857_v49 = vmax.f32 %v705_v41, 0.0 }
 0x10d   :  { %v579_v42 = vpop.f32.mrf.mxu0  ;;  %v707_v43 = vpop.f32.mrf.mxu1 }
 0x10e   :  { %v580_v44 = vadd.f32 %v2052_v17, %v579_v42  ;;  %v708_v45 = vadd.f32 %v2052_v17, %v707_v43 }
 0x10f   :  { %v581_v46 = vpop.f32.mrf.mxu0  ;;  %v709_v47 = vpop.f32.mrf.mxu1 }
 0x110   :  { %v826_v50 = vmax.f32 %v580_v44, 0.0  ;;  %v858_v51 = vmax.f32 %v708_v45, 0.0 }
 0x111   :  { %v584_v52 = vpop.f32.mrf.mxu0  ;;  %v712_v53 = vpop.f32.mrf.mxu1 }
 0x112   :  { %v1428_v54 = vpack.c.bf16 %v826_v50, %v825_v48  ;;  %v1508_v55 = vpack.c.bf16 %v858_v51, %v857_v49  ;;  %v585_v58 = vadd.f32 %v2052_v17, %v584_v52  ;;  %v713_v59 = vadd.f32 %v2052_v17, %v712_v53 }
 0x113   :  { %v586_v56 = vpop.f32.mrf.mxu0  ;;  %v714_v57 = vpop.f32.mrf.mxu1 }
 0x114   :  { %1580 = vst [vmem:[%s2217_s3 + $0x8] sm:$0xff] %v1428_v54   ;;  %1596 = vst [vmem:[%s2217_s3 + $0x88] sm:$0xff] %v1508_v55   ;;  %v827_v2 = vmax.f32 %v585_v58, 0.0  ;;  %v859_v3 = vmax.f32 %v713_v59, 0.0 }
 0x115   :  { %v587_v60 = vpop.f32.mrf.mxu0  ;;  %v715_v61 = vpop.f32.mrf.mxu1 }
 0x116   :  { %v588_v62 = vadd.f32 %v2052_v17, %v587_v60  ;;  %v716_v63 = vadd.f32 %v2052_v17, %v715_v61 }
 0x117   :  { %v589_v0 = vpop.f32.mrf.mxu0  ;;  %v717_v1 = vpop.f32.mrf.mxu1 }
 0x118   :  { %v828_v4 = vmax.f32 %v588_v62, 0.0  ;;  %v860_v5 = vmax.f32 %v716_v63, 0.0 }
 0x119   :  { %v592_v6 = vpop.f32.mrf.mxu0  ;;  %v720_v7 = vpop.f32.mrf.mxu1 }
 0x11a   :  { %v1433_v8 = vpack.c.bf16 %v828_v4, %v827_v2  ;;  %v1513_v9 = vpack.c.bf16 %v860_v5, %v859_v3  ;;  %v593_v12 = vadd.f32 %v2052_v17, %v592_v6  ;;  %v721_v13 = vadd.f32 %v2052_v17, %v720_v7 }
 0x11b   :  { %v594_v10 = vpop.f32.mrf.mxu0  ;;  %v722_v11 = vpop.f32.mrf.mxu1 }
 0x11c   :  { %1581 = vst [vmem:[%s2217_s3 + $0x10] sm:$0xff] %v1433_v8   ;;  %1597 = vst [vmem:[%s2217_s3 + $0x90] sm:$0xff] %v1513_v9   ;;  %v829_v21 = vmax.f32 %v593_v12, 0.0  ;;  %v861_v22 = vmax.f32 %v721_v13, 0.0 }
 0x11d   :  { %v595_v14 = vpop.f32.mrf.mxu0  ;;  %v723_v15 = vpop.f32.mrf.mxu1 }
 0x11e   :  { %v596_v16 = vadd.f32 %v2052_v17, %v595_v14  ;;  %v724_v18 = vadd.f32 %v2052_v17, %v723_v15 }
 0x11f   :  { %v597_v19 = vpop.f32.mrf.mxu0  ;;  %v725_v20 = vpop.f32.mrf.mxu1 }
 0x120   :  { %v830_v23 = vmax.f32 %v596_v16, 0.0  ;;  %v862_v24 = vmax.f32 %v724_v18, 0.0 }
 0x121   :  { %v600_v25 = vpop.f32.mrf.mxu0  ;;  %v728_v26 = vpop.f32.mrf.mxu1 }
 0x122   :  { %v1438_v27 = vpack.c.bf16 %v830_v23, %v829_v21  ;;  %v1518_v28 = vpack.c.bf16 %v862_v24, %v861_v22  ;;  %v601_v31 = vadd.f32 %v2052_v17, %v600_v25  ;;  %v729_v32 = vadd.f32 %v2052_v17, %v728_v26 }
 0x123   :  { %v602_v29 = vpop.f32.mrf.mxu0  ;;  %v730_v30 = vpop.f32.mrf.mxu1 }
 0x124   :  { %1582 = vst [vmem:[%s2217_s3 + $0x18] sm:$0xff] %v1438_v27   ;;  %1598 = vst [vmem:[%s2217_s3 + $0x98] sm:$0xff] %v1518_v28   ;;  %v831_v39 = vmax.f32 %v601_v31, 0.0  ;;  %v863_v40 = vmax.f32 %v729_v32, 0.0 }
 0x125   :  { %v603_v33 = vpop.f32.mrf.mxu0  ;;  %v731_v34 = vpop.f32.mrf.mxu1 }
 0x126   :  { %v604_v35 = vadd.f32 %v2052_v17, %v603_v33  ;;  %v732_v36 = vadd.f32 %v2052_v17, %v731_v34 }
 0x127   :  { %v605_v37 = vpop.f32.mrf.mxu0  ;;  %v733_v38 = vpop.f32.mrf.mxu1 }
 0x128   :  { %v832_v41 = vmax.f32 %v604_v35, 0.0  ;;  %v864_v42 = vmax.f32 %v732_v36, 0.0 }
 0x129   :  { %v608_v43 = vpop.f32.mrf.mxu0  ;;  %v736_v44 = vpop.f32.mrf.mxu1 }
 0x12a   :  { %v1443_v45 = vpack.c.bf16 %v832_v41, %v831_v39  ;;  %v1523_v46 = vpack.c.bf16 %v864_v42, %v863_v40  ;;  %v609_v49 = vadd.f32 %v2052_v17, %v608_v43  ;;  %v737_v50 = vadd.f32 %v2052_v17, %v736_v44 }
 0x12b   :  { %v610_v47 = vpop.f32.mrf.mxu0  ;;  %v738_v48 = vpop.f32.mrf.mxu1 }
 0x12c   :  { %1583 = vst [vmem:[%s2217_s3 + $0x20] sm:$0xff] %v1443_v45   ;;  %1599 = vst [vmem:[%s2217_s3 + $0xa0] sm:$0xff] %v1523_v46   ;;  %v833_v57 = vmax.f32 %v609_v49, 0.0  ;;  %v865_v58 = vmax.f32 %v737_v50, 0.0 }
 0x12d   :  { %v611_v51 = vpop.f32.mrf.mxu0  ;;  %v739_v52 = vpop.f32.mrf.mxu1 }
 0x12e   :  { %v612_v53 = vadd.f32 %v2052_v17, %v611_v51  ;;  %v740_v54 = vadd.f32 %v2052_v17, %v739_v52 }
 0x12f   :  { %v613_v55 = vpop.f32.mrf.mxu0  ;;  %v741_v56 = vpop.f32.mrf.mxu1 }
 0x130   :  { %v834_v59 = vmax.f32 %v612_v53, 0.0  ;;  %v866_v60 = vmax.f32 %v740_v54, 0.0 }
 0x131   :  { %v616_v61 = vpop.f32.mrf.mxu0  ;;  %v744_v62 = vpop.f32.mrf.mxu1 }
 0x132   :  { %v1448_v63 = vpack.c.bf16 %v834_v59, %v833_v57  ;;  %v1528_v0 = vpack.c.bf16 %v866_v60, %v865_v58  ;;  %v617_v3 = vadd.f32 %v2052_v17, %v616_v61  ;;  %v745_v4 = vadd.f32 %v2052_v17, %v744_v62 }
 0x133   :  { %v618_v1 = vpop.f32.mrf.mxu0  ;;  %v746_v2 = vpop.f32.mrf.mxu1 }
 0x134   :  { %1584 = vst [vmem:[%s2217_s3 + $0x28] sm:$0xff] %v1448_v63   ;;  %1600 = vst [vmem:[%s2217_s3 + $0xa8] sm:$0xff] %v1528_v0   ;;  %v835_v11 = vmax.f32 %v617_v3, 0.0  ;;  %v867_v12 = vmax.f32 %v745_v4, 0.0 }
 0x135   :  { %v619_v5 = vpop.f32.mrf.mxu0  ;;  %v747_v6 = vpop.f32.mrf.mxu1 }
 0x136   :  { %v620_v7 = vadd.f32 %v2052_v17, %v619_v5  ;;  %v748_v8 = vadd.f32 %v2052_v17, %v747_v6 }
 0x137   :  { %v621_v9 = vpop.f32.mrf.mxu0  ;;  %v749_v10 = vpop.f32.mrf.mxu1 }
 0x138   :  { %v836_v13 = vmax.f32 %v620_v7, 0.0  ;;  %v868_v14 = vmax.f32 %v748_v8, 0.0 }
 0x139   :  { %v624_v15 = vpop.f32.mrf.mxu0  ;;  %v752_v16 = vpop.f32.mrf.mxu1 }
 0x13a   :  { %v1453_v18 = vpack.c.bf16 %v836_v13, %v835_v11  ;;  %v1533_v19 = vpack.c.bf16 %v868_v14, %v867_v12  ;;  %v625_v22 = vadd.f32 %v2052_v17, %v624_v15  ;;  %v753_v23 = vadd.f32 %v2052_v17, %v752_v16 }
 0x13b   :  { %v626_v20 = vpop.f32.mrf.mxu0  ;;  %v754_v21 = vpop.f32.mrf.mxu1 }
 0x13c   :  { %1585 = vst [vmem:[%s2217_s3 + $0x30] sm:$0xff] %v1453_v18   ;;  %1601 = vst [vmem:[%s2217_s3 + $0xb0] sm:$0xff] %v1533_v19   ;;  %v837_v30 = vmax.f32 %v625_v22, 0.0  ;;  %v869_v31 = vmax.f32 %v753_v23, 0.0 }
 0x13d   :  { %v627_v24 = vpop.f32.mrf.mxu0  ;;  %v755_v25 = vpop.f32.mrf.mxu1 }
 0x13e   :  { %v628_v26 = vadd.f32 %v2052_v17, %v627_v24  ;;  %v756_v27 = vadd.f32 %v2052_v17, %v755_v25 }
 0x13f   :  { %v629_v28 = vpop.f32.mrf.mxu0  ;;  %v757_v29 = vpop.f32.mrf.mxu1 }
 0x140   :  { %v838_v32 = vmax.f32 %v628_v26, 0.0  ;;  %v870_v33 = vmax.f32 %v756_v27, 0.0 }
 0x141   :  { %v632_v34 = vpop.f32.mrf.mxu0  ;;  %v760_v35 = vpop.f32.mrf.mxu1 }
 0x142   :  { %v1458_v36 = vpack.c.bf16 %v838_v32, %v837_v30  ;;  %v1538_v37 = vpack.c.bf16 %v870_v33, %v869_v31  ;;  %v633_v40 = vadd.f32 %v2052_v17, %v632_v34  ;;  %v761_v41 = vadd.f32 %v2052_v17, %v760_v35 }
 0x143   :  { %v634_v38 = vpop.f32.mrf.mxu0  ;;  %v762_v39 = vpop.f32.mrf.mxu1 }
 0x144   :  { %1586 = vst [vmem:[%s2217_s3 + $0x38] sm:$0xff] %v1458_v36   ;;  %1602 = vst [vmem:[%s2217_s3 + $0xb8] sm:$0xff] %v1538_v37   ;;  %v839_v48 = vmax.f32 %v633_v40, 0.0  ;;  %v871_v49 = vmax.f32 %v761_v41, 0.0 }
 0x145   :  { %v635_v42 = vpop.f32.mrf.mxu0  ;;  %v763_v43 = vpop.f32.mrf.mxu1 }
 0x146   :  { %v636_v44 = vadd.f32 %v2052_v17, %v635_v42  ;;  %v764_v45 = vadd.f32 %v2052_v17, %v763_v43 }
 0x147   :  { %v637_v46 = vpop.f32.mrf.mxu0  ;;  %v765_v47 = vpop.f32.mrf.mxu1 }
 0x148   :  { %v840_v50 = vmax.f32 %v636_v44, 0.0  ;;  %v872_v51 = vmax.f32 %v764_v45, 0.0 }
 0x149   :  { %v640_v52 = vpop.f32.mrf.mxu0  ;;  %v768_v53 = vpop.f32.mrf.mxu1 }
 0x14a   :  { %v1463_v54 = vpack.c.bf16 %v840_v50, %v839_v48  ;;  %v1543_v55 = vpack.c.bf16 %v872_v51, %v871_v49  ;;  %v641_v58 = vadd.f32 %v2052_v17, %v640_v52  ;;  %v769_v59 = vadd.f32 %v2052_v17, %v768_v53 }
 0x14b   :  { %v642_v56 = vpop.f32.mrf.mxu0  ;;  %v770_v57 = vpop.f32.mrf.mxu1 }
 0x14c   :  { %1587 = vst [vmem:[%s2217_s3 + $0x40] sm:$0xff] %v1463_v54   ;;  %1603 = vst [vmem:[%s2217_s3 + $0xc0] sm:$0xff] %v1543_v55   ;;  %v841_v2 = vmax.f32 %v641_v58, 0.0  ;;  %v873_v3 = vmax.f32 %v769_v59, 0.0 }
 0x14d   :  { %v643_v60 = vpop.f32.mrf.mxu0  ;;  %v771_v61 = vpop.f32.mrf.mxu1 }
 0x14e   :  { %v644_v62 = vadd.f32 %v2052_v17, %v643_v60  ;;  %v772_v63 = vadd.f32 %v2052_v17, %v771_v61 }
 0x14f   :  { %v645_v0 = vpop.f32.mrf.mxu0  ;;  %v773_v1 = vpop.f32.mrf.mxu1 }
 0x150   :  { %v842_v4 = vmax.f32 %v644_v62, 0.0  ;;  %v874_v5 = vmax.f32 %v772_v63, 0.0 }
 0x151   :  { %v648_v6 = vpop.f32.mrf.mxu0  ;;  %v776_v7 = vpop.f32.mrf.mxu1 }
 0x152   :  { %v1468_v8 = vpack.c.bf16 %v842_v4, %v841_v2  ;;  %v1548_v9 = vpack.c.bf16 %v874_v5, %v873_v3  ;;  %v649_v12 = vadd.f32 %v2052_v17, %v648_v6  ;;  %v777_v13 = vadd.f32 %v2052_v17, %v776_v7 }
 0x153   :  { %v650_v10 = vpop.f32.mrf.mxu0  ;;  %v778_v11 = vpop.f32.mrf.mxu1 }
 0x154   :  { %1588 = vst [vmem:[%s2217_s3 + $0x48] sm:$0xff] %v1468_v8   ;;  %1604 = vst [vmem:[%s2217_s3 + $0xc8] sm:$0xff] %v1548_v9   ;;  %v843_v21 = vmax.f32 %v649_v12, 0.0  ;;  %v875_v22 = vmax.f32 %v777_v13, 0.0 }
 0x155   :  { %v651_v14 = vpop.f32.mrf.mxu0  ;;  %v779_v15 = vpop.f32.mrf.mxu1 }
 0x156   :  { %v652_v16 = vadd.f32 %v2052_v17, %v651_v14  ;;  %v780_v18 = vadd.f32 %v2052_v17, %v779_v15 }
 0x157   :  { %v653_v19 = vpop.f32.mrf.mxu0  ;;  %v781_v20 = vpop.f32.mrf.mxu1 }
 0x158   :  { %v844_v23 = vmax.f32 %v652_v16, 0.0  ;;  %v876_v24 = vmax.f32 %v780_v18, 0.0 }
 0x159   :  { %v656_v25 = vpop.f32.mrf.mxu0  ;;  %v784_v26 = vpop.f32.mrf.mxu1 }
 0x15a   :  { %v1473_v27 = vpack.c.bf16 %v844_v23, %v843_v21  ;;  %v1553_v28 = vpack.c.bf16 %v876_v24, %v875_v22  ;;  %v657_v31 = vadd.f32 %v2052_v17, %v656_v25  ;;  %v785_v32 = vadd.f32 %v2052_v17, %v784_v26 }
 0x15b   :  { %v658_v29 = vpop.f32.mrf.mxu0  ;;  %v786_v30 = vpop.f32.mrf.mxu1 }
 0x15c   :  { %1589 = vst [vmem:[%s2217_s3 + $0x50] sm:$0xff] %v1473_v27   ;;  %1605 = vst [vmem:[%s2217_s3 + $0xd0] sm:$0xff] %v1553_v28   ;;  %v845_v39 = vmax.f32 %v657_v31, 0.0  ;;  %v877_v40 = vmax.f32 %v785_v32, 0.0 }
 0x15d   :  { %v659_v33 = vpop.f32.mrf.mxu0  ;;  %v787_v34 = vpop.f32.mrf.mxu1 }
 0x15e   :  { %v660_v35 = vadd.f32 %v2052_v17, %v659_v33  ;;  %v788_v36 = vadd.f32 %v2052_v17, %v787_v34 }
 0x15f   :  { %v661_v37 = vpop.f32.mrf.mxu0  ;;  %v789_v38 = vpop.f32.mrf.mxu1 }
 0x160   :  { %v846_v41 = vmax.f32 %v660_v35, 0.0  ;;  %v878_v42 = vmax.f32 %v788_v36, 0.0 }
 0x161   :  { %v664_v43 = vpop.f32.mrf.mxu0  ;;  %v792_v44 = vpop.f32.mrf.mxu1 }
 0x162   :  { %v1478_v45 = vpack.c.bf16 %v846_v41, %v845_v39  ;;  %v1558_v46 = vpack.c.bf16 %v878_v42, %v877_v40  ;;  %v665_v49 = vadd.f32 %v2052_v17, %v664_v43  ;;  %v793_v50 = vadd.f32 %v2052_v17, %v792_v44 }
 0x163   :  { %v666_v47 = vpop.f32.mrf.mxu0  ;;  %v794_v48 = vpop.f32.mrf.mxu1 }
 0x164   :  { %1590 = vst [vmem:[%s2217_s3 + $0x58] sm:$0xff] %v1478_v45   ;;  %1606 = vst [vmem:[%s2217_s3 + $0xd8] sm:$0xff] %v1558_v46   ;;  %v847_v57 = vmax.f32 %v665_v49, 0.0  ;;  %v879_v58 = vmax.f32 %v793_v50, 0.0 }
 0x165   :  { %v667_v51 = vpop.f32.mrf.mxu0  ;;  %v795_v52 = vpop.f32.mrf.mxu1 }
 0x166   :  { %v668_v53 = vadd.f32 %v2052_v17, %v667_v51  ;;  %v796_v54 = vadd.f32 %v2052_v17, %v795_v52 }
 0x167   :  { %v669_v55 = vpop.f32.mrf.mxu0  ;;  %v797_v56 = vpop.f32.mrf.mxu1 }
 0x168   :  { %v848_v59 = vmax.f32 %v668_v53, 0.0  ;;  %v880_v60 = vmax.f32 %v796_v54, 0.0 }
 0x169   :  { %v672_v61 = vpop.f32.mrf.mxu0  ;;  %v800_v62 = vpop.f32.mrf.mxu1 }
 0x16a   :  { %v1483_v63 = vpack.c.bf16 %v848_v59, %v847_v57  ;;  %v1563_v0 = vpack.c.bf16 %v880_v60, %v879_v58  ;;  %v673_v3 = vadd.f32 %v2052_v17, %v672_v61  ;;  %v801_v4 = vadd.f32 %v2052_v17, %v800_v62 }
 0x16b   :  { %v674_v1 = vpop.f32.mrf.mxu0  ;;  %v802_v2 = vpop.f32.mrf.mxu1 }
 0x16c   :  { %1591 = vst [vmem:[%s2217_s3 + $0x60] sm:$0xff] %v1483_v63   ;;  %1607 = vst [vmem:[%s2217_s3 + $0xe0] sm:$0xff] %v1563_v0   ;;  %v849_v11 = vmax.f32 %v673_v3, 0.0  ;;  %v881_v12 = vmax.f32 %v801_v4, 0.0 }
 0x16d   :  { %v675_v5 = vpop.f32.mrf.mxu0  ;;  %v803_v6 = vpop.f32.mrf.mxu1 }
 0x16e   :  { %v676_v7 = vadd.f32 %v2052_v17, %v675_v5  ;;  %v804_v8 = vadd.f32 %v2052_v17, %v803_v6 }
 0x16f   :  { %v677_v9 = vpop.f32.mrf.mxu0  ;;  %v805_v10 = vpop.f32.mrf.mxu1 }
 0x170   :  { %v850_v13 = vmax.f32 %v676_v7, 0.0  ;;  %v882_v14 = vmax.f32 %v804_v8, 0.0 }
 0x171   :  { %v680_v15 = vpop.f32.mrf.mxu0  ;;  %v808_v16 = vpop.f32.mrf.mxu1 }
 0x172   :  { %v1488_v18 = vpack.c.bf16 %v850_v13, %v849_v11  ;;  %v1568_v19 = vpack.c.bf16 %v882_v14, %v881_v12  ;;  %v681_v22 = vadd.f32 %v2052_v17, %v680_v15  ;;  %v809_v23 = vadd.f32 %v2052_v17, %v808_v16 }
 0x173   :  { %v682_v20 = vpop.f32.mrf.mxu0  ;;  %v810_v21 = vpop.f32.mrf.mxu1 }
 0x174   :  { %1592 = vst [vmem:[%s2217_s3 + $0x68] sm:$0xff] %v1488_v18   ;;  %1608 = vst [vmem:[%s2217_s3 + $0xe8] sm:$0xff] %v1568_v19   ;;  %v851_v30 = vmax.f32 %v681_v22, 0.0  ;;  %v883_v31 = vmax.f32 %v809_v23, 0.0 }
 0x175   :  { %v683_v24 = vpop.f32.mrf.mxu0  ;;  %v811_v25 = vpop.f32.mrf.mxu1 }
 0x176   :  { %v684_v26 = vadd.f32 %v2052_v17, %v683_v24  ;;  %v812_v27 = vadd.f32 %v2052_v17, %v811_v25 }
 0x177   :  { %v685_v28 = vpop.f32.mrf.mxu0  ;;  %v813_v29 = vpop.f32.mrf.mxu1 }
 0x178   :  { %v852_v32 = vmax.f32 %v684_v26, 0.0  ;;  %v884_v33 = vmax.f32 %v812_v27, 0.0 }
 0x179   :  { %v688_v34 = vpop.f32.mrf.mxu0  ;;  %v816_v35 = vpop.f32.mrf.mxu1 }
 0x17a   :  { %v1493_v36 = vpack.c.bf16 %v852_v32, %v851_v30  ;;  %v1573_v37 = vpack.c.bf16 %v884_v33, %v883_v31  ;;  %v689_v40 = vadd.f32 %v2052_v17, %v688_v34  ;;  %v817_v41 = vadd.f32 %v2052_v17, %v816_v35 }
 0x17b   :  { %v690_v38 = vpop.f32.mrf.mxu0  ;;  %v818_v39 = vpop.f32.mrf.mxu1 }
 0x17c   :  { %1593 = vst [vmem:[%s2217_s3 + $0x70] sm:$0xff] %v1493_v36   ;;  %1609 = vst [vmem:[%s2217_s3 + $0xf0] sm:$0xff] %v1573_v37   ;;  %v853_v48 = vmax.f32 %v689_v40, 0.0  ;;  %v885_v49 = vmax.f32 %v817_v41, 0.0 }
 0x17d   :  { %v691_v42 = vpop.f32.mrf.mxu0  ;;  %v819_v43 = vpop.f32.mrf.mxu1 }
 0x17e   :  { %v692_v44 = vadd.f32 %v2052_v17, %v691_v42  ;;  %v820_v45 = vadd.f32 %v2052_v17, %v819_v43 }
 0x17f   :  { %v693_v46 = vpop.f32.mrf.mxu0  ;;  %v821_v47 = vpop.f32.mrf.mxu1 }
 0x180   :  { %v854_v50 = vmax.f32 %v692_v44, 0.0  ;;  %v886_v51 = vmax.f32 %v820_v45, 0.0 }
 0x182   :  { %v1498_v52 = vpack.c.bf16 %v854_v50, %v853_v48  ;;  %v1578_v53 = vpack.c.bf16 %v886_v51, %v885_v49 }
 0x184   :  { %1594 = vst [vmem:[%s2217_s3 + $0x78] sm:$0xff] %v1498_v52   ;;  %1610 = vst [vmem:[%s2217_s3 + $0xf8] sm:$0xff] %v1578_v53  }

// kernel: _lambda_.23
= control target key start
LH: loop header
LB: loop body
LE: loop exit
PB: predicated region body
PF: predicated region fallthrough
CT: control target
= control target key end

     0   :  { %s885_s0 = inlined_call_operand.vmem [shape: bf16[128,128], index: 0, kind: input, shape index: {}]   ;;  %s886_s1 = inlined_call_operand.vmem [shape: bf16[128,128], index: 1, kind: input, shape index: {}]   ;;  %s887_s2 = inlined_call_operand.vmem [shape: bf16[128,128], index: 2, kind: input, shape index: {}]   ;;  %s888_s3 = inlined_call_operand.vmem [shape: bf16[128,128], index: 3, kind: input, shape index: {}]   ;;  %s889_s4 = inlined_call_operand.vmem [shape: bf16[128,128], index: 4, kind: input, shape index: {}]   ;;  %s890_s5 = inlined_call_operand.vmem [shape: bf16[128,128], index: 5, kind: input, shape index: {}]   ;;  %s891_s6 = inlined_call_operand.vmem [shape: bf16[128,128], index: 6, kind: input, shape index: {}]   ;;  %s892_s7 = inlined_call_operand.vmem [shape: bf16[128,128], index: 7, kind: input, shape index: {}]   ;;  %s893_s8 = inlined_call_operand.vmem [shape: bf16[128,128], index: 8, kind: input, shape index: {}]   ;;  %s894_s9 = inlined_call_operand.vmem [shape: bf16[128,128], index: 9, kind: output, shape index: {}]  }
   0x1   :  { %v32_v0 = vld [vmem:[%s885_s0] sm:$0xf]  ;;  %v33_v1 = vld [vmem:[%s885_s0 + $0x4] sm:$0xf]  ;;  %v34_v27 = vld [vmem:[%s885_s0 + $0x8] sm:$0xf] }
   0x2   :  { %v48_v2 = vld [vmem:[%s886_s1] sm:$0xf]  ;;  %v49_v3 = vld [vmem:[%s886_s1 + $0x4] sm:$0xf]  ;;  %v35_v28 = vld [vmem:[%s885_s0 + $0xc] sm:$0xf] }
   0x3   :  { %v64_v4 = vld [vmem:[%s887_s2] sm:$0xf]  ;;  %v65_v5 = vld [vmem:[%s887_s2 + $0x4] sm:$0xf]  ;;  %v176_v6 = vmax.bf16 %v48_v2, %v32_v0  ;;  %v177_v10 = vmax.bf16 %v49_v3, %v33_v1  ;;  %v50_v29 = vld [vmem:[%s886_s1 + $0x8] sm:$0xf] }
   0x4   :  { %v80_v7 = vld [vmem:[%s888_s3] sm:$0xf]  ;;  %v81_v8 = vld [vmem:[%s888_s3 + $0x4] sm:$0xf]  ;;  %v51_v32 = vld [vmem:[%s886_s1 + $0xc] sm:$0xf]  ;;  %v178_v35 = vmax.bf16 %v50_v29, %v34_v27 }
   0x5   :  { %v96_v9 = vld [vmem:[%s889_s4] sm:$0xf]  ;;  %v97_v11 = vld [vmem:[%s889_s4 + $0x4] sm:$0xf]  ;;  %v192_v14 = vmax.bf16 %v80_v7, %v64_v4  ;;  %v193_v15 = vmax.bf16 %v81_v8, %v65_v5  ;;  %v66_v33 = vld [vmem:[%s887_s2 + $0x8] sm:$0xf]  ;;  %v179_v40 = vmax.bf16 %v51_v32, %v35_v28 }
   0x6   :  { %v112_v12 = vld [vmem:[%s890_s5] sm:$0xf]  ;;  %v113_v13 = vld [vmem:[%s890_s5 + $0x4] sm:$0xf]  ;;  %v67_v34 = vld [vmem:[%s887_s2 + $0xc] sm:$0xf] }
   0x7   :  { %v128_v16 = vld [vmem:[%s891_s6] sm:$0xf]  ;;  %v129_v17 = vld [vmem:[%s891_s6 + $0x4] sm:$0xf]  ;;  %v208_v19 = vmax.bf16 %v112_v12, %v96_v9  ;;  %v209_v20 = vmax.bf16 %v113_v13, %v97_v11  ;;  %v240_v23 = vmax.bf16 %v192_v14, %v176_v6  ;;  %v241_v26 = vmax.bf16 %v193_v15, %v177_v10  ;;  %v82_v37 = vld [vmem:[%s888_s3 + $0x8] sm:$0xf] }
   0x8   :  { %v144_v18 = vld [vmem:[%s892_s7] sm:$0xf]  ;;  %v145_v21 = vld [vmem:[%s892_s7 + $0x4] sm:$0xf]  ;;  %v83_v38 = vld [vmem:[%s888_s3 + $0xc] sm:$0xf]  ;;  %v194_v45 = vmax.bf16 %v82_v37, %v66_v33 }
   0x9   :  { %v224_v22 = vmax.bf16 %v144_v18, %v128_v16  ;;  %v160_v24 = vld [vmem:[%s893_s8] sm:$0xf]  ;;  %v225_v25 = vmax.bf16 %v145_v21, %v129_v17  ;;  %v161_v30 = vld [vmem:[%s893_s8 + $0x4] sm:$0xf]  ;;  %v98_v39 = vld [vmem:[%s889_s4 + $0x8] sm:$0xf]  ;;  %v195_v46 = vmax.bf16 %v83_v38, %v67_v34 }
   0xa   :  { %v99_v42 = vld [vmem:[%s889_s4 + $0xc] sm:$0xf]  ;;  %v114_v43 = vld [vmem:[%s890_s5 + $0x8] sm:$0xf]  ;;  %v242_v56 = vmax.bf16 %v194_v45, %v178_v35  ;;  %v36_v61 = vld [vmem:[%s885_s0 + $0x10] sm:$0xf] }
   0xb   :  { %v256_v31 = vmax.bf16 %v224_v22, %v208_v19  ;;  %v257_v36 = vmax.bf16 %v225_v25, %v209_v20  ;;  %v115_v44 = vld [vmem:[%s890_s5 + $0xc] sm:$0xf]  ;;  %v130_v48 = vld [vmem:[%s891_s6 + $0x8] sm:$0xf]  ;;  %v210_v51 = vmax.bf16 %v114_v43, %v98_v39  ;;  %v243_v60 = vmax.bf16 %v195_v46, %v179_v40  ;;  %v37_v62 = vld [vmem:[%s885_s0 + $0x14] sm:$0xf] }
   0xc   :  { %v131_v49 = vld [vmem:[%s891_s6 + $0xc] sm:$0xf]  ;;  %v146_v50 = vld [vmem:[%s892_s7 + $0x8] sm:$0xf]  ;;  %v211_v52 = vmax.bf16 %v115_v44, %v99_v42  ;;  %v52_v63 = vld [vmem:[%s886_s1 + $0x10] sm:$0xf] }
   0xd   :  { %v272_v41 = vmax.bf16 %v256_v31, %v240_v23  ;;  %v273_v47 = vmax.bf16 %v257_v36, %v241_v26  ;;  %v147_v54 = vld [vmem:[%s892_s7 + $0xc] sm:$0xf]  ;;  %v226_v55 = vmax.bf16 %v146_v50, %v130_v48  ;;  %v162_v58 = vld [vmem:[%s893_s8 + $0x8] sm:$0xf]  ;;  %v53_v2 = vld [vmem:[%s886_s1 + $0x14] sm:$0xf]  ;;  %v180_v5 = vmax.bf16 %v52_v63, %v36_v61 }
   0xe   :  { %v227_v59 = vmax.bf16 %v147_v54, %v131_v49  ;;  %v163_v0 = vld [vmem:[%s893_s8 + $0xc] sm:$0xf]  ;;  %v68_v3 = vld [vmem:[%s887_s2 + $0x10] sm:$0xf]  ;;  %v69_v4 = vld [vmem:[%s887_s2 + $0x14] sm:$0xf]  ;;  %v181_v11 = vmax.bf16 %v53_v2, %v37_v62 }
   0xf   :  { %v288_v53 = vmax.bf16 %v272_v41, %v160_v24  ;;  %v289_v57 = vmax.bf16 %v273_v47, %v161_v30  ;;  %v258_v1 = vmax.bf16 %v226_v55, %v210_v51  ;;  %v84_v8 = vld [vmem:[%s888_s3 + $0x10] sm:$0xf]  ;;  %v85_v9 = vld [vmem:[%s888_s3 + $0x14] sm:$0xf]  ;;  %v38_v32 = vld [vmem:[%s885_s0 + $0x18] sm:$0xf] }
  0x10   :  { %v259_v7 = vmax.bf16 %v227_v59, %v211_v52  ;;  %v100_v10 = vld [vmem:[%s889_s4 + $0x10] sm:$0xf]  ;;  %v101_v13 = vld [vmem:[%s889_s4 + $0x14] sm:$0xf]  ;;  %v196_v16 = vmax.bf16 %v84_v8, %v68_v3  ;;  %v197_v17 = vmax.bf16 %v85_v9, %v69_v4  ;;  %v39_v33 = vld [vmem:[%s885_s0 + $0x1c] sm:$0xf] }
  0x11   :  { %v364_v6 = vcombine.low %v288_v53, %v289_v57  ;;  %v274_v12 = vmax.bf16 %v258_v1, %v242_v56  ;;  %v116_v14 = vld [vmem:[%s890_s5 + $0x10] sm:$0xf]  ;;  %v117_v15 = vld [vmem:[%s890_s5 + $0x14] sm:$0xf]  ;;  %v54_v34 = vld [vmem:[%s886_s1 + $0x18] sm:$0xf] }
  0x12   :  { %v275_v18 = vmax.bf16 %v259_v7, %v243_v60  ;;  %v132_v19 = vld [vmem:[%s891_s6 + $0x10] sm:$0xf]  ;;  %v133_v20 = vld [vmem:[%s891_s6 + $0x14] sm:$0xf]  ;;  %v212_v22 = vmax.bf16 %v116_v14, %v100_v10  ;;  %v213_v23 = vmax.bf16 %v117_v15, %v101_v13  ;;  %v244_v27 = vmax.bf16 %v196_v16, %v180_v5  ;;  %v55_v37 = vld [vmem:[%s886_s1 + $0x1c] sm:$0xf] }
  0x13   :  { %328 = vst [vmem:[%s894_s9] sm:$0xff] %v364_v6   ;;  %v148_v21 = vld [vmem:[%s892_s7 + $0x10] sm:$0xf]  ;;  %v290_v24 = vmax.bf16 %v274_v12, %v162_v58  ;;  %v149_v25 = vld [vmem:[%s892_s7 + $0x14] sm:$0xf]  ;;  %v245_v31 = vmax.bf16 %v197_v17, %v181_v11  ;;  %v70_v38 = vld [vmem:[%s887_s2 + $0x18] sm:$0xf]  ;;  %v182_v40 = vmax.bf16 %v54_v34, %v38_v32  ;;  %v183_v46 = vmax.bf16 %v55_v37, %v39_v33 }
  0x14   :  { %v228_v26 = vmax.bf16 %v148_v21, %v132_v19  ;;  %v291_v28 = vmax.bf16 %v275_v18, %v163_v0  ;;  %v164_v29 = vld [vmem:[%s893_s8 + $0x10] sm:$0xf]  ;;  %v229_v30 = vmax.bf16 %v149_v25, %v133_v20  ;;  %v165_v35 = vld [vmem:[%s893_s8 + $0x14] sm:$0xf]  ;;  %v71_v39 = vld [vmem:[%s887_s2 + $0x1c] sm:$0xf] }
  0x15   :  { %v86_v43 = vld [vmem:[%s888_s3 + $0x18] sm:$0xf]  ;;  %v87_v44 = vld [vmem:[%s888_s3 + $0x1c] sm:$0xf]  ;;  %v40_v3 = vld [vmem:[%s885_s0 + $0x20] sm:$0xf] }
  0x16   :  { %v260_v36 = vmax.bf16 %v228_v26, %v212_v22  ;;  %v365_v41 = vcombine.low %v290_v24, %v291_v28  ;;  %v261_v42 = vmax.bf16 %v229_v30, %v213_v23  ;;  %v102_v45 = vld [vmem:[%s889_s4 + $0x18] sm:$0xf]  ;;  %v103_v48 = vld [vmem:[%s889_s4 + $0x1c] sm:$0xf]  ;;  %v198_v51 = vmax.bf16 %v86_v43, %v70_v38  ;;  %v41_v4 = vld [vmem:[%s885_s0 + $0x24] sm:$0xf] }
  0x17   :  { %v118_v49 = vld [vmem:[%s890_s5 + $0x18] sm:$0xf]  ;;  %v119_v50 = vld [vmem:[%s890_s5 + $0x1c] sm:$0xf]  ;;  %v199_v52 = vmax.bf16 %v87_v44, %v71_v39  ;;  %v56_v5 = vld [vmem:[%s886_s1 + $0x20] sm:$0xf] }
  0x18   :  { %v276_v47 = vmax.bf16 %v260_v36, %v244_v27  ;;  %366 = vst [vmem:[%s894_s9 + $0x8] sm:$0xff] %v365_v41   ;;  %v277_v53 = vmax.bf16 %v261_v42, %v245_v31  ;;  %v134_v54 = vld [vmem:[%s891_s6 + $0x18] sm:$0xf]  ;;  %v135_v55 = vld [vmem:[%s891_s6 + $0x1c] sm:$0xf]  ;;  %v214_v57 = vmax.bf16 %v118_v49, %v102_v45  ;;  %v215_v58 = vmax.bf16 %v119_v50, %v103_v48 }
  0x19   :  { %v150_v56 = vld [vmem:[%s892_s7 + $0x18] sm:$0xf]  ;;  %v151_v60 = vld [vmem:[%s892_s7 + $0x1c] sm:$0xf]  ;;  %v246_v62 = vmax.bf16 %v198_v51, %v182_v40  ;;  %v247_v2 = vmax.bf16 %v199_v52, %v183_v46  ;;  %v57_v8 = vld [vmem:[%s886_s1 + $0x24] sm:$0xf]  ;;  %v184_v11 = vmax.bf16 %v56_v5, %v40_v3 }
  0x1a   :  { %v292_v59 = vmax.bf16 %v276_v47, %v164_v29  ;;  %v230_v61 = vmax.bf16 %v150_v56, %v134_v54  ;;  %v293_v63 = vmax.bf16 %v277_v53, %v165_v35  ;;  %v166_v0 = vld [vmem:[%s893_s8 + $0x18] sm:$0xf]  ;;  %v231_v1 = vmax.bf16 %v151_v60, %v135_v55  ;;  %v167_v6 = vld [vmem:[%s893_s8 + $0x1c] sm:$0xf]  ;;  %v72_v9 = vld [vmem:[%s887_s2 + $0x20] sm:$0xf] }
  0x1b   :  { %v73_v10 = vld [vmem:[%s887_s2 + $0x24] sm:$0xf]  ;;  %v88_v14 = vld [vmem:[%s888_s3 + $0x20] sm:$0xf]  ;;  %v185_v17 = vmax.bf16 %v57_v8, %v41_v4  ;;  %v42_v38 = vld [vmem:[%s885_s0 + $0x28] sm:$0xf] }
  0x1c   :  { %v262_v7 = vmax.bf16 %v230_v61, %v214_v57  ;;  %v367_v12 = vcombine.low %v292_v59, %v293_v63  ;;  %v263_v13 = vmax.bf16 %v231_v1, %v215_v58  ;;  %v89_v15 = vld [vmem:[%s888_s3 + $0x24] sm:$0xf]  ;;  %v104_v16 = vld [vmem:[%s889_s4 + $0x20] sm:$0xf]  ;;  %v200_v22 = vmax.bf16 %v88_v14, %v72_v9  ;;  %v43_v39 = vld [vmem:[%s885_s0 + $0x2c] sm:$0xf] }
  0x1d   :  { %v105_v19 = vld [vmem:[%s889_s4 + $0x24] sm:$0xf]  ;;  %v120_v20 = vld [vmem:[%s890_s5 + $0x20] sm:$0xf]  ;;  %v201_v23 = vmax.bf16 %v89_v15, %v73_v10  ;;  %v58_v40 = vld [vmem:[%s886_s1 + $0x28] sm:$0xf] }
  0x1e   :  { %v278_v18 = vmax.bf16 %v262_v7, %v246_v62  ;;  %v121_v21 = vld [vmem:[%s890_s5 + $0x24] sm:$0xf]  ;;  %368 = vst [vmem:[%s894_s9 + $0x10] sm:$0xff] %v367_v12   ;;  %v279_v24 = vmax.bf16 %v263_v13, %v247_v2  ;;  %v136_v25 = vld [vmem:[%s891_s6 + $0x20] sm:$0xf]  ;;  %v216_v28 = vmax.bf16 %v120_v20, %v104_v16  ;;  %v248_v33 = vmax.bf16 %v200_v22, %v184_v11 }
  0x1f   :  { %v137_v26 = vld [vmem:[%s891_s6 + $0x24] sm:$0xf]  ;;  %v152_v27 = vld [vmem:[%s892_s7 + $0x20] sm:$0xf]  ;;  %v217_v29 = vmax.bf16 %v121_v21, %v105_v19  ;;  %v249_v37 = vmax.bf16 %v201_v23, %v185_v17  ;;  %v59_v43 = vld [vmem:[%s886_s1 + $0x2c] sm:$0xf]  ;;  %v186_v46 = vmax.bf16 %v58_v40, %v42_v38 }
  0x20   :  { %v294_v30 = vmax.bf16 %v278_v18, %v166_v0  ;;  %v153_v31 = vld [vmem:[%s892_s7 + $0x24] sm:$0xf]  ;;  %v232_v32 = vmax.bf16 %v152_v27, %v136_v25  ;;  %v295_v34 = vmax.bf16 %v279_v24, %v167_v6  ;;  %v168_v35 = vld [vmem:[%s893_s8 + $0x20] sm:$0xf]  ;;  %v74_v44 = vld [vmem:[%s887_s2 + $0x28] sm:$0xf]  ;;  %v187_v52 = vmax.bf16 %v59_v43, %v43_v39 }
  0x21   :  { %v233_v36 = vmax.bf16 %v153_v31, %v137_v26  ;;  %v169_v41 = vld [vmem:[%s893_s8 + $0x24] sm:$0xf]  ;;  %v75_v45 = vld [vmem:[%s887_s2 + $0x2c] sm:$0xf]  ;;  %v90_v49 = vld [vmem:[%s888_s3 + $0x28] sm:$0xf] }
  0x22   :  { %v264_v42 = vmax.bf16 %v232_v32, %v216_v28  ;;  %v369_v47 = vcombine.low %v294_v30, %v295_v34  ;;  %v91_v50 = vld [vmem:[%s888_s3 + $0x2c] sm:$0xf]  ;;  %v106_v51 = vld [vmem:[%s889_s4 + $0x28] sm:$0xf]  ;;  %v202_v57 = vmax.bf16 %v90_v49, %v74_v44  ;;  %v44_v9 = vld [vmem:[%s885_s0 + $0x30] sm:$0xf] }
  0x23   :  { %v265_v48 = vmax.bf16 %v233_v36, %v217_v29  ;;  %v107_v54 = vld [vmem:[%s889_s4 + $0x2c] sm:$0xf]  ;;  %v122_v55 = vld [vmem:[%s890_s5 + $0x28] sm:$0xf]  ;;  %v203_v58 = vmax.bf16 %v91_v50, %v75_v45  ;;  %v45_v10 = vld [vmem:[%s885_s0 + $0x34] sm:$0xf] }
  0x24   :  { %v280_v53 = vmax.bf16 %v264_v42, %v248_v33  ;;  %v123_v56 = vld [vmem:[%s890_s5 + $0x2c] sm:$0xf]  ;;  %370 = vst [vmem:[%s894_s9 + $0x18] sm:$0xff] %v369_v47   ;;  %v138_v60 = vld [vmem:[%s891_s6 + $0x28] sm:$0xf]  ;;  %v218_v63 = vmax.bf16 %v122_v55, %v106_v51  ;;  %v250_v4 = vmax.bf16 %v202_v57, %v186_v46 }
  0x25   :  { %v281_v59 = vmax.bf16 %v265_v48, %v249_v37  ;;  %v139_v61 = vld [vmem:[%s891_s6 + $0x2c] sm:$0xf]  ;;  %v154_v62 = vld [vmem:[%s892_s7 + $0x28] sm:$0xf]  ;;  %v219_v0 = vmax.bf16 %v123_v56, %v107_v54  ;;  %v251_v8 = vmax.bf16 %v203_v58, %v187_v52  ;;  %v60_v11 = vld [vmem:[%s886_s1 + $0x30] sm:$0xf] }
  0x26   :  { %v296_v1 = vmax.bf16 %v280_v53, %v168_v35  ;;  %v155_v2 = vld [vmem:[%s892_s7 + $0x2c] sm:$0xf]  ;;  %v234_v3 = vmax.bf16 %v154_v62, %v138_v60  ;;  %v170_v6 = vld [vmem:[%s893_s8 + $0x28] sm:$0xf]  ;;  %v61_v14 = vld [vmem:[%s886_s1 + $0x34] sm:$0xf]  ;;  %v188_v17 = vmax.bf16 %v60_v11, %v44_v9 }
  0x27   :  { %v297_v5 = vmax.bf16 %v281_v59, %v169_v41  ;;  %v235_v7 = vmax.bf16 %v155_v2, %v139_v61  ;;  %v171_v12 = vld [vmem:[%s893_s8 + $0x2c] sm:$0xf]  ;;  %v76_v15 = vld [vmem:[%s887_s2 + $0x30] sm:$0xf]  ;;  %v77_v16 = vld [vmem:[%s887_s2 + $0x34] sm:$0xf]  ;;  %v189_v23 = vmax.bf16 %v61_v14, %v45_v10 }
  0x28   :  { %v266_v13 = vmax.bf16 %v234_v3, %v218_v63  ;;  %v92_v20 = vld [vmem:[%s888_s3 + $0x30] sm:$0xf]  ;;  %v93_v21 = vld [vmem:[%s888_s3 + $0x34] sm:$0xf]  ;;  %v46_v44 = vld [vmem:[%s885_s0 + $0x38] sm:$0xf] }
  0x29   :  { %v371_v18 = vcombine.low %v296_v1, %v297_v5  ;;  %v267_v19 = vmax.bf16 %v235_v7, %v219_v0  ;;  %v108_v22 = vld [vmem:[%s889_s4 + $0x30] sm:$0xf]  ;;  %v109_v25 = vld [vmem:[%s889_s4 + $0x34] sm:$0xf]  ;;  %v204_v28 = vmax.bf16 %v92_v20, %v76_v15  ;;  %v205_v29 = vmax.bf16 %v93_v21, %v77_v16  ;;  %v47_v45 = vld [vmem:[%s885_s0 + $0x3c] sm:$0xf] }
  0x2a   :  { %v282_v24 = vmax.bf16 %v266_v13, %v250_v4  ;;  %v124_v26 = vld [vmem:[%s890_s5 + $0x30] sm:$0xf]  ;;  %v125_v27 = vld [vmem:[%s890_s5 + $0x34] sm:$0xf]  ;;  %v62_v46 = vld [vmem:[%s886_s1 + $0x38] sm:$0xf] }
  0x2b   :  { %372 = vst [vmem:[%s894_s9 + $0x20] sm:$0xff] %v371_v18   ;;  %v283_v30 = vmax.bf16 %v267_v19, %v251_v8  ;;  %v140_v31 = vld [vmem:[%s891_s6 + $0x30] sm:$0xf]  ;;  %v141_v32 = vld [vmem:[%s891_s6 + $0x34] sm:$0xf]  ;;  %v220_v34 = vmax.bf16 %v124_v26, %v108_v22  ;;  %v221_v35 = vmax.bf16 %v125_v27, %v109_v25  ;;  %v252_v39 = vmax.bf16 %v204_v28, %v188_v17 }
  0x2c   :  { %v156_v33 = vld [vmem:[%s892_s7 + $0x30] sm:$0xf]  ;;  %v298_v36 = vmax.bf16 %v282_v24, %v170_v6  ;;  %v157_v37 = vld [vmem:[%s892_s7 + $0x34] sm:$0xf]  ;;  %v253_v43 = vmax.bf16 %v205_v29, %v189_v23  ;;  %v63_v49 = vld [vmem:[%s886_s1 + $0x3c] sm:$0xf]  ;;  %v190_v52 = vmax.bf16 %v62_v46, %v46_v44 }
  0x2d   :  { %v236_v38 = vmax.bf16 %v156_v33, %v140_v31  ;;  %v299_v40 = vmax.bf16 %v283_v30, %v171_v12  ;;  %v172_v41 = vld [vmem:[%s893_s8 + $0x30] sm:$0xf]  ;;  %v237_v42 = vmax.bf16 %v157_v37, %v141_v32  ;;  %v173_v47 = vld [vmem:[%s893_s8 + $0x34] sm:$0xf]  ;;  %v78_v50 = vld [vmem:[%s887_s2 + $0x38] sm:$0xf]  ;;  %v191_v58 = vmax.bf16 %v63_v49, %v47_v45 }
  0x2e   :  { %v79_v51 = vld [vmem:[%s887_s2 + $0x3c] sm:$0xf]  ;;  %v94_v55 = vld [vmem:[%s888_s3 + $0x38] sm:$0xf] }
  0x2f   :  { %v268_v48 = vmax.bf16 %v236_v38, %v220_v34  ;;  %v373_v53 = vcombine.low %v298_v36, %v299_v40  ;;  %v269_v54 = vmax.bf16 %v237_v42, %v221_v35  ;;  %v95_v56 = vld [vmem:[%s888_s3 + $0x3c] sm:$0xf]  ;;  %v110_v57 = vld [vmem:[%s889_s4 + $0x38] sm:$0xf]  ;;  %v206_v63 = vmax.bf16 %v94_v55, %v78_v50 }
  0x30   :  { %v111_v60 = vld [vmem:[%s889_s4 + $0x3c] sm:$0xf]  ;;  %v126_v61 = vld [vmem:[%s890_s5 + $0x38] sm:$0xf]  ;;  %v207_v0 = vmax.bf16 %v95_v56, %v79_v51 }
  0x31   :  { %v284_v59 = vmax.bf16 %v268_v48, %v252_v39  ;;  %v127_v62 = vld [vmem:[%s890_s5 + $0x3c] sm:$0xf]  ;;  %374 = vst [vmem:[%s894_s9 + $0x28] sm:$0xff] %v373_v53   ;;  %v285_v1 = vmax.bf16 %v269_v54, %v253_v43  ;;  %v142_v2 = vld [vmem:[%s891_s6 + $0x38] sm:$0xf]  ;;  %v222_v5 = vmax.bf16 %v126_v61, %v110_v57  ;;  %v254_v10 = vmax.bf16 %v206_v63, %v190_v52 }
  0x32   :  { %v143_v3 = vld [vmem:[%s891_s6 + $0x3c] sm:$0xf]  ;;  %v158_v4 = vld [vmem:[%s892_s7 + $0x38] sm:$0xf]  ;;  %v223_v6 = vmax.bf16 %v127_v62, %v111_v60  ;;  %v255_v13 = vmax.bf16 %v207_v0, %v191_v58 }
  0x33   :  { %v300_v7 = vmax.bf16 %v284_v59, %v172_v41  ;;  %v159_v8 = vld [vmem:[%s892_s7 + $0x3c] sm:$0xf]  ;;  %v238_v9 = vmax.bf16 %v158_v4, %v142_v2  ;;  %v301_v11 = vmax.bf16 %v285_v1, %v173_v47  ;;  %v174_v16 = vld [vmem:[%s893_s8 + $0x38] sm:$0xf] }
  0x34   :  { %v239_v12 = vmax.bf16 %v159_v8, %v143_v3  ;;  %v175_v18 = vld [vmem:[%s893_s8 + $0x3c] sm:$0xf] }
  0x35   :  { %v270_v14 = vmax.bf16 %v238_v9, %v222_v5  ;;  %v375_v15 = vcombine.low %v300_v7, %v301_v11 }
  0x36   :  { %v271_v17 = vmax.bf16 %v239_v12, %v223_v6 }
  0x37   :  { %v286_v19 = vmax.bf16 %v270_v14, %v254_v10  ;;  %376 = vst [vmem:[%s894_s9 + $0x30] sm:$0xff] %v375_v15  }
  0x38   :  { %v287_v20 = vmax.bf16 %v271_v17, %v255_v13 }
  0x39   :  { %v302_v21 = vmax.bf16 %v286_v19, %v174_v16 }
  0x3a   :  { %v303_v22 = vmax.bf16 %v287_v20, %v175_v18 }
  0x3c   :  { %v377_v23 = vcombine.low %v302_v21, %v303_v22 }
  0x3e   :  { %378 = vst [vmem:[%s894_s9 + $0x38] sm:$0xff] %v377_v23  }

// kernel: _lambda_.28
= control target key start
LH: loop header
LB: loop body
LE: loop exit
PB: predicated region body
PF: predicated region fallthrough
CT: control target
= control target key end

     0   :  { %s1072_s12 = smov 0   ;;  %s1074_s13 = smov 0   ;;  %s1182_s0 = inlined_call_operand.vmem [shape: bf16[32,1152], index: 0, kind: input, shape index: {}]   ;;  %s1183_s1 = inlined_call_operand.vmem [shape: bf16[1152,128], index: 1, kind: input, shape index: {}]   ;;  %s1184_s2 = inlined_call_operand.vmem [shape: f32[1,128], index: 2, kind: input, shape index: {}]   ;;  %s1185_s3 = inlined_call_operand.vmem [shape: bf16[32,128], index: 3, kind: output, shape index: {}]  }
   0x1   :  { %s1076_s14 = smov 0   ;;  %s1078_s15 = smov 0  }
   0x2   :  { %s1080_s16 = smov 0  }
   0x3 LB: > { %s25_s17 = sadd.s32 1, %s1045_s15  ;;  %p48_p1 = scmp.ne.s32.totalorder %s1037_s13, %s1033_s12  ;;  %s1049_s16 = sphi %s1080_s16, %s13_s16   ;;  %s1045_s15 = sphi %s1078_s15, %s1189_s15   ;;  %s1041_s14 = sphi %s1076_s14, %s1188_s14   ;;  %s1037_s13 = sphi %s1074_s13, %s1187_s13   ;;  %s1033_s12 = sphi %s1072_s12, %s1186_s12  }
   0x4   : > { %p26_p0 = scmp.ge.s32.totalorder %s25_s17, 3  ;;  %p49_p2 = scmp.eq.s32.totalorder %s1049_s16, 0 }
   0x5   : > { %s41_s19 = sadd.s32 1, %s1037_s13  ;;  %p809_p5 = scmp.ge.s32.totalorder %s1049_s16, 3 }
   0x6   : > { %s1191_s17 = smov (%p26_p0, %s25_s17), 0  ;;  %p50_p3 = por %p49_p2, %p48_p1 }
   0x7   : > { %s37_s18 = ssub.s32 %s1045_s15, %s1191_s17  ;;  %162 = sbr.rel (%p809_p5) target bundleno = 21 (0x15), region = 20 }
   0x8   : > { %p39_p4 = scmp.eq.s32.totalorder %s37_s18, 0 }
   0xa   : > { %s1107_s20 = scalar_select %p39_p4, %s1037_s13, %s41_s19  }
   0xc   : > { %165 = sbr.rel (!%p50_p3) target bundleno = 21 (0x15), region = 24  ;;  %s167_s21 = sand.u32 (%p50_p3), 1, %s1037_s13  }
   0xd   : > { %s862_s22 = smul.u32 (%p50_p3), 12, %s1045_s15 }
   0xe   : > { %s936_s23 = smul.u32 (%p50_p3), 48, %s167_s21 }
   0xf   : > { %s175_s26 = scalar_lea.vmem (%p50_p3), %s1182_s0, %s862_s22 }
  0x10   : > { %v190_v0 = vld [vmem:[%s175_s26] sm:$0xff] (%p50_p3)  ;;  %v194_v2 = vld [vmem:[%s175_s26 + $0x48] sm:$0xff] (%p50_p3)  ;;  %s169_s27 = scalar_lea.vmem (%p50_p3), [#allocation3], %s936_s23  ;;  %v815_v6 = vld [vmem:[%s175_s26 + $0x50] sm:$0xf] (%p50_p3) }
  0x11   : > { %v192_v1 = vld [vmem:[%s175_s26 + $0x24] sm:$0xff]  ;;  %191 = vst [vmem:[%s169_s27] sm:$0xff] %v190_v0  ;;  %195 = vst [vmem:[%s169_s27 + $0x18] sm:$0xff] %v194_v2  ;;  %v196_v3 = vld [vmem:[%s175_s26 + $0x6c] sm:$0xff] }
  0x12   : > { %193 = vst [vmem:[%s169_s27 + $0xc] sm:$0xff] %v192_v1  ;;  %v811_v4 = vld [vmem:[%s175_s26 + $0x8] sm:$0xf]  ;;  %v813_v5 = vld [vmem:[%s175_s26 + $0x2c] sm:$0xf]  ;;  %197 = vst [vmem:[%s169_s27 + $0x24] sm:$0xff] %v196_v3 }
  0x13   : > { %812 = vst [vmem:[%s169_s27 + $0x8] sm:$0xf] %v811_v4  ;;  %814 = vst [vmem:[%s169_s27 + $0x14] sm:$0xf] %v813_v5  ;;  %v817_v7 = vld [vmem:[%s175_s26 + $0x74] sm:$0xf] }
  0x14   : > { %816 = vst [vmem:[%s169_s27 + $0x20] sm:$0xf] %v815_v6  ;;  %818 = vst [vmem:[%s169_s27 + $0x2c] sm:$0xf] %v817_v7 }
  0x15 PF: > { %p819_p6 = scmp.ge.s32.totalorder %s1049_s16, 1  ;;  %p230_p7 = scmp.lt.s32.totalorder %s1049_s16, 4 }
  0x17   : > { %p231_p8 = pnand %p819_p6, %p230_p7 }
  0x18   : > { %s237_s28 = sand.u32 (!%p231_p8), 1, %s1033_s12   ;;  %s276_s29 = smul.u32 (!%p231_p8), 48, %s1041_s14 }
  0x19   : > { %234 = sbr.rel (%p231_p8) target bundleno = 299 (0x12b), region = 54  ;;  %p821_p10 = scmp.ne.s32.totalorder (!%p231_p8), %s1041_s14, 0 }
  0x1a   : > { %s937_s30 = smul.u32 (!%p231_p8), 48, %s237_s28  ;;  %p277_p9 = scmp.lt.s32.totalorder (!%p231_p8), %s276_s29, 143 }
  0x1c   : > { %s1124_s8 = scalar_lea.vmem (!%p231_p8), [#allocation3], %s937_s30 }
  0x1e   : > { %s1193_s29 = smov (!%p277_p9, %s276_s29), 143  ;;  %301 = sbr.rel (%p821_p10) target bundleno = 38 (0x26), region = 62 }
  0x1f   : > { %s820_s4 = sshll.u32 %s1193_s29, 2 }
  0x20   : > { %s1122_s7 = scalar_lea.vmem %s1183_s1, %s820_s4 }
  0x23   : > { %v1051_v8 = vmov 0.0  }
  0x24   : > { %302 = vst [vmem:[#allocation2 + $0x10] sm:$0xff] %v1051_v8  ;;  %303 = vst [vmem:[#allocation2] sm:$0xff] %v1051_v8 }
  0x25   : > { %304 = vst [vmem:[#allocation2 + $0x18] sm:$0xff] %v1051_v8  ;;  %305 = vst [vmem:[#allocation2 + $0x8] sm:$0xff] %v1051_v8 }
  0x26 PF: > { %v979_v9 = vld [vmem:[%s1122_s7 + $0x78] sm:$0xff]   ;;  %v982_v12 = vld [vmem:[%s1122_s7 + $0x70] sm:$0xff]   ;;  %v985_v15 = vld [vmem:[%s1122_s7 + $0x68] sm:$0xff]   ;;  %p852_p11 = scmp.ne.s32.totalorder %s1041_s14, 2 }
  0x27   : > { %v980_v10 = vld [vmem:[%s1122_s7 + $0x38] sm:$0xff]   ;;  %878 = vmatprep.subr.bf16.mxu0 %v979_v9  ;;  %v983_v13 = vld [vmem:[%s1122_s7 + $0x30] sm:$0xff]   ;;  %v986_v16 = vld [vmem:[%s1122_s7 + $0x28] sm:$0xff]  }
  0x28   : > { %v981_v11 = vld [vmem:[%s1122_s7 + $0xb8] sm:$0xff]   ;;  %879 = vmatpush3.bf16.msra.mxu0 %v980_v10  ;;  %v984_v14 = vld [vmem:[%s1122_s7 + $0xb0] sm:$0xff]   ;;  %v987_v17 = vld [vmem:[%s1122_s7 + $0xa8] sm:$0xff]  }
  0x29   : > { %916 = vmatprep.subr.bf16.mxu1 %v981_v11  ;;  %880 = vmatprep.subr.bf16.mxu0 %v982_v12  ;;  %v988_v18 = vld [vmem:[%s1122_s7 + $0x60] sm:$0xff]   ;;  %v991_v21 = vld [vmem:[%s1122_s7 + $0x58] sm:$0xff]   ;;  %v994_v24 = vld [vmem:[%s1122_s7 + $0x50] sm:$0xff]  }
  0x2a   : > { %917 = vmatpush3.bf16.msra.mxu1 %v981_v11  ;;  %v989_v19 = vld [vmem:[%s1122_s7 + $0x20] sm:$0xff]   ;;  %v993_v22 = vld [vmem:[%s1122_s7 + $0x98] sm:$0xff]   ;;  %v996_v25 = vld [vmem:[%s1122_s7 + $0x90] sm:$0xff]  }
  0x2b   : > { %918 = vmatprep.subr.bf16.mxu1 %v984_v14  ;;  %v990_v20 = vld [vmem:[%s1122_s7 + $0xa0] sm:$0xff]   ;;  %v992_v23 = vld [vmem:[%s1122_s7 + $0x18] sm:$0xff]   ;;  %v995_v26 = vld [vmem:[%s1122_s7 + $0x10] sm:$0xff]  }
  0x2c   : > { %881 = vmatpush3.bf16.msra.mxu0 %v983_v13  ;;  %v997_v27 = vld [vmem:[%s1122_s7 + $0x48] sm:$0xff]   ;;  %v1000_v30 = vld [vmem:[%s1122_s7 + $0x40] sm:$0xff]   ;;  %v306_v44 = vld [vmem:[#allocation2 + $0x10] sm:$0xff] }
  0x2d   : > { %882 = vmatprep.subr.bf16.mxu0 %v985_v15  ;;  %v998_v28 = vld [vmem:[%s1122_s7 + $0x8] sm:$0xff]   ;;  %v1002_v31 = vld [vmem:[%s1122_s7 + $0x80] sm:$0xff]   ;;  %v308_v58 = vld [vmem:[#allocation2 + $0x18] sm:$0xff] }
  0x2e   : > { %919 = vmatpush3.bf16.msra.mxu1 %v984_v14  ;;  %v999_v29 = vld [vmem:[%s1122_s7 + $0x88] sm:$0xff]   ;;  %v1005_v32 = vld [vmem:[%s1124_s8 + $0x4] ss:$12 sps:$4 sm:$0xff]  }
  0x2f   : > { %920 = vmatprep.subr.bf16.mxu1 %v987_v17  ;;  %v1006_v33 = vld [vmem:[%s1124_s8 + $0x8] ss:$12 sps:$4 sm:$0xff]   ;;  %574 = vmatprep.mubr.bf16.mxu0 %v1005_v32  ;;  %v1003_v35 = vld [vmem:[%s1124_s8] ss:$12 sps:$4 sm:$0xff]   ;;  %v1010_v38 = vld [vmem:[%s1124_s8 + $0x18] ss:$12 sps:$4 sm:$0xff]  }
  0x30   : > { %883 = vmatpush3.bf16.msra.mxu0 %v986_v16  ;;  %v1001_v34 = vld [vmem:[%s1122_s7] sm:$0xff]   ;;  %932 = vmatprep.mubr.bf16.mxu1 %v1006_v33  ;;  %v1008_v36 = vld [vmem:[%s1124_s8 + $0x1c] ss:$12 sps:$4 sm:$0xff]  }
  0x31   : > { %884 = vmatprep.subr.bf16.mxu0 %v988_v18  ;;  %v1007_v37 = vld [vmem:[%s1124_s8 + $0x20] ss:$12 sps:$4 sm:$0xff]  }
  0x32   : > { %921 = vmatpush3.bf16.msra.mxu1 %v987_v17  ;;  %v307_v52 = vld [vmem:[#allocation2] sm:$0xff]  ;;  %v309_v0 = vld [vmem:[#allocation2 + $0x8] sm:$0xff] }
  0x33   : > { %922 = vmatprep.subr.bf16.mxu1 %v990_v20 }
  0x34   : > { %885 = vmatpush3.bf16.msra.mxu0 %v989_v19 }
  0x35   : > { %886 = vmatprep.subr.bf16.mxu0 %v991_v21 }
  0x36   : > { %923 = vmatpush3.bf16.msra.mxu1 %v990_v20 }
  0x37   : > { %924 = vmatprep.subr.bf16.mxu1 %v993_v22 }
  0x38   : > { %887 = vmatpush3.bf16.msra.mxu0 %v992_v23 }
  0x39   : > { %888 = vmatprep.subr.bf16.mxu0 %v994_v24 }
  0x3a   : > { %925 = vmatpush3.bf16.msra.mxu1 %v993_v22 }
  0x3b   : > { %926 = vmatprep.subr.bf16.mxu1 %v996_v25 }
  0x3c   : > { %889 = vmatpush3.bf16.msra.mxu0 %v995_v26 }
  0x3d   : > { %890 = vmatprep.subr.bf16.mxu0 %v997_v27 }
  0x3e   : > { %927 = vmatpush3.bf16.msra.mxu1 %v996_v25 }
  0x3f   : > { %928 = vmatprep.subr.bf16.mxu1 %v999_v29 }
  0x40   : > { %891 = vmatpush3.bf16.msra.mxu0 %v998_v28 }
  0x41   : > { %892 = vmatprep.subr.bf16.mxu0 %v1000_v30 }
  0x42   : > { %929 = vmatpush3.bf16.msra.mxu1 %v999_v29 }
  0x43   : > { %930 = vmatprep.subr.bf16.mxu1 %v1002_v31 }
  0x44   : > { %893 = vmatpush3.bf16.msra.mxu0 %v1001_v34 }
  0x46   : > { %931 = vmatpush3.bf16.msra.mxu1 %v1002_v31 }
  0x47   : > { %575 = vmatmul.mubr.bf16.vlgmr.msra.gmra.mxu0 %v1003_v35 }
  0x48   : > { %582 = vmatprep.mubr.bf16.mxu0 %v1008_v36 }
  0x49   : > { %933 = vmatmul.mubr.bf16.vlgmr.msra.gmra.mxu1 %v1007_v37 }
  0x4f   : > { %583 = vmatmul.mubr.bf16.gmra.mxu0 %v1010_v38 }
 0x107   : > { %v894_v39 = vpop.f32.mrf.mxu0 }
 0x109   : > { %v895_v40 = vpop.f32.mrf.mxu0  ;;  %v934_v41 = vpop.f32.mrf.mxu1 }
 0x10a   : > { %v896_v42 = vadd.f32 %v895_v40, %v894_v39 }
 0x10b   : > { %v897_v43 = vpop.f32.mrf.mxu0  ;;  %v625_v45 = vpop.f32.mrf.mxu1 }
 0x10c   : > { %v626_v46 = vadd.f32 %v896_v42, %v625_v45 }
 0x10d   : > { %v898_v47 = vpop.f32.mrf.mxu0  ;;  %v935_v48 = vpop.f32.mrf.mxu1 }
 0x10e   : > { %v640_v49 = vadd.f32 %v626_v46, %v306_v44  ;;  %v899_v50 = vadd.f32 %v898_v47, %v897_v43 }
 0x10f   : > { %v900_v51 = vpop.f32.mrf.mxu0  ;;  %v628_v53 = vpop.f32.mrf.mxu1 }
 0x110   : > { %644 = vst [vmem:[#allocation2 + $0x10] sm:$0xff] %v640_v49  ;;  %v629_v54 = vadd.f32 %v899_v50, %v628_v53 }
 0x111   : > { %v901_v55 = vpop.f32.mrf.mxu0 }
 0x112   : > { %v641_v56 = vadd.f32 %v629_v54, %v307_v52  ;;  %v902_v57 = vadd.f32 %v901_v55, %v900_v51 }
 0x113   : > { %v903_v59 = vpop.f32.mrf.mxu0 }
 0x114   : > { %645 = vst [vmem:[#allocation2] sm:$0xff] %v641_v56  ;;  %v634_v60 = vadd.f32 %v934_v41, %v902_v57 }
 0x115   : > { %v904_v61 = vpop.f32.mrf.mxu0 }
 0x116   : > { %v642_v62 = vadd.f32 %v634_v60, %v308_v58  ;;  %v905_v63 = vadd.f32 %v904_v61, %v903_v59 }
 0x118   : > { %646 = vst [vmem:[#allocation2 + $0x18] sm:$0xff] %v642_v62  ;;  %v637_v1 = vadd.f32 %v935_v48, %v905_v63  ;;  %651 = sbr.rel (%p852_p11) target bundleno = 299 (0x12b), region = 66 }
 0x11a   : > { %v643_v2 = vadd.f32 %v637_v1, %v309_v0 }
 0x11c   : > { %647 = vst [vmem:[#allocation2 + $0x8] sm:$0xff] %v643_v2 }
 0x11d   : > { %v652_v3 = vld [vmem:[#allocation2 + $0x10] sm:$0xff]  ;;  %v653_v4 = vld [vmem:[#allocation2] sm:$0xff] }
 0x11e   : > { %v853_v5 = vld [vmem:[%s1184_s2] ss:$0 sm:$0xff] }
 0x11f   : > { %v663_v6 = vadd.f32 %v853_v5, %v652_v3  ;;  %v664_v7 = vadd.f32 %v853_v5, %v653_v4  ;;  %v654_v8 = vld [vmem:[#allocation2 + $0x18] sm:$0xff] }
 0x120   : > { %v665_v10 = vadd.f32 %v853_v5, %v654_v8 }
 0x121   : > { %v667_v12 = vmax.f32 %v663_v6, 0.0  ;;  %v668_v13 = vmax.f32 %v664_v7, 0.0 }
 0x122   : > { %v669_v14 = vmax.f32 %v665_v10, 0.0 }
 0x123   : > { %v655_v9 = vld [vmem:[#allocation2 + $0x8] sm:$0xff]  ;;  %v870_v16 = vpack.c.bf16 %v668_v13, %v667_v12 }
 0x124   : > { %v666_v11 = vadd.f32 %v853_v5, %v655_v9 }
 0x125   : > { %871 = vst [vmem:[%s1185_s3] sm:$0xff] %v870_v16  }
 0x126   : > { %v670_v15 = vmax.f32 %v666_v11, 0.0 }
 0x128   : > { %v875_v17 = vpack.c.bf16 %v670_v15, %v669_v14 }
 0x12a   : > { %877 = vst [vmem:[%s1185_s3 + $0x8] sm:$0xff] %v875_v17  }
 0x12b PF: > { %s13_s16 = sadd.s32 1, %s1049_s16   ;;  %s1186_s12 = smov %s1037_s13 }
 0x12c   : > { %p10_p12 = scmp.ge.s32.totalorder %s13_s16, 5   ;;  %s1187_s13 = smov %s1107_s20 }
 0x12d   : > { %s1188_s14 = smov %s1045_s15  ;;  %s1189_s15 = smov %s1191_s17 }
 0x12e   :  { %12 = sbr.rel (!%p10_p12) target bundleno = 3 (0x3), region = 113 }

// kernel: _lambda_.25
= control target key start
LH: loop header
LB: loop body
LE: loop exit
PB: predicated region body
PF: predicated region fallthrough
CT: control target
= control target key end

     0   :  { %s1831_s15 = smov 0   ;;  %s1833_s16 = smov 0   ;;  %s2087_s0 = inlined_call_operand.vmem [shape: bf16[128,1152], index: 0, kind: input, shape index: {}]   ;;  %s2088_s1 = inlined_call_operand.vmem [shape: bf16[1152,128], index: 1, kind: input, shape index: {}]   ;;  %s2089_s2 = inlined_call_operand.vmem [shape: f32[1,128], index: 2, kind: input, shape index: {}]   ;;  %s2090_s3 = inlined_call_operand.vmem [shape: bf16[128,128], index: 3, kind: input, shape index: {}]   ;;  %s2091_s4 = inlined_call_operand.vmem [shape: bf16[128,128], index: 4, kind: output, shape index: {}]  }
   0x1   :  { %s1835_s17 = smov 0   ;;  %s1837_s18 = smov 0  }
   0x2   :  { %s1839_s19 = smov 0  }
   0x3 LB: > { %s26_s20 = sadd.s32 1, %s1799_s18  ;;  %p49_p1 = scmp.ne.s32.totalorder %s1791_s16, %s1787_s15  ;;  %s1803_s19 = sphi %s1839_s19, %s14_s19   ;;  %s1799_s18 = sphi %s1837_s18, %s2095_s18   ;;  %s1795_s17 = sphi %s1835_s17, %s2094_s17   ;;  %s1791_s16 = sphi %s1833_s16, %s2093_s16   ;;  %s1787_s15 = sphi %s1831_s15, %s2092_s15  }
   0x4   : > { %p27_p0 = scmp.ge.s32.totalorder %s26_s20, 3  ;;  %p50_p2 = scmp.eq.s32.totalorder %s1803_s19, 0 }
   0x5   : > { %s42_s22 = sadd.s32 1, %s1791_s16  ;;  %p1344_p5 = scmp.ge.s32.totalorder %s1803_s19, 3 }
   0x6   : > { %s2097_s20 = smov (%p27_p0, %s26_s20), 0  ;;  %p51_p3 = por %p50_p2, %p49_p1 }
   0x7   : > { %s38_s21 = ssub.s32 %s1799_s18, %s2097_s20  ;;  %203 = sbr.rel (%p1344_p5) target bundleno = 35 (0x23), region = 24 }
   0x8   : > { %p40_p4 = scmp.eq.s32.totalorder %s38_s21, 0 }
   0xa   : > { %s1866_s23 = scalar_select %p40_p4, %s1791_s16, %s42_s22  }
   0xc   : > { %206 = sbr.rel (!%p51_p3) target bundleno = 35 (0x23), region = 28  ;;  %s208_s24 = sand.u32 (%p51_p3), 1, %s1791_s16  }
   0xd   : > { %s1451_s25 = smul.u32 (%p51_p3), 12, %s1799_s18 }
   0xe   : > { %s1666_s26 = smul.u32 (%p51_p3), 192, %s208_s24 }
   0xf   : > { %s1874_s29 = scalar_lea.vmem (%p51_p3), %s2087_s0, %s1451_s25 }
  0x10   : > { %v231_v0 = vld [vmem:[%s1874_s29] sm:$0xff] (%p51_p3)  ;;  %v235_v2 = vld [vmem:[%s1874_s29 + $0x48] sm:$0xff] (%p51_p3)  ;;  %s1879_s30 = scalar_lea.vmem (%p51_p3), [#allocation3], %s1666_s26  ;;  %v239_v4 = vld [vmem:[%s1874_s29 + $0x90] sm:$0xff] (%p51_p3) }
  0x11   : > { %v233_v1 = vld [vmem:[%s1874_s29 + $0x24] sm:$0xff]  ;;  %232 = vst [vmem:[%s1879_s30] sm:$0xff] %v231_v0  ;;  %236 = vst [vmem:[%s1879_s30 + $0x18] sm:$0xff] %v235_v2  ;;  %v237_v3 = vld [vmem:[%s1874_s29 + $0x6c] sm:$0xff] }
  0x12   : > { %234 = vst [vmem:[%s1879_s30 + $0xc] sm:$0xff] %v233_v1  ;;  %v241_v5 = vld [vmem:[%s1874_s29 + $0xb4] sm:$0xff]  ;;  %238 = vst [vmem:[%s1879_s30 + $0x24] sm:$0xff] %v237_v3  ;;  %v245_v7 = vld [vmem:[%s1874_s29 + $0xfc] sm:$0xff] }
  0x13   : > { %240 = vst [vmem:[%s1879_s30 + $0x30] sm:$0xff] %v239_v4  ;;  %242 = vst [vmem:[%s1879_s30 + $0x3c] sm:$0xff] %v241_v5  ;;  %v243_v6 = vld [vmem:[%s1874_s29 + $0xd8] sm:$0xff]  ;;  %v247_v8 = vld [vmem:[%s1874_s29 + $0x120] sm:$0xff] }
  0x14   : > { %244 = vst [vmem:[%s1879_s30 + $0x48] sm:$0xff] %v243_v6  ;;  %246 = vst [vmem:[%s1879_s30 + $0x54] sm:$0xff] %v245_v7  ;;  %v249_v9 = vld [vmem:[%s1874_s29 + $0x144] sm:$0xff]  ;;  %v253_v11 = vld [vmem:[%s1874_s29 + $0x18c] sm:$0xff] }
  0x15   : > { %248 = vst [vmem:[%s1879_s30 + $0x60] sm:$0xff] %v247_v8  ;;  %v251_v10 = vld [vmem:[%s1874_s29 + $0x168] sm:$0xff]  ;;  %250 = vst [vmem:[%s1879_s30 + $0x6c] sm:$0xff] %v249_v9  ;;  %v255_v12 = vld [vmem:[%s1874_s29 + $0x1b0] sm:$0xff] }
  0x16   : > { %252 = vst [vmem:[%s1879_s30 + $0x78] sm:$0xff] %v251_v10  ;;  %254 = vst [vmem:[%s1879_s30 + $0x84] sm:$0xff] %v253_v11  ;;  %v257_v13 = vld [vmem:[%s1874_s29 + $0x1d4] sm:$0xff]  ;;  %v261_v15 = vld [vmem:[%s1874_s29 + $0x21c] sm:$0xff] }
  0x17   : > { %v259_v14 = vld [vmem:[%s1874_s29 + $0x1f8] sm:$0xff]  ;;  %256 = vst [vmem:[%s1879_s30 + $0x90] sm:$0xff] %v255_v12  ;;  %258 = vst [vmem:[%s1879_s30 + $0x9c] sm:$0xff] %v257_v13  ;;  %v1346_v16 = vld [vmem:[%s1874_s29 + $0x8] sm:$0xf] }
  0x18   : > { %260 = vst [vmem:[%s1879_s30 + $0xa8] sm:$0xff] %v259_v14  ;;  %v1348_v17 = vld [vmem:[%s1874_s29 + $0x2c] sm:$0xf]  ;;  %262 = vst [vmem:[%s1879_s30 + $0xb4] sm:$0xff] %v261_v15  ;;  %v1350_v18 = vld [vmem:[%s1874_s29 + $0x50] sm:$0xf] }
  0x19   : > { %1347 = vst [vmem:[%s1879_s30 + $0x8] sm:$0xf] %v1346_v16  ;;  %1349 = vst [vmem:[%s1879_s30 + $0x14] sm:$0xf] %v1348_v17  ;;  %v1352_v19 = vld [vmem:[%s1874_s29 + $0x74] sm:$0xf] }
  0x1a   : > { %v1354_v20 = vld [vmem:[%s1874_s29 + $0x98] sm:$0xf]  ;;  %1351 = vst [vmem:[%s1879_s30 + $0x20] sm:$0xf] %v1350_v18  ;;  %1353 = vst [vmem:[%s1879_s30 + $0x2c] sm:$0xf] %v1352_v19 }
  0x1b   : > { %1355 = vst [vmem:[%s1879_s30 + $0x38] sm:$0xf] %v1354_v20  ;;  %v1356_v21 = vld [vmem:[%s1874_s29 + $0xbc] sm:$0xf]  ;;  %v1358_v22 = vld [vmem:[%s1874_s29 + $0xe0] sm:$0xf] }
  0x1c   : > { %v1360_v23 = vld [vmem:[%s1874_s29 + $0x104] sm:$0xf]  ;;  %1357 = vst [vmem:[%s1879_s30 + $0x44] sm:$0xf] %v1356_v21  ;;  %1359 = vst [vmem:[%s1879_s30 + $0x50] sm:$0xf] %v1358_v22 }
  0x1d   : > { %1361 = vst [vmem:[%s1879_s30 + $0x5c] sm:$0xf] %v1360_v23  ;;  %v1362_v24 = vld [vmem:[%s1874_s29 + $0x128] sm:$0xf]  ;;  %v1364_v25 = vld [vmem:[%s1874_s29 + $0x14c] sm:$0xf] }
  0x1e   : > { %v1366_v26 = vld [vmem:[%s1874_s29 + $0x170] sm:$0xf]  ;;  %1363 = vst [vmem:[%s1879_s30 + $0x68] sm:$0xf] %v1362_v24  ;;  %1365 = vst [vmem:[%s1879_s30 + $0x74] sm:$0xf] %v1364_v25 }
  0x1f   : > { %1367 = vst [vmem:[%s1879_s30 + $0x80] sm:$0xf] %v1366_v26  ;;  %v1368_v27 = vld [vmem:[%s1874_s29 + $0x194] sm:$0xf]  ;;  %v1370_v28 = vld [vmem:[%s1874_s29 + $0x1b8] sm:$0xf] }
  0x20   : > { %v1372_v29 = vld [vmem:[%s1874_s29 + $0x1dc] sm:$0xf]  ;;  %1369 = vst [vmem:[%s1879_s30 + $0x8c] sm:$0xf] %v1368_v27  ;;  %1371 = vst [vmem:[%s1879_s30 + $0x98] sm:$0xf] %v1370_v28 }
  0x21   : > { %1373 = vst [vmem:[%s1879_s30 + $0xa4] sm:$0xf] %v1372_v29  ;;  %v1374_v30 = vld [vmem:[%s1874_s29 + $0x200] sm:$0xf]  ;;  %v1376_v31 = vld [vmem:[%s1874_s29 + $0x224] sm:$0xf] }
  0x22   : > { %1375 = vst [vmem:[%s1879_s30 + $0xb0] sm:$0xf] %v1374_v30  ;;  %1377 = vst [vmem:[%s1879_s30 + $0xbc] sm:$0xf] %v1376_v31 }
  0x23 PF: > { %p1378_p6 = scmp.ge.s32.totalorder %s1803_s19, 1  ;;  %p319_p7 = scmp.lt.s32.totalorder %s1803_s19, 4 }
  0x25   : > { %p320_p8 = pnand %p1378_p6, %p319_p7 }
  0x26   : > { %s326_s5 = sand.u32 (!%p320_p8), 1, %s1787_s15   ;;  %s375_s6 = smul.u32 (!%p320_p8), 48, %s1795_s17 }
  0x27   : > { %323 = sbr.rel (%p320_p8) target bundleno = 379 (0x17b), region = 58  ;;  %p1380_p10 = scmp.ne.s32.totalorder (!%p320_p8), %s1795_s17, 0 }
  0x28   : > { %s1667_s7 = smul.u32 (!%p320_p8), 192, %s326_s5  ;;  %p376_p9 = scmp.lt.s32.totalorder (!%p320_p8), %s375_s6, 143 }
  0x2a   : > { %s1951_s12 = scalar_lea.vmem (!%p320_p8), [#allocation3], %s1667_s7 }
  0x2c   : > { %s2099_s6 = smov (!%p376_p9, %s375_s6), 143  ;;  %409 = sbr.rel (%p1380_p10) target bundleno = 58 (0x3a), region = 66 }
  0x2d   : > { %s1379_s8 = sshll.u32 %s2099_s6, 2 }
  0x2e   : > { %s1949_s11 = scalar_lea.vmem %s2088_s1, %s1379_s8 }
  0x31   : > { %v1805_v32 = vmov 0.0  }
  0x32   : > { %410 = vst [vmem:[#allocation2 + $0x30] sm:$0xff] %v1805_v32  ;;  %411 = vst [vmem:[#allocation2] sm:$0xff] %v1805_v32 }
  0x33   : > { %412 = vst [vmem:[#allocation2 + $0x58] sm:$0xff] %v1805_v32  ;;  %413 = vst [vmem:[#allocation2 + $0x18] sm:$0xff] %v1805_v32 }
  0x34   : > { %414 = vst [vmem:[#allocation2 + $0x50] sm:$0xff] %v1805_v32  ;;  %415 = vst [vmem:[#allocation2 + $0x68] sm:$0xff] %v1805_v32 }
  0x35   : > { %416 = vst [vmem:[#allocation2 + $0x8] sm:$0xff] %v1805_v32  ;;  %417 = vst [vmem:[#allocation2 + $0x48] sm:$0xff] %v1805_v32 }
  0x36   : > { %418 = vst [vmem:[#allocation2 + $0x40] sm:$0xff] %v1805_v32  ;;  %419 = vst [vmem:[#allocation2 + $0x20] sm:$0xff] %v1805_v32 }
  0x37   : > { %420 = vst [vmem:[#allocation2 + $0x10] sm:$0xff] %v1805_v32  ;;  %421 = vst [vmem:[#allocation2 + $0x38] sm:$0xff] %v1805_v32 }
  0x38   : > { %422 = vst [vmem:[#allocation2 + $0x60] sm:$0xff] %v1805_v32  ;;  %423 = vst [vmem:[#allocation2 + $0x70] sm:$0xff] %v1805_v32 }
  0x39   : > { %424 = vst [vmem:[#allocation2 + $0x78] sm:$0xff] %v1805_v32  ;;  %425 = vst [vmem:[#allocation2 + $0x28] sm:$0xff] %v1805_v32 }
  0x3a PF: > { %v1709_v33 = vld [vmem:[%s1949_s11 + $0x78] sm:$0xff]   ;;  %v1712_v36 = vld [vmem:[%s1949_s11 + $0x70] sm:$0xff]   ;;  %v1715_v39 = vld [vmem:[%s1949_s11 + $0x68] sm:$0xff]   ;;  %p1429_p11 = scmp.ne.s32.totalorder %s1795_s17, 2 }
  0x3b   : > { %v1710_v34 = vld [vmem:[%s1949_s11 + $0x38] sm:$0xff]   ;;  %1554 = vmatprep.subr.bf16.mxu0 %v1709_v33  ;;  %v1713_v37 = vld [vmem:[%s1949_s11 + $0x30] sm:$0xff]   ;;  %v1716_v40 = vld [vmem:[%s1949_s11 + $0x28] sm:$0xff]  }
  0x3c   : > { %v1711_v35 = vld [vmem:[%s1949_s11 + $0xb8] sm:$0xff]   ;;  %1555 = vmatpush3.bf16.msra.mxu0 %v1710_v34  ;;  %v1714_v38 = vld [vmem:[%s1949_s11 + $0xb0] sm:$0xff]   ;;  %v1717_v41 = vld [vmem:[%s1949_s11 + $0xa8] sm:$0xff]  }
  0x3d   : > { %1634 = vmatprep.subr.bf16.mxu1 %v1711_v35  ;;  %1556 = vmatprep.subr.bf16.mxu0 %v1712_v36  ;;  %v1718_v42 = vld [vmem:[%s1949_s11 + $0x60] sm:$0xff]   ;;  %v1721_v45 = vld [vmem:[%s1949_s11 + $0x58] sm:$0xff]   ;;  %v1724_v48 = vld [vmem:[%s1949_s11 + $0x50] sm:$0xff]  }
  0x3e   : > { %1635 = vmatpush3.bf16.msra.mxu1 %v1711_v35  ;;  %v1719_v43 = vld [vmem:[%s1949_s11 + $0x20] sm:$0xff]   ;;  %v1723_v46 = vld [vmem:[%s1949_s11 + $0x98] sm:$0xff]   ;;  %v1726_v49 = vld [vmem:[%s1949_s11 + $0x90] sm:$0xff]  }
  0x3f   : > { %1636 = vmatprep.subr.bf16.mxu1 %v1714_v38  ;;  %v1720_v44 = vld [vmem:[%s1949_s11 + $0xa0] sm:$0xff]   ;;  %v1722_v47 = vld [vmem:[%s1949_s11 + $0x18] sm:$0xff]   ;;  %v1725_v50 = vld [vmem:[%s1949_s11 + $0x10] sm:$0xff]  }
  0x40   : > { %1557 = vmatpush3.bf16.msra.mxu0 %v1713_v37  ;;  %v1727_v51 = vld [vmem:[%s1949_s11 + $0x48] sm:$0xff]   ;;  %v1730_v54 = vld [vmem:[%s1949_s11 + $0x40] sm:$0xff]   ;;  %v1745_v1 = vld [vmem:[%s1951_s12 + $0x50] ss:$12 sps:$4 sm:$0xff]  }
  0x41   : > { %1558 = vmatprep.subr.bf16.mxu0 %v1715_v39  ;;  %v1728_v52 = vld [vmem:[%s1949_s11 + $0x8] sm:$0xff]   ;;  %v1732_v55 = vld [vmem:[%s1949_s11 + $0x80] sm:$0xff]   ;;  %v1743_v3 = vld [vmem:[%s1951_s12 + $0x30] ss:$12 sps:$4 sm:$0xff]  }
  0x42   : > { %1637 = vmatpush3.bf16.msra.mxu1 %v1714_v38  ;;  %v1729_v53 = vld [vmem:[%s1949_s11 + $0x88] sm:$0xff]   ;;  %v1735_v56 = vld [vmem:[%s1951_s12 + $0x4] ss:$12 sps:$4 sm:$0xff]   ;;  %v1741_v0 = vld [vmem:[%s1951_s12 + $0x34] ss:$12 sps:$4 sm:$0xff]  }
  0x43   : > { %1638 = vmatprep.subr.bf16.mxu1 %v1717_v41  ;;  %v1736_v57 = vld [vmem:[%s1951_s12 + $0x8] ss:$12 sps:$4 sm:$0xff]   ;;  %v1731_v58 = vld [vmem:[%s1949_s11] sm:$0xff]   ;;  %826 = vmatprep.mubr.bf16.mxu0 %v1735_v56  ;;  %v1746_v4 = vld [vmem:[%s1951_s12 + $0x4c] ss:$12 sps:$4 sm:$0xff]  }
  0x44   : > { %1559 = vmatpush3.bf16.msra.mxu0 %v1716_v40  ;;  %1650 = vmatprep.mubr.bf16.mxu1 %v1736_v57  ;;  %v1733_v59 = vld [vmem:[%s1951_s12] ss:$12 sps:$4 sm:$0xff]   ;;  %v1738_v60 = vld [vmem:[%s1951_s12 + $0x1c] ss:$12 sps:$4 sm:$0xff]   ;;  %v1744_v62 = vld [vmem:[%s1951_s12 + $0x38] ss:$12 sps:$4 sm:$0xff]  }
  0x45   : > { %1560 = vmatprep.subr.bf16.mxu0 %v1718_v42  ;;  %v1737_v61 = vld [vmem:[%s1951_s12 + $0x20] ss:$12 sps:$4 sm:$0xff]   ;;  %v1740_v63 = vld [vmem:[%s1951_s12 + $0x18] ss:$12 sps:$4 sm:$0xff]   ;;  %v1752_v2 = vld [vmem:[%s1951_s12 + $0x68] ss:$12 sps:$4 sm:$0xff]  }
  0x46   : > { %1639 = vmatpush3.bf16.msra.mxu1 %v1717_v41  ;;  %v1753_v5 = vld [vmem:[%s1951_s12 + $0x80] ss:$12 sps:$4 sm:$0xff]   ;;  %v1760_v6 = vld [vmem:[%s1951_s12 + $0x98] ss:$12 sps:$4 sm:$0xff]   ;;  %v1748_v7 = vld [vmem:[%s1951_s12 + $0x48] ss:$12 sps:$4 sm:$0xff]  }
  0x47   : > { %1640 = vmatprep.subr.bf16.mxu1 %v1720_v44  ;;  %v1749_v8 = vld [vmem:[%s1951_s12 + $0x64] ss:$12 sps:$4 sm:$0xff]   ;;  %v1751_v10 = vld [vmem:[%s1951_s12 + $0x60] ss:$12 sps:$4 sm:$0xff]   ;;  %v1754_v11 = vld [vmem:[%s1951_s12 + $0x7c] ss:$12 sps:$4 sm:$0xff]  }
  0x48   : > { %1561 = vmatpush3.bf16.msra.mxu0 %v1719_v43  ;;  %v1761_v9 = vld [vmem:[%s1951_s12 + $0xb0] ss:$12 sps:$4 sm:$0xff]   ;;  %v1756_v12 = vld [vmem:[%s1951_s12 + $0x78] ss:$12 sps:$4 sm:$0xff]   ;;  %v1757_v13 = vld [vmem:[%s1951_s12 + $0x94] ss:$12 sps:$4 sm:$0xff]  }
  0x49   : > { %1562 = vmatprep.subr.bf16.mxu0 %v1721_v45  ;;  %v1759_v14 = vld [vmem:[%s1951_s12 + $0x90] ss:$12 sps:$4 sm:$0xff]   ;;  %v1762_v15 = vld [vmem:[%s1951_s12 + $0xac] ss:$12 sps:$4 sm:$0xff]   ;;  %v1764_v16 = vld [vmem:[%s1951_s12 + $0xa8] ss:$12 sps:$4 sm:$0xff]  }
  0x4a   : > { %1641 = vmatpush3.bf16.msra.mxu1 %v1720_v44  ;;  %v426_v22 = vld [vmem:[#allocation2 + $0x30] sm:$0xff]  ;;  %v427_v30 = vld [vmem:[#allocation2] sm:$0xff]  ;;  %v428_v37 = vld [vmem:[#allocation2 + $0x58] sm:$0xff] }
  0x4b   : > { %1642 = vmatprep.subr.bf16.mxu1 %v1723_v46  ;;  %v429_v44 = vld [vmem:[#allocation2 + $0x18] sm:$0xff] }
  0x4c   : > { %1563 = vmatpush3.bf16.msra.mxu0 %v1722_v47 }
  0x4d   : > { %1564 = vmatprep.subr.bf16.mxu0 %v1724_v48 }
  0x4e   : > { %1643 = vmatpush3.bf16.msra.mxu1 %v1723_v46 }
  0x4f   : > { %1644 = vmatprep.subr.bf16.mxu1 %v1726_v49 }
  0x50   : > { %1565 = vmatpush3.bf16.msra.mxu0 %v1725_v50 }
  0x51   : > { %1566 = vmatprep.subr.bf16.mxu0 %v1727_v51 }
  0x52   : > { %1645 = vmatpush3.bf16.msra.mxu1 %v1726_v49 }
  0x53   : > { %1646 = vmatprep.subr.bf16.mxu1 %v1729_v53 }
  0x54   : > { %1567 = vmatpush3.bf16.msra.mxu0 %v1728_v52  ;;  %v430_v52 = vld [vmem:[#allocation2 + $0x50] sm:$0xff] }
  0x55   : > { %1568 = vmatprep.subr.bf16.mxu0 %v1730_v54 }
  0x56   : > { %1647 = vmatpush3.bf16.msra.mxu1 %v1729_v53 }
  0x57   : > { %1648 = vmatprep.subr.bf16.mxu1 %v1732_v55 }
  0x58   : > { %1569 = vmatpush3.bf16.msra.mxu0 %v1731_v58 }
  0x5a   : > { %1649 = vmatpush3.bf16.msra.mxu1 %v1732_v55 }
  0x5b   : > { %827 = vmatmul.mubr.bf16.vlgmr.msra.gmra.mxu0 %v1733_v59  ;;  %v431_v59 = vld [vmem:[#allocation2 + $0x68] sm:$0xff] }
  0x5c   : > { %834 = vmatprep.mubr.bf16.mxu0 %v1738_v60 }
  0x5d   : > { %1651 = vmatmul.mubr.bf16.vlgmr.msra.gmra.mxu1 %v1737_v61 }
  0x5e   : > { %1654 = vmatprep.mubr.bf16.mxu1 %v1744_v62 }
  0x63   : > { %835 = vmatmul.mubr.bf16.gmra.mxu0 %v1740_v63 }
  0x64   : > { %842 = vmatprep.mubr.bf16.mxu0 %v1741_v0 }
  0x65   : > { %1655 = vmatmul.mubr.bf16.gmra.mxu1 %v1745_v1  ;;  %v432_v1 = vld [vmem:[#allocation2 + $0x8] sm:$0xff] }
  0x66   : > { %1658 = vmatprep.mubr.bf16.mxu1 %v1752_v2 }
  0x6b   : > { %843 = vmatmul.mubr.bf16.gmra.mxu0 %v1743_v3 }
  0x6c   : > { %850 = vmatprep.mubr.bf16.mxu0 %v1746_v4 }
  0x6d   : > { %1659 = vmatmul.mubr.bf16.gmra.mxu1 %v1753_v5 }
  0x6e   : > { %1662 = vmatprep.mubr.bf16.mxu1 %v1760_v6 }
  0x73   : > { %851 = vmatmul.mubr.bf16.gmra.mxu0 %v1748_v7 }
  0x74   : > { %858 = vmatprep.mubr.bf16.mxu0 %v1749_v8  ;;  %v433_v8 = vld [vmem:[#allocation2 + $0x48] sm:$0xff] }
  0x75   : > { %1663 = vmatmul.mubr.bf16.gmra.mxu1 %v1761_v9 }
  0x7b   : > { %859 = vmatmul.mubr.bf16.gmra.mxu0 %v1751_v10 }
  0x7c   : > { %866 = vmatprep.mubr.bf16.mxu0 %v1754_v11 }
  0x83   : > { %867 = vmatmul.mubr.bf16.gmra.mxu0 %v1756_v12 }
  0x84   : > { %874 = vmatprep.mubr.bf16.mxu0 %v1757_v13 }
  0x8b   : > { %875 = vmatmul.mubr.bf16.gmra.mxu0 %v1759_v14 }
  0x8c   : > { %882 = vmatprep.mubr.bf16.mxu0 %v1762_v15 }
  0x93   : > { %883 = vmatmul.mubr.bf16.gmra.mxu0 %v1764_v16  ;;  %v434_v16 = vld [vmem:[#allocation2 + $0x40] sm:$0xff] }
 0x11b   : > { %v1570_v17 = vpop.f32.mrf.mxu0 }
 0x11d   : > { %v1571_v18 = vpop.f32.mrf.mxu0  ;;  %v1652_v19 = vpop.f32.mrf.mxu1 }
 0x11e   : > { %v1572_v20 = vadd.f32 %v1571_v18, %v1570_v17 }
 0x11f   : > { %v1573_v21 = vpop.f32.mrf.mxu0  ;;  %v925_v23 = vpop.f32.mrf.mxu1 }
 0x120   : > { %v926_v24 = vadd.f32 %v1572_v20, %v925_v23  ;;  %v435_v23 = vld [vmem:[#allocation2 + $0x20] sm:$0xff] }
 0x121   : > { %v1574_v25 = vpop.f32.mrf.mxu0  ;;  %v1653_v26 = vpop.f32.mrf.mxu1 }
 0x122   : > { %v988_v27 = vadd.f32 %v926_v24, %v426_v22  ;;  %v1575_v28 = vadd.f32 %v1574_v25, %v1573_v21 }
 0x123   : > { %v1576_v29 = vpop.f32.mrf.mxu0  ;;  %v928_v31 = vpop.f32.mrf.mxu1 }
 0x124   : > { %1004 = vst [vmem:[#allocation2 + $0x30] sm:$0xff] %v988_v27  ;;  %v929_v32 = vadd.f32 %v1575_v28, %v928_v31 }
 0x125   : > { %v1577_v33 = vpop.f32.mrf.mxu0  ;;  %v1656_v34 = vpop.f32.mrf.mxu1 }
 0x126   : > { %v989_v35 = vadd.f32 %v929_v32, %v427_v30  ;;  %v1578_v36 = vadd.f32 %v1577_v33, %v1576_v29  ;;  %v436_v29 = vld [vmem:[#allocation2 + $0x10] sm:$0xff] }
 0x127   : > { %v1579_v38 = vpop.f32.mrf.mxu0  ;;  %v941_v41 = vpop.f32.mrf.mxu1 }
 0x128   : > { %1005 = vst [vmem:[#allocation2] sm:$0xff] %v989_v35  ;;  %v934_v39 = vadd.f32 %v1652_v19, %v1578_v36  ;;  %v437_v36 = vld [vmem:[#allocation2 + $0x38] sm:$0xff] }
 0x129   : > { %v1580_v40 = vpop.f32.mrf.mxu0  ;;  %v1657_v48 = vpop.f32.mrf.mxu1 }
 0x12a   : > { %v990_v42 = vadd.f32 %v934_v39, %v428_v37  ;;  %v1581_v43 = vadd.f32 %v1580_v40, %v1579_v38 }
 0x12b   : > { %v1582_v45 = vpop.f32.mrf.mxu0  ;;  %v944_v55 = vpop.f32.mrf.mxu1 }
 0x12c   : > { %1006 = vst [vmem:[#allocation2 + $0x58] sm:$0xff] %v990_v42  ;;  %v937_v46 = vadd.f32 %v1653_v26, %v1581_v43 }
 0x12d   : > { %v1583_v47 = vpop.f32.mrf.mxu0  ;;  %v1660_v62 = vpop.f32.mrf.mxu1 }
 0x12e   : > { %v991_v49 = vadd.f32 %v937_v46, %v429_v44  ;;  %v1584_v50 = vadd.f32 %v1583_v47, %v1582_v45  ;;  %v438_v44 = vld [vmem:[#allocation2 + $0x60] sm:$0xff] }
 0x12f   : > { %v1585_v51 = vpop.f32.mrf.mxu0  ;;  %v957_v5 = vpop.f32.mrf.mxu1 }
 0x130   : > { %1007 = vst [vmem:[#allocation2 + $0x18] sm:$0xff] %v991_v49  ;;  %v942_v53 = vadd.f32 %v1584_v50, %v941_v41 }
 0x131   : > { %v1586_v54 = vpop.f32.mrf.mxu0  ;;  %v1661_v12 = vpop.f32.mrf.mxu1 }
 0x132   : > { %v992_v56 = vadd.f32 %v942_v53, %v430_v52  ;;  %v1587_v57 = vadd.f32 %v1586_v54, %v1585_v51  ;;  %v439_v51 = vld [vmem:[#allocation2 + $0x70] sm:$0xff] }
 0x133   : > { %v1588_v58 = vpop.f32.mrf.mxu0  ;;  %v960_v19 = vpop.f32.mrf.mxu1 }
 0x134   : > { %1008 = vst [vmem:[#allocation2 + $0x50] sm:$0xff] %v992_v56  ;;  %v945_v60 = vadd.f32 %v1587_v57, %v944_v55  ;;  %v440_v56 = vld [vmem:[#allocation2 + $0x78] sm:$0xff] }
 0x135   : > { %v1589_v61 = vpop.f32.mrf.mxu0  ;;  %v1664_v26 = vpop.f32.mrf.mxu1 }
 0x136   : > { %v993_v63 = vadd.f32 %v945_v60, %v431_v59  ;;  %v1590_v0 = vadd.f32 %v1589_v61, %v1588_v58 }
 0x137   : > { %v1591_v2 = vpop.f32.mrf.mxu0  ;;  %v973_v33 = vpop.f32.mrf.mxu1 }
 0x138   : > { %1009 = vst [vmem:[#allocation2 + $0x68] sm:$0xff] %v993_v63  ;;  %v950_v3 = vadd.f32 %v1656_v34, %v1590_v0 }
 0x139   : > { %v1592_v4 = vpop.f32.mrf.mxu0  ;;  %v1665_v40 = vpop.f32.mrf.mxu1 }
 0x13a   : > { %v994_v6 = vadd.f32 %v950_v3, %v432_v1  ;;  %v1593_v7 = vadd.f32 %v1592_v4, %v1591_v2 }
 0x13b   : > { %v1594_v9 = vpop.f32.mrf.mxu0  ;;  %v976_v47 = vpop.f32.mrf.mxu1 }
 0x13c   : > { %1010 = vst [vmem:[#allocation2 + $0x8] sm:$0xff] %v994_v6  ;;  %v953_v10 = vadd.f32 %v1657_v48, %v1593_v7 }
 0x13d   : > { %v1595_v11 = vpop.f32.mrf.mxu0 }
 0x13e   : > { %v995_v13 = vadd.f32 %v953_v10, %v433_v8  ;;  %v1596_v14 = vadd.f32 %v1595_v11, %v1594_v9 }
 0x13f   : > { %v1597_v15 = vpop.f32.mrf.mxu0 }
 0x140   : > { %1011 = vst [vmem:[#allocation2 + $0x48] sm:$0xff] %v995_v13  ;;  %v958_v17 = vadd.f32 %v1596_v14, %v957_v5 }
 0x141   : > { %v1598_v18 = vpop.f32.mrf.mxu0 }
 0x142   : > { %v996_v20 = vadd.f32 %v958_v17, %v434_v16  ;;  %v1599_v21 = vadd.f32 %v1598_v18, %v1597_v15 }
 0x143   : > { %v1600_v22 = vpop.f32.mrf.mxu0 }
 0x144   : > { %1012 = vst [vmem:[#allocation2 + $0x40] sm:$0xff] %v996_v20  ;;  %v961_v24 = vadd.f32 %v1599_v21, %v960_v19 }
 0x145   : > { %v1601_v25 = vpop.f32.mrf.mxu0 }
 0x146   : > { %v997_v27 = vadd.f32 %v961_v24, %v435_v23  ;;  %v1602_v28 = vadd.f32 %v1601_v25, %v1600_v22 }
 0x147   : > { %v1603_v30 = vpop.f32.mrf.mxu0 }
 0x148   : > { %1013 = vst [vmem:[#allocation2 + $0x20] sm:$0xff] %v997_v27  ;;  %v966_v31 = vadd.f32 %v1660_v62, %v1602_v28  ;;  %v441_v62 = vld [vmem:[#allocation2 + $0x28] sm:$0xff] }
 0x149   : > { %v1604_v32 = vpop.f32.mrf.mxu0 }
 0x14a   : > { %v998_v34 = vadd.f32 %v966_v31, %v436_v29  ;;  %v1605_v35 = vadd.f32 %v1604_v32, %v1603_v30 }
 0x14b   : > { %v1606_v37 = vpop.f32.mrf.mxu0 }
 0x14c   : > { %1014 = vst [vmem:[#allocation2 + $0x10] sm:$0xff] %v998_v34  ;;  %v969_v38 = vadd.f32 %v1661_v12, %v1605_v35 }
 0x14d   : > { %v1607_v39 = vpop.f32.mrf.mxu0 }
 0x14e   : > { %v999_v41 = vadd.f32 %v969_v38, %v437_v36  ;;  %v1608_v42 = vadd.f32 %v1607_v39, %v1606_v37 }
 0x14f   : > { %v1609_v43 = vpop.f32.mrf.mxu0 }
 0x150   : > { %1015 = vst [vmem:[#allocation2 + $0x38] sm:$0xff] %v999_v41  ;;  %v974_v45 = vadd.f32 %v1608_v42, %v973_v33 }
 0x151   : > { %v1610_v46 = vpop.f32.mrf.mxu0 }
 0x152   : > { %v1000_v48 = vadd.f32 %v974_v45, %v438_v44  ;;  %v1611_v49 = vadd.f32 %v1610_v46, %v1609_v43 }
 0x153   : > { %v1612_v50 = vpop.f32.mrf.mxu0 }
 0x154   : > { %1016 = vst [vmem:[#allocation2 + $0x60] sm:$0xff] %v1000_v48  ;;  %v977_v52 = vadd.f32 %v1611_v49, %v976_v47 }
 0x155   : > { %v1613_v53 = vpop.f32.mrf.mxu0 }
 0x156   : > { %v1001_v54 = vadd.f32 %v977_v52, %v439_v51  ;;  %v1614_v55 = vadd.f32 %v1613_v53, %v1612_v50 }
 0x157   : > { %v1615_v57 = vpop.f32.mrf.mxu0 }
 0x158   : > { %1017 = vst [vmem:[#allocation2 + $0x70] sm:$0xff] %v1001_v54  ;;  %v982_v58 = vadd.f32 %v1664_v26, %v1614_v55 }
 0x159   : > { %v1616_v59 = vpop.f32.mrf.mxu0 }
 0x15a   : > { %v1002_v60 = vadd.f32 %v982_v58, %v440_v56  ;;  %v1617_v61 = vadd.f32 %v1616_v59, %v1615_v57 }
 0x15c   : > { %1018 = vst [vmem:[#allocation2 + $0x78] sm:$0xff] %v1002_v60  ;;  %v985_v63 = vadd.f32 %v1665_v40, %v1617_v61  ;;  %1023 = sbr.rel (%p1429_p11) target bundleno = 379 (0x17b), region = 70 }
 0x15e   : > { %v1003_v0 = vadd.f32 %v985_v63, %v441_v62 }
 0x160   : > { %1019 = vst [vmem:[#allocation2 + $0x28] sm:$0xff] %v1003_v0 }
 0x161   : > { %v1024_v1 = vld [vmem:[#allocation2 + $0x30] sm:$0xff]  ;;  %v1025_v2 = vld [vmem:[#allocation2] sm:$0xff]  ;;  %v1026_v7 = vld [vmem:[#allocation2 + $0x58] sm:$0xff] }
 0x162   : > { %v2006_v3 = vld [vmem:[%s2089_s2] ss:$0 sm:$0xff]  ;;  %v1027_v8 = vld [vmem:[#allocation2 + $0x18] sm:$0xff]  ;;  %v1540_v13 = vld [vmem:[%s2090_s3 + $0x8] sm:$0xff]  }
 0x163   : > { %v1047_v4 = vadd.f32 %v2006_v3, %v1024_v1  ;;  %v1048_v5 = vadd.f32 %v2006_v3, %v1025_v2  ;;  %v1469_v6 = vld [vmem:[%s2090_s3] sm:$0xff]   ;;  %v1049_v11 = vadd.f32 %v2006_v3, %v1026_v7  ;;  %v1050_v12 = vadd.f32 %v2006_v3, %v1027_v8  ;;  %v1028_v14 = vld [vmem:[#allocation2 + $0x50] sm:$0xff]  ;;  %v1029_v15 = vld [vmem:[#allocation2 + $0x68] sm:$0xff] }
 0x164   : > { %v1470_v9 = vunpack.c.l.bf16 %v1469_v6  ;;  %v1471_v10 = vunpack.c.h.bf16 %v1469_v6  ;;  %v1474_v16 = vunpack.c.l.bf16 %v1540_v13  ;;  %v1475_v17 = vunpack.c.h.bf16 %v1540_v13  ;;  %v1541_v20 = vld [vmem:[%s2090_s3 + $0x10] sm:$0xff]   ;;  %v1030_v21 = vld [vmem:[#allocation2 + $0x8] sm:$0xff]  ;;  %v1542_v27 = vld [vmem:[%s2090_s3 + $0x18] sm:$0xff]  }
 0x165   : > { %v1051_v18 = vadd.f32 %v2006_v3, %v1028_v14  ;;  %v1052_v19 = vadd.f32 %v2006_v3, %v1029_v15  ;;  %v1031_v22 = vld [vmem:[#allocation2 + $0x48] sm:$0xff]  ;;  %v1478_v25 = vunpack.c.l.bf16 %v1541_v20  ;;  %v1479_v26 = vunpack.c.h.bf16 %v1541_v20  ;;  %v1032_v32 = vld [vmem:[#allocation2 + $0x40] sm:$0xff]  ;;  %v1034_v43 = vld [vmem:[#allocation2 + $0x10] sm:$0xff] }
 0x166   : > { %v1095_v23 = vadd.f32 %v1470_v9, %v1047_v4  ;;  %v1096_v24 = vadd.f32 %v1471_v10, %v1048_v5  ;;  %v1097_v28 = vadd.f32 %v1474_v16, %v1049_v11  ;;  %v1098_v29 = vadd.f32 %v1475_v17, %v1050_v12  ;;  %v1033_v37 = vld [vmem:[#allocation2 + $0x20] sm:$0xff]  ;;  %v1035_v48 = vld [vmem:[#allocation2 + $0x38] sm:$0xff]  ;;  %v1544_v49 = vld [vmem:[%s2090_s3 + $0x28] sm:$0xff]  }
 0x167   : > { %v1053_v30 = vadd.f32 %v2006_v3, %v1030_v21  ;;  %v1054_v31 = vadd.f32 %v2006_v3, %v1031_v22  ;;  %v1099_v35 = vadd.f32 %v1478_v25, %v1051_v18  ;;  %v1100_v36 = vadd.f32 %v1479_v26, %v1052_v19  ;;  %v1543_v42 = vld [vmem:[%s2090_s3 + $0x20] sm:$0xff]   ;;  %v1037_v59 = vld [vmem:[#allocation2 + $0x70] sm:$0xff]  ;;  %v1038_v6 = vld [vmem:[#allocation2 + $0x78] sm:$0xff] }
 0x168   : > { %v1111_v33 = vmax.f32 %v1095_v23, 0.0  ;;  %v1112_v34 = vmax.f32 %v1096_v24, 0.0  ;;  %v1113_v38 = vmax.f32 %v1097_v28, 0.0  ;;  %v1114_v39 = vmax.f32 %v1098_v29, 0.0  ;;  %v1036_v54 = vld [vmem:[#allocation2 + $0x60] sm:$0xff]  ;;  %v1545_v60 = vld [vmem:[%s2090_s3 + $0x30] sm:$0xff]  }
 0x169   : > { %v1482_v40 = vunpack.c.l.bf16 %v1542_v27  ;;  %v1483_v41 = vunpack.c.h.bf16 %v1542_v27  ;;  %v1115_v45 = vmax.f32 %v1099_v35, 0.0  ;;  %v1116_v46 = vmax.f32 %v1100_v36, 0.0  ;;  %v1039_v7 = vld [vmem:[#allocation2 + $0x28] sm:$0xff]  ;;  %v1546_v12 = vld [vmem:[%s2090_s3 + $0x38] sm:$0xff]  }
 0x16a   : > { %v1503_v44 = vpack.c.bf16 %v1112_v34, %v1111_v33  ;;  %v1055_v47 = vadd.f32 %v2006_v3, %v1032_v32  ;;  %v1508_v50 = vpack.c.bf16 %v1114_v39, %v1113_v38  ;;  %v1056_v53 = vadd.f32 %v2006_v3, %v1033_v37 }
 0x16b   : > { %v1101_v51 = vadd.f32 %v1482_v40, %v1053_v30  ;;  %v1102_v52 = vadd.f32 %v1483_v41, %v1054_v31  ;;  %v1513_v55 = vpack.c.bf16 %v1116_v46, %v1115_v45  ;;  %v1486_v56 = vunpack.c.l.bf16 %v1543_v42 }
 0x16c   : > { %1504 = vst [vmem:[%s2091_s4] sm:$0xff] %v1503_v44   ;;  %v1487_v57 = vunpack.c.h.bf16 %v1543_v42  ;;  %v1057_v58 = vadd.f32 %v2006_v3, %v1034_v43  ;;  %1547 = vst [vmem:[%s2091_s4 + $0x8] sm:$0xff] %v1508_v50   ;;  %v1058_v63 = vadd.f32 %v2006_v3, %v1035_v48  ;;  %v1490_v0 = vunpack.c.l.bf16 %v1544_v49 }
 0x16d   : > { %v1117_v61 = vmax.f32 %v1101_v51, 0.0  ;;  %v1118_v62 = vmax.f32 %v1102_v52, 0.0  ;;  %1548 = vst [vmem:[%s2091_s4 + $0x10] sm:$0xff] %v1513_v55   ;;  %v1103_v1 = vadd.f32 %v1486_v56, %v1055_v47  ;;  %v1491_v4 = vunpack.c.h.bf16 %v1544_v49 }
 0x16e   : > { %v1104_v2 = vadd.f32 %v1487_v57, %v1056_v53  ;;  %v1059_v5 = vadd.f32 %v2006_v3, %v1036_v54  ;;  %v1105_v9 = vadd.f32 %v1490_v0, %v1057_v58  ;;  %v1060_v10 = vadd.f32 %v2006_v3, %v1037_v59 }
 0x16f   : > { %v1518_v8 = vpack.c.bf16 %v1118_v62, %v1117_v61  ;;  %v1494_v11 = vunpack.c.l.bf16 %v1545_v60  ;;  %v1119_v13 = vmax.f32 %v1103_v1, 0.0  ;;  %v1106_v15 = vadd.f32 %v1491_v4, %v1058_v63 }
 0x170   : > { %v1120_v14 = vmax.f32 %v1104_v2, 0.0  ;;  %v1495_v16 = vunpack.c.h.bf16 %v1545_v60  ;;  %v1121_v17 = vmax.f32 %v1105_v9, 0.0  ;;  %v1061_v19 = vadd.f32 %v2006_v3, %v1038_v6 }
 0x171   : > { %1549 = vst [vmem:[%s2091_s4 + $0x18] sm:$0xff] %v1518_v8   ;;  %v1107_v18 = vadd.f32 %v1494_v11, %v1059_v5  ;;  %v1062_v20 = vadd.f32 %v2006_v3, %v1039_v7  ;;  %v1122_v22 = vmax.f32 %v1106_v15, 0.0  ;;  %v1498_v24 = vunpack.c.l.bf16 %v1546_v12 }
 0x172   : > { %v1523_v21 = vpack.c.bf16 %v1120_v14, %v1119_v13  ;;  %v1108_v23 = vadd.f32 %v1495_v16, %v1060_v10  ;;  %v1499_v26 = vunpack.c.h.bf16 %v1546_v12 }
 0x173   : > { %v1123_v25 = vmax.f32 %v1107_v18, 0.0  ;;  %v1528_v27 = vpack.c.bf16 %v1122_v22, %v1121_v17  ;;  %v1109_v29 = vadd.f32 %v1498_v24, %v1061_v19 }
 0x174   : > { %1550 = vst [vmem:[%s2091_s4 + $0x20] sm:$0xff] %v1523_v21   ;;  %v1124_v28 = vmax.f32 %v1108_v23, 0.0  ;;  %v1110_v30 = vadd.f32 %v1499_v26, %v1062_v20 }
 0x175   : > { %1551 = vst [vmem:[%s2091_s4 + $0x28] sm:$0xff] %v1528_v27   ;;  %v1125_v3 = vmax.f32 %v1109_v29, 0.0 }
 0x176   : > { %v1533_v31 = vpack.c.bf16 %v1124_v28, %v1123_v25  ;;  %v1126_v32 = vmax.f32 %v1110_v30, 0.0 }
 0x178   : > { %1552 = vst [vmem:[%s2091_s4 + $0x30] sm:$0xff] %v1533_v31   ;;  %v1538_v33 = vpack.c.bf16 %v1126_v32, %v1125_v3 }
 0x17a   : > { %1553 = vst [vmem:[%s2091_s4 + $0x38] sm:$0xff] %v1538_v33  }
 0x17b PF: > { %s14_s19 = sadd.s32 1, %s1803_s19   ;;  %s2092_s15 = smov %s1791_s16 }
 0x17c   : > { %p11_p12 = scmp.ge.s32.totalorder %s14_s19, 5   ;;  %s2093_s16 = smov %s1866_s23 }
 0x17d   : > { %s2094_s17 = smov %s1799_s18  ;;  %s2095_s18 = smov %s2097_s20 }
 0x17e   :  { %13 = sbr.rel (!%p11_p12) target bundleno = 3 (0x3), region = 120 }

// kernel: _lambda_.24
= control target key start
LH: loop header
LB: loop body
LE: loop exit
PB: predicated region body
PF: predicated region fallthrough
CT: control target
= control target key end

     0   :  { %s1660_s12 = smov 0   ;;  %s1662_s13 = smov 0   ;;  %s1874_s0 = inlined_call_operand.vmem [shape: bf16[128,1152], index: 0, kind: input, shape index: {}]   ;;  %s1875_s1 = inlined_call_operand.vmem [shape: bf16[1152,128], index: 1, kind: input, shape index: {}]   ;;  %s1876_s2 = inlined_call_operand.vmem [shape: f32[1,128], index: 2, kind: input, shape index: {}]   ;;  %s1877_s3 = inlined_call_operand.vmem [shape: bf16[128,128], index: 3, kind: output, shape index: {}]  }
   0x1   :  { %s1664_s14 = smov 0   ;;  %s1666_s15 = smov 0  }
   0x2   :  { %s1668_s16 = smov 0  }
   0x3 LB: > { %s25_s17 = sadd.s32 1, %s1633_s15  ;;  %p48_p1 = scmp.ne.s32.totalorder %s1625_s13, %s1621_s12  ;;  %s1637_s16 = sphi %s1668_s16, %s13_s16   ;;  %s1633_s15 = sphi %s1666_s15, %s1881_s15   ;;  %s1629_s14 = sphi %s1664_s14, %s1880_s14   ;;  %s1625_s13 = sphi %s1662_s13, %s1879_s13   ;;  %s1621_s12 = sphi %s1660_s12, %s1878_s12  }
   0x4   : > { %p26_p0 = scmp.ge.s32.totalorder %s25_s17, 3  ;;  %p49_p2 = scmp.eq.s32.totalorder %s1637_s16, 0 }
   0x5   : > { %s41_s19 = sadd.s32 1, %s1625_s13  ;;  %p1217_p5 = scmp.ge.s32.totalorder %s1637_s16, 3 }
   0x6   : > { %s1883_s17 = smov (%p26_p0, %s25_s17), 0  ;;  %p50_p3 = por %p49_p2, %p48_p1 }
   0x7   : > { %s37_s18 = ssub.s32 %s1633_s15, %s1883_s17  ;;  %162 = sbr.rel (%p1217_p5) target bundleno = 35 (0x23), region = 20 }
   0x8   : > { %p39_p4 = scmp.eq.s32.totalorder %s37_s18, 0 }
   0xa   : > { %s1695_s20 = scalar_select %p39_p4, %s1625_s13, %s41_s19  }
   0xc   : > { %165 = sbr.rel (!%p50_p3) target bundleno = 35 (0x23), region = 24  ;;  %s167_s21 = sand.u32 (%p50_p3), 1, %s1625_s13  }
   0xd   : > { %s1324_s22 = smul.u32 (%p50_p3), 12, %s1633_s15 }
   0xe   : > { %s1500_s23 = smul.u32 (%p50_p3), 192, %s167_s21 }
   0xf   : > { %s1703_s26 = scalar_lea.vmem (%p50_p3), %s1874_s0, %s1324_s22 }
  0x10   : > { %v190_v0 = vld [vmem:[%s1703_s26] sm:$0xff] (%p50_p3)  ;;  %v194_v2 = vld [vmem:[%s1703_s26 + $0x48] sm:$0xff] (%p50_p3)  ;;  %s1708_s27 = scalar_lea.vmem (%p50_p3), [#allocation3], %s1500_s23  ;;  %v198_v4 = vld [vmem:[%s1703_s26 + $0x90] sm:$0xff] (%p50_p3) }
  0x11   : > { %v192_v1 = vld [vmem:[%s1703_s26 + $0x24] sm:$0xff]  ;;  %191 = vst [vmem:[%s1708_s27] sm:$0xff] %v190_v0  ;;  %195 = vst [vmem:[%s1708_s27 + $0x18] sm:$0xff] %v194_v2  ;;  %v196_v3 = vld [vmem:[%s1703_s26 + $0x6c] sm:$0xff] }
  0x12   : > { %193 = vst [vmem:[%s1708_s27 + $0xc] sm:$0xff] %v192_v1  ;;  %v200_v5 = vld [vmem:[%s1703_s26 + $0xb4] sm:$0xff]  ;;  %197 = vst [vmem:[%s1708_s27 + $0x24] sm:$0xff] %v196_v3  ;;  %v204_v7 = vld [vmem:[%s1703_s26 + $0xfc] sm:$0xff] }
  0x13   : > { %199 = vst [vmem:[%s1708_s27 + $0x30] sm:$0xff] %v198_v4  ;;  %201 = vst [vmem:[%s1708_s27 + $0x3c] sm:$0xff] %v200_v5  ;;  %v202_v6 = vld [vmem:[%s1703_s26 + $0xd8] sm:$0xff]  ;;  %v206_v8 = vld [vmem:[%s1703_s26 + $0x120] sm:$0xff] }
  0x14   : > { %203 = vst [vmem:[%s1708_s27 + $0x48] sm:$0xff] %v202_v6  ;;  %205 = vst [vmem:[%s1708_s27 + $0x54] sm:$0xff] %v204_v7  ;;  %v208_v9 = vld [vmem:[%s1703_s26 + $0x144] sm:$0xff]  ;;  %v212_v11 = vld [vmem:[%s1703_s26 + $0x18c] sm:$0xff] }
  0x15   : > { %207 = vst [vmem:[%s1708_s27 + $0x60] sm:$0xff] %v206_v8  ;;  %v210_v10 = vld [vmem:[%s1703_s26 + $0x168] sm:$0xff]  ;;  %209 = vst [vmem:[%s1708_s27 + $0x6c] sm:$0xff] %v208_v9  ;;  %v214_v12 = vld [vmem:[%s1703_s26 + $0x1b0] sm:$0xff] }
  0x16   : > { %211 = vst [vmem:[%s1708_s27 + $0x78] sm:$0xff] %v210_v10  ;;  %213 = vst [vmem:[%s1708_s27 + $0x84] sm:$0xff] %v212_v11  ;;  %v216_v13 = vld [vmem:[%s1703_s26 + $0x1d4] sm:$0xff]  ;;  %v220_v15 = vld [vmem:[%s1703_s26 + $0x21c] sm:$0xff] }
  0x17   : > { %v218_v14 = vld [vmem:[%s1703_s26 + $0x1f8] sm:$0xff]  ;;  %215 = vst [vmem:[%s1708_s27 + $0x90] sm:$0xff] %v214_v12  ;;  %217 = vst [vmem:[%s1708_s27 + $0x9c] sm:$0xff] %v216_v13  ;;  %v1219_v16 = vld [vmem:[%s1703_s26 + $0x8] sm:$0xf] }
  0x18   : > { %219 = vst [vmem:[%s1708_s27 + $0xa8] sm:$0xff] %v218_v14  ;;  %v1221_v17 = vld [vmem:[%s1703_s26 + $0x2c] sm:$0xf]  ;;  %221 = vst [vmem:[%s1708_s27 + $0xb4] sm:$0xff] %v220_v15  ;;  %v1223_v18 = vld [vmem:[%s1703_s26 + $0x50] sm:$0xf] }
  0x19   : > { %1220 = vst [vmem:[%s1708_s27 + $0x8] sm:$0xf] %v1219_v16  ;;  %1222 = vst [vmem:[%s1708_s27 + $0x14] sm:$0xf] %v1221_v17  ;;  %v1225_v19 = vld [vmem:[%s1703_s26 + $0x74] sm:$0xf] }
  0x1a   : > { %v1227_v20 = vld [vmem:[%s1703_s26 + $0x98] sm:$0xf]  ;;  %1224 = vst [vmem:[%s1708_s27 + $0x20] sm:$0xf] %v1223_v18  ;;  %1226 = vst [vmem:[%s1708_s27 + $0x2c] sm:$0xf] %v1225_v19 }
  0x1b   : > { %1228 = vst [vmem:[%s1708_s27 + $0x38] sm:$0xf] %v1227_v20  ;;  %v1229_v21 = vld [vmem:[%s1703_s26 + $0xbc] sm:$0xf]  ;;  %v1231_v22 = vld [vmem:[%s1703_s26 + $0xe0] sm:$0xf] }
  0x1c   : > { %v1233_v23 = vld [vmem:[%s1703_s26 + $0x104] sm:$0xf]  ;;  %1230 = vst [vmem:[%s1708_s27 + $0x44] sm:$0xf] %v1229_v21  ;;  %1232 = vst [vmem:[%s1708_s27 + $0x50] sm:$0xf] %v1231_v22 }
  0x1d   : > { %1234 = vst [vmem:[%s1708_s27 + $0x5c] sm:$0xf] %v1233_v23  ;;  %v1235_v24 = vld [vmem:[%s1703_s26 + $0x128] sm:$0xf]  ;;  %v1237_v25 = vld [vmem:[%s1703_s26 + $0x14c] sm:$0xf] }
  0x1e   : > { %v1239_v26 = vld [vmem:[%s1703_s26 + $0x170] sm:$0xf]  ;;  %1236 = vst [vmem:[%s1708_s27 + $0x68] sm:$0xf] %v1235_v24  ;;  %1238 = vst [vmem:[%s1708_s27 + $0x74] sm:$0xf] %v1237_v25 }
  0x1f   : > { %1240 = vst [vmem:[%s1708_s27 + $0x80] sm:$0xf] %v1239_v26  ;;  %v1241_v27 = vld [vmem:[%s1703_s26 + $0x194] sm:$0xf]  ;;  %v1243_v28 = vld [vmem:[%s1703_s26 + $0x1b8] sm:$0xf] }
  0x20   : > { %v1245_v29 = vld [vmem:[%s1703_s26 + $0x1dc] sm:$0xf]  ;;  %1242 = vst [vmem:[%s1708_s27 + $0x8c] sm:$0xf] %v1241_v27  ;;  %1244 = vst [vmem:[%s1708_s27 + $0x98] sm:$0xf] %v1243_v28 }
  0x21   : > { %1246 = vst [vmem:[%s1708_s27 + $0xa4] sm:$0xf] %v1245_v29  ;;  %v1247_v30 = vld [vmem:[%s1703_s26 + $0x200] sm:$0xf]  ;;  %v1249_v31 = vld [vmem:[%s1703_s26 + $0x224] sm:$0xf] }
  0x22   : > { %1248 = vst [vmem:[%s1708_s27 + $0xb0] sm:$0xf] %v1247_v30  ;;  %1250 = vst [vmem:[%s1708_s27 + $0xbc] sm:$0xf] %v1249_v31 }
  0x23 PF: > { %p1251_p6 = scmp.ge.s32.totalorder %s1637_s16, 1  ;;  %p278_p7 = scmp.lt.s32.totalorder %s1637_s16, 4 }
  0x25   : > { %p279_p8 = pnand %p1251_p6, %p278_p7 }
  0x26   : > { %s285_s28 = sand.u32 (!%p279_p8), 1, %s1621_s12   ;;  %s324_s29 = smul.u32 (!%p279_p8), 48, %s1629_s14 }
  0x27   : > { %282 = sbr.rel (%p279_p8) target bundleno = 369 (0x171), region = 54  ;;  %p1253_p10 = scmp.ne.s32.totalorder (!%p279_p8), %s1629_s14, 0 }
  0x28   : > { %s1501_s30 = smul.u32 (!%p279_p8), 192, %s285_s28  ;;  %p325_p9 = scmp.lt.s32.totalorder (!%p279_p8), %s324_s29, 143 }
  0x2a   : > { %s1780_s8 = scalar_lea.vmem (!%p279_p8), [#allocation3], %s1501_s30 }
  0x2c   : > { %s1885_s29 = smov (!%p325_p9, %s324_s29), 143  ;;  %349 = sbr.rel (%p1253_p10) target bundleno = 58 (0x3a), region = 62 }
  0x2d   : > { %s1252_s4 = sshll.u32 %s1885_s29, 2 }
  0x2e   : > { %s1778_s7 = scalar_lea.vmem %s1875_s1, %s1252_s4 }
  0x31   : > { %v1639_v32 = vmov 0.0  }
  0x32   : > { %350 = vst [vmem:[#allocation2 + $0x30] sm:$0xff] %v1639_v32  ;;  %351 = vst [vmem:[#allocation2] sm:$0xff] %v1639_v32 }
  0x33   : > { %352 = vst [vmem:[#allocation2 + $0x58] sm:$0xff] %v1639_v32  ;;  %353 = vst [vmem:[#allocation2 + $0x18] sm:$0xff] %v1639_v32 }
  0x34   : > { %354 = vst [vmem:[#allocation2 + $0x50] sm:$0xff] %v1639_v32  ;;  %355 = vst [vmem:[#allocation2 + $0x68] sm:$0xff] %v1639_v32 }
  0x35   : > { %356 = vst [vmem:[#allocation2 + $0x8] sm:$0xff] %v1639_v32  ;;  %357 = vst [vmem:[#allocation2 + $0x48] sm:$0xff] %v1639_v32 }
  0x36   : > { %358 = vst [vmem:[#allocation2 + $0x40] sm:$0xff] %v1639_v32  ;;  %359 = vst [vmem:[#allocation2 + $0x20] sm:$0xff] %v1639_v32 }
  0x37   : > { %360 = vst [vmem:[#allocation2 + $0x10] sm:$0xff] %v1639_v32  ;;  %361 = vst [vmem:[#allocation2 + $0x38] sm:$0xff] %v1639_v32 }
  0x38   : > { %362 = vst [vmem:[#allocation2 + $0x60] sm:$0xff] %v1639_v32  ;;  %363 = vst [vmem:[#allocation2 + $0x70] sm:$0xff] %v1639_v32 }
  0x39   : > { %364 = vst [vmem:[#allocation2 + $0x78] sm:$0xff] %v1639_v32  ;;  %365 = vst [vmem:[#allocation2 + $0x28] sm:$0xff] %v1639_v32 }
  0x3a PF: > { %v1543_v33 = vld [vmem:[%s1778_s7 + $0x78] sm:$0xff]   ;;  %v1546_v36 = vld [vmem:[%s1778_s7 + $0x70] sm:$0xff]   ;;  %v1549_v39 = vld [vmem:[%s1778_s7 + $0x68] sm:$0xff]   ;;  %p1302_p11 = scmp.ne.s32.totalorder %s1629_s14, 2 }
  0x3b   : > { %v1544_v34 = vld [vmem:[%s1778_s7 + $0x38] sm:$0xff]   ;;  %1388 = vmatprep.subr.bf16.mxu0 %v1543_v33  ;;  %v1547_v37 = vld [vmem:[%s1778_s7 + $0x30] sm:$0xff]   ;;  %v1550_v40 = vld [vmem:[%s1778_s7 + $0x28] sm:$0xff]  }
  0x3c   : > { %v1545_v35 = vld [vmem:[%s1778_s7 + $0xb8] sm:$0xff]   ;;  %1389 = vmatpush3.bf16.msra.mxu0 %v1544_v34  ;;  %v1548_v38 = vld [vmem:[%s1778_s7 + $0xb0] sm:$0xff]   ;;  %v1551_v41 = vld [vmem:[%s1778_s7 + $0xa8] sm:$0xff]  }
  0x3d   : > { %1468 = vmatprep.subr.bf16.mxu1 %v1545_v35  ;;  %1390 = vmatprep.subr.bf16.mxu0 %v1546_v36  ;;  %v1552_v42 = vld [vmem:[%s1778_s7 + $0x60] sm:$0xff]   ;;  %v1555_v45 = vld [vmem:[%s1778_s7 + $0x58] sm:$0xff]   ;;  %v1558_v48 = vld [vmem:[%s1778_s7 + $0x50] sm:$0xff]  }
  0x3e   : > { %1469 = vmatpush3.bf16.msra.mxu1 %v1545_v35  ;;  %v1553_v43 = vld [vmem:[%s1778_s7 + $0x20] sm:$0xff]   ;;  %v1557_v46 = vld [vmem:[%s1778_s7 + $0x98] sm:$0xff]   ;;  %v1560_v49 = vld [vmem:[%s1778_s7 + $0x90] sm:$0xff]  }
  0x3f   : > { %1470 = vmatprep.subr.bf16.mxu1 %v1548_v38  ;;  %v1554_v44 = vld [vmem:[%s1778_s7 + $0xa0] sm:$0xff]   ;;  %v1556_v47 = vld [vmem:[%s1778_s7 + $0x18] sm:$0xff]   ;;  %v1559_v50 = vld [vmem:[%s1778_s7 + $0x10] sm:$0xff]  }
  0x40   : > { %1391 = vmatpush3.bf16.msra.mxu0 %v1547_v37  ;;  %v1561_v51 = vld [vmem:[%s1778_s7 + $0x48] sm:$0xff]   ;;  %v1564_v54 = vld [vmem:[%s1778_s7 + $0x40] sm:$0xff]   ;;  %v1579_v1 = vld [vmem:[%s1780_s8 + $0x50] ss:$12 sps:$4 sm:$0xff]  }
  0x41   : > { %1392 = vmatprep.subr.bf16.mxu0 %v1549_v39  ;;  %v1562_v52 = vld [vmem:[%s1778_s7 + $0x8] sm:$0xff]   ;;  %v1566_v55 = vld [vmem:[%s1778_s7 + $0x80] sm:$0xff]   ;;  %v1577_v3 = vld [vmem:[%s1780_s8 + $0x30] ss:$12 sps:$4 sm:$0xff]  }
  0x42   : > { %1471 = vmatpush3.bf16.msra.mxu1 %v1548_v38  ;;  %v1563_v53 = vld [vmem:[%s1778_s7 + $0x88] sm:$0xff]   ;;  %v1569_v56 = vld [vmem:[%s1780_s8 + $0x4] ss:$12 sps:$4 sm:$0xff]   ;;  %v1575_v0 = vld [vmem:[%s1780_s8 + $0x34] ss:$12 sps:$4 sm:$0xff]  }
  0x43   : > { %1472 = vmatprep.subr.bf16.mxu1 %v1551_v41  ;;  %v1570_v57 = vld [vmem:[%s1780_s8 + $0x8] ss:$12 sps:$4 sm:$0xff]   ;;  %v1565_v58 = vld [vmem:[%s1778_s7] sm:$0xff]   ;;  %766 = vmatprep.mubr.bf16.mxu0 %v1569_v56  ;;  %v1580_v4 = vld [vmem:[%s1780_s8 + $0x4c] ss:$12 sps:$4 sm:$0xff]  }
  0x44   : > { %1393 = vmatpush3.bf16.msra.mxu0 %v1550_v40  ;;  %1484 = vmatprep.mubr.bf16.mxu1 %v1570_v57  ;;  %v1567_v59 = vld [vmem:[%s1780_s8] ss:$12 sps:$4 sm:$0xff]   ;;  %v1572_v60 = vld [vmem:[%s1780_s8 + $0x1c] ss:$12 sps:$4 sm:$0xff]   ;;  %v1578_v62 = vld [vmem:[%s1780_s8 + $0x38] ss:$12 sps:$4 sm:$0xff]  }
  0x45   : > { %1394 = vmatprep.subr.bf16.mxu0 %v1552_v42  ;;  %v1571_v61 = vld [vmem:[%s1780_s8 + $0x20] ss:$12 sps:$4 sm:$0xff]   ;;  %v1574_v63 = vld [vmem:[%s1780_s8 + $0x18] ss:$12 sps:$4 sm:$0xff]   ;;  %v1586_v2 = vld [vmem:[%s1780_s8 + $0x68] ss:$12 sps:$4 sm:$0xff]  }
  0x46   : > { %1473 = vmatpush3.bf16.msra.mxu1 %v1551_v41  ;;  %v1587_v5 = vld [vmem:[%s1780_s8 + $0x80] ss:$12 sps:$4 sm:$0xff]   ;;  %v1594_v6 = vld [vmem:[%s1780_s8 + $0x98] ss:$12 sps:$4 sm:$0xff]   ;;  %v1582_v7 = vld [vmem:[%s1780_s8 + $0x48] ss:$12 sps:$4 sm:$0xff]  }
  0x47   : > { %1474 = vmatprep.subr.bf16.mxu1 %v1554_v44  ;;  %v1583_v8 = vld [vmem:[%s1780_s8 + $0x64] ss:$12 sps:$4 sm:$0xff]   ;;  %v1585_v10 = vld [vmem:[%s1780_s8 + $0x60] ss:$12 sps:$4 sm:$0xff]   ;;  %v1588_v11 = vld [vmem:[%s1780_s8 + $0x7c] ss:$12 sps:$4 sm:$0xff]  }
  0x48   : > { %1395 = vmatpush3.bf16.msra.mxu0 %v1553_v43  ;;  %v1595_v9 = vld [vmem:[%s1780_s8 + $0xb0] ss:$12 sps:$4 sm:$0xff]   ;;  %v1590_v12 = vld [vmem:[%s1780_s8 + $0x78] ss:$12 sps:$4 sm:$0xff]   ;;  %v1591_v13 = vld [vmem:[%s1780_s8 + $0x94] ss:$12 sps:$4 sm:$0xff]  }
  0x49   : > { %1396 = vmatprep.subr.bf16.mxu0 %v1555_v45  ;;  %v1593_v14 = vld [vmem:[%s1780_s8 + $0x90] ss:$12 sps:$4 sm:$0xff]   ;;  %v1596_v15 = vld [vmem:[%s1780_s8 + $0xac] ss:$12 sps:$4 sm:$0xff]   ;;  %v1598_v16 = vld [vmem:[%s1780_s8 + $0xa8] ss:$12 sps:$4 sm:$0xff]  }
  0x4a   : > { %1475 = vmatpush3.bf16.msra.mxu1 %v1554_v44  ;;  %v366_v22 = vld [vmem:[#allocation2 + $0x30] sm:$0xff]  ;;  %v367_v30 = vld [vmem:[#allocation2] sm:$0xff]  ;;  %v368_v37 = vld [vmem:[#allocation2 + $0x58] sm:$0xff] }
  0x4b   : > { %1476 = vmatprep.subr.bf16.mxu1 %v1557_v46  ;;  %v369_v44 = vld [vmem:[#allocation2 + $0x18] sm:$0xff] }
  0x4c   : > { %1397 = vmatpush3.bf16.msra.mxu0 %v1556_v47 }
  0x4d   : > { %1398 = vmatprep.subr.bf16.mxu0 %v1558_v48 }
  0x4e   : > { %1477 = vmatpush3.bf16.msra.mxu1 %v1557_v46 }
  0x4f   : > { %1478 = vmatprep.subr.bf16.mxu1 %v1560_v49 }
  0x50   : > { %1399 = vmatpush3.bf16.msra.mxu0 %v1559_v50 }
  0x51   : > { %1400 = vmatprep.subr.bf16.mxu0 %v1561_v51 }
  0x52   : > { %1479 = vmatpush3.bf16.msra.mxu1 %v1560_v49 }
  0x53   : > { %1480 = vmatprep.subr.bf16.mxu1 %v1563_v53 }
  0x54   : > { %1401 = vmatpush3.bf16.msra.mxu0 %v1562_v52  ;;  %v370_v52 = vld [vmem:[#allocation2 + $0x50] sm:$0xff] }
  0x55   : > { %1402 = vmatprep.subr.bf16.mxu0 %v1564_v54 }
  0x56   : > { %1481 = vmatpush3.bf16.msra.mxu1 %v1563_v53 }
  0x57   : > { %1482 = vmatprep.subr.bf16.mxu1 %v1566_v55 }
  0x58   : > { %1403 = vmatpush3.bf16.msra.mxu0 %v1565_v58 }
  0x5a   : > { %1483 = vmatpush3.bf16.msra.mxu1 %v1566_v55 }
  0x5b   : > { %767 = vmatmul.mubr.bf16.vlgmr.msra.gmra.mxu0 %v1567_v59  ;;  %v371_v59 = vld [vmem:[#allocation2 + $0x68] sm:$0xff] }
  0x5c   : > { %774 = vmatprep.mubr.bf16.mxu0 %v1572_v60 }
  0x5d   : > { %1485 = vmatmul.mubr.bf16.vlgmr.msra.gmra.mxu1 %v1571_v61 }
  0x5e   : > { %1488 = vmatprep.mubr.bf16.mxu1 %v1578_v62 }
  0x63   : > { %775 = vmatmul.mubr.bf16.gmra.mxu0 %v1574_v63 }
  0x64   : > { %782 = vmatprep.mubr.bf16.mxu0 %v1575_v0 }
  0x65   : > { %1489 = vmatmul.mubr.bf16.gmra.mxu1 %v1579_v1  ;;  %v372_v1 = vld [vmem:[#allocation2 + $0x8] sm:$0xff] }
  0x66   : > { %1492 = vmatprep.mubr.bf16.mxu1 %v1586_v2 }
  0x6b   : > { %783 = vmatmul.mubr.bf16.gmra.mxu0 %v1577_v3 }
  0x6c   : > { %790 = vmatprep.mubr.bf16.mxu0 %v1580_v4 }
  0x6d   : > { %1493 = vmatmul.mubr.bf16.gmra.mxu1 %v1587_v5 }
  0x6e   : > { %1496 = vmatprep.mubr.bf16.mxu1 %v1594_v6 }
  0x73   : > { %791 = vmatmul.mubr.bf16.gmra.mxu0 %v1582_v7 }
  0x74   : > { %798 = vmatprep.mubr.bf16.mxu0 %v1583_v8  ;;  %v373_v8 = vld [vmem:[#allocation2 + $0x48] sm:$0xff] }
  0x75   : > { %1497 = vmatmul.mubr.bf16.gmra.mxu1 %v1595_v9 }
  0x7b   : > { %799 = vmatmul.mubr.bf16.gmra.mxu0 %v1585_v10 }
  0x7c   : > { %806 = vmatprep.mubr.bf16.mxu0 %v1588_v11 }
  0x83   : > { %807 = vmatmul.mubr.bf16.gmra.mxu0 %v1590_v12 }
  0x84   : > { %814 = vmatprep.mubr.bf16.mxu0 %v1591_v13 }
  0x8b   : > { %815 = vmatmul.mubr.bf16.gmra.mxu0 %v1593_v14 }
  0x8c   : > { %822 = vmatprep.mubr.bf16.mxu0 %v1596_v15 }
  0x93   : > { %823 = vmatmul.mubr.bf16.gmra.mxu0 %v1598_v16  ;;  %v374_v16 = vld [vmem:[#allocation2 + $0x40] sm:$0xff] }
 0x11b   : > { %v1404_v17 = vpop.f32.mrf.mxu0 }
 0x11d   : > { %v1405_v18 = vpop.f32.mrf.mxu0  ;;  %v1486_v19 = vpop.f32.mrf.mxu1 }
 0x11e   : > { %v1406_v20 = vadd.f32 %v1405_v18, %v1404_v17 }
 0x11f   : > { %v1407_v21 = vpop.f32.mrf.mxu0  ;;  %v865_v23 = vpop.f32.mrf.mxu1 }
 0x120   : > { %v866_v24 = vadd.f32 %v1406_v20, %v865_v23  ;;  %v375_v23 = vld [vmem:[#allocation2 + $0x20] sm:$0xff] }
 0x121   : > { %v1408_v25 = vpop.f32.mrf.mxu0  ;;  %v1487_v26 = vpop.f32.mrf.mxu1 }
 0x122   : > { %v928_v27 = vadd.f32 %v866_v24, %v366_v22  ;;  %v1409_v28 = vadd.f32 %v1408_v25, %v1407_v21 }
 0x123   : > { %v1410_v29 = vpop.f32.mrf.mxu0  ;;  %v868_v31 = vpop.f32.mrf.mxu1 }
 0x124   : > { %944 = vst [vmem:[#allocation2 + $0x30] sm:$0xff] %v928_v27  ;;  %v869_v32 = vadd.f32 %v1409_v28, %v868_v31 }
 0x125   : > { %v1411_v33 = vpop.f32.mrf.mxu0  ;;  %v1490_v34 = vpop.f32.mrf.mxu1 }
 0x126   : > { %v929_v35 = vadd.f32 %v869_v32, %v367_v30  ;;  %v1412_v36 = vadd.f32 %v1411_v33, %v1410_v29  ;;  %v376_v29 = vld [vmem:[#allocation2 + $0x10] sm:$0xff] }
 0x127   : > { %v1413_v38 = vpop.f32.mrf.mxu0  ;;  %v881_v41 = vpop.f32.mrf.mxu1 }
 0x128   : > { %945 = vst [vmem:[#allocation2] sm:$0xff] %v929_v35  ;;  %v874_v39 = vadd.f32 %v1486_v19, %v1412_v36  ;;  %v377_v36 = vld [vmem:[#allocation2 + $0x38] sm:$0xff] }
 0x129   : > { %v1414_v40 = vpop.f32.mrf.mxu0  ;;  %v1491_v48 = vpop.f32.mrf.mxu1 }
 0x12a   : > { %v930_v42 = vadd.f32 %v874_v39, %v368_v37  ;;  %v1415_v43 = vadd.f32 %v1414_v40, %v1413_v38 }
 0x12b   : > { %v1416_v45 = vpop.f32.mrf.mxu0  ;;  %v884_v55 = vpop.f32.mrf.mxu1 }
 0x12c   : > { %946 = vst [vmem:[#allocation2 + $0x58] sm:$0xff] %v930_v42  ;;  %v877_v46 = vadd.f32 %v1487_v26, %v1415_v43 }
 0x12d   : > { %v1417_v47 = vpop.f32.mrf.mxu0  ;;  %v1494_v62 = vpop.f32.mrf.mxu1 }
 0x12e   : > { %v931_v49 = vadd.f32 %v877_v46, %v369_v44  ;;  %v1418_v50 = vadd.f32 %v1417_v47, %v1416_v45  ;;  %v378_v44 = vld [vmem:[#allocation2 + $0x60] sm:$0xff] }
 0x12f   : > { %v1419_v51 = vpop.f32.mrf.mxu0  ;;  %v897_v5 = vpop.f32.mrf.mxu1 }
 0x130   : > { %947 = vst [vmem:[#allocation2 + $0x18] sm:$0xff] %v931_v49  ;;  %v882_v53 = vadd.f32 %v1418_v50, %v881_v41 }
 0x131   : > { %v1420_v54 = vpop.f32.mrf.mxu0  ;;  %v1495_v12 = vpop.f32.mrf.mxu1 }
 0x132   : > { %v932_v56 = vadd.f32 %v882_v53, %v370_v52  ;;  %v1421_v57 = vadd.f32 %v1420_v54, %v1419_v51  ;;  %v379_v51 = vld [vmem:[#allocation2 + $0x70] sm:$0xff] }
 0x133   : > { %v1422_v58 = vpop.f32.mrf.mxu0  ;;  %v900_v19 = vpop.f32.mrf.mxu1 }
 0x134   : > { %948 = vst [vmem:[#allocation2 + $0x50] sm:$0xff] %v932_v56  ;;  %v885_v60 = vadd.f32 %v1421_v57, %v884_v55  ;;  %v380_v56 = vld [vmem:[#allocation2 + $0x78] sm:$0xff] }
 0x135   : > { %v1423_v61 = vpop.f32.mrf.mxu0  ;;  %v1498_v26 = vpop.f32.mrf.mxu1 }
 0x136   : > { %v933_v63 = vadd.f32 %v885_v60, %v371_v59  ;;  %v1424_v0 = vadd.f32 %v1423_v61, %v1422_v58 }
 0x137   : > { %v1425_v2 = vpop.f32.mrf.mxu0  ;;  %v913_v33 = vpop.f32.mrf.mxu1 }
 0x138   : > { %949 = vst [vmem:[#allocation2 + $0x68] sm:$0xff] %v933_v63  ;;  %v890_v3 = vadd.f32 %v1490_v34, %v1424_v0 }
 0x139   : > { %v1426_v4 = vpop.f32.mrf.mxu0  ;;  %v1499_v40 = vpop.f32.mrf.mxu1 }
 0x13a   : > { %v934_v6 = vadd.f32 %v890_v3, %v372_v1  ;;  %v1427_v7 = vadd.f32 %v1426_v4, %v1425_v2 }
 0x13b   : > { %v1428_v9 = vpop.f32.mrf.mxu0  ;;  %v916_v47 = vpop.f32.mrf.mxu1 }
 0x13c   : > { %950 = vst [vmem:[#allocation2 + $0x8] sm:$0xff] %v934_v6  ;;  %v893_v10 = vadd.f32 %v1491_v48, %v1427_v7 }
 0x13d   : > { %v1429_v11 = vpop.f32.mrf.mxu0 }
 0x13e   : > { %v935_v13 = vadd.f32 %v893_v10, %v373_v8  ;;  %v1430_v14 = vadd.f32 %v1429_v11, %v1428_v9 }
 0x13f   : > { %v1431_v15 = vpop.f32.mrf.mxu0 }
 0x140   : > { %951 = vst [vmem:[#allocation2 + $0x48] sm:$0xff] %v935_v13  ;;  %v898_v17 = vadd.f32 %v1430_v14, %v897_v5 }
 0x141   : > { %v1432_v18 = vpop.f32.mrf.mxu0 }
 0x142   : > { %v936_v20 = vadd.f32 %v898_v17, %v374_v16  ;;  %v1433_v21 = vadd.f32 %v1432_v18, %v1431_v15 }
 0x143   : > { %v1434_v22 = vpop.f32.mrf.mxu0 }
 0x144   : > { %952 = vst [vmem:[#allocation2 + $0x40] sm:$0xff] %v936_v20  ;;  %v901_v24 = vadd.f32 %v1433_v21, %v900_v19 }
 0x145   : > { %v1435_v25 = vpop.f32.mrf.mxu0 }
 0x146   : > { %v937_v27 = vadd.f32 %v901_v24, %v375_v23  ;;  %v1436_v28 = vadd.f32 %v1435_v25, %v1434_v22 }
 0x147   : > { %v1437_v30 = vpop.f32.mrf.mxu0 }
 0x148   : > { %953 = vst [vmem:[#allocation2 + $0x20] sm:$0xff] %v937_v27  ;;  %v906_v31 = vadd.f32 %v1494_v62, %v1436_v28  ;;  %v381_v62 = vld [vmem:[#allocation2 + $0x28] sm:$0xff] }
 0x149   : > { %v1438_v32 = vpop.f32.mrf.mxu0 }
 0x14a   : > { %v938_v34 = vadd.f32 %v906_v31, %v376_v29  ;;  %v1439_v35 = vadd.f32 %v1438_v32, %v1437_v30 }
 0x14b   : > { %v1440_v37 = vpop.f32.mrf.mxu0 }
 0x14c   : > { %954 = vst [vmem:[#allocation2 + $0x10] sm:$0xff] %v938_v34  ;;  %v909_v38 = vadd.f32 %v1495_v12, %v1439_v35 }
 0x14d   : > { %v1441_v39 = vpop.f32.mrf.mxu0 }
 0x14e   : > { %v939_v41 = vadd.f32 %v909_v38, %v377_v36  ;;  %v1442_v42 = vadd.f32 %v1441_v39, %v1440_v37 }
 0x14f   : > { %v1443_v43 = vpop.f32.mrf.mxu0 }
 0x150   : > { %955 = vst [vmem:[#allocation2 + $0x38] sm:$0xff] %v939_v41  ;;  %v914_v45 = vadd.f32 %v1442_v42, %v913_v33 }
 0x151   : > { %v1444_v46 = vpop.f32.mrf.mxu0 }
 0x152   : > { %v940_v48 = vadd.f32 %v914_v45, %v378_v44  ;;  %v1445_v49 = vadd.f32 %v1444_v46, %v1443_v43 }
 0x153   : > { %v1446_v50 = vpop.f32.mrf.mxu0 }
 0x154   : > { %956 = vst [vmem:[#allocation2 + $0x60] sm:$0xff] %v940_v48  ;;  %v917_v52 = vadd.f32 %v1445_v49, %v916_v47 }
 0x155   : > { %v1447_v53 = vpop.f32.mrf.mxu0 }
 0x156   : > { %v941_v54 = vadd.f32 %v917_v52, %v379_v51  ;;  %v1448_v55 = vadd.f32 %v1447_v53, %v1446_v50 }
 0x157   : > { %v1449_v57 = vpop.f32.mrf.mxu0 }
 0x158   : > { %957 = vst [vmem:[#allocation2 + $0x70] sm:$0xff] %v941_v54  ;;  %v922_v58 = vadd.f32 %v1498_v26, %v1448_v55 }
 0x159   : > { %v1450_v59 = vpop.f32.mrf.mxu0 }
 0x15a   : > { %v942_v60 = vadd.f32 %v922_v58, %v380_v56  ;;  %v1451_v61 = vadd.f32 %v1450_v59, %v1449_v57 }
 0x15c   : > { %958 = vst [vmem:[#allocation2 + $0x78] sm:$0xff] %v942_v60  ;;  %v925_v63 = vadd.f32 %v1499_v40, %v1451_v61  ;;  %963 = sbr.rel (%p1302_p11) target bundleno = 369 (0x171), region = 66 }
 0x15e   : > { %v943_v0 = vadd.f32 %v925_v63, %v381_v62 }
 0x160   : > { %959 = vst [vmem:[#allocation2 + $0x28] sm:$0xff] %v943_v0 }
 0x161   : > { %v964_v1 = vld [vmem:[#allocation2 + $0x30] sm:$0xff]  ;;  %v965_v2 = vld [vmem:[#allocation2] sm:$0xff]  ;;  %v966_v6 = vld [vmem:[#allocation2 + $0x58] sm:$0xff] }
 0x162   : > { %v1303_v3 = vld [vmem:[%s1876_s2] ss:$0 sm:$0xff]  ;;  %v967_v7 = vld [vmem:[#allocation2 + $0x18] sm:$0xff]  ;;  %v968_v8 = vld [vmem:[#allocation2 + $0x50] sm:$0xff] }
 0x163   : > { %v987_v4 = vadd.f32 %v1303_v3, %v964_v1  ;;  %v988_v5 = vadd.f32 %v1303_v3, %v965_v2  ;;  %v989_v9 = vadd.f32 %v1303_v3, %v966_v6  ;;  %v990_v10 = vadd.f32 %v1303_v3, %v967_v7  ;;  %v969_v11 = vld [vmem:[#allocation2 + $0x68] sm:$0xff]  ;;  %v972_v19 = vld [vmem:[#allocation2 + $0x40] sm:$0xff]  ;;  %v974_v21 = vld [vmem:[#allocation2 + $0x10] sm:$0xff] }
 0x164   : > { %v991_v12 = vadd.f32 %v1303_v3, %v968_v8  ;;  %v970_v13 = vld [vmem:[#allocation2 + $0x8] sm:$0xff]  ;;  %v992_v17 = vadd.f32 %v1303_v3, %v969_v11  ;;  %v973_v20 = vld [vmem:[#allocation2 + $0x20] sm:$0xff]  ;;  %v975_v26 = vld [vmem:[#allocation2 + $0x38] sm:$0xff]  ;;  %v995_v31 = vadd.f32 %v1303_v3, %v972_v19  ;;  %v997_v36 = vadd.f32 %v1303_v3, %v974_v21 }
 0x165   : > { %v971_v14 = vld [vmem:[#allocation2 + $0x48] sm:$0xff]  ;;  %v1003_v15 = vmax.f32 %v987_v4, 0.0  ;;  %v1004_v16 = vmax.f32 %v988_v5, 0.0  ;;  %v993_v18 = vadd.f32 %v1303_v3, %v970_v13  ;;  %v1005_v22 = vmax.f32 %v989_v9, 0.0  ;;  %v976_v27 = vld [vmem:[#allocation2 + $0x60] sm:$0xff]  ;;  %v977_v32 = vld [vmem:[#allocation2 + $0x70] sm:$0xff] }
 0x166   : > { %v1006_v23 = vmax.f32 %v990_v10, 0.0  ;;  %v1007_v24 = vmax.f32 %v991_v12, 0.0  ;;  %v994_v25 = vadd.f32 %v1303_v3, %v971_v14  ;;  %v1008_v29 = vmax.f32 %v992_v17, 0.0  ;;  %v978_v37 = vld [vmem:[#allocation2 + $0x78] sm:$0xff] }
 0x167   : > { %v1344_v28 = vpack.c.bf16 %v1004_v16, %v1003_v15  ;;  %v1009_v30 = vmax.f32 %v993_v18, 0.0  ;;  %v996_v35 = vadd.f32 %v1303_v3, %v973_v20  ;;  %v979_v38 = vld [vmem:[#allocation2 + $0x28] sm:$0xff]  ;;  %v1011_v40 = vmax.f32 %v995_v31, 0.0 }
 0x168   : > { %v1349_v33 = vpack.c.bf16 %v1006_v23, %v1005_v22  ;;  %v1010_v34 = vmax.f32 %v994_v25, 0.0  ;;  %v1354_v39 = vpack.c.bf16 %v1008_v29, %v1007_v24  ;;  %v998_v41 = vadd.f32 %v1303_v3, %v975_v26 }
 0x169   : > { %1345 = vst [vmem:[%s1877_s3] sm:$0xff] %v1344_v28   ;;  %v999_v42 = vadd.f32 %v1303_v3, %v976_v27  ;;  %v1012_v44 = vmax.f32 %v996_v35, 0.0  ;;  %v1013_v45 = vmax.f32 %v997_v36, 0.0  ;;  %v1000_v46 = vadd.f32 %v1303_v3, %v977_v32 }
 0x16a   : > { %1381 = vst [vmem:[%s1877_s3 + $0x8] sm:$0xff] %v1349_v33   ;;  %v1359_v43 = vpack.c.bf16 %v1010_v34, %v1009_v30  ;;  %1382 = vst [vmem:[%s1877_s3 + $0x10] sm:$0xff] %v1354_v39   ;;  %v1014_v47 = vmax.f32 %v998_v41, 0.0  ;;  %v1001_v49 = vadd.f32 %v1303_v3, %v978_v37  ;;  %v1002_v50 = vadd.f32 %v1303_v3, %v979_v38 }
 0x16b   : > { %v1015_v48 = vmax.f32 %v999_v42, 0.0  ;;  %v1364_v51 = vpack.c.bf16 %v1012_v44, %v1011_v40  ;;  %v1016_v52 = vmax.f32 %v1000_v46, 0.0 }
 0x16c   : > { %1383 = vst [vmem:[%s1877_s3 + $0x18] sm:$0xff] %v1359_v43   ;;  %v1369_v53 = vpack.c.bf16 %v1014_v47, %v1013_v45  ;;  %v1017_v54 = vmax.f32 %v1001_v49, 0.0  ;;  %v1018_v55 = vmax.f32 %v1002_v50, 0.0 }
 0x16d   : > { %1384 = vst [vmem:[%s1877_s3 + $0x20] sm:$0xff] %v1364_v51   ;;  %v1374_v56 = vpack.c.bf16 %v1016_v52, %v1015_v48 }
 0x16e   : > { %1385 = vst [vmem:[%s1877_s3 + $0x28] sm:$0xff] %v1369_v53   ;;  %v1379_v57 = vpack.c.bf16 %v1018_v55, %v1017_v54 }
 0x16f   : > { %1386 = vst [vmem:[%s1877_s3 + $0x30] sm:$0xff] %v1374_v56  }
 0x170   : > { %1387 = vst [vmem:[%s1877_s3 + $0x38] sm:$0xff] %v1379_v57  }
 0x171 PF: > { %s13_s16 = sadd.s32 1, %s1637_s16   ;;  %s1878_s12 = smov %s1625_s13 }
 0x172   : > { %p10_p12 = scmp.ge.s32.totalorder %s13_s16, 5   ;;  %s1879_s13 = smov %s1695_s20 }
 0x173   : > { %s1880_s14 = smov %s1633_s15  ;;  %s1881_s15 = smov %s1883_s17 }
 0x174   :  { %12 = sbr.rel (!%p10_p12) target bundleno = 3 (0x3), region = 113 }

// kernel: _lambda_.29
= control target key start
LH: loop header
LB: loop body
LE: loop exit
PB: predicated region body
PF: predicated region fallthrough
CT: control target
= control target key end

     0   :  { %s304_s1 = inlined_call_operand.vmem [shape: bf16[128,128], index: 1, kind: input, shape index: {}]   ;;  %s305_s0 = inlined_call_operand.vmem [shape: bf16[32,128], index: 0, kind: input, shape index: {}]   ;;  %s306_s2 = inlined_call_operand.vmem [shape: f32[1,128], index: 2, kind: input, shape index: {}]   ;;  %s307_s3 = inlined_call_operand.vmem [shape: bf16[32,128], index: 3, kind: output, shape index: {}]  }
   0x1   :  { %v235_v0 = vld [vmem:[%s304_s1 + $0x38] sm:$0xff]   ;;  %v236_v1 = vld [vmem:[%s304_s1 + $0x30] sm:$0xff]   ;;  %v237_v2 = vld [vmem:[%s304_s1 + $0x28] sm:$0xff]  }
   0x2   :  { %215 = vmatprep.subr.bf16.mxu0 %v235_v0  ;;  %v238_v3 = vld [vmem:[%s304_s1 + $0x20] sm:$0xff]   ;;  %v239_v5 = vld [vmem:[%s304_s1 + $0x18] sm:$0xff]   ;;  %v240_v6 = vld [vmem:[%s304_s1 + $0x10] sm:$0xff]  }
   0x3   :  { %216 = vmatpush3.bf16.msra.mxu0 %v235_v0  ;;  %v243_v4 = vld [vmem:[%s305_s0] sm:$0xff]   ;;  %v241_v7 = vld [vmem:[%s304_s1 + $0x8] sm:$0xff]  }
   0x4   :  { %217 = vmatprep.subr.bf16.mxu0 %v236_v1  ;;  %231 = vmatprep.mubr.bf16.mxu0 %v243_v4  ;;  %v242_v8 = vld [vmem:[%s304_s1] sm:$0xff]   ;;  %v244_v9 = vld [vmem:[%s305_s0 + $0x8] sm:$0xff]  }
   0x5   :  { %v175_v11 = vld [vmem:[%s306_s2] ss:$0 sm:$0xff] }
   0x7   :  { %218 = vmatpush3.bf16.msra.mxu0 %v236_v1 }
   0x8   :  { %219 = vmatprep.subr.bf16.mxu0 %v237_v2 }
   0xb   :  { %220 = vmatpush3.bf16.msra.mxu0 %v237_v2 }
   0xc   :  { %221 = vmatprep.subr.bf16.mxu0 %v238_v3 }
   0xf   :  { %222 = vmatpush3.bf16.msra.mxu0 %v238_v3 }
  0x10   :  { %223 = vmatprep.subr.bf16.mxu0 %v239_v5 }
  0x13   :  { %224 = vmatpush3.bf16.msra.mxu0 %v239_v5 }
  0x14   :  { %225 = vmatprep.subr.bf16.mxu0 %v240_v6 }
  0x17   :  { %226 = vmatpush3.bf16.msra.mxu0 %v240_v6 }
  0x18   :  { %227 = vmatprep.subr.bf16.mxu0 %v241_v7 }
  0x1b   :  { %228 = vmatpush3.bf16.msra.mxu0 %v241_v7 }
  0x1c   :  { %229 = vmatprep.subr.bf16.mxu0 %v242_v8 }
  0x1f   :  { %230 = vmatpush3.bf16.msra.mxu0 %v242_v8 }
  0x22   :  { %232 = vmatmul.mubr.bf16.vlgmr.msra.gmra.mxu0 %v244_v9 }
  0xe2   :  { %v233_v10 = vpop.f32.mrf.mxu0 }
  0xe3   :  { %v145_v14 = vadd.f32 %v233_v10, %v175_v11 }
  0xe4   :  { %v136_v12 = vpop.f32.mrf.mxu0 }
  0xe5   :  { %v137_v17 = vadd.f32 %v175_v11, %v136_v12 }
  0xe6   :  { %v234_v13 = vpop.f32.mrf.mxu0 }
  0xe7   :  { %v148_v15 = vadd.f32 %v234_v13, %v175_v11 }
  0xe8   :  { %v139_v16 = vpop.f32.mrf.mxu0 }
  0xe9   :  { %v202_v18 = vpack.c.bf16 %v148_v15, %v145_v14  ;;  %v140_v19 = vadd.f32 %v175_v11, %v139_v16 }
  0xeb   :  { %204 = vst [vmem:[%s307_s3 + $0x8] sm:$0xff] %v202_v18   ;;  %v197_v20 = vpack.c.bf16 %v140_v19, %v137_v17 }
  0xed   :  { %198 = vst [vmem:[%s307_s3] sm:$0xff] %v197_v20  }

// kernel: _lambda_.35
= control target key start
LH: loop header
LB: loop body
LE: loop exit
PB: predicated region body
PF: predicated region fallthrough
CT: control target
= control target key end

     0   :  { %s1131_s15 = smov 0   ;;  %s1133_s16 = smov 0   ;;  %s1233_s0 = inlined_call_operand.vmem [shape: bf16[8,2304], index: 0, kind: input, shape index: {}]   ;;  %s1234_s1 = inlined_call_operand.vmem [shape: bf16[2304,256], index: 1, kind: input, shape index: {}]   ;;  %s1235_s2 = inlined_call_operand.vmem [shape: f32[1,256], index: 2, kind: input, shape index: {}]   ;;  %s1236_s3 = inlined_call_operand.vmem [shape: bf16[8,256], index: 3, kind: input, shape index: {}]   ;;  %s1237_s4 = inlined_call_operand.vmem [shape: bf16[8,256], index: 4, kind: output, shape index: {}]  }
   0x1   :  { %s1135_s17 = smov 0  }
   0x2 LB: > { %s26_s18 = sadd.s32 1, %s1098_s16  ;;  %p915_p0 = scmp.ge.s32.totalorder %s1102_s17, 1  ;;  %s1102_s17 = sphi %s1135_s17, %s14_s17   ;;  %s1098_s16 = sphi %s1133_s16, %s1239_s16   ;;  %s1094_s15 = sphi %s1131_s15, %s1238_s15  }
   0x3   : > { %p27_p1 = scmp.ge.s32.totalorder %s26_s18, 6  ;;  %p236_p2 = scmp.lt.s32.totalorder %s1102_s17, 7 }
   0x5   : > { %s1241_s18 = smov (%p27_p1, %s26_s18), 0  ;;  %p237_p3 = pnand %p915_p0, %p236_p2 }
   0x6   : > { %s293_s19 = smul.u32 (!%p237_p3), 3, %s1094_s15  ;;  %p919_p6 = scmp.ne.s32.totalorder (!%p237_p3), %s1094_s15, 0 }
   0x7   : > { %240 = sbr.rel (%p237_p3) target bundleno = 304 (0x130), region = 36 }
   0x8   : > { %s303_s20 = smul.u32 (!%p237_p3), 48, %s1094_s15  ;;  %p296_p4 = scmp.lt.s32.totalorder (!%p237_p3), %s293_s19, 17 }
   0xa   : > { %p305_p5 = scmp.lt.s32.totalorder (!%p237_p3), %s303_s20, 287 }
   0xc   : > { %s1243_s19 = smov (!%p296_p4, %s293_s19), 17  ;;  %s1245_s20 = smov (!%p305_p5, %s303_s20), 287 }
   0xd   : > { %s916_s21 = sshll.u32 %s1243_s19, 2  ;;  %s977_s25 = sshll.u32 %s1245_s20, 3 }
   0xe   : > { %s1156_s24 = scalar_lea.vmem %s1233_s0, %s916_s21  ;;  %s1161_s28 = scalar_lea.vmem %s1234_s1, %s977_s25 }
   0xf   : > { %344 = sbr.rel (%p919_p6) target bundleno = 22 (0x16), region = 40 }
  0x14   : > { %v1104_v0 = vmov 0.0  }
  0x15   : > { %345 = vst [vmem:[#allocation2] sm:$0xff] %v1104_v0  ;;  %346 = vst [vmem:[#allocation2 + $0x8] sm:$0xff] %v1104_v0 }
  0x16 PF: > { %v1005_v1 = vld [vmem:[%s1161_s28 + $0x74] ss:$8 sps:$4 sm:$0xff]   ;;  %v1007_v2 = vld [vmem:[%s1161_s28 + $0x70] ss:$8 sps:$4 sm:$0xff]   ;;  %v1105_v3 = vmov 0   ;;  %v349_v34 = vld [vmem:[%s1156_s24] sm:$0xff] }
  0x17   : > { %723 = vmatprep.mubr.bf16.mxu1 %v1105_v3  ;;  %650 = vmatprep.subr.bf16.mxu0 %v1005_v1  ;;  %v1008_v4 = vld [vmem:[%s1161_s28 + $0x64] ss:$8 sps:$4 sm:$0xff]   ;;  %v1010_v5 = vld [vmem:[%s1161_s28 + $0x60] ss:$8 sps:$4 sm:$0xff]   ;;  %v1011_v6 = vld [vmem:[%s1161_s28 + $0x54] ss:$8 sps:$4 sm:$0xff]   ;;  %v921_v36 = vcombine.high %v349_v34, %v349_v34  ;;  %v920_v53 = vcombine.low %v349_v34, %v349_v34 }
  0x18   : > { %651 = vmatpush1.bf16.msra.mxu0 %v1007_v2  ;;  %v1013_v7 = vld [vmem:[%s1161_s28 + $0x50] ss:$8 sps:$4 sm:$0xff]   ;;  %v1014_v8 = vld [vmem:[%s1161_s28 + $0x44] ss:$8 sps:$4 sm:$0xff]   ;;  %v1026_v9 = vld [vmem:[%s1161_s28 + $0x174] ss:$8 sps:$4 sm:$0xff]  }
  0x19   : > { %652 = vmatprep.subr.bf16.mxu0 %v1008_v4  ;;  %v1028_v10 = vld [vmem:[%s1161_s28 + $0x170] ss:$8 sps:$4 sm:$0xff]   ;;  %v1016_v11 = vld [vmem:[%s1161_s28 + $0x40] ss:$8 sps:$4 sm:$0xff]   ;;  %v1017_v12 = vld [vmem:[%s1161_s28 + $0x34] ss:$8 sps:$4 sm:$0xff]   ;;  %691 = vmatprep.subr.bf16.mxu1 %v1026_v9 }
  0x1a   : > { %v1032_v13 = vld [vmem:[%s1161_s28 + $0x164] ss:$8 sps:$4 sm:$0xff]   ;;  %692 = vmatpush1.bf16.msra.mxu1 %v1028_v10  ;;  %v1034_v14 = vld [vmem:[%s1161_s28 + $0x160] ss:$8 sps:$4 sm:$0xff]   ;;  %v1019_v15 = vld [vmem:[%s1161_s28 + $0x30] ss:$8 sps:$4 sm:$0xff]   ;;  %682 = vmatprep.mubr.bf16.mxu0 %v921_v36 }
  0x1b   : > { %693 = vmatprep.subr.bf16.mxu1 %v1032_v13  ;;  %v1038_v16 = vld [vmem:[%s1161_s28 + $0x154] ss:$8 sps:$4 sm:$0xff]   ;;  %v1020_v17 = vld [vmem:[%s1161_s28 + $0x24] ss:$8 sps:$4 sm:$0xff]   ;;  %v1040_v18 = vld [vmem:[%s1161_s28 + $0x150] ss:$8 sps:$4 sm:$0xff]  }
  0x1c   : > { %653 = vmatpush1.bf16.msra.mxu0 %v1010_v5  ;;  %v1044_v19 = vld [vmem:[%s1161_s28 + $0x144] ss:$8 sps:$4 sm:$0xff]   ;;  %v1022_v20 = vld [vmem:[%s1161_s28 + $0x20] ss:$8 sps:$4 sm:$0xff]   ;;  %v1023_v21 = vld [vmem:[%s1161_s28 + $0x14] ss:$8 sps:$4 sm:$0xff]  }
  0x1d   : > { %654 = vmatprep.subr.bf16.mxu0 %v1011_v6  ;;  %v1046_v22 = vld [vmem:[%s1161_s28 + $0x140] ss:$8 sps:$4 sm:$0xff]   ;;  %v1050_v23 = vld [vmem:[%s1161_s28 + $0x134] ss:$8 sps:$4 sm:$0xff]   ;;  %v1025_v24 = vld [vmem:[%s1161_s28 + $0x10] ss:$8 sps:$4 sm:$0xff]  }
  0x1e   : > { %694 = vmatpush1.bf16.msra.mxu1 %v1034_v14  ;;  %v1029_v25 = vld [vmem:[%s1161_s28 + $0x4] ss:$8 sps:$4 sm:$0xff]   ;;  %v1052_v26 = vld [vmem:[%s1161_s28 + $0x130] ss:$8 sps:$4 sm:$0xff]   ;;  %v1031_v28 = vld [vmem:[%s1161_s28] ss:$8 sps:$4 sm:$0xff]  }
  0x1f   : > { %695 = vmatprep.subr.bf16.mxu1 %v1038_v16  ;;  %v1056_v27 = vld [vmem:[%s1161_s28 + $0x124] ss:$8 sps:$4 sm:$0xff]   ;;  %v1035_v29 = vld [vmem:[%s1161_s28 + $0xf4] ss:$8 sps:$4 sm:$0xff]   ;;  %v1058_v30 = vld [vmem:[%s1161_s28 + $0x120] ss:$8 sps:$4 sm:$0xff]  }
  0x20   : > { %655 = vmatpush1.bf16.msra.mxu0 %v1013_v7  ;;  %v1062_v31 = vld [vmem:[%s1161_s28 + $0x114] ss:$8 sps:$4 sm:$0xff]   ;;  %v1037_v32 = vld [vmem:[%s1161_s28 + $0xf0] ss:$8 sps:$4 sm:$0xff]   ;;  %v1041_v33 = vld [vmem:[%s1161_s28 + $0xe4] ss:$8 sps:$4 sm:$0xff]  }
  0x21   : > { %656 = vmatprep.subr.bf16.mxu0 %v1014_v8  ;;  %v1064_v35 = vld [vmem:[%s1161_s28 + $0x110] ss:$8 sps:$4 sm:$0xff]   ;;  %v1068_v37 = vld [vmem:[%s1161_s28 + $0x104] ss:$8 sps:$4 sm:$0xff]   ;;  %v1043_v38 = vld [vmem:[%s1161_s28 + $0xe0] ss:$8 sps:$4 sm:$0xff]  }
  0x22   : > { %696 = vmatpush1.bf16.msra.mxu1 %v1040_v18  ;;  %v1047_v39 = vld [vmem:[%s1161_s28 + $0xd4] ss:$8 sps:$4 sm:$0xff]   ;;  %v1070_v40 = vld [vmem:[%s1161_s28 + $0x100] ss:$8 sps:$4 sm:$0xff]   ;;  %v1049_v41 = vld [vmem:[%s1161_s28 + $0xd0] ss:$8 sps:$4 sm:$0xff]  }
  0x23   : > { %697 = vmatprep.subr.bf16.mxu1 %v1044_v19  ;;  %v1053_v42 = vld [vmem:[%s1161_s28 + $0xc4] ss:$8 sps:$4 sm:$0xff]   ;;  %v1074_v43 = vld [vmem:[%s1156_s24 + $0x8] ss:$0 sps:$4 sm:$0xff]   ;;  %v1059_v45 = vld [vmem:[%s1161_s28 + $0xb4] ss:$8 sps:$4 sm:$0xff]  }
  0x24   : > { %657 = vmatpush1.bf16.msra.mxu0 %v1016_v11  ;;  %v1055_v44 = vld [vmem:[%s1161_s28 + $0xc0] ss:$8 sps:$4 sm:$0xff]   ;;  %v1061_v46 = vld [vmem:[%s1161_s28 + $0xb0] ss:$8 sps:$4 sm:$0xff]   ;;  %v1065_v47 = vld [vmem:[%s1161_s28 + $0xa4] ss:$8 sps:$4 sm:$0xff]  }
  0x25   : > { %658 = vmatprep.subr.bf16.mxu0 %v1017_v12  ;;  %v1067_v48 = vld [vmem:[%s1161_s28 + $0xa0] ss:$8 sps:$4 sm:$0xff]   ;;  %v1071_v49 = vld [vmem:[%s1161_s28 + $0x94] ss:$8 sps:$4 sm:$0xff]   ;;  %v1073_v50 = vld [vmem:[%s1161_s28 + $0x90] ss:$8 sps:$4 sm:$0xff]  }
  0x26   : > { %698 = vmatpush1.bf16.msra.mxu1 %v1046_v22  ;;  %v1075_v51 = vld [vmem:[%s1161_s28 + $0x84] ss:$8 sps:$4 sm:$0xff]   ;;  %v1077_v52 = vld [vmem:[%s1161_s28 + $0x80] ss:$8 sps:$4 sm:$0xff]   ;;  %p971_p7 = scmp.ne.s32.totalorder %s1094_s15, 5 }
  0x27   : > { %699 = vmatprep.subr.bf16.mxu1 %v1050_v23  ;;  %v347_v58 = vld [vmem:[#allocation2] sm:$0xff]  ;;  %v348_v61 = vld [vmem:[#allocation2 + $0x8] sm:$0xff] }
  0x28   : > { %659 = vmatpush1.bf16.msra.mxu0 %v1019_v15 }
  0x29   : > { %660 = vmatprep.subr.bf16.mxu0 %v1020_v17 }
  0x2a   : > { %700 = vmatpush1.bf16.msra.mxu1 %v1052_v26 }
  0x2b   : > { %701 = vmatprep.subr.bf16.mxu1 %v1056_v27 }
  0x2c   : > { %661 = vmatpush1.bf16.msra.mxu0 %v1022_v20 }
  0x2d   : > { %662 = vmatprep.subr.bf16.mxu0 %v1023_v21 }
  0x2e   : > { %702 = vmatpush1.bf16.msra.mxu1 %v1058_v30 }
  0x2f   : > { %703 = vmatprep.subr.bf16.mxu1 %v1062_v31 }
  0x30   : > { %663 = vmatpush1.bf16.msra.mxu0 %v1025_v24 }
  0x31   : > { %664 = vmatprep.subr.bf16.mxu0 %v1029_v25 }
  0x32   : > { %704 = vmatpush1.bf16.msra.mxu1 %v1064_v35 }
  0x33   : > { %705 = vmatprep.subr.bf16.mxu1 %v1068_v37 }
  0x34   : > { %665 = vmatpush1.bf16.msra.mxu0 %v1031_v28 }
  0x35   : > { %666 = vmatprep.subr.bf16.mxu0 %v1035_v29 }
  0x36   : > { %706 = vmatpush1.bf16.msra.mxu1 %v1070_v40 }
  0x38   : > { %667 = vmatpush2.bf16.msra.mxu0 %v1037_v32 }
  0x39   : > { %668 = vmatprep.subr.bf16.mxu0 %v1041_v33  ;;  %724 = vmatmul.mubr.bf16.vlgmr.msra.gmra.mxu1 %v1074_v43 }
  0x3c   : > { %669 = vmatpush2.bf16.msra.mxu0 %v1043_v38 }
  0x3d   : > { %670 = vmatprep.subr.bf16.mxu0 %v1047_v39 }
  0x40   : > { %671 = vmatpush2.bf16.msra.mxu0 %v1049_v41 }
  0x41   : > { %672 = vmatprep.subr.bf16.mxu0 %v1053_v42 }
  0x44   : > { %673 = vmatpush2.bf16.msra.mxu0 %v1055_v44 }
  0x45   : > { %674 = vmatprep.subr.bf16.mxu0 %v1059_v45 }
  0x48   : > { %675 = vmatpush2.bf16.msra.mxu0 %v1061_v46 }
  0x49   : > { %676 = vmatprep.subr.bf16.mxu0 %v1065_v47 }
  0x4c   : > { %677 = vmatpush2.bf16.msra.mxu0 %v1067_v48 }
  0x4d   : > { %678 = vmatprep.subr.bf16.mxu0 %v1071_v49 }
  0x50   : > { %679 = vmatpush2.bf16.msra.mxu0 %v1073_v50 }
  0x51   : > { %680 = vmatprep.subr.bf16.mxu0 %v1075_v51 }
  0x54   : > { %681 = vmatpush2.bf16.msra.mxu0 %v1077_v52 }
  0x57   : > { %683 = vmatmul.mubr.bf16.vlgmr.msra.gmra.mxu0 %v920_v53 }
  0xf9   : > { %v725_v54 = vpop.f32.mrf.mxu1 }
  0xfb   : > { %v727_v55 = vpop.f32.mrf.mxu1 }
  0xfd   : > { %v729_v56 = vpop.f32.mrf.mxu1 }
  0xff   : > { %v730_v57 = vpop.f32.mrf.mxu1 }
 0x117   : > { %v684_v59 = vpop.f32.mrf.mxu0 }
 0x118   : > { %v726_v60 = vadd.f32 %v725_v54, %v684_v59 }
 0x119   : > { %v686_v62 = vpop.f32.mrf.mxu0 }
 0x11a   : > { %v732_v63 = vadd.f32 %v726_v60, %v347_v58  ;;  %v728_v0 = vadd.f32 %v727_v55, %v686_v62  ;;  %739 = sbr.rel (%p971_p7) target bundleno = 304 (0x130), region = 44 }
 0x11b   : > { %v688_v1 = vpop.f32.mrf.mxu0 }
 0x11c   : > { %734 = vst [vmem:[#allocation2] sm:$0xff] %v732_v63  ;;  %v733_v2 = vadd.f32 %v728_v0, %v348_v61 }
 0x11d   : > { %v689_v3 = vpop.f32.mrf.mxu0 }
 0x11e   : > { %735 = vst [vmem:[#allocation2 + $0x8] sm:$0xff] %v733_v2 }
 0x11f   : > { %v744_v4 = vlaneseq  ;;  %v742_v6 = vld [vmem:[%s1235_s2] sm:$0x3] }
 0x120   : > { %v756_v7 = vld [vmem:[%s1236_s3] sm:$0xff] }
 0x121   : > { %v745_v5 = vshrl.u32 %v744_v4, 7  ;;  %v757_v14 = vunpack.c.l.bf16 %v756_v7  ;;  %v758_v15 = vunpack.c.h.bf16 %v756_v7 }
 0x123   : > { %v746_v8 = vsub.s32 0, %v745_v5  ;;  %v750_v9 = vsub.s32 1, %v745_v5  ;;  %v740_v10 = vld [vmem:[#allocation2] sm:$0xff] }
 0x125   : > { %v741_v11 = vld [vmem:[#allocation2 + $0x8] sm:$0xff]  ;;  %v747_v12 = vrot.slane %v742_v6, %v746_v8  ;;  %v751_v13 = vrot.slane %v742_v6, %v750_v9 }
 0x127   : > { %v754_v16 = vadd.f32 %v747_v12, %v740_v10  ;;  %v755_v17 = vadd.f32 %v751_v13, %v741_v11 }
 0x129   : > { %v759_v18 = vadd.f32 %v757_v14, %v754_v16  ;;  %v760_v19 = vadd.f32 %v758_v15, %v755_v17 }
 0x12b   : > { %v761_v20 = vmax.f32 %v759_v18, 0.0  ;;  %v762_v21 = vmax.f32 %v760_v19, 0.0 }
 0x12d   : > { %v978_v22 = vpack.c.bf16 %v762_v21, %v761_v20 }
 0x12f   : > { %771 = vst [vmem:[%s1237_s4] sm:$0xff] %v978_v22 }
 0x130 PF: > { %s14_s17 = sadd.s32 1, %s1102_s17   ;;  %s1238_s15 = smov %s1098_s16 }
 0x131   : > { %p11_p8 = scmp.ge.s32.totalorder %s14_s17, 8   ;;  %s1239_s16 = smov %s1241_s18 }
 0x133   :  { %13 = sbr.rel (!%p11_p8) target bundleno = 2 (0x2), region = 83 }

// kernel: _lambda_.30
= control target key start
LH: loop header
LB: loop body
LE: loop exit
PB: predicated region body
PF: predicated region fallthrough
CT: control target
= control target key end

     0   :  { %s1177_s15 = smov 0   ;;  %s1179_s16 = smov 0   ;;  %s1293_s0 = inlined_call_operand.vmem [shape: bf16[32,1152], index: 0, kind: input, shape index: {}]   ;;  %s1294_s1 = inlined_call_operand.vmem [shape: bf16[1152,128], index: 1, kind: input, shape index: {}]   ;;  %s1295_s2 = inlined_call_operand.vmem [shape: f32[1,128], index: 2, kind: input, shape index: {}]   ;;  %s1296_s3 = inlined_call_operand.vmem [shape: bf16[32,128], index: 3, kind: input, shape index: {}]   ;;  %s1297_s4 = inlined_call_operand.vmem [shape: bf16[32,128], index: 4, kind: output, shape index: {}]  }
   0x1   :  { %s1181_s17 = smov 0   ;;  %s1183_s18 = smov 0  }
   0x2   :  { %s1185_s19 = smov 0  }
   0x3 LB: > { %s26_s20 = sadd.s32 1, %s1145_s18  ;;  %p49_p1 = scmp.ne.s32.totalorder %s1137_s16, %s1133_s15  ;;  %s1149_s19 = sphi %s1185_s19, %s14_s19   ;;  %s1145_s18 = sphi %s1183_s18, %s1301_s18   ;;  %s1141_s17 = sphi %s1181_s17, %s1300_s17   ;;  %s1137_s16 = sphi %s1179_s16, %s1299_s16   ;;  %s1133_s15 = sphi %s1177_s15, %s1298_s15  }
   0x4   : > { %p27_p0 = scmp.ge.s32.totalorder %s26_s20, 3  ;;  %p50_p2 = scmp.eq.s32.totalorder %s1149_s19, 0 }
   0x5   : > { %s42_s22 = sadd.s32 1, %s1137_s16  ;;  %p900_p5 = scmp.ge.s32.totalorder %s1149_s19, 3 }
   0x6   : > { %s1303_s20 = smov (%p27_p0, %s26_s20), 0  ;;  %p51_p3 = por %p50_p2, %p49_p1 }
   0x7   : > { %s38_s21 = ssub.s32 %s1145_s18, %s1303_s20  ;;  %203 = sbr.rel (%p900_p5) target bundleno = 21 (0x15), region = 24 }
   0x8   : > { %p40_p4 = scmp.eq.s32.totalorder %s38_s21, 0 }
   0xa   : > { %s1212_s23 = scalar_select %p40_p4, %s1137_s16, %s42_s22  }
   0xc   : > { %206 = sbr.rel (!%p51_p3) target bundleno = 21 (0x15), region = 28  ;;  %s208_s24 = sand.u32 (%p51_p3), 1, %s1137_s16  }
   0xd   : > { %s953_s25 = smul.u32 (%p51_p3), 12, %s1145_s18 }
   0xe   : > { %s1036_s26 = smul.u32 (%p51_p3), 48, %s208_s24 }
   0xf   : > { %s216_s29 = scalar_lea.vmem (%p51_p3), %s1293_s0, %s953_s25 }
  0x10   : > { %v231_v0 = vld [vmem:[%s216_s29] sm:$0xff] (%p51_p3)  ;;  %v235_v2 = vld [vmem:[%s216_s29 + $0x48] sm:$0xff] (%p51_p3)  ;;  %s210_s30 = scalar_lea.vmem (%p51_p3), [#allocation3], %s1036_s26  ;;  %v906_v6 = vld [vmem:[%s216_s29 + $0x50] sm:$0xf] (%p51_p3) }
  0x11   : > { %v233_v1 = vld [vmem:[%s216_s29 + $0x24] sm:$0xff]  ;;  %232 = vst [vmem:[%s210_s30] sm:$0xff] %v231_v0  ;;  %236 = vst [vmem:[%s210_s30 + $0x18] sm:$0xff] %v235_v2  ;;  %v237_v3 = vld [vmem:[%s216_s29 + $0x6c] sm:$0xff] }
  0x12   : > { %234 = vst [vmem:[%s210_s30 + $0xc] sm:$0xff] %v233_v1  ;;  %v902_v4 = vld [vmem:[%s216_s29 + $0x8] sm:$0xf]  ;;  %v904_v5 = vld [vmem:[%s216_s29 + $0x2c] sm:$0xf]  ;;  %238 = vst [vmem:[%s210_s30 + $0x24] sm:$0xff] %v237_v3 }
  0x13   : > { %903 = vst [vmem:[%s210_s30 + $0x8] sm:$0xf] %v902_v4  ;;  %905 = vst [vmem:[%s210_s30 + $0x14] sm:$0xf] %v904_v5  ;;  %v908_v7 = vld [vmem:[%s216_s29 + $0x74] sm:$0xf] }
  0x14   : > { %907 = vst [vmem:[%s210_s30 + $0x20] sm:$0xf] %v906_v6  ;;  %909 = vst [vmem:[%s210_s30 + $0x2c] sm:$0xf] %v908_v7 }
  0x15 PF: > { %p910_p6 = scmp.ge.s32.totalorder %s1149_s19, 1  ;;  %p271_p7 = scmp.lt.s32.totalorder %s1149_s19, 4 }
  0x17   : > { %p272_p8 = pnand %p910_p6, %p271_p7 }
  0x18   : > { %s278_s5 = sand.u32 (!%p272_p8), 1, %s1133_s15   ;;  %s327_s6 = smul.u32 (!%p272_p8), 48, %s1141_s17 }
  0x19   : > { %275 = sbr.rel (%p272_p8) target bundleno = 301 (0x12d), region = 58  ;;  %p912_p10 = scmp.ne.s32.totalorder (!%p272_p8), %s1141_s17, 0 }
  0x1a   : > { %s1037_s7 = smul.u32 (!%p272_p8), 48, %s278_s5  ;;  %p328_p9 = scmp.lt.s32.totalorder (!%p272_p8), %s327_s6, 143 }
  0x1c   : > { %s1229_s12 = scalar_lea.vmem (!%p272_p8), [#allocation3], %s1037_s7 }
  0x1e   : > { %s1305_s6 = smov (!%p328_p9, %s327_s6), 143  ;;  %361 = sbr.rel (%p912_p10) target bundleno = 38 (0x26), region = 66 }
  0x1f   : > { %s911_s8 = sshll.u32 %s1305_s6, 2 }
  0x20   : > { %s1227_s11 = scalar_lea.vmem %s1294_s1, %s911_s8 }
  0x23   : > { %v1151_v8 = vmov 0.0  }
  0x24   : > { %362 = vst [vmem:[#allocation2 + $0x10] sm:$0xff] %v1151_v8  ;;  %363 = vst [vmem:[#allocation2] sm:$0xff] %v1151_v8 }
  0x25   : > { %364 = vst [vmem:[#allocation2 + $0x18] sm:$0xff] %v1151_v8  ;;  %365 = vst [vmem:[#allocation2 + $0x8] sm:$0xff] %v1151_v8 }
  0x26 PF: > { %v1079_v9 = vld [vmem:[%s1227_s11 + $0x78] sm:$0xff]   ;;  %v1082_v12 = vld [vmem:[%s1227_s11 + $0x70] sm:$0xff]   ;;  %v1085_v15 = vld [vmem:[%s1227_s11 + $0x68] sm:$0xff]   ;;  %p943_p11 = scmp.ne.s32.totalorder %s1141_s17, 2 }
  0x27   : > { %v1080_v10 = vld [vmem:[%s1227_s11 + $0x38] sm:$0xff]   ;;  %978 = vmatprep.subr.bf16.mxu0 %v1079_v9  ;;  %v1083_v13 = vld [vmem:[%s1227_s11 + $0x30] sm:$0xff]   ;;  %v1086_v16 = vld [vmem:[%s1227_s11 + $0x28] sm:$0xff]  }
  0x28   : > { %v1081_v11 = vld [vmem:[%s1227_s11 + $0xb8] sm:$0xff]   ;;  %979 = vmatpush3.bf16.msra.mxu0 %v1080_v10  ;;  %v1084_v14 = vld [vmem:[%s1227_s11 + $0xb0] sm:$0xff]   ;;  %v1087_v17 = vld [vmem:[%s1227_s11 + $0xa8] sm:$0xff]  }
  0x29   : > { %1016 = vmatprep.subr.bf16.mxu1 %v1081_v11  ;;  %980 = vmatprep.subr.bf16.mxu0 %v1082_v12  ;;  %v1088_v18 = vld [vmem:[%s1227_s11 + $0x60] sm:$0xff]   ;;  %v1091_v21 = vld [vmem:[%s1227_s11 + $0x58] sm:$0xff]   ;;  %v1094_v24 = vld [vmem:[%s1227_s11 + $0x50] sm:$0xff]  }
  0x2a   : > { %1017 = vmatpush3.bf16.msra.mxu1 %v1081_v11  ;;  %v1089_v19 = vld [vmem:[%s1227_s11 + $0x20] sm:$0xff]   ;;  %v1093_v22 = vld [vmem:[%s1227_s11 + $0x98] sm:$0xff]   ;;  %v1096_v25 = vld [vmem:[%s1227_s11 + $0x90] sm:$0xff]  }
  0x2b   : > { %1018 = vmatprep.subr.bf16.mxu1 %v1084_v14  ;;  %v1090_v20 = vld [vmem:[%s1227_s11 + $0xa0] sm:$0xff]   ;;  %v1092_v23 = vld [vmem:[%s1227_s11 + $0x18] sm:$0xff]   ;;  %v1095_v26 = vld [vmem:[%s1227_s11 + $0x10] sm:$0xff]  }
  0x2c   : > { %981 = vmatpush3.bf16.msra.mxu0 %v1083_v13  ;;  %v1097_v27 = vld [vmem:[%s1227_s11 + $0x48] sm:$0xff]   ;;  %v1100_v30 = vld [vmem:[%s1227_s11 + $0x40] sm:$0xff]   ;;  %v366_v44 = vld [vmem:[#allocation2 + $0x10] sm:$0xff] }
  0x2d   : > { %982 = vmatprep.subr.bf16.mxu0 %v1085_v15  ;;  %v1098_v28 = vld [vmem:[%s1227_s11 + $0x8] sm:$0xff]   ;;  %v1102_v31 = vld [vmem:[%s1227_s11 + $0x80] sm:$0xff]   ;;  %v368_v58 = vld [vmem:[#allocation2 + $0x18] sm:$0xff] }
  0x2e   : > { %1019 = vmatpush3.bf16.msra.mxu1 %v1084_v14  ;;  %v1099_v29 = vld [vmem:[%s1227_s11 + $0x88] sm:$0xff]   ;;  %v1105_v32 = vld [vmem:[%s1229_s12 + $0x4] ss:$12 sps:$4 sm:$0xff]  }
  0x2f   : > { %1020 = vmatprep.subr.bf16.mxu1 %v1087_v17  ;;  %v1106_v33 = vld [vmem:[%s1229_s12 + $0x8] ss:$12 sps:$4 sm:$0xff]   ;;  %634 = vmatprep.mubr.bf16.mxu0 %v1105_v32  ;;  %v1103_v35 = vld [vmem:[%s1229_s12] ss:$12 sps:$4 sm:$0xff]   ;;  %v1110_v38 = vld [vmem:[%s1229_s12 + $0x18] ss:$12 sps:$4 sm:$0xff]  }
  0x30   : > { %983 = vmatpush3.bf16.msra.mxu0 %v1086_v16  ;;  %v1101_v34 = vld [vmem:[%s1227_s11] sm:$0xff]   ;;  %1032 = vmatprep.mubr.bf16.mxu1 %v1106_v33  ;;  %v1108_v36 = vld [vmem:[%s1229_s12 + $0x1c] ss:$12 sps:$4 sm:$0xff]  }
  0x31   : > { %984 = vmatprep.subr.bf16.mxu0 %v1088_v18  ;;  %v1107_v37 = vld [vmem:[%s1229_s12 + $0x20] ss:$12 sps:$4 sm:$0xff]  }
  0x32   : > { %1021 = vmatpush3.bf16.msra.mxu1 %v1087_v17  ;;  %v367_v52 = vld [vmem:[#allocation2] sm:$0xff]  ;;  %v369_v0 = vld [vmem:[#allocation2 + $0x8] sm:$0xff] }
  0x33   : > { %1022 = vmatprep.subr.bf16.mxu1 %v1090_v20 }
  0x34   : > { %985 = vmatpush3.bf16.msra.mxu0 %v1089_v19 }
  0x35   : > { %986 = vmatprep.subr.bf16.mxu0 %v1091_v21 }
  0x36   : > { %1023 = vmatpush3.bf16.msra.mxu1 %v1090_v20 }
  0x37   : > { %1024 = vmatprep.subr.bf16.mxu1 %v1093_v22 }
  0x38   : > { %987 = vmatpush3.bf16.msra.mxu0 %v1092_v23 }
  0x39   : > { %988 = vmatprep.subr.bf16.mxu0 %v1094_v24 }
  0x3a   : > { %1025 = vmatpush3.bf16.msra.mxu1 %v1093_v22 }
  0x3b   : > { %1026 = vmatprep.subr.bf16.mxu1 %v1096_v25 }
  0x3c   : > { %989 = vmatpush3.bf16.msra.mxu0 %v1095_v26 }
  0x3d   : > { %990 = vmatprep.subr.bf16.mxu0 %v1097_v27 }
  0x3e   : > { %1027 = vmatpush3.bf16.msra.mxu1 %v1096_v25 }
  0x3f   : > { %1028 = vmatprep.subr.bf16.mxu1 %v1099_v29 }
  0x40   : > { %991 = vmatpush3.bf16.msra.mxu0 %v1098_v28 }
  0x41   : > { %992 = vmatprep.subr.bf16.mxu0 %v1100_v30 }
  0x42   : > { %1029 = vmatpush3.bf16.msra.mxu1 %v1099_v29 }
  0x43   : > { %1030 = vmatprep.subr.bf16.mxu1 %v1102_v31 }
  0x44   : > { %993 = vmatpush3.bf16.msra.mxu0 %v1101_v34 }
  0x46   : > { %1031 = vmatpush3.bf16.msra.mxu1 %v1102_v31 }
  0x47   : > { %635 = vmatmul.mubr.bf16.vlgmr.msra.gmra.mxu0 %v1103_v35 }
  0x48   : > { %642 = vmatprep.mubr.bf16.mxu0 %v1108_v36 }
  0x49   : > { %1033 = vmatmul.mubr.bf16.vlgmr.msra.gmra.mxu1 %v1107_v37 }
  0x4f   : > { %643 = vmatmul.mubr.bf16.gmra.mxu0 %v1110_v38 }
 0x107   : > { %v994_v39 = vpop.f32.mrf.mxu0 }
 0x109   : > { %v995_v40 = vpop.f32.mrf.mxu0  ;;  %v1034_v41 = vpop.f32.mrf.mxu1 }
 0x10a   : > { %v996_v42 = vadd.f32 %v995_v40, %v994_v39 }
 0x10b   : > { %v997_v43 = vpop.f32.mrf.mxu0  ;;  %v685_v45 = vpop.f32.mrf.mxu1 }
 0x10c   : > { %v686_v46 = vadd.f32 %v996_v42, %v685_v45 }
 0x10d   : > { %v998_v47 = vpop.f32.mrf.mxu0  ;;  %v1035_v48 = vpop.f32.mrf.mxu1 }
 0x10e   : > { %v700_v49 = vadd.f32 %v686_v46, %v366_v44  ;;  %v999_v50 = vadd.f32 %v998_v47, %v997_v43 }
 0x10f   : > { %v1000_v51 = vpop.f32.mrf.mxu0  ;;  %v688_v53 = vpop.f32.mrf.mxu1 }
 0x110   : > { %704 = vst [vmem:[#allocation2 + $0x10] sm:$0xff] %v700_v49  ;;  %v689_v54 = vadd.f32 %v999_v50, %v688_v53 }
 0x111   : > { %v1001_v55 = vpop.f32.mrf.mxu0 }
 0x112   : > { %v701_v56 = vadd.f32 %v689_v54, %v367_v52  ;;  %v1002_v57 = vadd.f32 %v1001_v55, %v1000_v51 }
 0x113   : > { %v1003_v59 = vpop.f32.mrf.mxu0 }
 0x114   : > { %705 = vst [vmem:[#allocation2] sm:$0xff] %v701_v56  ;;  %v694_v60 = vadd.f32 %v1034_v41, %v1002_v57 }
 0x115   : > { %v1004_v61 = vpop.f32.mrf.mxu0 }
 0x116   : > { %v702_v62 = vadd.f32 %v694_v60, %v368_v58  ;;  %v1005_v63 = vadd.f32 %v1004_v61, %v1003_v59 }
 0x118   : > { %706 = vst [vmem:[#allocation2 + $0x18] sm:$0xff] %v702_v62  ;;  %v697_v1 = vadd.f32 %v1035_v48, %v1005_v63  ;;  %711 = sbr.rel (%p943_p11) target bundleno = 301 (0x12d), region = 70 }
 0x11a   : > { %v703_v2 = vadd.f32 %v697_v1, %v369_v0 }
 0x11c   : > { %707 = vst [vmem:[#allocation2 + $0x8] sm:$0xff] %v703_v2 }
 0x11d   : > { %v712_v3 = vld [vmem:[#allocation2 + $0x10] sm:$0xff]  ;;  %v713_v4 = vld [vmem:[#allocation2] sm:$0xff]  ;;  %v976_v15 = vld [vmem:[%s1296_s3 + $0x8] sm:$0xff]  }
 0x11e   : > { %v944_v5 = vld [vmem:[%s1295_s2] ss:$0 sm:$0xff]  ;;  %v964_v16 = vunpack.c.l.bf16 %v976_v15  ;;  %v965_v17 = vunpack.c.h.bf16 %v976_v15 }
 0x11f   : > { %v723_v6 = vadd.f32 %v944_v5, %v712_v3  ;;  %v724_v7 = vadd.f32 %v944_v5, %v713_v4  ;;  %v959_v8 = vld [vmem:[%s1296_s3] sm:$0xff]   ;;  %v714_v9 = vld [vmem:[#allocation2 + $0x18] sm:$0xff] }
 0x120   : > { %v960_v11 = vunpack.c.l.bf16 %v959_v8  ;;  %v961_v12 = vunpack.c.h.bf16 %v959_v8  ;;  %v725_v13 = vadd.f32 %v944_v5, %v714_v9 }
 0x122   : > { %v735_v18 = vadd.f32 %v960_v11, %v723_v6  ;;  %v736_v19 = vadd.f32 %v961_v12, %v724_v7  ;;  %v737_v20 = vadd.f32 %v964_v16, %v725_v13 }
 0x123   : > { %v715_v10 = vld [vmem:[#allocation2 + $0x8] sm:$0xff] }
 0x124   : > { %v726_v14 = vadd.f32 %v944_v5, %v715_v10  ;;  %v739_v22 = vmax.f32 %v735_v18, 0.0  ;;  %v740_v23 = vmax.f32 %v736_v19, 0.0  ;;  %v741_v24 = vmax.f32 %v737_v20, 0.0 }
 0x126   : > { %v738_v21 = vadd.f32 %v965_v17, %v726_v14  ;;  %v969_v26 = vpack.c.bf16 %v740_v23, %v739_v22 }
 0x128   : > { %v742_v25 = vmax.f32 %v738_v21, 0.0  ;;  %970 = vst [vmem:[%s1297_s4] sm:$0xff] %v969_v26  }
 0x12a   : > { %v974_v27 = vpack.c.bf16 %v742_v25, %v741_v24 }
 0x12c   : > { %977 = vst [vmem:[%s1297_s4 + $0x8] sm:$0xff] %v974_v27  }
 0x12d PF: > { %s14_s19 = sadd.s32 1, %s1149_s19   ;;  %s1298_s15 = smov %s1137_s16 }
 0x12e   : > { %p11_p12 = scmp.ge.s32.totalorder %s14_s19, 5   ;;  %s1299_s16 = smov %s1212_s23 }
 0x12f   : > { %s1300_s17 = smov %s1145_s18  ;;  %s1301_s18 = smov %s1303_s20 }
 0x130   :  { %13 = sbr.rel (!%p11_p12) target bundleno = 3 (0x3), region = 120 }

// kernel: _lambda_.33
= control target key start
LH: loop header
LB: loop body
LE: loop exit
PB: predicated region body
PF: predicated region fallthrough
CT: control target
= control target key end

     0   :  { %s1036_s12 = smov 0   ;;  %s1038_s13 = smov 0   ;;  %s1135_s0 = inlined_call_operand.vmem [shape: bf16[8,1152], index: 0, kind: input, shape index: {}]   ;;  %s1136_s1 = inlined_call_operand.vmem [shape: bf16[1152,256], index: 1, kind: input, shape index: {}]   ;;  %s1137_s2 = inlined_call_operand.vmem [shape: f32[1,256], index: 2, kind: input, shape index: {}]   ;;  %s1138_s3 = inlined_call_operand.vmem [shape: bf16[8,256], index: 3, kind: output, shape index: {}]  }
   0x1   :  { %s1040_s14 = smov 0  }
   0x2 LB: > { %s25_s15 = sadd.s32 1, %s1008_s13  ;;  %p825_p0 = scmp.ge.s32.totalorder %s1012_s14, 1  ;;  %s1012_s14 = sphi %s1040_s14, %s13_s14   ;;  %s1008_s13 = sphi %s1038_s13, %s1140_s13   ;;  %s1004_s12 = sphi %s1036_s12, %s1139_s12  }
   0x3   : > { %p26_p1 = scmp.ge.s32.totalorder %s25_s15, 3  ;;  %p194_p2 = scmp.lt.s32.totalorder %s1012_s14, 4 }
   0x5   : > { %s1142_s15 = smov (%p26_p1, %s25_s15), 0  ;;  %p195_p3 = pnand %p825_p0, %p194_p2 }
   0x6   : > { %s240_s16 = smul.u32 (!%p195_p3), 3, %s1004_s12  ;;  %p829_p6 = scmp.ne.s32.totalorder (!%p195_p3), %s1004_s12, 0 }
   0x7   : > { %198 = sbr.rel (%p195_p3) target bundleno = 302 (0x12e), region = 32 }
   0x8   : > { %s250_s17 = smul.u32 (!%p195_p3), 48, %s1004_s12  ;;  %p243_p4 = scmp.lt.s32.totalorder (!%p195_p3), %s240_s16, 8 }
   0xa   : > { %p252_p5 = scmp.lt.s32.totalorder (!%p195_p3), %s250_s17, 143 }
   0xc   : > { %s1144_s16 = smov (!%p243_p4, %s240_s16), 8  ;;  %s1146_s17 = smov (!%p252_p5, %s250_s17), 143 }
   0xd   : > { %s826_s18 = sshll.u32 %s1144_s16, 2  ;;  %s887_s22 = sshll.u32 %s1146_s17, 3 }
   0xe   : > { %s1061_s21 = scalar_lea.vmem %s1135_s0, %s826_s18  ;;  %s1066_s25 = scalar_lea.vmem %s1136_s1, %s887_s22 }
   0xf   : > { %281 = sbr.rel (%p829_p6) target bundleno = 22 (0x16), region = 36 }
  0x14   : > { %v1014_v0 = vmov 0.0  }
  0x15   : > { %282 = vst [vmem:[#allocation2] sm:$0xff] %v1014_v0  ;;  %283 = vst [vmem:[#allocation2 + $0x8] sm:$0xff] %v1014_v0 }
  0x16 PF: > { %v915_v1 = vld [vmem:[%s1066_s25 + $0x74] ss:$8 sps:$4 sm:$0xff]   ;;  %v917_v2 = vld [vmem:[%s1066_s25 + $0x70] ss:$8 sps:$4 sm:$0xff]   ;;  %v1015_v3 = vmov 0   ;;  %v286_v34 = vld [vmem:[%s1061_s21] sm:$0xff] }
  0x17   : > { %660 = vmatprep.mubr.bf16.mxu1 %v1015_v3  ;;  %587 = vmatprep.subr.bf16.mxu0 %v915_v1  ;;  %v918_v4 = vld [vmem:[%s1066_s25 + $0x64] ss:$8 sps:$4 sm:$0xff]   ;;  %v920_v5 = vld [vmem:[%s1066_s25 + $0x60] ss:$8 sps:$4 sm:$0xff]   ;;  %v921_v6 = vld [vmem:[%s1066_s25 + $0x54] ss:$8 sps:$4 sm:$0xff]   ;;  %v831_v36 = vcombine.high %v286_v34, %v286_v34  ;;  %v830_v53 = vcombine.low %v286_v34, %v286_v34 }
  0x18   : > { %588 = vmatpush1.bf16.msra.mxu0 %v917_v2  ;;  %v923_v7 = vld [vmem:[%s1066_s25 + $0x50] ss:$8 sps:$4 sm:$0xff]   ;;  %v924_v8 = vld [vmem:[%s1066_s25 + $0x44] ss:$8 sps:$4 sm:$0xff]   ;;  %v936_v9 = vld [vmem:[%s1066_s25 + $0x174] ss:$8 sps:$4 sm:$0xff]  }
  0x19   : > { %589 = vmatprep.subr.bf16.mxu0 %v918_v4  ;;  %v938_v10 = vld [vmem:[%s1066_s25 + $0x170] ss:$8 sps:$4 sm:$0xff]   ;;  %v926_v11 = vld [vmem:[%s1066_s25 + $0x40] ss:$8 sps:$4 sm:$0xff]   ;;  %v927_v12 = vld [vmem:[%s1066_s25 + $0x34] ss:$8 sps:$4 sm:$0xff]   ;;  %628 = vmatprep.subr.bf16.mxu1 %v936_v9 }
  0x1a   : > { %v942_v13 = vld [vmem:[%s1066_s25 + $0x164] ss:$8 sps:$4 sm:$0xff]   ;;  %629 = vmatpush1.bf16.msra.mxu1 %v938_v10  ;;  %v944_v14 = vld [vmem:[%s1066_s25 + $0x160] ss:$8 sps:$4 sm:$0xff]   ;;  %v929_v15 = vld [vmem:[%s1066_s25 + $0x30] ss:$8 sps:$4 sm:$0xff]   ;;  %619 = vmatprep.mubr.bf16.mxu0 %v831_v36 }
  0x1b   : > { %630 = vmatprep.subr.bf16.mxu1 %v942_v13  ;;  %v948_v16 = vld [vmem:[%s1066_s25 + $0x154] ss:$8 sps:$4 sm:$0xff]   ;;  %v930_v17 = vld [vmem:[%s1066_s25 + $0x24] ss:$8 sps:$4 sm:$0xff]   ;;  %v950_v18 = vld [vmem:[%s1066_s25 + $0x150] ss:$8 sps:$4 sm:$0xff]  }
  0x1c   : > { %590 = vmatpush1.bf16.msra.mxu0 %v920_v5  ;;  %v954_v19 = vld [vmem:[%s1066_s25 + $0x144] ss:$8 sps:$4 sm:$0xff]   ;;  %v932_v20 = vld [vmem:[%s1066_s25 + $0x20] ss:$8 sps:$4 sm:$0xff]   ;;  %v933_v21 = vld [vmem:[%s1066_s25 + $0x14] ss:$8 sps:$4 sm:$0xff]  }
  0x1d   : > { %591 = vmatprep.subr.bf16.mxu0 %v921_v6  ;;  %v956_v22 = vld [vmem:[%s1066_s25 + $0x140] ss:$8 sps:$4 sm:$0xff]   ;;  %v960_v23 = vld [vmem:[%s1066_s25 + $0x134] ss:$8 sps:$4 sm:$0xff]   ;;  %v935_v24 = vld [vmem:[%s1066_s25 + $0x10] ss:$8 sps:$4 sm:$0xff]  }
  0x1e   : > { %631 = vmatpush1.bf16.msra.mxu1 %v944_v14  ;;  %v939_v25 = vld [vmem:[%s1066_s25 + $0x4] ss:$8 sps:$4 sm:$0xff]   ;;  %v962_v26 = vld [vmem:[%s1066_s25 + $0x130] ss:$8 sps:$4 sm:$0xff]   ;;  %v941_v28 = vld [vmem:[%s1066_s25] ss:$8 sps:$4 sm:$0xff]  }
  0x1f   : > { %632 = vmatprep.subr.bf16.mxu1 %v948_v16  ;;  %v966_v27 = vld [vmem:[%s1066_s25 + $0x124] ss:$8 sps:$4 sm:$0xff]   ;;  %v945_v29 = vld [vmem:[%s1066_s25 + $0xf4] ss:$8 sps:$4 sm:$0xff]   ;;  %v968_v30 = vld [vmem:[%s1066_s25 + $0x120] ss:$8 sps:$4 sm:$0xff]  }
  0x20   : > { %592 = vmatpush1.bf16.msra.mxu0 %v923_v7  ;;  %v972_v31 = vld [vmem:[%s1066_s25 + $0x114] ss:$8 sps:$4 sm:$0xff]   ;;  %v947_v32 = vld [vmem:[%s1066_s25 + $0xf0] ss:$8 sps:$4 sm:$0xff]   ;;  %v951_v33 = vld [vmem:[%s1066_s25 + $0xe4] ss:$8 sps:$4 sm:$0xff]  }
  0x21   : > { %593 = vmatprep.subr.bf16.mxu0 %v924_v8  ;;  %v974_v35 = vld [vmem:[%s1066_s25 + $0x110] ss:$8 sps:$4 sm:$0xff]   ;;  %v978_v37 = vld [vmem:[%s1066_s25 + $0x104] ss:$8 sps:$4 sm:$0xff]   ;;  %v953_v38 = vld [vmem:[%s1066_s25 + $0xe0] ss:$8 sps:$4 sm:$0xff]  }
  0x22   : > { %633 = vmatpush1.bf16.msra.mxu1 %v950_v18  ;;  %v957_v39 = vld [vmem:[%s1066_s25 + $0xd4] ss:$8 sps:$4 sm:$0xff]   ;;  %v980_v40 = vld [vmem:[%s1066_s25 + $0x100] ss:$8 sps:$4 sm:$0xff]   ;;  %v959_v41 = vld [vmem:[%s1066_s25 + $0xd0] ss:$8 sps:$4 sm:$0xff]  }
  0x23   : > { %634 = vmatprep.subr.bf16.mxu1 %v954_v19  ;;  %v963_v42 = vld [vmem:[%s1066_s25 + $0xc4] ss:$8 sps:$4 sm:$0xff]   ;;  %v984_v43 = vld [vmem:[%s1061_s21 + $0x8] ss:$0 sps:$4 sm:$0xff]   ;;  %v969_v45 = vld [vmem:[%s1066_s25 + $0xb4] ss:$8 sps:$4 sm:$0xff]  }
  0x24   : > { %594 = vmatpush1.bf16.msra.mxu0 %v926_v11  ;;  %v965_v44 = vld [vmem:[%s1066_s25 + $0xc0] ss:$8 sps:$4 sm:$0xff]   ;;  %v971_v46 = vld [vmem:[%s1066_s25 + $0xb0] ss:$8 sps:$4 sm:$0xff]   ;;  %v975_v47 = vld [vmem:[%s1066_s25 + $0xa4] ss:$8 sps:$4 sm:$0xff]  }
  0x25   : > { %595 = vmatprep.subr.bf16.mxu0 %v927_v12  ;;  %v977_v48 = vld [vmem:[%s1066_s25 + $0xa0] ss:$8 sps:$4 sm:$0xff]   ;;  %v981_v49 = vld [vmem:[%s1066_s25 + $0x94] ss:$8 sps:$4 sm:$0xff]   ;;  %v983_v50 = vld [vmem:[%s1066_s25 + $0x90] ss:$8 sps:$4 sm:$0xff]  }
  0x26   : > { %635 = vmatpush1.bf16.msra.mxu1 %v956_v22  ;;  %v985_v51 = vld [vmem:[%s1066_s25 + $0x84] ss:$8 sps:$4 sm:$0xff]   ;;  %v987_v52 = vld [vmem:[%s1066_s25 + $0x80] ss:$8 sps:$4 sm:$0xff]   ;;  %p881_p7 = scmp.ne.s32.totalorder %s1004_s12, 2 }
  0x27   : > { %636 = vmatprep.subr.bf16.mxu1 %v960_v23  ;;  %v284_v58 = vld [vmem:[#allocation2] sm:$0xff]  ;;  %v285_v61 = vld [vmem:[#allocation2 + $0x8] sm:$0xff] }
  0x28   : > { %596 = vmatpush1.bf16.msra.mxu0 %v929_v15 }
  0x29   : > { %597 = vmatprep.subr.bf16.mxu0 %v930_v17 }
  0x2a   : > { %637 = vmatpush1.bf16.msra.mxu1 %v962_v26 }
  0x2b   : > { %638 = vmatprep.subr.bf16.mxu1 %v966_v27 }
  0x2c   : > { %598 = vmatpush1.bf16.msra.mxu0 %v932_v20 }
  0x2d   : > { %599 = vmatprep.subr.bf16.mxu0 %v933_v21 }
  0x2e   : > { %639 = vmatpush1.bf16.msra.mxu1 %v968_v30 }
  0x2f   : > { %640 = vmatprep.subr.bf16.mxu1 %v972_v31 }
  0x30   : > { %600 = vmatpush1.bf16.msra.mxu0 %v935_v24 }
  0x31   : > { %601 = vmatprep.subr.bf16.mxu0 %v939_v25 }
  0x32   : > { %641 = vmatpush1.bf16.msra.mxu1 %v974_v35 }
  0x33   : > { %642 = vmatprep.subr.bf16.mxu1 %v978_v37 }
  0x34   : > { %602 = vmatpush1.bf16.msra.mxu0 %v941_v28 }
  0x35   : > { %603 = vmatprep.subr.bf16.mxu0 %v945_v29 }
  0x36   : > { %643 = vmatpush1.bf16.msra.mxu1 %v980_v40 }
  0x38   : > { %604 = vmatpush2.bf16.msra.mxu0 %v947_v32 }
  0x39   : > { %605 = vmatprep.subr.bf16.mxu0 %v951_v33  ;;  %661 = vmatmul.mubr.bf16.vlgmr.msra.gmra.mxu1 %v984_v43 }
  0x3c   : > { %606 = vmatpush2.bf16.msra.mxu0 %v953_v38 }
  0x3d   : > { %607 = vmatprep.subr.bf16.mxu0 %v957_v39 }
  0x40   : > { %608 = vmatpush2.bf16.msra.mxu0 %v959_v41 }
  0x41   : > { %609 = vmatprep.subr.bf16.mxu0 %v963_v42 }
  0x44   : > { %610 = vmatpush2.bf16.msra.mxu0 %v965_v44 }
  0x45   : > { %611 = vmatprep.subr.bf16.mxu0 %v969_v45 }
  0x48   : > { %612 = vmatpush2.bf16.msra.mxu0 %v971_v46 }
  0x49   : > { %613 = vmatprep.subr.bf16.mxu0 %v975_v47 }
  0x4c   : > { %614 = vmatpush2.bf16.msra.mxu0 %v977_v48 }
  0x4d   : > { %615 = vmatprep.subr.bf16.mxu0 %v981_v49 }
  0x50   : > { %616 = vmatpush2.bf16.msra.mxu0 %v983_v50 }
  0x51   : > { %617 = vmatprep.subr.bf16.mxu0 %v985_v51 }
  0x54   : > { %618 = vmatpush2.bf16.msra.mxu0 %v987_v52 }
  0x57   : > { %620 = vmatmul.mubr.bf16.vlgmr.msra.gmra.mxu0 %v830_v53 }
  0xf9   : > { %v662_v54 = vpop.f32.mrf.mxu1 }
  0xfb   : > { %v664_v55 = vpop.f32.mrf.mxu1 }
  0xfd   : > { %v666_v56 = vpop.f32.mrf.mxu1 }
  0xff   : > { %v667_v57 = vpop.f32.mrf.mxu1 }
 0x117   : > { %v621_v59 = vpop.f32.mrf.mxu0 }
 0x118   : > { %v663_v60 = vadd.f32 %v662_v54, %v621_v59 }
 0x119   : > { %v623_v62 = vpop.f32.mrf.mxu0 }
 0x11a   : > { %v669_v63 = vadd.f32 %v663_v60, %v284_v58  ;;  %v665_v0 = vadd.f32 %v664_v55, %v623_v62  ;;  %676 = sbr.rel (%p881_p7) target bundleno = 302 (0x12e), region = 40 }
 0x11b   : > { %v625_v1 = vpop.f32.mrf.mxu0 }
 0x11c   : > { %671 = vst [vmem:[#allocation2] sm:$0xff] %v669_v63  ;;  %v670_v2 = vadd.f32 %v665_v0, %v285_v61 }
 0x11d   : > { %v626_v3 = vpop.f32.mrf.mxu0 }
 0x11e   : > { %672 = vst [vmem:[#allocation2 + $0x8] sm:$0xff] %v670_v2 }
 0x11f   : > { %v681_v4 = vlaneseq  ;;  %v679_v6 = vld [vmem:[%s1137_s2] sm:$0x3] }
 0x121   : > { %v682_v5 = vshrl.u32 %v681_v4, 7 }
 0x123   : > { %v683_v7 = vsub.s32 0, %v682_v5  ;;  %v687_v8 = vsub.s32 1, %v682_v5  ;;  %v677_v9 = vld [vmem:[#allocation2] sm:$0xff] }
 0x125   : > { %v678_v10 = vld [vmem:[#allocation2 + $0x8] sm:$0xff]  ;;  %v684_v11 = vrot.slane %v679_v6, %v683_v7  ;;  %v688_v12 = vrot.slane %v679_v6, %v687_v8 }
 0x127   : > { %v691_v13 = vadd.f32 %v684_v11, %v677_v9  ;;  %v692_v14 = vadd.f32 %v688_v12, %v678_v10 }
 0x129   : > { %v693_v15 = vmax.f32 %v691_v13, 0.0  ;;  %v694_v16 = vmax.f32 %v692_v14, 0.0 }
 0x12b   : > { %v888_v17 = vpack.c.bf16 %v694_v16, %v693_v15 }
 0x12d   : > { %703 = vst [vmem:[%s1138_s3] sm:$0xff] %v888_v17 }
 0x12e PF: > { %s13_s14 = sadd.s32 1, %s1012_s14   ;;  %s1139_s12 = smov %s1008_s13 }
 0x12f   : > { %p10_p8 = scmp.ge.s32.totalorder %s13_s14, 5   ;;  %s1140_s13 = smov %s1142_s15 }
 0x131   :  { %12 = sbr.rel (!%p10_p8) target bundleno = 2 (0x2), region = 76 }

// kernel: _lambda_.34
= control target key start
LH: loop header
LB: loop body
LE: loop exit
PB: predicated region body
PF: predicated region fallthrough
CT: control target
= control target key end

     0   :  { %v221_v1 = vmov 0   ;;  %v34_v18 = vlaneseq  ;;  %s299_s1 = inlined_call_operand.vmem [shape: bf16[128,256], index: 1, kind: input, shape index: {}]   ;;  %s300_s0 = inlined_call_operand.vmem [shape: bf16[8,128], index: 0, kind: input, shape index: {}]   ;;  %s301_s2 = inlined_call_operand.vmem [shape: f32[1,256], index: 2, kind: input, shape index: {}]   ;;  %s302_s3 = inlined_call_operand.vmem [shape: bf16[8,256], index: 3, kind: output, shape index: {}]  }
   0x1   :  { %v197_v0 = vld [vmem:[%s299_s1 + $0x74] ss:$8 sps:$4 sm:$0xff]   ;;  %156 = vmatprep.mubr.bf16.mxu0 %v221_v1  ;;  %v199_v2 = vld [vmem:[%s299_s1 + $0x70] ss:$8 sps:$4 sm:$0xff]   ;;  %v200_v3 = vld [vmem:[%s299_s1 + $0x64] ss:$8 sps:$4 sm:$0xff]  }
   0x2   :  { %124 = vmatprep.subr.bf16.mxu0 %v197_v0  ;;  %v202_v4 = vld [vmem:[%s299_s1 + $0x60] ss:$8 sps:$4 sm:$0xff]   ;;  %v203_v5 = vld [vmem:[%s299_s1 + $0x54] ss:$8 sps:$4 sm:$0xff]   ;;  %v205_v6 = vld [vmem:[%s299_s1 + $0x50] ss:$8 sps:$4 sm:$0xff]  }
   0x3   :  { %125 = vmatpush1.bf16.msra.mxu0 %v199_v2  ;;  %v206_v7 = vld [vmem:[%s299_s1 + $0x44] ss:$8 sps:$4 sm:$0xff]   ;;  %v208_v8 = vld [vmem:[%s299_s1 + $0x40] ss:$8 sps:$4 sm:$0xff]   ;;  %v209_v9 = vld [vmem:[%s299_s1 + $0x34] ss:$8 sps:$4 sm:$0xff]  }
   0x4   :  { %126 = vmatprep.subr.bf16.mxu0 %v200_v3  ;;  %v211_v10 = vld [vmem:[%s299_s1 + $0x30] ss:$8 sps:$4 sm:$0xff]   ;;  %v212_v11 = vld [vmem:[%s299_s1 + $0x24] ss:$8 sps:$4 sm:$0xff]   ;;  %v214_v12 = vld [vmem:[%s299_s1 + $0x20] ss:$8 sps:$4 sm:$0xff]  }
   0x5   :  { %v215_v13 = vld [vmem:[%s299_s1 + $0x14] ss:$8 sps:$4 sm:$0xff]   ;;  %v217_v14 = vld [vmem:[%s299_s1 + $0x10] ss:$8 sps:$4 sm:$0xff]   ;;  %v218_v15 = vld [vmem:[%s299_s1 + $0x4] ss:$8 sps:$4 sm:$0xff]  }
   0x6   :  { %v220_v16 = vld [vmem:[%s299_s1] ss:$8 sps:$4 sm:$0xff]   ;;  %v35_v19 = vshrl.u32 %v34_v18, 7 }
   0x7   :  { %127 = vmatpush1.bf16.msra.mxu0 %v202_v4  ;;  %v15_v17 = vld [vmem:[%s300_s0] sm:$0xf] }
   0x8   :  { %128 = vmatprep.subr.bf16.mxu0 %v203_v5  ;;  %v36_v20 = vsub.s32 0, %v35_v19  ;;  %v40_v21 = vsub.s32 1, %v35_v19  ;;  %v32_v22 = vld [vmem:[%s301_s2] sm:$0x3] }
   0xa   :  { %v37_v23 = vrot.slane %v32_v22, %v36_v20  ;;  %v41_v24 = vrot.slane %v32_v22, %v40_v21 }
   0xb   :  { %129 = vmatpush1.bf16.msra.mxu0 %v205_v6 }
   0xc   :  { %130 = vmatprep.subr.bf16.mxu0 %v206_v7 }
   0xf   :  { %131 = vmatpush1.bf16.msra.mxu0 %v208_v8 }
  0x10   :  { %132 = vmatprep.subr.bf16.mxu0 %v209_v9 }
  0x13   :  { %133 = vmatpush1.bf16.msra.mxu0 %v211_v10 }
  0x14   :  { %134 = vmatprep.subr.bf16.mxu0 %v212_v11 }
  0x17   :  { %135 = vmatpush1.bf16.msra.mxu0 %v214_v12 }
  0x18   :  { %136 = vmatprep.subr.bf16.mxu0 %v215_v13 }
  0x1b   :  { %137 = vmatpush1.bf16.msra.mxu0 %v217_v14 }
  0x1c   :  { %138 = vmatprep.subr.bf16.mxu0 %v218_v15 }
  0x1f   :  { %139 = vmatpush1.bf16.msra.mxu0 %v220_v16 }
  0x22   :  { %157 = vmatmul.mubr.bf16.vlgmr.msra.gmra.mxu0 %v15_v17 }
  0xe2   :  { %v158_v25 = vpop.f32.mrf.mxu0 }
  0xe3   :  { %v159_v27 = vadd.f32 %v158_v25, %v37_v23 }
  0xe4   :  { %v160_v26 = vpop.f32.mrf.mxu0 }
  0xe5   :  { %v161_v28 = vadd.f32 %v160_v26, %v41_v24 }
  0xe6   :  { %v162_v29 = vpop.f32.mrf.mxu0 }
  0xe7   :  { %v195_v30 = vpack.c.bf16 %v161_v28, %v159_v27 }
  0xe8   :  { %v163_v31 = vpop.f32.mrf.mxu0 }
  0xe9   :  { %173 = vst [vmem:[%s302_s3] sm:$0xff] %v195_v30 }

// kernel: _lambda_.36
= control target key start
LH: loop header
LB: loop body
LE: loop exit
PB: predicated region body
PF: predicated region fallthrough
CT: control target
= control target key end

     0   :  { %s1036_s12 = smov 0   ;;  %s1038_s13 = smov 0   ;;  %s1135_s0 = inlined_call_operand.vmem [shape: bf16[8,2304], index: 0, kind: input, shape index: {}]   ;;  %s1136_s1 = inlined_call_operand.vmem [shape: bf16[2304,256], index: 1, kind: input, shape index: {}]   ;;  %s1137_s2 = inlined_call_operand.vmem [shape: f32[1,256], index: 2, kind: input, shape index: {}]   ;;  %s1138_s3 = inlined_call_operand.vmem [shape: bf16[8,256], index: 3, kind: output, shape index: {}]  }
   0x1   :  { %s1040_s14 = smov 0  }
   0x2 LB: > { %s25_s15 = sadd.s32 1, %s1008_s13  ;;  %p825_p0 = scmp.ge.s32.totalorder %s1012_s14, 1  ;;  %s1012_s14 = sphi %s1040_s14, %s13_s14   ;;  %s1008_s13 = sphi %s1038_s13, %s1140_s13   ;;  %s1004_s12 = sphi %s1036_s12, %s1139_s12  }
   0x3   : > { %p26_p1 = scmp.ge.s32.totalorder %s25_s15, 6  ;;  %p194_p2 = scmp.lt.s32.totalorder %s1012_s14, 7 }
   0x5   : > { %s1142_s15 = smov (%p26_p1, %s25_s15), 0  ;;  %p195_p3 = pnand %p825_p0, %p194_p2 }
   0x6   : > { %s240_s16 = smul.u32 (!%p195_p3), 3, %s1004_s12  ;;  %p829_p6 = scmp.ne.s32.totalorder (!%p195_p3), %s1004_s12, 0 }
   0x7   : > { %198 = sbr.rel (%p195_p3) target bundleno = 302 (0x12e), region = 32 }
   0x8   : > { %s250_s17 = smul.u32 (!%p195_p3), 48, %s1004_s12  ;;  %p243_p4 = scmp.lt.s32.totalorder (!%p195_p3), %s240_s16, 17 }
   0xa   : > { %p252_p5 = scmp.lt.s32.totalorder (!%p195_p3), %s250_s17, 287 }
   0xc   : > { %s1144_s16 = smov (!%p243_p4, %s240_s16), 17  ;;  %s1146_s17 = smov (!%p252_p5, %s250_s17), 287 }
   0xd   : > { %s826_s18 = sshll.u32 %s1144_s16, 2  ;;  %s887_s22 = sshll.u32 %s1146_s17, 3 }
   0xe   : > { %s1061_s21 = scalar_lea.vmem %s1135_s0, %s826_s18  ;;  %s1066_s25 = scalar_lea.vmem %s1136_s1, %s887_s22 }
   0xf   : > { %281 = sbr.rel (%p829_p6) target bundleno = 22 (0x16), region = 36 }
  0x14   : > { %v1014_v0 = vmov 0.0  }
  0x15   : > { %282 = vst [vmem:[#allocation2] sm:$0xff] %v1014_v0  ;;  %283 = vst [vmem:[#allocation2 + $0x8] sm:$0xff] %v1014_v0 }
  0x16 PF: > { %v915_v1 = vld [vmem:[%s1066_s25 + $0x74] ss:$8 sps:$4 sm:$0xff]   ;;  %v917_v2 = vld [vmem:[%s1066_s25 + $0x70] ss:$8 sps:$4 sm:$0xff]   ;;  %v1015_v3 = vmov 0   ;;  %v286_v34 = vld [vmem:[%s1061_s21] sm:$0xff] }
  0x17   : > { %660 = vmatprep.mubr.bf16.mxu1 %v1015_v3  ;;  %587 = vmatprep.subr.bf16.mxu0 %v915_v1  ;;  %v918_v4 = vld [vmem:[%s1066_s25 + $0x64] ss:$8 sps:$4 sm:$0xff]   ;;  %v920_v5 = vld [vmem:[%s1066_s25 + $0x60] ss:$8 sps:$4 sm:$0xff]   ;;  %v921_v6 = vld [vmem:[%s1066_s25 + $0x54] ss:$8 sps:$4 sm:$0xff]   ;;  %v831_v36 = vcombine.high %v286_v34, %v286_v34  ;;  %v830_v53 = vcombine.low %v286_v34, %v286_v34 }
  0x18   : > { %588 = vmatpush1.bf16.msra.mxu0 %v917_v2  ;;  %v923_v7 = vld [vmem:[%s1066_s25 + $0x50] ss:$8 sps:$4 sm:$0xff]   ;;  %v924_v8 = vld [vmem:[%s1066_s25 + $0x44] ss:$8 sps:$4 sm:$0xff]   ;;  %v936_v9 = vld [vmem:[%s1066_s25 + $0x174] ss:$8 sps:$4 sm:$0xff]  }
  0x19   : > { %589 = vmatprep.subr.bf16.mxu0 %v918_v4  ;;  %v938_v10 = vld [vmem:[%s1066_s25 + $0x170] ss:$8 sps:$4 sm:$0xff]   ;;  %v926_v11 = vld [vmem:[%s1066_s25 + $0x40] ss:$8 sps:$4 sm:$0xff]   ;;  %v927_v12 = vld [vmem:[%s1066_s25 + $0x34] ss:$8 sps:$4 sm:$0xff]   ;;  %628 = vmatprep.subr.bf16.mxu1 %v936_v9 }
  0x1a   : > { %v942_v13 = vld [vmem:[%s1066_s25 + $0x164] ss:$8 sps:$4 sm:$0xff]   ;;  %629 = vmatpush1.bf16.msra.mxu1 %v938_v10  ;;  %v944_v14 = vld [vmem:[%s1066_s25 + $0x160] ss:$8 sps:$4 sm:$0xff]   ;;  %v929_v15 = vld [vmem:[%s1066_s25 + $0x30] ss:$8 sps:$4 sm:$0xff]   ;;  %619 = vmatprep.mubr.bf16.mxu0 %v831_v36 }
  0x1b   : > { %630 = vmatprep.subr.bf16.mxu1 %v942_v13  ;;  %v948_v16 = vld [vmem:[%s1066_s25 + $0x154] ss:$8 sps:$4 sm:$0xff]   ;;  %v930_v17 = vld [vmem:[%s1066_s25 + $0x24] ss:$8 sps:$4 sm:$0xff]   ;;  %v950_v18 = vld [vmem:[%s1066_s25 + $0x150] ss:$8 sps:$4 sm:$0xff]  }
  0x1c   : > { %590 = vmatpush1.bf16.msra.mxu0 %v920_v5  ;;  %v954_v19 = vld [vmem:[%s1066_s25 + $0x144] ss:$8 sps:$4 sm:$0xff]   ;;  %v932_v20 = vld [vmem:[%s1066_s25 + $0x20] ss:$8 sps:$4 sm:$0xff]   ;;  %v933_v21 = vld [vmem:[%s1066_s25 + $0x14] ss:$8 sps:$4 sm:$0xff]  }
  0x1d   : > { %591 = vmatprep.subr.bf16.mxu0 %v921_v6  ;;  %v956_v22 = vld [vmem:[%s1066_s25 + $0x140] ss:$8 sps:$4 sm:$0xff]   ;;  %v960_v23 = vld [vmem:[%s1066_s25 + $0x134] ss:$8 sps:$4 sm:$0xff]   ;;  %v935_v24 = vld [vmem:[%s1066_s25 + $0x10] ss:$8 sps:$4 sm:$0xff]  }
  0x1e   : > { %631 = vmatpush1.bf16.msra.mxu1 %v944_v14  ;;  %v939_v25 = vld [vmem:[%s1066_s25 + $0x4] ss:$8 sps:$4 sm:$0xff]   ;;  %v962_v26 = vld [vmem:[%s1066_s25 + $0x130] ss:$8 sps:$4 sm:$0xff]   ;;  %v941_v28 = vld [vmem:[%s1066_s25] ss:$8 sps:$4 sm:$0xff]  }
  0x1f   : > { %632 = vmatprep.subr.bf16.mxu1 %v948_v16  ;;  %v966_v27 = vld [vmem:[%s1066_s25 + $0x124] ss:$8 sps:$4 sm:$0xff]   ;;  %v945_v29 = vld [vmem:[%s1066_s25 + $0xf4] ss:$8 sps:$4 sm:$0xff]   ;;  %v968_v30 = vld [vmem:[%s1066_s25 + $0x120] ss:$8 sps:$4 sm:$0xff]  }
  0x20   : > { %592 = vmatpush1.bf16.msra.mxu0 %v923_v7  ;;  %v972_v31 = vld [vmem:[%s1066_s25 + $0x114] ss:$8 sps:$4 sm:$0xff]   ;;  %v947_v32 = vld [vmem:[%s1066_s25 + $0xf0] ss:$8 sps:$4 sm:$0xff]   ;;  %v951_v33 = vld [vmem:[%s1066_s25 + $0xe4] ss:$8 sps:$4 sm:$0xff]  }
  0x21   : > { %593 = vmatprep.subr.bf16.mxu0 %v924_v8  ;;  %v974_v35 = vld [vmem:[%s1066_s25 + $0x110] ss:$8 sps:$4 sm:$0xff]   ;;  %v978_v37 = vld [vmem:[%s1066_s25 + $0x104] ss:$8 sps:$4 sm:$0xff]   ;;  %v953_v38 = vld [vmem:[%s1066_s25 + $0xe0] ss:$8 sps:$4 sm:$0xff]  }
  0x22   : > { %633 = vmatpush1.bf16.msra.mxu1 %v950_v18  ;;  %v957_v39 = vld [vmem:[%s1066_s25 + $0xd4] ss:$8 sps:$4 sm:$0xff]   ;;  %v980_v40 = vld [vmem:[%s1066_s25 + $0x100] ss:$8 sps:$4 sm:$0xff]   ;;  %v959_v41 = vld [vmem:[%s1066_s25 + $0xd0] ss:$8 sps:$4 sm:$0xff]  }
  0x23   : > { %634 = vmatprep.subr.bf16.mxu1 %v954_v19  ;;  %v963_v42 = vld [vmem:[%s1066_s25 + $0xc4] ss:$8 sps:$4 sm:$0xff]   ;;  %v984_v43 = vld [vmem:[%s1061_s21 + $0x8] ss:$0 sps:$4 sm:$0xff]   ;;  %v969_v45 = vld [vmem:[%s1066_s25 + $0xb4] ss:$8 sps:$4 sm:$0xff]  }
  0x24   : > { %594 = vmatpush1.bf16.msra.mxu0 %v926_v11  ;;  %v965_v44 = vld [vmem:[%s1066_s25 + $0xc0] ss:$8 sps:$4 sm:$0xff]   ;;  %v971_v46 = vld [vmem:[%s1066_s25 + $0xb0] ss:$8 sps:$4 sm:$0xff]   ;;  %v975_v47 = vld [vmem:[%s1066_s25 + $0xa4] ss:$8 sps:$4 sm:$0xff]  }
  0x25   : > { %595 = vmatprep.subr.bf16.mxu0 %v927_v12  ;;  %v977_v48 = vld [vmem:[%s1066_s25 + $0xa0] ss:$8 sps:$4 sm:$0xff]   ;;  %v981_v49 = vld [vmem:[%s1066_s25 + $0x94] ss:$8 sps:$4 sm:$0xff]   ;;  %v983_v50 = vld [vmem:[%s1066_s25 + $0x90] ss:$8 sps:$4 sm:$0xff]  }
  0x26   : > { %635 = vmatpush1.bf16.msra.mxu1 %v956_v22  ;;  %v985_v51 = vld [vmem:[%s1066_s25 + $0x84] ss:$8 sps:$4 sm:$0xff]   ;;  %v987_v52 = vld [vmem:[%s1066_s25 + $0x80] ss:$8 sps:$4 sm:$0xff]   ;;  %p881_p7 = scmp.ne.s32.totalorder %s1004_s12, 5 }
  0x27   : > { %636 = vmatprep.subr.bf16.mxu1 %v960_v23  ;;  %v284_v58 = vld [vmem:[#allocation2] sm:$0xff]  ;;  %v285_v61 = vld [vmem:[#allocation2 + $0x8] sm:$0xff] }
  0x28   : > { %596 = vmatpush1.bf16.msra.mxu0 %v929_v15 }
  0x29   : > { %597 = vmatprep.subr.bf16.mxu0 %v930_v17 }
  0x2a   : > { %637 = vmatpush1.bf16.msra.mxu1 %v962_v26 }
  0x2b   : > { %638 = vmatprep.subr.bf16.mxu1 %v966_v27 }
  0x2c   : > { %598 = vmatpush1.bf16.msra.mxu0 %v932_v20 }
  0x2d   : > { %599 = vmatprep.subr.bf16.mxu0 %v933_v21 }
  0x2e   : > { %639 = vmatpush1.bf16.msra.mxu1 %v968_v30 }
  0x2f   : > { %640 = vmatprep.subr.bf16.mxu1 %v972_v31 }
  0x30   : > { %600 = vmatpush1.bf16.msra.mxu0 %v935_v24 }
  0x31   : > { %601 = vmatprep.subr.bf16.mxu0 %v939_v25 }
  0x32   : > { %641 = vmatpush1.bf16.msra.mxu1 %v974_v35 }
  0x33   : > { %642 = vmatprep.subr.bf16.mxu1 %v978_v37 }
  0x34   : > { %602 = vmatpush1.bf16.msra.mxu0 %v941_v28 }
  0x35   : > { %603 = vmatprep.subr.bf16.mxu0 %v945_v29 }
  0x36   : > { %643 = vmatpush1.bf16.msra.mxu1 %v980_v40 }
  0x38   : > { %604 = vmatpush2.bf16.msra.mxu0 %v947_v32 }
  0x39   : > { %605 = vmatprep.subr.bf16.mxu0 %v951_v33  ;;  %661 = vmatmul.mubr.bf16.vlgmr.msra.gmra.mxu1 %v984_v43 }
  0x3c   : > { %606 = vmatpush2.bf16.msra.mxu0 %v953_v38 }
  0x3d   : > { %607 = vmatprep.subr.bf16.mxu0 %v957_v39 }
  0x40   : > { %608 = vmatpush2.bf16.msra.mxu0 %v959_v41 }
  0x41   : > { %609 = vmatprep.subr.bf16.mxu0 %v963_v42 }
  0x44   : > { %610 = vmatpush2.bf16.msra.mxu0 %v965_v44 }
  0x45   : > { %611 = vmatprep.subr.bf16.mxu0 %v969_v45 }
  0x48   : > { %612 = vmatpush2.bf16.msra.mxu0 %v971_v46 }
  0x49   : > { %613 = vmatprep.subr.bf16.mxu0 %v975_v47 }
  0x4c   : > { %614 = vmatpush2.bf16.msra.mxu0 %v977_v48 }
  0x4d   : > { %615 = vmatprep.subr.bf16.mxu0 %v981_v49 }
  0x50   : > { %616 = vmatpush2.bf16.msra.mxu0 %v983_v50 }
  0x51   : > { %617 = vmatprep.subr.bf16.mxu0 %v985_v51 }
  0x54   : > { %618 = vmatpush2.bf16.msra.mxu0 %v987_v52 }
  0x57   : > { %620 = vmatmul.mubr.bf16.vlgmr.msra.gmra.mxu0 %v830_v53 }
  0xf9   : > { %v662_v54 = vpop.f32.mrf.mxu1 }
  0xfb   : > { %v664_v55 = vpop.f32.mrf.mxu1 }
  0xfd   : > { %v666_v56 = vpop.f32.mrf.mxu1 }
  0xff   : > { %v667_v57 = vpop.f32.mrf.mxu1 }
 0x117   : > { %v621_v59 = vpop.f32.mrf.mxu0 }
 0x118   : > { %v663_v60 = vadd.f32 %v662_v54, %v621_v59 }
 0x119   : > { %v623_v62 = vpop.f32.mrf.mxu0 }
 0x11a   : > { %v669_v63 = vadd.f32 %v663_v60, %v284_v58  ;;  %v665_v0 = vadd.f32 %v664_v55, %v623_v62  ;;  %676 = sbr.rel (%p881_p7) target bundleno = 302 (0x12e), region = 40 }
 0x11b   : > { %v625_v1 = vpop.f32.mrf.mxu0 }
 0x11c   : > { %671 = vst [vmem:[#allocation2] sm:$0xff] %v669_v63  ;;  %v670_v2 = vadd.f32 %v665_v0, %v285_v61 }
 0x11d   : > { %v626_v3 = vpop.f32.mrf.mxu0 }
 0x11e   : > { %672 = vst [vmem:[#allocation2 + $0x8] sm:$0xff] %v670_v2 }
 0x11f   : > { %v681_v4 = vlaneseq  ;;  %v679_v6 = vld [vmem:[%s1137_s2] sm:$0x3] }
 0x121   : > { %v682_v5 = vshrl.u32 %v681_v4, 7 }
 0x123   : > { %v683_v7 = vsub.s32 0, %v682_v5  ;;  %v687_v8 = vsub.s32 1, %v682_v5  ;;  %v677_v9 = vld [vmem:[#allocation2] sm:$0xff] }
 0x125   : > { %v678_v10 = vld [vmem:[#allocation2 + $0x8] sm:$0xff]  ;;  %v684_v11 = vrot.slane %v679_v6, %v683_v7  ;;  %v688_v12 = vrot.slane %v679_v6, %v687_v8 }
 0x127   : > { %v691_v13 = vadd.f32 %v684_v11, %v677_v9  ;;  %v692_v14 = vadd.f32 %v688_v12, %v678_v10 }
 0x129   : > { %v693_v15 = vmax.f32 %v691_v13, 0.0  ;;  %v694_v16 = vmax.f32 %v692_v14, 0.0 }
 0x12b   : > { %v888_v17 = vpack.c.bf16 %v694_v16, %v693_v15 }
 0x12d   : > { %703 = vst [vmem:[%s1138_s3] sm:$0xff] %v888_v17 }
 0x12e PF: > { %s13_s14 = sadd.s32 1, %s1012_s14   ;;  %s1139_s12 = smov %s1008_s13 }
 0x12f   : > { %p10_p8 = scmp.ge.s32.totalorder %s13_s14, 8   ;;  %s1140_s13 = smov %s1142_s15 }
 0x131   :  { %12 = sbr.rel (!%p10_p8) target bundleno = 2 (0x2), region = 76 }

// kernel: _lambda_.39
= control target key start
LH: loop header
LB: loop body
LE: loop exit
PB: predicated region body
PF: predicated region fallthrough
CT: control target
= control target key end

     0   :  { %v81_v38 = vlaneseq  ;;  %v731_v39 = vmov 1966171168   ;;  %s966_s1 = inlined_call_operand.vmem [shape: bf16[256,512], index: 1, kind: input, shape index: {}]   ;;  %s967_s0 = inlined_call_operand.vmem [shape: bf16[2,256], index: 0, kind: input, shape index: {}]   ;;  %s968_s2 = inlined_call_operand.vmem [shape: f32[1,512], index: 2, kind: input, shape index: {}]   ;;  %s969_s3 = inlined_call_operand.vmem [shape: bf16[2,512], index: 3, kind: output, shape index: {}]  }
   0x1   :  { %v635_v0 = vld [vmem:[%s966_s1 + $0xe4] ss:$16 sps:$4 sm:$0xff]   ;;  %v637_v1 = vld [vmem:[%s966_s1 + $0xec] ss:$16 sps:$4 sm:$0xff]   ;;  %v639_v2 = vld [vmem:[%s966_s1 + $0xe0] ss:$16 sps:$4 sm:$0xff]   ;;  %v111_v40 = vunpack.c.l.s4 %v731_v39 }
   0x2   :  { %446 = vmatprep.subr.bf16.mxu0 %v635_v0  ;;  %v640_v3 = vld [vmem:[%s966_s1 + $0xe8] ss:$16 sps:$4 sm:$0xff]   ;;  %487 = vmatprep.subr.bf16.mxu1 %v637_v1  ;;  %v641_v4 = vld [vmem:[%s966_s1 + $0xc4] ss:$16 sps:$4 sm:$0xff]   ;;  %v643_v5 = vld [vmem:[%s966_s1 + $0xcc] ss:$16 sps:$4 sm:$0xff]  }
   0x3   :  { %447 = vmatpush1.bf16.msra.mxu0 %v639_v2  ;;  %488 = vmatpush1.bf16.msra.mxu1 %v640_v3  ;;  %v645_v6 = vld [vmem:[%s966_s1 + $0xc0] ss:$16 sps:$4 sm:$0xff]   ;;  %v646_v7 = vld [vmem:[%s966_s1 + $0xc8] ss:$16 sps:$4 sm:$0xff]   ;;  %v647_v8 = vld [vmem:[%s966_s1 + $0xa4] ss:$16 sps:$4 sm:$0xff]   ;;  %v112_v46 = vunpack.c.0.s8 %v111_v40 }
   0x4   :  { %448 = vmatprep.subr.bf16.mxu0 %v641_v4  ;;  %489 = vmatprep.subr.bf16.mxu1 %v643_v5  ;;  %v649_v9 = vld [vmem:[%s966_s1 + $0xac] ss:$16 sps:$4 sm:$0xff]   ;;  %v651_v10 = vld [vmem:[%s966_s1 + $0xa0] ss:$16 sps:$4 sm:$0xff]   ;;  %v652_v11 = vld [vmem:[%s966_s1 + $0xa8] ss:$16 sps:$4 sm:$0xff]  }
   0x5   :  { %v653_v12 = vld [vmem:[%s966_s1 + $0x84] ss:$16 sps:$4 sm:$0xff]   ;;  %v655_v13 = vld [vmem:[%s966_s1 + $0x8c] ss:$16 sps:$4 sm:$0xff]   ;;  %v657_v14 = vld [vmem:[%s966_s1 + $0x80] ss:$16 sps:$4 sm:$0xff]  }
   0x6   :  { %v658_v15 = vld [vmem:[%s966_s1 + $0x88] ss:$16 sps:$4 sm:$0xff]   ;;  %v659_v16 = vld [vmem:[%s966_s1 + $0x64] ss:$16 sps:$4 sm:$0xff]   ;;  %v661_v17 = vld [vmem:[%s966_s1 + $0x6c] ss:$16 sps:$4 sm:$0xff]  }
   0x7   :  { %449 = vmatpush1.bf16.msra.mxu0 %v645_v6  ;;  %490 = vmatpush1.bf16.msra.mxu1 %v646_v7  ;;  %v663_v18 = vld [vmem:[%s966_s1 + $0x60] ss:$16 sps:$4 sm:$0xff]   ;;  %v664_v19 = vld [vmem:[%s966_s1 + $0x68] ss:$16 sps:$4 sm:$0xff]   ;;  %v665_v20 = vld [vmem:[%s966_s1 + $0x44] ss:$16 sps:$4 sm:$0xff]  }
   0x8   :  { %450 = vmatprep.subr.bf16.mxu0 %v647_v8  ;;  %491 = vmatprep.subr.bf16.mxu1 %v649_v9  ;;  %v667_v21 = vld [vmem:[%s966_s1 + $0x4c] ss:$16 sps:$4 sm:$0xff]   ;;  %v669_v22 = vld [vmem:[%s966_s1 + $0x40] ss:$16 sps:$4 sm:$0xff]   ;;  %v670_v23 = vld [vmem:[%s966_s1 + $0x48] ss:$16 sps:$4 sm:$0xff]  }
   0x9   :  { %v671_v24 = vld [vmem:[%s966_s1 + $0x24] ss:$16 sps:$4 sm:$0xff]   ;;  %v673_v25 = vld [vmem:[%s966_s1 + $0x2c] ss:$16 sps:$4 sm:$0xff]   ;;  %v675_v26 = vld [vmem:[%s966_s1 + $0x20] ss:$16 sps:$4 sm:$0xff]  }
   0xa   :  { %v676_v27 = vld [vmem:[%s966_s1 + $0x28] ss:$16 sps:$4 sm:$0xff]   ;;  %v677_v28 = vld [vmem:[%s966_s1 + $0x4] ss:$16 sps:$4 sm:$0xff]   ;;  %v679_v29 = vld [vmem:[%s966_s1 + $0xc] ss:$16 sps:$4 sm:$0xff]  }
   0xb   :  { %451 = vmatpush1.bf16.msra.mxu0 %v651_v10  ;;  %492 = vmatpush1.bf16.msra.mxu1 %v652_v11  ;;  %v681_v30 = vld [vmem:[%s966_s1] ss:$16 sps:$4 sm:$0xff]   ;;  %v682_v31 = vld [vmem:[%s966_s1 + $0x8] ss:$16 sps:$4 sm:$0xff]   ;;  %v683_v32 = vld [vmem:[%s966_s1 + $0x1e4] ss:$16 sps:$4 sm:$0xff]  }
   0xc   :  { %452 = vmatprep.subr.bf16.mxu0 %v653_v12  ;;  %493 = vmatprep.subr.bf16.mxu1 %v655_v13  ;;  %v685_v33 = vld [vmem:[%s966_s1 + $0x1ec] ss:$16 sps:$4 sm:$0xff]   ;;  %v687_v34 = vld [vmem:[%s966_s1 + $0x1e0] ss:$16 sps:$4 sm:$0xff]   ;;  %v688_v35 = vld [vmem:[%s966_s1 + $0x1e8] ss:$16 sps:$4 sm:$0xff]  }
   0xd   :  { %v689_v36 = vld [vmem:[%s966_s1 + $0x1c4] ss:$16 sps:$4 sm:$0xff]   ;;  %v691_v37 = vld [vmem:[%s966_s1 + $0x1cc] ss:$16 sps:$4 sm:$0xff]   ;;  %v693_v41 = vld [vmem:[%s966_s1 + $0x1c0] ss:$16 sps:$4 sm:$0xff]  }
   0xe   :  { %v694_v42 = vld [vmem:[%s966_s1 + $0x1c8] ss:$16 sps:$4 sm:$0xff]   ;;  %v695_v43 = vld [vmem:[%s966_s1 + $0x1a4] ss:$16 sps:$4 sm:$0xff]   ;;  %v697_v44 = vld [vmem:[%s966_s1 + $0x1ac] ss:$16 sps:$4 sm:$0xff]  }
   0xf   :  { %453 = vmatpush1.bf16.msra.mxu0 %v657_v14  ;;  %494 = vmatpush1.bf16.msra.mxu1 %v658_v15  ;;  %v878_v45 = vshrl.u32 %v81_v38, 7  ;;  %v699_v47 = vld [vmem:[%s966_s1 + $0x1a0] ss:$16 sps:$4 sm:$0xff]   ;;  %v700_v48 = vld [vmem:[%s966_s1 + $0x1a8] ss:$16 sps:$4 sm:$0xff]  }
  0x10   :  { %454 = vmatprep.subr.bf16.mxu0 %v659_v16  ;;  %495 = vmatprep.subr.bf16.mxu1 %v661_v17  ;;  %v701_v49 = vld [vmem:[%s966_s1 + $0x184] ss:$16 sps:$4 sm:$0xff]   ;;  %v703_v50 = vld [vmem:[%s966_s1 + $0x18c] ss:$16 sps:$4 sm:$0xff]   ;;  %v705_v53 = vld [vmem:[%s966_s1 + $0x180] ss:$16 sps:$4 sm:$0xff]  }
  0x11   :  { %v893_v51 = vsub.s32 %v112_v46, %v878_v45  ;;  %v566_v52 = vld.sshfl [vmem:[%s967_s0] sm:$0x11 pattern:$0x75316420]  ;;  %v706_v54 = vld [vmem:[%s966_s1 + $0x188] ss:$16 sps:$4 sm:$0xff]  }
  0x12   :  { %v109_v55 = vcombine.high %v566_v52, %v566_v52  ;;  %v707_v56 = vld [vmem:[%s966_s1 + $0x164] ss:$16 sps:$4 sm:$0xff]   ;;  %v709_v57 = vld [vmem:[%s966_s1 + $0x16c] ss:$16 sps:$4 sm:$0xff]   ;;  %v711_v59 = vld [vmem:[%s966_s1 + $0x160] ss:$16 sps:$4 sm:$0xff]  }
  0x13   :  { %455 = vmatpush1.bf16.msra.mxu0 %v663_v18  ;;  %496 = vmatpush1.bf16.msra.mxu1 %v664_v19  ;;  %v712_v60 = vld [vmem:[%s966_s1 + $0x168] ss:$16 sps:$4 sm:$0xff]   ;;  %v713_v61 = vld [vmem:[%s966_s1 + $0x144] ss:$16 sps:$4 sm:$0xff]   ;;  %v715_v62 = vld [vmem:[%s966_s1 + $0x14c] ss:$16 sps:$4 sm:$0xff]   ;;  %v116_v9 = vrot.slane %v566_v52, %v893_v51 }
  0x14   :  { %456 = vmatprep.subr.bf16.mxu0 %v665_v20  ;;  %497 = vmatprep.subr.bf16.mxu1 %v667_v21  ;;  %v123_v58 = vrot.slane %v109_v55, %v893_v51  ;;  %v717_v63 = vld [vmem:[%s966_s1 + $0x140] ss:$16 sps:$4 sm:$0xff]   ;;  %v718_v0 = vld [vmem:[%s966_s1 + $0x148] ss:$16 sps:$4 sm:$0xff]   ;;  %v719_v1 = vld [vmem:[%s966_s1 + $0x124] ss:$16 sps:$4 sm:$0xff]  }
  0x15   :  { %v721_v2 = vld [vmem:[%s966_s1 + $0x12c] ss:$16 sps:$4 sm:$0xff]   ;;  %v723_v3 = vld [vmem:[%s966_s1 + $0x120] ss:$16 sps:$4 sm:$0xff]   ;;  %v724_v4 = vld [vmem:[%s966_s1 + $0x128] ss:$16 sps:$4 sm:$0xff]  }
  0x16   :  { %478 = vmatprep.mubr.bf16.mxu0 %v123_v58  ;;  %519 = vmatprep.mubr.bf16.mxu1 %v123_v58  ;;  %v725_v5 = vld [vmem:[%s966_s1 + $0x104] ss:$16 sps:$4 sm:$0xff]   ;;  %v727_v6 = vld [vmem:[%s966_s1 + $0x10c] ss:$16 sps:$4 sm:$0xff]   ;;  %v729_v7 = vld [vmem:[%s966_s1 + $0x100] ss:$16 sps:$4 sm:$0xff]  }
  0x17   :  { %457 = vmatpush1.bf16.msra.mxu0 %v669_v22  ;;  %498 = vmatpush1.bf16.msra.mxu1 %v670_v23  ;;  %v730_v8 = vld [vmem:[%s966_s1 + $0x108] ss:$16 sps:$4 sm:$0xff]   ;;  %v83_v10 = vsub.s32 0, %v878_v45  ;;  %v91_v11 = vsub.s32 2, %v878_v45  ;;  %v87_v12 = vsub.s32 1, %v878_v45  ;;  %v95_v13 = vsub.s32 3, %v878_v45 }
  0x18   :  { %458 = vmatprep.subr.bf16.mxu0 %v671_v24  ;;  %499 = vmatprep.subr.bf16.mxu1 %v673_v25  ;;  %v79_v14 = vld [vmem:[%s968_s2] sm:$0xf] }
  0x19   :  { %v84_v15 = vrot.slane %v79_v14, %v83_v10  ;;  %v92_v16 = vrot.slane %v79_v14, %v91_v11  ;;  %v88_v17 = vrot.slane %v79_v14, %v87_v12  ;;  %v96_v18 = vrot.slane %v79_v14, %v95_v13 }
  0x1b   :  { %459 = vmatpush1.bf16.msra.mxu0 %v675_v26  ;;  %500 = vmatpush1.bf16.msra.mxu1 %v676_v27 }
  0x1c   :  { %460 = vmatprep.subr.bf16.mxu0 %v677_v28  ;;  %501 = vmatprep.subr.bf16.mxu1 %v679_v29 }
  0x1f   :  { %461 = vmatpush1.bf16.msra.mxu0 %v681_v30  ;;  %502 = vmatpush1.bf16.msra.mxu1 %v682_v31 }
  0x20   :  { %462 = vmatprep.subr.bf16.mxu0 %v683_v32  ;;  %503 = vmatprep.subr.bf16.mxu1 %v685_v33 }
  0x23   :  { %463 = vmatpush2.bf16.msra.mxu0 %v687_v34  ;;  %504 = vmatpush2.bf16.msra.mxu1 %v688_v35 }
  0x24   :  { %464 = vmatprep.subr.bf16.mxu0 %v689_v36  ;;  %505 = vmatprep.subr.bf16.mxu1 %v691_v37 }
  0x27   :  { %465 = vmatpush2.bf16.msra.mxu0 %v693_v41  ;;  %506 = vmatpush2.bf16.msra.mxu1 %v694_v42 }
  0x28   :  { %466 = vmatprep.subr.bf16.mxu0 %v695_v43  ;;  %507 = vmatprep.subr.bf16.mxu1 %v697_v44 }
  0x2b   :  { %467 = vmatpush2.bf16.msra.mxu0 %v699_v47  ;;  %508 = vmatpush2.bf16.msra.mxu1 %v700_v48 }
  0x2c   :  { %468 = vmatprep.subr.bf16.mxu0 %v701_v49  ;;  %509 = vmatprep.subr.bf16.mxu1 %v703_v50 }
  0x2f   :  { %469 = vmatpush2.bf16.msra.mxu0 %v705_v53  ;;  %510 = vmatpush2.bf16.msra.mxu1 %v706_v54 }
  0x30   :  { %470 = vmatprep.subr.bf16.mxu0 %v707_v56  ;;  %511 = vmatprep.subr.bf16.mxu1 %v709_v57 }
  0x33   :  { %471 = vmatpush2.bf16.msra.mxu0 %v711_v59  ;;  %512 = vmatpush2.bf16.msra.mxu1 %v712_v60 }
  0x34   :  { %472 = vmatprep.subr.bf16.mxu0 %v713_v61  ;;  %513 = vmatprep.subr.bf16.mxu1 %v715_v62 }
  0x37   :  { %473 = vmatpush2.bf16.msra.mxu0 %v717_v63  ;;  %514 = vmatpush2.bf16.msra.mxu1 %v718_v0 }
  0x38   :  { %474 = vmatprep.subr.bf16.mxu0 %v719_v1  ;;  %515 = vmatprep.subr.bf16.mxu1 %v721_v2 }
  0x3b   :  { %475 = vmatpush2.bf16.msra.mxu0 %v723_v3  ;;  %516 = vmatpush2.bf16.msra.mxu1 %v724_v4 }
  0x3c   :  { %476 = vmatprep.subr.bf16.mxu0 %v725_v5  ;;  %517 = vmatprep.subr.bf16.mxu1 %v727_v6 }
  0x3f   :  { %477 = vmatpush2.bf16.msra.mxu0 %v729_v7  ;;  %518 = vmatpush2.bf16.msra.mxu1 %v730_v8 }
  0x42   :  { %479 = vmatmul.mubr.bf16.vlgmr.msra.gmra.mxu0 %v116_v9  ;;  %520 = vmatmul.mubr.bf16.vlgmr.msra.gmra.mxu1 %v116_v9 }
 0x102   :  { %v480_v19 = vpop.f32.mrf.mxu0  ;;  %v521_v20 = vpop.f32.mrf.mxu1 }
 0x103   :  { %v481_v23 = vadd.f32 %v480_v19, %v84_v15  ;;  %v522_v24 = vadd.f32 %v521_v20, %v92_v16 }
 0x104   :  { %v482_v21 = vpop.f32.mrf.mxu0  ;;  %v523_v22 = vpop.f32.mrf.mxu1 }
 0x105   :  { %v483_v25 = vadd.f32 %v482_v21, %v88_v17  ;;  %v524_v26 = vadd.f32 %v523_v22, %v96_v18 }
 0x106   :  { %v484_v27 = vpop.f32.mrf.mxu0  ;;  %v525_v28 = vpop.f32.mrf.mxu1 }
 0x107   :  { %v631_v29 = vpack.c.bf16 %v483_v25, %v481_v23  ;;  %v632_v30 = vpack.c.bf16 %v524_v26, %v522_v24 }
 0x108   :  { %v485_v31 = vpop.f32.mrf.mxu0  ;;  %v526_v32 = vpop.f32.mrf.mxu1 }
 0x109   :  { %v544_v33 = vrot.slane %v631_v29, %v893_v51  ;;  %v551_v34 = vrot.slane %v632_v30, %v893_v51 }
 0x10b   :  { %v552_v35 = vcombine.low %v544_v33, %v551_v34 }
 0x10d   :  { %633 = vst.sshfl [vmem:[%s969_s3] sm:$0x55 pattern:$0x73625140] %v552_v35 }

// kernel: _lambda_.38
= control target key start
LH: loop header
LB: loop body
LE: loop exit
PB: predicated region body
PF: predicated region fallthrough
CT: control target
= control target key end

     0   :  { %s1612_s12 = smov 0   ;;  %s1614_s13 = smov 0   ;;  %s1789_s0 = inlined_call_operand.vmem [shape: bf16[2,2304], index: 0, kind: input, shape index: {}]   ;;  %s1790_s1 = inlined_call_operand.vmem [shape: bf16[2304,512], index: 1, kind: input, shape index: {}]   ;;  %s1791_s2 = inlined_call_operand.vmem [shape: f32[1,512], index: 2, kind: input, shape index: {}]   ;;  %s1792_s3 = inlined_call_operand.vmem [shape: bf16[2,512], index: 3, kind: output, shape index: {}]  }
   0x1   :  { %s1616_s14 = smov 0  }
   0x2 LB: > { %s25_s15 = sadd.s32 1, %s1582_s13  ;;  %p1282_p0 = scmp.ge.s32.totalorder %s1586_s14, 1  ;;  %s1586_s14 = sphi %s1616_s14, %s13_s14   ;;  %s1582_s13 = sphi %s1614_s13, %s1794_s13   ;;  %s1578_s12 = sphi %s1612_s12, %s1793_s12  }
   0x3   : > { %p26_p1 = scmp.ge.s32.totalorder %s25_s15, 6  ;;  %p193_p2 = scmp.lt.s32.totalorder %s1586_s14, 7 }
   0x5   : > { %s1796_s15 = smov (%p26_p1, %s25_s15), 0  ;;  %p194_p3 = pnand %p1282_p0, %p193_p2 }
   0x6   : > { %s237_s16 = smul.u32 (!%p194_p3), 3, %s1578_s12  ;;  %p1285_p6 = scmp.ne.s32.totalorder (!%p194_p3), %s1578_s12, 0 }
   0x7   : > { %197 = sbr.rel (%p194_p3) target bundleno = 352 (0x160), region = 32 }
   0x8   : > { %s246_s17 = smul.u32 (!%p194_p3), 48, %s1578_s12  ;;  %p240_p4 = scmp.lt.s32.totalorder (!%p194_p3), %s237_s16, 17 }
   0xa   : > { %p248_p5 = scmp.lt.s32.totalorder (!%p194_p3), %s246_s17, 287 }
   0xc   : > { %s1798_s16 = smov (!%p240_p4, %s237_s16), 17  ;;  %s1800_s17 = smov (!%p248_p5, %s246_s17), 287 }
   0xd   : > { %s244_s20 = scalar_lea.vmem %s1789_s0, %s1798_s16  ;;  %s1391_s21 = sshll.u32 %s1800_s17, 4 }
   0xe   : > { %s1643_s24 = scalar_lea.vmem %s1790_s1, %s1391_s21  ;;  %276 = sbr.rel (%p1285_p6) target bundleno = 21 (0x15), region = 36 }
  0x13   : > { %v1588_v0 = vmov 0.0  }
  0x14   : > { %277 = vst [vmem:[#allocation2] sm:$0xff] %v1588_v0 }
  0x15 PF: > { %v1420_v1 = vld [vmem:[%s1643_s24 + $0xe4] ss:$16 sps:$4 sm:$0xff]   ;;  %v1589_v3 = vmov 0   ;;  %v1424_v4 = vld [vmem:[%s1643_s24 + $0xe0] ss:$16 sps:$4 sm:$0xff]   ;;  %v388_v24 = vlaneseq  ;;  %p1383_p7 = scmp.ne.s32.totalorder %s1578_s12, 5 }
  0x16   : > { %v1422_v2 = vld [vmem:[%s1643_s24 + $0x2e4] ss:$16 sps:$4 sm:$0xff]   ;;  %956 = vmatprep.mubr.bf16.mxu1 %v1589_v3  ;;  %883 = vmatprep.subr.bf16.mxu0 %v1420_v1  ;;  %v1425_v5 = vld [vmem:[%s1643_s24 + $0x2e0] ss:$16 sps:$4 sm:$0xff]   ;;  %v1590_v22 = vmov 1966171168  }
  0x17   : > { %924 = vmatprep.subr.bf16.mxu1 %v1422_v2  ;;  %v1426_v6 = vld [vmem:[%s1643_s24 + $0xc4] ss:$16 sps:$4 sm:$0xff]   ;;  %884 = vmatpush1.bf16.msra.mxu0 %v1424_v4  ;;  %v1430_v8 = vld [vmem:[%s1643_s24 + $0xc0] ss:$16 sps:$4 sm:$0xff]   ;;  %v386_v23 = vunpack.c.l.s4 %v1590_v22  ;;  %v1670_v29 = vshrl.u32 %v388_v24, 7 }
  0x18   : > { %925 = vmatpush1.bf16.msra.mxu1 %v1425_v5  ;;  %v1428_v7 = vld [vmem:[%s1643_s24 + $0x2c4] ss:$16 sps:$4 sm:$0xff]   ;;  %885 = vmatprep.subr.bf16.mxu0 %v1426_v6  ;;  %v1431_v9 = vld [vmem:[%s1643_s24 + $0x2c0] ss:$16 sps:$4 sm:$0xff]   ;;  %v1472_v45 = vld [vmem:[%s1643_s24 + $0xec] ss:$16 sps:$4 sm:$0xff]  }
  0x19   : > { %926 = vmatprep.subr.bf16.mxu1 %v1428_v7  ;;  %v1432_v10 = vld [vmem:[%s1643_s24 + $0xa4] ss:$16 sps:$4 sm:$0xff]   ;;  %v1436_v12 = vld [vmem:[%s1643_s24 + $0xa0] ss:$16 sps:$4 sm:$0xff]   ;;  %v387_v28 = vunpack.c.0.s8 %v386_v23  ;;  %v1470_v47 = vld [vmem:[%s1643_s24 + $0xe8] ss:$16 sps:$4 sm:$0xff]  }
  0x1a   : > { %v1434_v11 = vld [vmem:[%s1643_s24 + $0x2a4] ss:$16 sps:$4 sm:$0xff]   ;;  %v1437_v13 = vld [vmem:[%s1643_s24 + $0x2a0] ss:$16 sps:$4 sm:$0xff]   ;;  %v1478_v50 = vld [vmem:[%s1643_s24 + $0xcc] ss:$16 sps:$4 sm:$0xff]  }
  0x1b   : > { %886 = vmatpush1.bf16.msra.mxu0 %v1430_v8  ;;  %v1438_v14 = vld [vmem:[%s1643_s24 + $0x84] ss:$16 sps:$4 sm:$0xff]   ;;  %v1442_v16 = vld [vmem:[%s1643_s24 + $0x80] ss:$16 sps:$4 sm:$0xff]   ;;  %v1682_v35 = vsub.s32 %v387_v28, %v1670_v29  ;;  %v1476_v51 = vld [vmem:[%s1643_s24 + $0xc8] ss:$16 sps:$4 sm:$0xff]  }
  0x1c   : > { %927 = vmatpush1.bf16.msra.mxu1 %v1431_v9  ;;  %887 = vmatprep.subr.bf16.mxu0 %v1432_v10  ;;  %v1440_v15 = vld [vmem:[%s1643_s24 + $0x284] ss:$16 sps:$4 sm:$0xff]   ;;  %v1443_v17 = vld [vmem:[%s1643_s24 + $0x280] ss:$16 sps:$4 sm:$0xff]   ;;  %v1484_v54 = vld [vmem:[%s1643_s24 + $0xac] ss:$16 sps:$4 sm:$0xff]  }
  0x1d   : > { %928 = vmatprep.subr.bf16.mxu1 %v1434_v11  ;;  %v1444_v18 = vld [vmem:[%s1643_s24 + $0x64] ss:$16 sps:$4 sm:$0xff]   ;;  %v1448_v20 = vld [vmem:[%s1643_s24 + $0x60] ss:$16 sps:$4 sm:$0xff]   ;;  %v1482_v55 = vld [vmem:[%s1643_s24 + $0xa8] ss:$16 sps:$4 sm:$0xff]  }
  0x1e   : > { %v1446_v19 = vld [vmem:[%s1643_s24 + $0x264] ss:$16 sps:$4 sm:$0xff]   ;;  %v1449_v21 = vld [vmem:[%s1643_s24 + $0x260] ss:$16 sps:$4 sm:$0xff]   ;;  %v1490_v58 = vld [vmem:[%s1643_s24 + $0x8c] ss:$16 sps:$4 sm:$0xff]  }
  0x1f   : > { %888 = vmatpush1.bf16.msra.mxu0 %v1436_v12  ;;  %v1450_v25 = vld [vmem:[%s1643_s24 + $0x44] ss:$16 sps:$4 sm:$0xff]   ;;  %v1454_v27 = vld [vmem:[%s1643_s24 + $0x40] ss:$16 sps:$4 sm:$0xff]   ;;  %v1488_v59 = vld [vmem:[%s1643_s24 + $0x88] ss:$16 sps:$4 sm:$0xff]  }
  0x20   : > { %929 = vmatpush1.bf16.msra.mxu1 %v1437_v13  ;;  %889 = vmatprep.subr.bf16.mxu0 %v1438_v14  ;;  %v1452_v26 = vld [vmem:[%s1643_s24 + $0x244] ss:$16 sps:$4 sm:$0xff]   ;;  %v1455_v30 = vld [vmem:[%s1643_s24 + $0x240] ss:$16 sps:$4 sm:$0xff]   ;;  %v1496_v62 = vld [vmem:[%s1643_s24 + $0x6c] ss:$16 sps:$4 sm:$0xff]  }
  0x21   : > { %930 = vmatprep.subr.bf16.mxu1 %v1440_v15  ;;  %v1456_v31 = vld [vmem:[%s1643_s24 + $0x24] ss:$16 sps:$4 sm:$0xff]   ;;  %v1286_v33 = vld.sshfl [vmem:[%s244_s20] sm:$0x13 pattern:$0x75316420] }
  0x22   : > { %v1458_v32 = vld [vmem:[%s1643_s24 + $0x224] ss:$16 sps:$4 sm:$0xff]   ;;  %v1460_v34 = vld [vmem:[%s1643_s24 + $0x20] ss:$16 sps:$4 sm:$0xff]   ;;  %v384_v36 = vcombine.high %v1286_v33, %v1286_v33  ;;  %v1690_v42 = vrot.slane %v1286_v33, %v1682_v35  ;;  %v1494_v63 = vld [vmem:[%s1643_s24 + $0x68] ss:$16 sps:$4 sm:$0xff]  }
  0x23   : > { %890 = vmatpush1.bf16.msra.mxu0 %v1442_v16  ;;  %v1461_v37 = vld [vmem:[%s1643_s24 + $0x220] ss:$16 sps:$4 sm:$0xff]   ;;  %v1462_v38 = vld [vmem:[%s1643_s24 + $0x4] ss:$16 sps:$4 sm:$0xff]   ;;  %v1502_v2 = vld [vmem:[%s1643_s24 + $0x4c] ss:$16 sps:$4 sm:$0xff]  }
  0x24   : > { %931 = vmatpush1.bf16.msra.mxu1 %v1443_v17  ;;  %891 = vmatprep.subr.bf16.mxu0 %v1444_v18  ;;  %v1464_v39 = vld [vmem:[%s1643_s24 + $0x204] ss:$16 sps:$4 sm:$0xff]   ;;  %v398_v40 = vrot.slane %v384_v36, %v1682_v35  ;;  %v1466_v41 = vld [vmem:[%s1643_s24] ss:$16 sps:$4 sm:$0xff]   ;;  %v1697_v46 = vcombine.high %v1690_v42, %v1690_v42  ;;  %v1500_v4 = vld [vmem:[%s1643_s24 + $0x48] ss:$16 sps:$4 sm:$0xff]  }
  0x25   : > { %932 = vmatprep.subr.bf16.mxu1 %v1446_v19  ;;  %v1467_v43 = vld [vmem:[%s1643_s24 + $0x200] ss:$16 sps:$4 sm:$0xff]   ;;  %v1468_v44 = vld [vmem:[%s1643_s24 + $0x1e4] ss:$16 sps:$4 sm:$0xff]   ;;  %v1508_v7 = vld [vmem:[%s1643_s24 + $0x2c] ss:$16 sps:$4 sm:$0xff]  }
  0x26   : > { %915 = vmatprep.mubr.bf16.mxu0 %v398_v40  ;;  %v1473_v48 = vld [vmem:[%s1643_s24 + $0x1e0] ss:$16 sps:$4 sm:$0xff]   ;;  %v1474_v49 = vld [vmem:[%s1643_s24 + $0x1c4] ss:$16 sps:$4 sm:$0xff]   ;;  %v1506_v8 = vld [vmem:[%s1643_s24 + $0x28] ss:$16 sps:$4 sm:$0xff]  }
  0x27   : > { %892 = vmatpush1.bf16.msra.mxu0 %v1448_v20  ;;  %v1479_v52 = vld [vmem:[%s1643_s24 + $0x1c0] ss:$16 sps:$4 sm:$0xff]   ;;  %v1480_v53 = vld [vmem:[%s1643_s24 + $0x1a4] ss:$16 sps:$4 sm:$0xff]   ;;  %v1514_v11 = vld [vmem:[%s1643_s24 + $0xc] ss:$16 sps:$4 sm:$0xff]  }
  0x28   : > { %933 = vmatpush1.bf16.msra.mxu1 %v1449_v21  ;;  %893 = vmatprep.subr.bf16.mxu0 %v1450_v25  ;;  %v1485_v56 = vld [vmem:[%s1643_s24 + $0x1a0] ss:$16 sps:$4 sm:$0xff]   ;;  %v1486_v57 = vld [vmem:[%s1643_s24 + $0x184] ss:$16 sps:$4 sm:$0xff]   ;;  %v1512_v12 = vld [vmem:[%s1643_s24 + $0x8] ss:$16 sps:$4 sm:$0xff]  }
  0x29   : > { %934 = vmatprep.subr.bf16.mxu1 %v1452_v26  ;;  %v1491_v60 = vld [vmem:[%s1643_s24 + $0x180] ss:$16 sps:$4 sm:$0xff]   ;;  %v1492_v61 = vld [vmem:[%s1643_s24 + $0x164] ss:$16 sps:$4 sm:$0xff]   ;;  %v1518_v14 = vld [vmem:[%s1643_s24 + $0x1ec] ss:$16 sps:$4 sm:$0xff]  }
  0x2a   : > { %v1497_v0 = vld [vmem:[%s1643_s24 + $0x160] ss:$16 sps:$4 sm:$0xff]   ;;  %v1498_v1 = vld [vmem:[%s1643_s24 + $0x144] ss:$16 sps:$4 sm:$0xff]   ;;  %v1521_v15 = vld [vmem:[%s1643_s24 + $0x2ec] ss:$16 sps:$4 sm:$0xff]  }
  0x2b   : > { %894 = vmatpush1.bf16.msra.mxu0 %v1454_v27  ;;  %v1503_v5 = vld [vmem:[%s1643_s24 + $0x140] ss:$16 sps:$4 sm:$0xff]   ;;  %v1504_v6 = vld [vmem:[%s1643_s24 + $0x124] ss:$16 sps:$4 sm:$0xff]   ;;  %v1516_v16 = vld [vmem:[%s1643_s24 + $0x1e8] ss:$16 sps:$4 sm:$0xff]  }
  0x2c   : > { %935 = vmatpush1.bf16.msra.mxu1 %v1455_v30  ;;  %895 = vmatprep.subr.bf16.mxu0 %v1456_v31  ;;  %v1509_v9 = vld [vmem:[%s1643_s24 + $0x120] ss:$16 sps:$4 sm:$0xff]   ;;  %v1510_v10 = vld [vmem:[%s1643_s24 + $0x104] ss:$16 sps:$4 sm:$0xff]   ;;  %v1519_v17 = vld [vmem:[%s1643_s24 + $0x2e8] ss:$16 sps:$4 sm:$0xff]  }
  0x2d   : > { %936 = vmatprep.subr.bf16.mxu1 %v1458_v32  ;;  %v1515_v13 = vld [vmem:[%s1643_s24 + $0x100] ss:$16 sps:$4 sm:$0xff]   ;;  %v1524_v18 = vld [vmem:[%s1643_s24 + $0x1cc] ss:$16 sps:$4 sm:$0xff]   ;;  %v1522_v20 = vld [vmem:[%s1643_s24 + $0x1c8] ss:$16 sps:$4 sm:$0xff]  }
  0x2e   : > { %v1527_v19 = vld [vmem:[%s1643_s24 + $0x2cc] ss:$16 sps:$4 sm:$0xff]   ;;  %v1525_v21 = vld [vmem:[%s1643_s24 + $0x2c8] ss:$16 sps:$4 sm:$0xff]  }
  0x2f   : > { %896 = vmatpush1.bf16.msra.mxu0 %v1460_v34  ;;  %v1530_v22 = vld [vmem:[%s1643_s24 + $0x1ac] ss:$16 sps:$4 sm:$0xff]   ;;  %v1528_v24 = vld [vmem:[%s1643_s24 + $0x1a8] ss:$16 sps:$4 sm:$0xff]  }
  0x30   : > { %937 = vmatpush1.bf16.msra.mxu1 %v1461_v37  ;;  %897 = vmatprep.subr.bf16.mxu0 %v1462_v38  ;;  %v1533_v23 = vld [vmem:[%s1643_s24 + $0x2ac] ss:$16 sps:$4 sm:$0xff]   ;;  %v1531_v25 = vld [vmem:[%s1643_s24 + $0x2a8] ss:$16 sps:$4 sm:$0xff]  }
  0x31   : > { %938 = vmatprep.subr.bf16.mxu1 %v1464_v39  ;;  %v1536_v26 = vld [vmem:[%s1643_s24 + $0x18c] ss:$16 sps:$4 sm:$0xff]   ;;  %v1534_v28 = vld [vmem:[%s1643_s24 + $0x188] ss:$16 sps:$4 sm:$0xff]  }
  0x32   : > { %v1539_v27 = vld [vmem:[%s1643_s24 + $0x28c] ss:$16 sps:$4 sm:$0xff]   ;;  %v1537_v30 = vld [vmem:[%s1643_s24 + $0x288] ss:$16 sps:$4 sm:$0xff]  }
  0x33   : > { %898 = vmatpush1.bf16.msra.mxu0 %v1466_v41  ;;  %v1545_v31 = vld [vmem:[%s1643_s24 + $0x26c] ss:$16 sps:$4 sm:$0xff]   ;;  %v1540_v32 = vld [vmem:[%s1643_s24 + $0x168] ss:$16 sps:$4 sm:$0xff]  }
  0x34   : > { %939 = vmatpush1.bf16.msra.mxu1 %v1467_v43  ;;  %899 = vmatprep.subr.bf16.mxu0 %v1468_v44  ;;  %v1543_v33 = vld [vmem:[%s1643_s24 + $0x268] ss:$16 sps:$4 sm:$0xff]   ;;  %v1548_v34 = vld [vmem:[%s1643_s24 + $0x14c] ss:$16 sps:$4 sm:$0xff]  }
  0x35   : > { %965 = vmatprep.subr.bf16.mxu1 %v1472_v45  ;;  %v1551_v36 = vld [vmem:[%s1643_s24 + $0x24c] ss:$16 sps:$4 sm:$0xff]   ;;  %v1546_v37 = vld [vmem:[%s1643_s24 + $0x148] ss:$16 sps:$4 sm:$0xff]  }
  0x36   : > { %v1549_v38 = vld [vmem:[%s1643_s24 + $0x248] ss:$16 sps:$4 sm:$0xff]   ;;  %v1554_v39 = vld [vmem:[%s1643_s24 + $0x12c] ss:$16 sps:$4 sm:$0xff]  }
  0x37   : > { %957 = vmatmul.mubr.bf16.vlgmr.msra.gmra.mxu1 %v1697_v46  ;;  %900 = vmatpush2.bf16.msra.mxu0 %v1473_v48  ;;  %v1552_v41 = vld [vmem:[%s1643_s24 + $0x128] ss:$16 sps:$4 sm:$0xff]   ;;  %v1560_v44 = vld [vmem:[%s1643_s24 + $0x10c] ss:$16 sps:$4 sm:$0xff]  }
  0x38   : > { %966 = vmatpush1.bf16.msra.mxu1 %v1470_v47  ;;  %901 = vmatprep.subr.bf16.mxu0 %v1474_v49  ;;  %v1555_v43 = vld [vmem:[%s1643_s24 + $0x228] ss:$16 sps:$4 sm:$0xff]   ;;  %v1563_v45 = vld [vmem:[%s1643_s24 + $0x20c] ss:$16 sps:$4 sm:$0xff]  }
  0x39   : > { %967 = vmatprep.subr.bf16.mxu1 %v1478_v50  ;;  %997 = vmatprep.mubr.bf16.mxu1 %v398_v40  ;;  %v1557_v40 = vld [vmem:[%s1643_s24 + $0x22c] ss:$16 sps:$4 sm:$0xff]   ;;  %v1558_v47 = vld [vmem:[%s1643_s24 + $0x108] ss:$16 sps:$4 sm:$0xff]  }
  0x3a   : > { %v1561_v48 = vld [vmem:[%s1643_s24 + $0x208] ss:$16 sps:$4 sm:$0xff]  }
  0x3b   : > { %902 = vmatpush2.bf16.msra.mxu0 %v1479_v52 }
  0x3c   : > { %968 = vmatpush1.bf16.msra.mxu1 %v1476_v51  ;;  %903 = vmatprep.subr.bf16.mxu0 %v1480_v53 }
  0x3d   : > { %969 = vmatprep.subr.bf16.mxu1 %v1484_v54 }
  0x3f   : > { %904 = vmatpush2.bf16.msra.mxu0 %v1485_v56 }
  0x40   : > { %970 = vmatpush1.bf16.msra.mxu1 %v1482_v55  ;;  %905 = vmatprep.subr.bf16.mxu0 %v1486_v57 }
  0x41   : > { %971 = vmatprep.subr.bf16.mxu1 %v1490_v58 }
  0x43   : > { %906 = vmatpush2.bf16.msra.mxu0 %v1491_v60  ;;  %v1591_v60 = vmov 1983009808  }
  0x44   : > { %972 = vmatpush1.bf16.msra.mxu1 %v1488_v59  ;;  %907 = vmatprep.subr.bf16.mxu0 %v1492_v61  ;;  %v1054_v61 = vunpack.c.l.s4 %v1591_v60 }
  0x45   : > { %973 = vmatprep.subr.bf16.mxu1 %v1496_v62 }
  0x46   : > { %v1055_v62 = vunpack.c.0.s8 %v1054_v61 }
  0x47   : > { %908 = vmatpush2.bf16.msra.mxu0 %v1497_v0 }
  0x48   : > { %974 = vmatpush1.bf16.msra.mxu1 %v1494_v63  ;;  %909 = vmatprep.subr.bf16.mxu0 %v1498_v1 }
  0x49   : > { %975 = vmatprep.subr.bf16.mxu1 %v1502_v2 }
  0x4b   : > { %910 = vmatpush2.bf16.msra.mxu0 %v1503_v5 }
  0x4c   : > { %976 = vmatpush1.bf16.msra.mxu1 %v1500_v4  ;;  %911 = vmatprep.subr.bf16.mxu0 %v1504_v6 }
  0x4d   : > { %977 = vmatprep.subr.bf16.mxu1 %v1508_v7 }
  0x4f   : > { %912 = vmatpush2.bf16.msra.mxu0 %v1509_v9 }
  0x50   : > { %978 = vmatpush1.bf16.msra.mxu1 %v1506_v8  ;;  %913 = vmatprep.subr.bf16.mxu0 %v1510_v10 }
  0x51   : > { %979 = vmatprep.subr.bf16.mxu1 %v1514_v11 }
  0x53   : > { %914 = vmatpush2.bf16.msra.mxu0 %v1515_v13 }
  0x54   : > { %980 = vmatpush1.bf16.msra.mxu1 %v1512_v12  ;;  %1006 = vmatprep.subr.bf16.mxu0 %v1521_v15  ;;  %v278_v12 = vld [vmem:[#allocation2] sm:$0xff] }
  0x55   : > { %981 = vmatprep.subr.bf16.mxu1 %v1518_v14 }
  0x56   : > { %916 = vmatmul.mubr.bf16.vlgmr.msra.gmra.mxu0 %v1690_v42 }
  0x57   : > { %1007 = vmatpush1.bf16.msra.mxu0 %v1519_v17  ;;  %1038 = vmatprep.mubr.bf16.mxu0 %v1589_v3  ;;  %v1542_v3 = vld [vmem:[%s1643_s24 + $0x16c] ss:$16 sps:$4 sm:$0xff]  }
  0x58   : > { %982 = vmatpush2.bf16.msra.mxu1 %v1516_v16  ;;  %1008 = vmatprep.subr.bf16.mxu0 %v1527_v19 }
  0x59   : > { %983 = vmatprep.subr.bf16.mxu1 %v1524_v18 }
  0x5b   : > { %1009 = vmatpush1.bf16.msra.mxu0 %v1525_v21 }
  0x5c   : > { %984 = vmatpush2.bf16.msra.mxu1 %v1522_v20  ;;  %1010 = vmatprep.subr.bf16.mxu0 %v1533_v23 }
  0x5d   : > { %985 = vmatprep.subr.bf16.mxu1 %v1530_v22 }
  0x5f   : > { %1011 = vmatpush1.bf16.msra.mxu0 %v1531_v25 }
  0x60   : > { %986 = vmatpush2.bf16.msra.mxu1 %v1528_v24  ;;  %1012 = vmatprep.subr.bf16.mxu0 %v1539_v27 }
  0x61   : > { %987 = vmatprep.subr.bf16.mxu1 %v1536_v26 }
  0x63   : > { %1013 = vmatpush1.bf16.msra.mxu0 %v1537_v30 }
  0x64   : > { %988 = vmatpush2.bf16.msra.mxu1 %v1534_v28  ;;  %1014 = vmatprep.subr.bf16.mxu0 %v1545_v31 }
  0x65   : > { %989 = vmatprep.subr.bf16.mxu1 %v1542_v3 }
  0x67   : > { %1015 = vmatpush1.bf16.msra.mxu0 %v1543_v33 }
  0x68   : > { %990 = vmatpush2.bf16.msra.mxu1 %v1540_v32  ;;  %1016 = vmatprep.subr.bf16.mxu0 %v1551_v36 }
  0x69   : > { %991 = vmatprep.subr.bf16.mxu1 %v1548_v34 }
  0x6b   : > { %1017 = vmatpush1.bf16.msra.mxu0 %v1549_v38 }
  0x6c   : > { %992 = vmatpush2.bf16.msra.mxu1 %v1546_v37  ;;  %1018 = vmatprep.subr.bf16.mxu0 %v1557_v40 }
  0x6d   : > { %993 = vmatprep.subr.bf16.mxu1 %v1554_v39 }
  0x6f   : > { %1019 = vmatpush1.bf16.msra.mxu0 %v1555_v43 }
  0x70   : > { %994 = vmatpush2.bf16.msra.mxu1 %v1552_v41  ;;  %1020 = vmatprep.subr.bf16.mxu0 %v1563_v45 }
  0x71   : > { %995 = vmatprep.subr.bf16.mxu1 %v1560_v44 }
  0x73   : > { %1021 = vmatpush1.bf16.msra.mxu0 %v1561_v48 }
  0x74   : > { %996 = vmatpush2.bf16.msra.mxu1 %v1558_v47 }
  0x76   : > { %1039 = vmatmul.mubr.bf16.vlgmr.msra.gmra.mxu0 %v1697_v46  ;;  %v1058_v46 = vsub.s32 %v1055_v62, %v1670_v29 }
  0x77   : > { %998 = vmatmul.mubr.bf16.vlgmr.msra.gmra.mxu1 %v1690_v42 }
  0xf7   : > { %v958_v49 = vpop.f32.mrf.mxu1 }
  0xf9   : > { %v960_v50 = vpop.f32.mrf.mxu1 }
  0xfb   : > { %v962_v51 = vpop.f32.mrf.mxu1 }
  0xfd   : > { %v963_v52 = vpop.f32.mrf.mxu1 }
 0x116   : > { %v917_v53 = vpop.f32.mrf.mxu0 }
 0x117   : > { %v959_v55 = vadd.f32 %v958_v49, %v917_v53 }
 0x118   : > { %v919_v54 = vpop.f32.mrf.mxu0 }
 0x119   : > { %v961_v56 = vadd.f32 %v960_v50, %v919_v54 }
 0x11a   : > { %v921_v57 = vpop.f32.mrf.mxu0 }
 0x11b   : > { %v1051_v58 = vcombine.low %v959_v55, %v961_v56 }
 0x11c   : > { %v922_v59 = vpop.f32.mrf.mxu0 }
 0x11d   : > { %v1059_v10 = vrot.slane %v1051_v58, %v1058_v46 }
 0x136   : > { %v1040_v0 = vpop.f32.mrf.mxu0 }
 0x137   : > { %v999_v63 = vpop.f32.mrf.mxu1 }
 0x138   : > { %v1042_v42 = vpop.f32.mrf.mxu0  ;;  %v1041_v2 = vadd.f32 %v1040_v0, %v999_v63 }
 0x139   : > { %v1001_v1 = vpop.f32.mrf.mxu1 }
 0x13a   : > { %v1043_v4 = vadd.f32 %v1042_v42, %v1001_v1  ;;  %v1044_v6 = vpop.f32.mrf.mxu0 }
 0x13b   : > { %v1003_v5 = vpop.f32.mrf.mxu1 }
 0x13c   : > { %v1052_v7 = vcombine.low %v1041_v2, %v1043_v4  ;;  %v1045_v9 = vpop.f32.mrf.mxu0 }
 0x13d   : > { %v1004_v8 = vpop.f32.mrf.mxu1 }
 0x13e   : > { %v1066_v11 = vrot.slane %v1052_v7, %v1058_v46 }
 0x140   : > { %v1067_v13 = vcombine.low %v1059_v10, %v1066_v11  ;;  %1074 = sbr.rel (%p1383_p7) target bundleno = 352 (0x160), region = 40 }
 0x142   : > { %v1069_v14 = vadd.f32 %v1067_v13, %v278_v12 }
 0x144   : > { %1070 = vst [vmem:[#allocation2] sm:$0xff] %v1069_v14 }
 0x145   : > { %v1076_v15 = vld [vmem:[%s1791_s2] sm:$0xf]  ;;  %v1080_v16 = vsub.s32 0, %v1670_v29  ;;  %v1084_v17 = vsub.s32 1, %v1670_v29  ;;  %v1088_v18 = vsub.s32 2, %v1670_v29  ;;  %v1092_v19 = vsub.s32 3, %v1670_v29 }
 0x147   : > { %v1081_v20 = vrot.slane %v1076_v15, %v1080_v16  ;;  %v1085_v21 = vrot.slane %v1076_v15, %v1084_v17  ;;  %v1089_v22 = vrot.slane %v1076_v15, %v1088_v18  ;;  %v1093_v23 = vrot.slane %v1076_v15, %v1092_v19 }
 0x149   : > { %v1094_v24 = vcombine.low %v1081_v20, %v1085_v21  ;;  %v1095_v25 = vcombine.low %v1089_v22, %v1093_v23 }
 0x14b   : > { %v1102_v26 = vrot.slane %v1094_v24, %v1058_v46  ;;  %v1109_v27 = vrot.slane %v1095_v25, %v1058_v46  ;;  %v1075_v28 = vld [vmem:[#allocation2] sm:$0xff] }
 0x14d   : > { %v1110_v30 = vcombine.low %v1102_v26, %v1109_v27 }
 0x14f   : > { %v1112_v3 = vadd.f32 %v1110_v30, %v1075_v28 }
 0x151   : > { %v1113_v31 = vmax.f32 %v1112_v3, 0.0 }
 0x153   : > { %v1115_v32 = vcombine.high %v1113_v31, %v1113_v31  ;;  %v1122_v33 = vrot.slane %v1113_v31, %v1058_v46 }
 0x155   : > { %v1129_v34 = vrot.slane %v1115_v32, %v1058_v46  ;;  %v1130_v36 = vcombine.high %v1122_v33, %v1122_v33 }
 0x157   : > { %v1131_v37 = vcombine.high %v1129_v34, %v1129_v34  ;;  %v1384_v38 = vpack.c.bf16 %v1130_v36, %v1122_v33 }
 0x159   : > { %v1385_v39 = vpack.c.bf16 %v1131_v37, %v1129_v34  ;;  %v1152_v29 = vrot.slane %v1384_v38, %v1682_v35 }
 0x15b   : > { %v1159_v40 = vrot.slane %v1385_v39, %v1682_v35 }
 0x15d   : > { %v1160_v41 = vcombine.low %v1152_v29, %v1159_v40 }
 0x15f   : > { %1386 = vst.sshfl [vmem:[%s1792_s3] sm:$0x55 pattern:$0x73625140] %v1160_v41 }
 0x160 PF: > { %s13_s14 = sadd.s32 1, %s1586_s14   ;;  %s1793_s12 = smov %s1582_s13 }
 0x161   : > { %p10_p8 = scmp.ge.s32.totalorder %s13_s14, 8   ;;  %s1794_s13 = smov %s1796_s15 }
 0x163   :  { %12 = sbr.rel (!%p10_p8) target bundleno = 2 (0x2), region = 76 }

// kernel: _lambda_.40
= control target key start
LH: loop header
LB: loop body
LE: loop exit
PB: predicated region body
PF: predicated region fallthrough
CT: control target
= control target key end

     0   :  { %s1972_s15 = smov 0   ;;  %s1974_s16 = smov 0   ;;  %s2182_s0 = inlined_call_operand.vmem [shape: bf16[2,4608], index: 0, kind: input, shape index: {}]   ;;  %s2183_s1 = inlined_call_operand.vmem [shape: bf16[4608,512], index: 1, kind: input, shape index: {}]   ;;  %s2184_s2 = inlined_call_operand.vmem [shape: f32[1,512], index: 2, kind: input, shape index: {}]   ;;  %s2185_s3 = inlined_call_operand.vmem [shape: bf16[2,512], index: 3, kind: input, shape index: {}]   ;;  %s2186_s4 = inlined_call_operand.vmem [shape: bf16[2,512], index: 4, kind: output, shape index: {}]  }
   0x1   :  { %s1976_s17 = smov 0  }
   0x2 LB: > { %s26_s18 = sadd.s32 1, %s1938_s16  ;;  %p1557_p0 = scmp.ge.s32.totalorder %s1942_s17, 1  ;;  %s1942_s17 = sphi %s1976_s17, %s14_s17   ;;  %s1938_s16 = sphi %s1974_s16, %s2188_s16   ;;  %s1934_s15 = sphi %s1972_s15, %s2187_s15  }
   0x3   : > { %p27_p1 = scmp.ge.s32.totalorder %s26_s18, 9  ;;  %p234_p2 = scmp.lt.s32.totalorder %s1942_s17, 10 }
   0x5   : > { %s2190_s18 = smov (%p27_p1, %s26_s18), 0  ;;  %p235_p3 = pnand %p1557_p0, %p234_p2 }
   0x6   : > { %s1558_s19 = sshll.u32 (!%p235_p3), %s1934_s15, 2  ;;  %s1559_s20 = sshll.u32 (!%p235_p3), %s1934_s15, 6 }
   0x7   : > { %238 = sbr.rel (%p235_p3) target bundleno = 386 (0x182), region = 36  ;;  %p291_p4 = scmp.lt.s32.totalorder (!%p235_p3), %s1558_s19, 35 }
   0x8   : > { %p299_p5 = scmp.lt.s32.totalorder (!%p235_p3), %s1559_s20, 575  ;;  %p1562_p6 = scmp.ne.s32.totalorder (!%p235_p3), %s1934_s15, 0 }
   0xc   : > { %s2192_s19 = smov (!%p291_p4, %s1558_s19), 35  ;;  %s2194_s20 = smov (!%p299_p5, %s1559_s20), 575 }
   0xd   : > { %s295_s23 = scalar_lea.vmem %s2182_s0, %s2192_s19  ;;  %s1700_s24 = sshll.u32 %s2194_s20, 4 }
   0xe   : > { %s2003_s27 = scalar_lea.vmem %s2183_s1, %s1700_s24  ;;  %335 = sbr.rel (%p1562_p6) target bundleno = 21 (0x15), region = 40 }
  0x13   : > { %v1944_v0 = vmov 0.0  }
  0x14   : > { %336 = vst [vmem:[#allocation2] sm:$0xff] %v1944_v0 }
  0x15 PF: > { %v1728_v1 = vld [vmem:[%s2003_s27 + $0xe4] ss:$16 sps:$4 sm:$0xff]   ;;  %v1732_v3 = vld [vmem:[%s2003_s27 + $0xe0] ss:$16 sps:$4 sm:$0xff]   ;;  %v1945_v39 = vmov 1966171168   ;;  %v479_v41 = vlaneseq }
  0x16   : > { %v1730_v2 = vld [vmem:[%s2003_s27 + $0x2e4] ss:$16 sps:$4 sm:$0xff]   ;;  %1136 = vmatprep.subr.bf16.mxu0 %v1728_v1  ;;  %v1733_v4 = vld [vmem:[%s2003_s27 + $0x2e0] ss:$16 sps:$4 sm:$0xff]   ;;  %v477_v40 = vunpack.c.l.s4 %v1945_v39  ;;  %v1860_v39 = vld [vmem:[%s2003_s27 + $0x28] ss:$16 sps:$4 sm:$0xff]  }
  0x17   : > { %1177 = vmatprep.subr.bf16.mxu1 %v1730_v2  ;;  %v1734_v5 = vld [vmem:[%s2003_s27 + $0xc4] ss:$16 sps:$4 sm:$0xff]   ;;  %1137 = vmatpush1.bf16.msra.mxu0 %v1732_v3  ;;  %v1738_v7 = vld [vmem:[%s2003_s27 + $0xc0] ss:$16 sps:$4 sm:$0xff]   ;;  %v2048_v47 = vshrl.u32 %v479_v41, 7  ;;  %p1692_p7 = scmp.ne.s32.totalorder %s1934_s15, 8 }
  0x18   : > { %1178 = vmatpush1.bf16.msra.mxu1 %v1733_v4  ;;  %v1736_v6 = vld [vmem:[%s2003_s27 + $0x2c4] ss:$16 sps:$4 sm:$0xff]   ;;  %1138 = vmatprep.subr.bf16.mxu0 %v1734_v5  ;;  %v1739_v8 = vld [vmem:[%s2003_s27 + $0x2c0] ss:$16 sps:$4 sm:$0xff]   ;;  %v478_v46 = vunpack.c.0.s8 %v477_v40  ;;  %v1863_v40 = vld [vmem:[%s2003_s27 + $0x228] ss:$16 sps:$4 sm:$0xff]  }
  0x19   : > { %1179 = vmatprep.subr.bf16.mxu1 %v1736_v6  ;;  %v1740_v9 = vld [vmem:[%s2003_s27 + $0xa4] ss:$16 sps:$4 sm:$0xff]   ;;  %v1744_v11 = vld [vmem:[%s2003_s27 + $0xa0] ss:$16 sps:$4 sm:$0xff]   ;;  %v1868_v41 = vld [vmem:[%s2003_s27 + $0xc] ss:$16 sps:$4 sm:$0xff]  }
  0x1a   : > { %v1742_v10 = vld [vmem:[%s2003_s27 + $0x2a4] ss:$16 sps:$4 sm:$0xff]   ;;  %v1745_v12 = vld [vmem:[%s2003_s27 + $0x2a0] ss:$16 sps:$4 sm:$0xff]   ;;  %v2055_v52 = vsub.s32 %v478_v46, %v2048_v47  ;;  %v1877_v46 = vld [vmem:[%s2003_s27 + $0x3ec] ss:$16 sps:$4 sm:$0xff]  }
  0x1b   : > { %1139 = vmatpush1.bf16.msra.mxu0 %v1738_v7  ;;  %v1746_v13 = vld [vmem:[%s2003_s27 + $0x84] ss:$16 sps:$4 sm:$0xff]   ;;  %v1750_v15 = vld [vmem:[%s2003_s27 + $0x80] ss:$16 sps:$4 sm:$0xff]  }
  0x1c   : > { %1180 = vmatpush1.bf16.msra.mxu1 %v1739_v8  ;;  %1140 = vmatprep.subr.bf16.mxu0 %v1740_v9  ;;  %v1748_v14 = vld [vmem:[%s2003_s27 + $0x284] ss:$16 sps:$4 sm:$0xff]   ;;  %v1751_v16 = vld [vmem:[%s2003_s27 + $0x280] ss:$16 sps:$4 sm:$0xff]  }
  0x1d   : > { %1181 = vmatprep.subr.bf16.mxu1 %v1742_v10  ;;  %v1752_v17 = vld [vmem:[%s2003_s27 + $0x64] ss:$16 sps:$4 sm:$0xff]   ;;  %v1756_v19 = vld [vmem:[%s2003_s27 + $0x60] ss:$16 sps:$4 sm:$0xff]  }
  0x1e   : > { %v1754_v18 = vld [vmem:[%s2003_s27 + $0x264] ss:$16 sps:$4 sm:$0xff]   ;;  %v1757_v20 = vld [vmem:[%s2003_s27 + $0x260] ss:$16 sps:$4 sm:$0xff]  }
  0x1f   : > { %1141 = vmatpush1.bf16.msra.mxu0 %v1744_v11  ;;  %v1758_v21 = vld [vmem:[%s2003_s27 + $0x44] ss:$16 sps:$4 sm:$0xff]   ;;  %v1762_v23 = vld [vmem:[%s2003_s27 + $0x40] ss:$16 sps:$4 sm:$0xff]  }
  0x20   : > { %1182 = vmatpush1.bf16.msra.mxu1 %v1745_v12  ;;  %1142 = vmatprep.subr.bf16.mxu0 %v1746_v13  ;;  %v1760_v22 = vld [vmem:[%s2003_s27 + $0x244] ss:$16 sps:$4 sm:$0xff]   ;;  %v1763_v24 = vld [vmem:[%s2003_s27 + $0x240] ss:$16 sps:$4 sm:$0xff]   ;;  %v1826_v12 = vld [vmem:[%s2003_s27 + $0xec] ss:$16 sps:$4 sm:$0xff]  }
  0x21   : > { %1183 = vmatprep.subr.bf16.mxu1 %v1748_v14  ;;  %v1764_v25 = vld [vmem:[%s2003_s27 + $0x24] ss:$16 sps:$4 sm:$0xff]   ;;  %v1768_v27 = vld [vmem:[%s2003_s27 + $0x20] ss:$16 sps:$4 sm:$0xff]   ;;  %v1829_v13 = vld [vmem:[%s2003_s27 + $0x2ec] ss:$16 sps:$4 sm:$0xff]  }
  0x22   : > { %v1766_v26 = vld [vmem:[%s2003_s27 + $0x224] ss:$16 sps:$4 sm:$0xff]   ;;  %v1769_v28 = vld [vmem:[%s2003_s27 + $0x220] ss:$16 sps:$4 sm:$0xff]  }
  0x23   : > { %1143 = vmatpush1.bf16.msra.mxu0 %v1750_v15  ;;  %v1770_v29 = vld [vmem:[%s2003_s27 + $0x4] ss:$16 sps:$4 sm:$0xff]   ;;  %v1774_v31 = vld [vmem:[%s2003_s27] ss:$16 sps:$4 sm:$0xff]   ;;  %v1824_v15 = vld [vmem:[%s2003_s27 + $0xe8] ss:$16 sps:$4 sm:$0xff]  }
  0x24   : > { %1184 = vmatpush1.bf16.msra.mxu1 %v1751_v16  ;;  %1144 = vmatprep.subr.bf16.mxu0 %v1752_v17  ;;  %v1772_v30 = vld [vmem:[%s2003_s27 + $0x204] ss:$16 sps:$4 sm:$0xff]   ;;  %v1775_v32 = vld [vmem:[%s2003_s27 + $0x200] ss:$16 sps:$4 sm:$0xff]   ;;  %v1827_v16 = vld [vmem:[%s2003_s27 + $0x2e8] ss:$16 sps:$4 sm:$0xff]  }
  0x25   : > { %1185 = vmatprep.subr.bf16.mxu1 %v1754_v18  ;;  %v1776_v33 = vld [vmem:[%s2003_s27 + $0x1e4] ss:$16 sps:$4 sm:$0xff]   ;;  %v1780_v35 = vld [vmem:[%s2003_s27 + $0x1e0] ss:$16 sps:$4 sm:$0xff]   ;;  %v1832_v17 = vld [vmem:[%s2003_s27 + $0xcc] ss:$16 sps:$4 sm:$0xff]  }
  0x26   : > { %v1778_v34 = vld [vmem:[%s2003_s27 + $0x3e4] ss:$16 sps:$4 sm:$0xff]   ;;  %v1781_v36 = vld [vmem:[%s2003_s27 + $0x3e0] ss:$16 sps:$4 sm:$0xff]   ;;  %v1835_v18 = vld [vmem:[%s2003_s27 + $0x2cc] ss:$16 sps:$4 sm:$0xff]  }
  0x27   : > { %1145 = vmatpush1.bf16.msra.mxu0 %v1756_v19  ;;  %v1782_v37 = vld [vmem:[%s2003_s27 + $0x1c4] ss:$16 sps:$4 sm:$0xff]   ;;  %v1786_v42 = vld [vmem:[%s2003_s27 + $0x1c0] ss:$16 sps:$4 sm:$0xff]   ;;  %v1830_v19 = vld [vmem:[%s2003_s27 + $0xc8] ss:$16 sps:$4 sm:$0xff]  }
  0x28   : > { %1186 = vmatpush1.bf16.msra.mxu1 %v1757_v20  ;;  %1146 = vmatprep.subr.bf16.mxu0 %v1758_v21  ;;  %v1784_v38 = vld [vmem:[%s2003_s27 + $0x3c4] ss:$16 sps:$4 sm:$0xff]   ;;  %v1787_v43 = vld [vmem:[%s2003_s27 + $0x3c0] ss:$16 sps:$4 sm:$0xff]   ;;  %v1833_v20 = vld [vmem:[%s2003_s27 + $0x2c8] ss:$16 sps:$4 sm:$0xff]  }
  0x29   : > { %1187 = vmatprep.subr.bf16.mxu1 %v1760_v22  ;;  %v1788_v44 = vld [vmem:[%s2003_s27 + $0x1a4] ss:$16 sps:$4 sm:$0xff]   ;;  %v1792_v48 = vld [vmem:[%s2003_s27 + $0x1a0] ss:$16 sps:$4 sm:$0xff]   ;;  %v1838_v21 = vld [vmem:[%s2003_s27 + $0xac] ss:$16 sps:$4 sm:$0xff]  }
  0x2a   : > { %v1790_v45 = vld [vmem:[%s2003_s27 + $0x3a4] ss:$16 sps:$4 sm:$0xff]   ;;  %v1793_v49 = vld [vmem:[%s2003_s27 + $0x3a0] ss:$16 sps:$4 sm:$0xff]   ;;  %v1841_v22 = vld [vmem:[%s2003_s27 + $0x2ac] ss:$16 sps:$4 sm:$0xff]  }
  0x2b   : > { %1147 = vmatpush1.bf16.msra.mxu0 %v1762_v23  ;;  %v1794_v50 = vld [vmem:[%s2003_s27 + $0x184] ss:$16 sps:$4 sm:$0xff]   ;;  %v1563_v53 = vld.sshfl [vmem:[%s295_s23] sm:$0x33 pattern:$0x75316420] }
  0x2c   : > { %1188 = vmatpush1.bf16.msra.mxu1 %v1763_v24  ;;  %1148 = vmatprep.subr.bf16.mxu0 %v1764_v25  ;;  %v1796_v51 = vld [vmem:[%s2003_s27 + $0x384] ss:$16 sps:$4 sm:$0xff]   ;;  %v1798_v54 = vld [vmem:[%s2003_s27 + $0x180] ss:$16 sps:$4 sm:$0xff]   ;;  %v475_v56 = vcombine.high %v1563_v53, %v1563_v53  ;;  %v2081_v10 = vrot.slane %v1563_v53, %v2055_v52  ;;  %v1836_v23 = vld [vmem:[%s2003_s27 + $0xa8] ss:$16 sps:$4 sm:$0xff]  }
  0x2d   : > { %1189 = vmatprep.subr.bf16.mxu1 %v1766_v26  ;;  %v1799_v55 = vld [vmem:[%s2003_s27 + $0x380] ss:$16 sps:$4 sm:$0xff]   ;;  %v1800_v57 = vld [vmem:[%s2003_s27 + $0x164] ss:$16 sps:$4 sm:$0xff]   ;;  %v1839_v24 = vld [vmem:[%s2003_s27 + $0x2a8] ss:$16 sps:$4 sm:$0xff]  }
  0x2e   : > { %v1802_v58 = vld [vmem:[%s2003_s27 + $0x364] ss:$16 sps:$4 sm:$0xff]   ;;  %v489_v59 = vrot.slane %v475_v56, %v2055_v52  ;;  %v1804_v60 = vld [vmem:[%s2003_s27 + $0x160] ss:$16 sps:$4 sm:$0xff]   ;;  %v2088_v14 = vcombine.high %v2081_v10, %v2081_v10  ;;  %v1844_v25 = vld [vmem:[%s2003_s27 + $0x8c] ss:$16 sps:$4 sm:$0xff]  }
  0x2f   : > { %1149 = vmatpush1.bf16.msra.mxu0 %v1768_v27  ;;  %v1805_v61 = vld [vmem:[%s2003_s27 + $0x360] ss:$16 sps:$4 sm:$0xff]   ;;  %v1806_v63 = vld [vmem:[%s2003_s27 + $0x144] ss:$16 sps:$4 sm:$0xff]   ;;  %v1847_v26 = vld [vmem:[%s2003_s27 + $0x28c] ss:$16 sps:$4 sm:$0xff]  }
  0x30   : > { %1190 = vmatpush1.bf16.msra.mxu1 %v1769_v28  ;;  %1150 = vmatprep.subr.bf16.mxu0 %v1770_v29  ;;  %v491_v62 = vcombine.high %v489_v59, %v489_v59  ;;  %v1808_v0 = vld [vmem:[%s2003_s27 + $0x344] ss:$16 sps:$4 sm:$0xff]   ;;  %v1810_v1 = vld [vmem:[%s2003_s27 + $0x140] ss:$16 sps:$4 sm:$0xff]   ;;  %v1842_v27 = vld [vmem:[%s2003_s27 + $0x88] ss:$16 sps:$4 sm:$0xff]  }
  0x31   : > { %1191 = vmatprep.subr.bf16.mxu1 %v1772_v30  ;;  %1168 = vmatprep.mubr.bf16.mxu0 %v489_v59  ;;  %v1811_v2 = vld [vmem:[%s2003_s27 + $0x340] ss:$16 sps:$4 sm:$0xff]   ;;  %v1812_v3 = vld [vmem:[%s2003_s27 + $0x124] ss:$16 sps:$4 sm:$0xff]   ;;  %v1845_v28 = vld [vmem:[%s2003_s27 + $0x288] ss:$16 sps:$4 sm:$0xff]  }
  0x32   : > { %1209 = vmatprep.mubr.bf16.mxu1 %v491_v62  ;;  %v1814_v4 = vld [vmem:[%s2003_s27 + $0x324] ss:$16 sps:$4 sm:$0xff]   ;;  %v1816_v5 = vld [vmem:[%s2003_s27 + $0x120] ss:$16 sps:$4 sm:$0xff]   ;;  %v1850_v29 = vld [vmem:[%s2003_s27 + $0x6c] ss:$16 sps:$4 sm:$0xff]  }
  0x33   : > { %1151 = vmatpush1.bf16.msra.mxu0 %v1774_v31  ;;  %v1817_v6 = vld [vmem:[%s2003_s27 + $0x320] ss:$16 sps:$4 sm:$0xff]   ;;  %v1818_v7 = vld [vmem:[%s2003_s27 + $0x104] ss:$16 sps:$4 sm:$0xff]   ;;  %v1853_v30 = vld [vmem:[%s2003_s27 + $0x26c] ss:$16 sps:$4 sm:$0xff]  }
  0x34   : > { %1192 = vmatpush1.bf16.msra.mxu1 %v1775_v32  ;;  %1152 = vmatprep.subr.bf16.mxu0 %v1776_v33  ;;  %v1820_v8 = vld [vmem:[%s2003_s27 + $0x304] ss:$16 sps:$4 sm:$0xff]   ;;  %v1822_v9 = vld [vmem:[%s2003_s27 + $0x100] ss:$16 sps:$4 sm:$0xff]   ;;  %v1848_v31 = vld [vmem:[%s2003_s27 + $0x68] ss:$16 sps:$4 sm:$0xff]  }
  0x35   : > { %1193 = vmatprep.subr.bf16.mxu1 %v1778_v34  ;;  %v1823_v11 = vld [vmem:[%s2003_s27 + $0x300] ss:$16 sps:$4 sm:$0xff]   ;;  %v1851_v32 = vld [vmem:[%s2003_s27 + $0x268] ss:$16 sps:$4 sm:$0xff]   ;;  %v1856_v33 = vld [vmem:[%s2003_s27 + $0x4c] ss:$16 sps:$4 sm:$0xff]  }
  0x36   : > { %v1859_v34 = vld [vmem:[%s2003_s27 + $0x24c] ss:$16 sps:$4 sm:$0xff]   ;;  %v1878_v53 = vld [vmem:[%s2003_s27 + $0x1c8] ss:$16 sps:$4 sm:$0xff]  }
  0x37   : > { %1153 = vmatpush2.bf16.msra.mxu0 %v1780_v35  ;;  %v1854_v35 = vld [vmem:[%s2003_s27 + $0x48] ss:$16 sps:$4 sm:$0xff]   ;;  %v1889_v56 = vld [vmem:[%s2003_s27 + $0x3ac] ss:$16 sps:$4 sm:$0xff]  }
  0x38   : > { %1194 = vmatpush2.bf16.msra.mxu1 %v1781_v36  ;;  %1154 = vmatprep.subr.bf16.mxu0 %v1782_v37  ;;  %v1857_v36 = vld [vmem:[%s2003_s27 + $0x248] ss:$16 sps:$4 sm:$0xff]   ;;  %v1862_v37 = vld [vmem:[%s2003_s27 + $0x2c] ss:$16 sps:$4 sm:$0xff]  }
  0x39   : > { %1195 = vmatprep.subr.bf16.mxu1 %v1784_v38  ;;  %v1865_v38 = vld [vmem:[%s2003_s27 + $0x22c] ss:$16 sps:$4 sm:$0xff]  }
  0x3b   : > { %1155 = vmatpush2.bf16.msra.mxu0 %v1786_v42  ;;  %v1871_v42 = vld [vmem:[%s2003_s27 + $0x20c] ss:$16 sps:$4 sm:$0xff]  }
  0x3c   : > { %1196 = vmatpush2.bf16.msra.mxu1 %v1787_v43  ;;  %1156 = vmatprep.subr.bf16.mxu0 %v1788_v44  ;;  %v1866_v43 = vld [vmem:[%s2003_s27 + $0x8] ss:$16 sps:$4 sm:$0xff]  }
  0x3d   : > { %1197 = vmatprep.subr.bf16.mxu1 %v1790_v45  ;;  %v1869_v44 = vld [vmem:[%s2003_s27 + $0x208] ss:$16 sps:$4 sm:$0xff]   ;;  %v1874_v45 = vld [vmem:[%s2003_s27 + $0x1ec] ss:$16 sps:$4 sm:$0xff]  }
  0x3f   : > { %1157 = vmatpush2.bf16.msra.mxu0 %v1792_v48  ;;  %v1872_v48 = vld [vmem:[%s2003_s27 + $0x1e8] ss:$16 sps:$4 sm:$0xff]  }
  0x40   : > { %1198 = vmatpush2.bf16.msra.mxu1 %v1793_v49  ;;  %1158 = vmatprep.subr.bf16.mxu0 %v1794_v50  ;;  %v1875_v49 = vld [vmem:[%s2003_s27 + $0x3e8] ss:$16 sps:$4 sm:$0xff]   ;;  %v1880_v50 = vld [vmem:[%s2003_s27 + $0x1cc] ss:$16 sps:$4 sm:$0xff]  }
  0x41   : > { %1199 = vmatprep.subr.bf16.mxu1 %v1796_v51  ;;  %v1883_v51 = vld [vmem:[%s2003_s27 + $0x3cc] ss:$16 sps:$4 sm:$0xff]  }
  0x43   : > { %1159 = vmatpush2.bf16.msra.mxu0 %v1798_v54  ;;  %v1881_v54 = vld [vmem:[%s2003_s27 + $0x3c8] ss:$16 sps:$4 sm:$0xff]  }
  0x44   : > { %1200 = vmatpush2.bf16.msra.mxu1 %v1799_v55  ;;  %1160 = vmatprep.subr.bf16.mxu0 %v1800_v57  ;;  %v1886_v55 = vld [vmem:[%s2003_s27 + $0x1ac] ss:$16 sps:$4 sm:$0xff]   ;;  %v1884_v57 = vld [vmem:[%s2003_s27 + $0x1a8] ss:$16 sps:$4 sm:$0xff]  }
  0x45   : > { %1201 = vmatprep.subr.bf16.mxu1 %v1802_v58  ;;  %v1887_v58 = vld [vmem:[%s2003_s27 + $0x3a8] ss:$16 sps:$4 sm:$0xff]  }
  0x47   : > { %1161 = vmatpush2.bf16.msra.mxu0 %v1804_v60  ;;  %v1895_v60 = vld [vmem:[%s2003_s27 + $0x38c] ss:$16 sps:$4 sm:$0xff]  }
  0x48   : > { %1202 = vmatpush2.bf16.msra.mxu1 %v1805_v61  ;;  %1162 = vmatprep.subr.bf16.mxu0 %v1806_v63  ;;  %v1890_v61 = vld [vmem:[%s2003_s27 + $0x188] ss:$16 sps:$4 sm:$0xff]   ;;  %v1898_v63 = vld [vmem:[%s2003_s27 + $0x16c] ss:$16 sps:$4 sm:$0xff]  }
  0x49   : > { %1203 = vmatprep.subr.bf16.mxu1 %v1808_v0  ;;  %v1901_v0 = vld [vmem:[%s2003_s27 + $0x36c] ss:$16 sps:$4 sm:$0xff]  }
  0x4b   : > { %1163 = vmatpush2.bf16.msra.mxu0 %v1810_v1  ;;  %v1896_v1 = vld [vmem:[%s2003_s27 + $0x168] ss:$16 sps:$4 sm:$0xff]  }
  0x4c   : > { %1204 = vmatpush2.bf16.msra.mxu1 %v1811_v2  ;;  %1164 = vmatprep.subr.bf16.mxu0 %v1812_v3  ;;  %v1899_v2 = vld [vmem:[%s2003_s27 + $0x368] ss:$16 sps:$4 sm:$0xff]   ;;  %v1904_v3 = vld [vmem:[%s2003_s27 + $0x14c] ss:$16 sps:$4 sm:$0xff]  }
  0x4d   : > { %1205 = vmatprep.subr.bf16.mxu1 %v1814_v4  ;;  %v1907_v4 = vld [vmem:[%s2003_s27 + $0x34c] ss:$16 sps:$4 sm:$0xff]  }
  0x4f   : > { %1165 = vmatpush2.bf16.msra.mxu0 %v1816_v5  ;;  %v1902_v5 = vld [vmem:[%s2003_s27 + $0x148] ss:$16 sps:$4 sm:$0xff]  }
  0x50   : > { %1206 = vmatpush2.bf16.msra.mxu1 %v1817_v6  ;;  %1166 = vmatprep.subr.bf16.mxu0 %v1818_v7  ;;  %v1905_v6 = vld [vmem:[%s2003_s27 + $0x348] ss:$16 sps:$4 sm:$0xff]   ;;  %v1910_v7 = vld [vmem:[%s2003_s27 + $0x12c] ss:$16 sps:$4 sm:$0xff]  }
  0x51   : > { %1207 = vmatprep.subr.bf16.mxu1 %v1820_v8  ;;  %v1913_v8 = vld [vmem:[%s2003_s27 + $0x32c] ss:$16 sps:$4 sm:$0xff]  }
  0x53   : > { %1167 = vmatpush2.bf16.msra.mxu0 %v1822_v9  ;;  %v1908_v9 = vld [vmem:[%s2003_s27 + $0x128] ss:$16 sps:$4 sm:$0xff]  }
  0x54   : > { %1208 = vmatpush2.bf16.msra.mxu1 %v1823_v11  ;;  %1218 = vmatprep.subr.bf16.mxu0 %v1826_v12  ;;  %v1911_v11 = vld [vmem:[%s2003_s27 + $0x328] ss:$16 sps:$4 sm:$0xff]   ;;  %v1916_v12 = vld [vmem:[%s2003_s27 + $0x10c] ss:$16 sps:$4 sm:$0xff]  }
  0x55   : > { %1259 = vmatprep.subr.bf16.mxu1 %v1829_v13  ;;  %v1919_v13 = vld [vmem:[%s2003_s27 + $0x30c] ss:$16 sps:$4 sm:$0xff]  }
  0x56   : > { %1169 = vmatmul.mubr.bf16.vlgmr.msra.gmra.mxu0 %v2081_v10 }
  0x57   : > { %1210 = vmatmul.mubr.bf16.vlgmr.msra.gmra.mxu1 %v2088_v14  ;;  %1219 = vmatpush1.bf16.msra.mxu0 %v1824_v15  ;;  %v1914_v15 = vld [vmem:[%s2003_s27 + $0x108] ss:$16 sps:$4 sm:$0xff]  }
  0x58   : > { %1260 = vmatpush1.bf16.msra.mxu1 %v1827_v16  ;;  %1220 = vmatprep.subr.bf16.mxu0 %v1832_v17  ;;  %v1917_v16 = vld [vmem:[%s2003_s27 + $0x308] ss:$16 sps:$4 sm:$0xff]  }
  0x59   : > { %1261 = vmatprep.subr.bf16.mxu1 %v1835_v18  ;;  %1250 = vmatprep.mubr.bf16.mxu0 %v489_v59  ;;  %v1892_v59 = vld [vmem:[%s2003_s27 + $0x18c] ss:$16 sps:$4 sm:$0xff]  }
  0x5a   : > { %1291 = vmatprep.mubr.bf16.mxu1 %v491_v62  ;;  %v1893_v62 = vld [vmem:[%s2003_s27 + $0x388] ss:$16 sps:$4 sm:$0xff]  }
  0x5b   : > { %1221 = vmatpush1.bf16.msra.mxu0 %v1830_v19 }
  0x5c   : > { %1262 = vmatpush1.bf16.msra.mxu1 %v1833_v20  ;;  %1222 = vmatprep.subr.bf16.mxu0 %v1838_v21 }
  0x5d   : > { %1263 = vmatprep.subr.bf16.mxu1 %v1841_v22 }
  0x5f   : > { %1223 = vmatpush1.bf16.msra.mxu0 %v1836_v23 }
  0x60   : > { %1264 = vmatpush1.bf16.msra.mxu1 %v1839_v24  ;;  %1224 = vmatprep.subr.bf16.mxu0 %v1844_v25 }
  0x61   : > { %1265 = vmatprep.subr.bf16.mxu1 %v1847_v26 }
  0x63   : > { %1225 = vmatpush1.bf16.msra.mxu0 %v1842_v27 }
  0x64   : > { %1266 = vmatpush1.bf16.msra.mxu1 %v1845_v28  ;;  %1226 = vmatprep.subr.bf16.mxu0 %v1850_v29  ;;  %v1946_v28 = vmov 1983009808  }
  0x65   : > { %1267 = vmatprep.subr.bf16.mxu1 %v1853_v30  ;;  %v1307_v29 = vunpack.c.l.s4 %v1946_v28 }
  0x67   : > { %1227 = vmatpush1.bf16.msra.mxu0 %v1848_v31  ;;  %v1308_v30 = vunpack.c.0.s8 %v1307_v29 }
  0x68   : > { %1268 = vmatpush1.bf16.msra.mxu1 %v1851_v32  ;;  %1228 = vmatprep.subr.bf16.mxu0 %v1856_v33 }
  0x69   : > { %1269 = vmatprep.subr.bf16.mxu1 %v1859_v34 }
  0x6b   : > { %1229 = vmatpush1.bf16.msra.mxu0 %v1854_v35 }
  0x6c   : > { %1270 = vmatpush1.bf16.msra.mxu1 %v1857_v36  ;;  %1230 = vmatprep.subr.bf16.mxu0 %v1862_v37 }
  0x6d   : > { %1271 = vmatprep.subr.bf16.mxu1 %v1865_v38 }
  0x6f   : > { %1231 = vmatpush1.bf16.msra.mxu0 %v1860_v39 }
  0x70   : > { %1272 = vmatpush1.bf16.msra.mxu1 %v1863_v40  ;;  %1232 = vmatprep.subr.bf16.mxu0 %v1868_v41 }
  0x71   : > { %1273 = vmatprep.subr.bf16.mxu1 %v1871_v42 }
  0x73   : > { %1233 = vmatpush1.bf16.msra.mxu0 %v1866_v43  ;;  %v337_v43 = vld [vmem:[#allocation2] sm:$0xff] }
  0x74   : > { %1274 = vmatpush1.bf16.msra.mxu1 %v1869_v44  ;;  %1234 = vmatprep.subr.bf16.mxu0 %v1874_v45 }
  0x75   : > { %1275 = vmatprep.subr.bf16.mxu1 %v1877_v46 }
  0x77   : > { %1235 = vmatpush2.bf16.msra.mxu0 %v1872_v48 }
  0x78   : > { %1276 = vmatpush2.bf16.msra.mxu1 %v1875_v49  ;;  %1236 = vmatprep.subr.bf16.mxu0 %v1880_v50 }
  0x79   : > { %1277 = vmatprep.subr.bf16.mxu1 %v1883_v51 }
  0x7b   : > { %1237 = vmatpush2.bf16.msra.mxu0 %v1878_v53 }
  0x7c   : > { %1278 = vmatpush2.bf16.msra.mxu1 %v1881_v54  ;;  %1238 = vmatprep.subr.bf16.mxu0 %v1886_v55 }
  0x7d   : > { %1279 = vmatprep.subr.bf16.mxu1 %v1889_v56 }
  0x7f   : > { %1239 = vmatpush2.bf16.msra.mxu0 %v1884_v57 }
  0x80   : > { %1280 = vmatpush2.bf16.msra.mxu1 %v1887_v58  ;;  %1240 = vmatprep.subr.bf16.mxu0 %v1892_v59 }
  0x81   : > { %1281 = vmatprep.subr.bf16.mxu1 %v1895_v60 }
  0x83   : > { %1241 = vmatpush2.bf16.msra.mxu0 %v1890_v61 }
  0x84   : > { %1282 = vmatpush2.bf16.msra.mxu1 %v1893_v62  ;;  %1242 = vmatprep.subr.bf16.mxu0 %v1898_v63 }
  0x85   : > { %1283 = vmatprep.subr.bf16.mxu1 %v1901_v0 }
  0x87   : > { %1243 = vmatpush2.bf16.msra.mxu0 %v1896_v1 }
  0x88   : > { %1284 = vmatpush2.bf16.msra.mxu1 %v1899_v2  ;;  %1244 = vmatprep.subr.bf16.mxu0 %v1904_v3 }
  0x89   : > { %1285 = vmatprep.subr.bf16.mxu1 %v1907_v4 }
  0x8b   : > { %1245 = vmatpush2.bf16.msra.mxu0 %v1902_v5 }
  0x8c   : > { %1286 = vmatpush2.bf16.msra.mxu1 %v1905_v6  ;;  %1246 = vmatprep.subr.bf16.mxu0 %v1910_v7 }
  0x8d   : > { %1287 = vmatprep.subr.bf16.mxu1 %v1913_v8 }
  0x8f   : > { %1247 = vmatpush2.bf16.msra.mxu0 %v1908_v9 }
  0x90   : > { %1288 = vmatpush2.bf16.msra.mxu1 %v1911_v11  ;;  %1248 = vmatprep.subr.bf16.mxu0 %v1916_v12 }
  0x91   : > { %1289 = vmatprep.subr.bf16.mxu1 %v1919_v13 }
  0x93   : > { %1249 = vmatpush2.bf16.msra.mxu0 %v1914_v15 }
  0x94   : > { %1290 = vmatpush2.bf16.msra.mxu1 %v1917_v16 }
  0x96   : > { %1251 = vmatmul.mubr.bf16.vlgmr.msra.gmra.mxu0 %v2081_v10 }
  0x97   : > { %1292 = vmatmul.mubr.bf16.vlgmr.msra.gmra.mxu1 %v2088_v14  ;;  %v1311_v14 = vsub.s32 %v1308_v30, %v2048_v47 }
 0x116   : > { %v1170_v17 = vpop.f32.mrf.mxu0 }
 0x117   : > { %v1211_v18 = vpop.f32.mrf.mxu1 }
 0x118   : > { %v1212_v19 = vadd.f32 %v1211_v18, %v1170_v17  ;;  %v1172_v20 = vpop.f32.mrf.mxu0 }
 0x119   : > { %v1213_v21 = vpop.f32.mrf.mxu1 }
 0x11a   : > { %v1214_v22 = vadd.f32 %v1213_v21, %v1172_v20  ;;  %v1174_v23 = vpop.f32.mrf.mxu0 }
 0x11b   : > { %v1215_v24 = vpop.f32.mrf.mxu1 }
 0x11c   : > { %v1304_v25 = vcombine.low %v1212_v19, %v1214_v22  ;;  %v1175_v26 = vpop.f32.mrf.mxu0 }
 0x11d   : > { %v1216_v27 = vpop.f32.mrf.mxu1 }
 0x11e   : > { %v1312_v41 = vrot.slane %v1304_v25, %v1311_v14 }
 0x156   : > { %v1252_v31 = vpop.f32.mrf.mxu0 }
 0x157   : > { %v1293_v32 = vpop.f32.mrf.mxu1 }
 0x158   : > { %v1254_v33 = vpop.f32.mrf.mxu0  ;;  %v1294_v34 = vadd.f32 %v1293_v32, %v1252_v31 }
 0x159   : > { %v1295_v10 = vpop.f32.mrf.mxu1 }
 0x15a   : > { %v1296_v35 = vadd.f32 %v1295_v10, %v1254_v33  ;;  %v1256_v36 = vpop.f32.mrf.mxu0 }
 0x15b   : > { %v1297_v37 = vpop.f32.mrf.mxu1 }
 0x15c   : > { %v1305_v38 = vcombine.low %v1294_v34, %v1296_v35  ;;  %v1257_v39 = vpop.f32.mrf.mxu0 }
 0x15d   : > { %v1298_v40 = vpop.f32.mrf.mxu1 }
 0x15e   : > { %v1319_v42 = vrot.slane %v1305_v38, %v1311_v14 }
 0x160   : > { %v1320_v44 = vcombine.low %v1312_v41, %v1319_v42  ;;  %1327 = sbr.rel (%p1692_p7) target bundleno = 386 (0x182), region = 44 }
 0x162   : > { %v1322_v45 = vadd.f32 %v1320_v44, %v337_v43 }
 0x164   : > { %1323 = vst [vmem:[#allocation2] sm:$0xff] %v1322_v45 }
 0x165   : > { %v1329_v46 = vld [vmem:[%s2184_s2] sm:$0xf]  ;;  %v1333_v48 = vsub.s32 0, %v2048_v47  ;;  %v1337_v49 = vsub.s32 1, %v2048_v47  ;;  %v1341_v50 = vsub.s32 2, %v2048_v47  ;;  %v1345_v51 = vsub.s32 3, %v2048_v47 }
 0x166   : > { %v1366_v60 = vld [vmem:[%s2185_s3] sm:$0xf] }
 0x167   : > { %v1334_v53 = vrot.slane %v1329_v46, %v1333_v48  ;;  %v1338_v54 = vrot.slane %v1329_v46, %v1337_v49  ;;  %v1342_v55 = vrot.slane %v1329_v46, %v1341_v50  ;;  %v1346_v56 = vrot.slane %v1329_v46, %v1345_v51 }
 0x168   : > { %v1367_v0 = vunpack.c.l.bf16 %v1366_v60 }
 0x169   : > { %v1347_v57 = vcombine.low %v1334_v53, %v1338_v54  ;;  %v1348_v58 = vcombine.low %v1342_v55, %v1346_v56 }
 0x16b   : > { %v1355_v59 = vrot.slane %v1347_v57, %v1311_v14  ;;  %v1362_v61 = vrot.slane %v1348_v58, %v1311_v14  ;;  %v1328_v62 = vld [vmem:[#allocation2] sm:$0xff] }
 0x16d   : > { %v1363_v63 = vcombine.low %v1355_v59, %v1362_v61 }
 0x16f   : > { %v1365_v1 = vadd.f32 %v1363_v63, %v1328_v62 }
 0x171   : > { %v1368_v2 = vadd.f32 %v1367_v0, %v1365_v1 }
 0x173   : > { %v1369_v3 = vmax.f32 %v1368_v2, 0.0 }
 0x175   : > { %v1371_v4 = vcombine.high %v1369_v3, %v1369_v3  ;;  %v1378_v47 = vrot.slane %v1369_v3, %v1311_v14 }
 0x177   : > { %v1385_v5 = vrot.slane %v1371_v4, %v1311_v14  ;;  %v1386_v6 = vcombine.high %v1378_v47, %v1378_v47 }
 0x179   : > { %v1387_v7 = vcombine.high %v1385_v5, %v1385_v5  ;;  %v1693_v8 = vpack.c.bf16 %v1386_v6, %v1378_v47 }
 0x17b   : > { %v1694_v9 = vpack.c.bf16 %v1387_v7, %v1385_v5  ;;  %v1408_v11 = vrot.slane %v1693_v8, %v2055_v52 }
 0x17d   : > { %v1415_v12 = vrot.slane %v1694_v9, %v2055_v52 }
 0x17f   : > { %v1416_v13 = vcombine.low %v1408_v11, %v1415_v12 }
 0x181   : > { %1695 = vst.sshfl [vmem:[%s2186_s4] sm:$0x55 pattern:$0x73625140] %v1416_v13 }
 0x182 PF: > { %s14_s17 = sadd.s32 1, %s1942_s17   ;;  %s2187_s15 = smov %s1938_s16 }
 0x183   : > { %p11_p8 = scmp.ge.s32.totalorder %s14_s17, 11   ;;  %s2188_s16 = smov %s2190_s18 }
 0x185   :  { %13 = sbr.rel (!%p11_p8) target bundleno = 2 (0x2), region = 83 }

// kernel: _lambda_.41
= control target key start
LH: loop header
LB: loop body
LE: loop exit
PB: predicated region body
PF: predicated region fallthrough
CT: control target
= control target key end

     0   :  { %s1885_s12 = smov 0   ;;  %s1887_s13 = smov 0   ;;  %s2092_s0 = inlined_call_operand.vmem [shape: bf16[2,4608], index: 0, kind: input, shape index: {}]   ;;  %s2093_s1 = inlined_call_operand.vmem [shape: bf16[4608,512], index: 1, kind: input, shape index: {}]   ;;  %s2094_s2 = inlined_call_operand.vmem [shape: f32[1,512], index: 2, kind: input, shape index: {}]   ;;  %s2095_s3 = inlined_call_operand.vmem [shape: bf16[2,512], index: 3, kind: output, shape index: {}]  }
   0x1   :  { %s1889_s14 = smov 0  }
   0x2 LB: > { %s25_s15 = sadd.s32 1, %s1856_s13  ;;  %p1475_p0 = scmp.ge.s32.totalorder %s1860_s14, 1  ;;  %s1860_s14 = sphi %s1889_s14, %s13_s14   ;;  %s1856_s13 = sphi %s1887_s13, %s2097_s13   ;;  %s1852_s12 = sphi %s1885_s12, %s2096_s12  }
   0x3   : > { %p26_p1 = scmp.ge.s32.totalorder %s25_s15, 9  ;;  %p193_p2 = scmp.lt.s32.totalorder %s1860_s14, 10 }
   0x5   : > { %s2099_s15 = smov (%p26_p1, %s25_s15), 0  ;;  %p194_p3 = pnand %p1475_p0, %p193_p2 }
   0x6   : > { %s1476_s16 = sshll.u32 (!%p194_p3), %s1852_s12, 2  ;;  %s1477_s17 = sshll.u32 (!%p194_p3), %s1852_s12, 6 }
   0x7   : > { %197 = sbr.rel (%p194_p3) target bundleno = 384 (0x180), region = 32  ;;  %p240_p4 = scmp.lt.s32.totalorder (!%p194_p3), %s1476_s16, 35 }
   0x8   : > { %p248_p5 = scmp.lt.s32.totalorder (!%p194_p3), %s1477_s17, 575  ;;  %p1480_p6 = scmp.ne.s32.totalorder (!%p194_p3), %s1852_s12, 0 }
   0xc   : > { %s2101_s16 = smov (!%p240_p4, %s1476_s16), 35  ;;  %s2103_s17 = smov (!%p248_p5, %s1477_s17), 575 }
   0xd   : > { %s244_s20 = scalar_lea.vmem %s2092_s0, %s2101_s16  ;;  %s1618_s21 = sshll.u32 %s2103_s17, 4 }
   0xe   : > { %s1916_s24 = scalar_lea.vmem %s2093_s1, %s1618_s21  ;;  %275 = sbr.rel (%p1480_p6) target bundleno = 21 (0x15), region = 36 }
  0x13   : > { %v1862_v0 = vmov 0.0  }
  0x14   : > { %276 = vst [vmem:[#allocation2] sm:$0xff] %v1862_v0 }
  0x15 PF: > { %v1646_v1 = vld [vmem:[%s1916_s24 + $0xe4] ss:$16 sps:$4 sm:$0xff]   ;;  %v1650_v3 = vld [vmem:[%s1916_s24 + $0xe0] ss:$16 sps:$4 sm:$0xff]   ;;  %v1863_v39 = vmov 1966171168   ;;  %v419_v41 = vlaneseq }
  0x16   : > { %v1648_v2 = vld [vmem:[%s1916_s24 + $0x2e4] ss:$16 sps:$4 sm:$0xff]   ;;  %1076 = vmatprep.subr.bf16.mxu0 %v1646_v1  ;;  %v1651_v4 = vld [vmem:[%s1916_s24 + $0x2e0] ss:$16 sps:$4 sm:$0xff]   ;;  %v417_v40 = vunpack.c.l.s4 %v1863_v39  ;;  %v1778_v39 = vld [vmem:[%s1916_s24 + $0x28] ss:$16 sps:$4 sm:$0xff]  }
  0x17   : > { %1117 = vmatprep.subr.bf16.mxu1 %v1648_v2  ;;  %v1652_v5 = vld [vmem:[%s1916_s24 + $0xc4] ss:$16 sps:$4 sm:$0xff]   ;;  %1077 = vmatpush1.bf16.msra.mxu0 %v1650_v3  ;;  %v1656_v7 = vld [vmem:[%s1916_s24 + $0xc0] ss:$16 sps:$4 sm:$0xff]   ;;  %v1961_v47 = vshrl.u32 %v419_v41, 7  ;;  %p1610_p7 = scmp.ne.s32.totalorder %s1852_s12, 8 }
  0x18   : > { %1118 = vmatpush1.bf16.msra.mxu1 %v1651_v4  ;;  %v1654_v6 = vld [vmem:[%s1916_s24 + $0x2c4] ss:$16 sps:$4 sm:$0xff]   ;;  %1078 = vmatprep.subr.bf16.mxu0 %v1652_v5  ;;  %v1657_v8 = vld [vmem:[%s1916_s24 + $0x2c0] ss:$16 sps:$4 sm:$0xff]   ;;  %v418_v46 = vunpack.c.0.s8 %v417_v40  ;;  %v1781_v40 = vld [vmem:[%s1916_s24 + $0x228] ss:$16 sps:$4 sm:$0xff]  }
  0x19   : > { %1119 = vmatprep.subr.bf16.mxu1 %v1654_v6  ;;  %v1658_v9 = vld [vmem:[%s1916_s24 + $0xa4] ss:$16 sps:$4 sm:$0xff]   ;;  %v1662_v11 = vld [vmem:[%s1916_s24 + $0xa0] ss:$16 sps:$4 sm:$0xff]   ;;  %v1786_v41 = vld [vmem:[%s1916_s24 + $0xc] ss:$16 sps:$4 sm:$0xff]  }
  0x1a   : > { %v1660_v10 = vld [vmem:[%s1916_s24 + $0x2a4] ss:$16 sps:$4 sm:$0xff]   ;;  %v1663_v12 = vld [vmem:[%s1916_s24 + $0x2a0] ss:$16 sps:$4 sm:$0xff]   ;;  %v1968_v52 = vsub.s32 %v418_v46, %v1961_v47  ;;  %v1795_v46 = vld [vmem:[%s1916_s24 + $0x3ec] ss:$16 sps:$4 sm:$0xff]  }
  0x1b   : > { %1079 = vmatpush1.bf16.msra.mxu0 %v1656_v7  ;;  %v1664_v13 = vld [vmem:[%s1916_s24 + $0x84] ss:$16 sps:$4 sm:$0xff]   ;;  %v1668_v15 = vld [vmem:[%s1916_s24 + $0x80] ss:$16 sps:$4 sm:$0xff]  }
  0x1c   : > { %1120 = vmatpush1.bf16.msra.mxu1 %v1657_v8  ;;  %1080 = vmatprep.subr.bf16.mxu0 %v1658_v9  ;;  %v1666_v14 = vld [vmem:[%s1916_s24 + $0x284] ss:$16 sps:$4 sm:$0xff]   ;;  %v1669_v16 = vld [vmem:[%s1916_s24 + $0x280] ss:$16 sps:$4 sm:$0xff]  }
  0x1d   : > { %1121 = vmatprep.subr.bf16.mxu1 %v1660_v10  ;;  %v1670_v17 = vld [vmem:[%s1916_s24 + $0x64] ss:$16 sps:$4 sm:$0xff]   ;;  %v1674_v19 = vld [vmem:[%s1916_s24 + $0x60] ss:$16 sps:$4 sm:$0xff]  }
  0x1e   : > { %v1672_v18 = vld [vmem:[%s1916_s24 + $0x264] ss:$16 sps:$4 sm:$0xff]   ;;  %v1675_v20 = vld [vmem:[%s1916_s24 + $0x260] ss:$16 sps:$4 sm:$0xff]  }
  0x1f   : > { %1081 = vmatpush1.bf16.msra.mxu0 %v1662_v11  ;;  %v1676_v21 = vld [vmem:[%s1916_s24 + $0x44] ss:$16 sps:$4 sm:$0xff]   ;;  %v1680_v23 = vld [vmem:[%s1916_s24 + $0x40] ss:$16 sps:$4 sm:$0xff]  }
  0x20   : > { %1122 = vmatpush1.bf16.msra.mxu1 %v1663_v12  ;;  %1082 = vmatprep.subr.bf16.mxu0 %v1664_v13  ;;  %v1678_v22 = vld [vmem:[%s1916_s24 + $0x244] ss:$16 sps:$4 sm:$0xff]   ;;  %v1681_v24 = vld [vmem:[%s1916_s24 + $0x240] ss:$16 sps:$4 sm:$0xff]   ;;  %v1744_v12 = vld [vmem:[%s1916_s24 + $0xec] ss:$16 sps:$4 sm:$0xff]  }
  0x21   : > { %1123 = vmatprep.subr.bf16.mxu1 %v1666_v14  ;;  %v1682_v25 = vld [vmem:[%s1916_s24 + $0x24] ss:$16 sps:$4 sm:$0xff]   ;;  %v1686_v27 = vld [vmem:[%s1916_s24 + $0x20] ss:$16 sps:$4 sm:$0xff]   ;;  %v1747_v13 = vld [vmem:[%s1916_s24 + $0x2ec] ss:$16 sps:$4 sm:$0xff]  }
  0x22   : > { %v1684_v26 = vld [vmem:[%s1916_s24 + $0x224] ss:$16 sps:$4 sm:$0xff]   ;;  %v1687_v28 = vld [vmem:[%s1916_s24 + $0x220] ss:$16 sps:$4 sm:$0xff]  }
  0x23   : > { %1083 = vmatpush1.bf16.msra.mxu0 %v1668_v15  ;;  %v1688_v29 = vld [vmem:[%s1916_s24 + $0x4] ss:$16 sps:$4 sm:$0xff]   ;;  %v1692_v31 = vld [vmem:[%s1916_s24] ss:$16 sps:$4 sm:$0xff]   ;;  %v1742_v15 = vld [vmem:[%s1916_s24 + $0xe8] ss:$16 sps:$4 sm:$0xff]  }
  0x24   : > { %1124 = vmatpush1.bf16.msra.mxu1 %v1669_v16  ;;  %1084 = vmatprep.subr.bf16.mxu0 %v1670_v17  ;;  %v1690_v30 = vld [vmem:[%s1916_s24 + $0x204] ss:$16 sps:$4 sm:$0xff]   ;;  %v1693_v32 = vld [vmem:[%s1916_s24 + $0x200] ss:$16 sps:$4 sm:$0xff]   ;;  %v1745_v16 = vld [vmem:[%s1916_s24 + $0x2e8] ss:$16 sps:$4 sm:$0xff]  }
  0x25   : > { %1125 = vmatprep.subr.bf16.mxu1 %v1672_v18  ;;  %v1694_v33 = vld [vmem:[%s1916_s24 + $0x1e4] ss:$16 sps:$4 sm:$0xff]   ;;  %v1698_v35 = vld [vmem:[%s1916_s24 + $0x1e0] ss:$16 sps:$4 sm:$0xff]   ;;  %v1750_v17 = vld [vmem:[%s1916_s24 + $0xcc] ss:$16 sps:$4 sm:$0xff]  }
  0x26   : > { %v1696_v34 = vld [vmem:[%s1916_s24 + $0x3e4] ss:$16 sps:$4 sm:$0xff]   ;;  %v1699_v36 = vld [vmem:[%s1916_s24 + $0x3e0] ss:$16 sps:$4 sm:$0xff]   ;;  %v1753_v18 = vld [vmem:[%s1916_s24 + $0x2cc] ss:$16 sps:$4 sm:$0xff]  }
  0x27   : > { %1085 = vmatpush1.bf16.msra.mxu0 %v1674_v19  ;;  %v1700_v37 = vld [vmem:[%s1916_s24 + $0x1c4] ss:$16 sps:$4 sm:$0xff]   ;;  %v1704_v42 = vld [vmem:[%s1916_s24 + $0x1c0] ss:$16 sps:$4 sm:$0xff]   ;;  %v1748_v19 = vld [vmem:[%s1916_s24 + $0xc8] ss:$16 sps:$4 sm:$0xff]  }
  0x28   : > { %1126 = vmatpush1.bf16.msra.mxu1 %v1675_v20  ;;  %1086 = vmatprep.subr.bf16.mxu0 %v1676_v21  ;;  %v1702_v38 = vld [vmem:[%s1916_s24 + $0x3c4] ss:$16 sps:$4 sm:$0xff]   ;;  %v1705_v43 = vld [vmem:[%s1916_s24 + $0x3c0] ss:$16 sps:$4 sm:$0xff]   ;;  %v1751_v20 = vld [vmem:[%s1916_s24 + $0x2c8] ss:$16 sps:$4 sm:$0xff]  }
  0x29   : > { %1127 = vmatprep.subr.bf16.mxu1 %v1678_v22  ;;  %v1706_v44 = vld [vmem:[%s1916_s24 + $0x1a4] ss:$16 sps:$4 sm:$0xff]   ;;  %v1710_v48 = vld [vmem:[%s1916_s24 + $0x1a0] ss:$16 sps:$4 sm:$0xff]   ;;  %v1756_v21 = vld [vmem:[%s1916_s24 + $0xac] ss:$16 sps:$4 sm:$0xff]  }
  0x2a   : > { %v1708_v45 = vld [vmem:[%s1916_s24 + $0x3a4] ss:$16 sps:$4 sm:$0xff]   ;;  %v1711_v49 = vld [vmem:[%s1916_s24 + $0x3a0] ss:$16 sps:$4 sm:$0xff]   ;;  %v1759_v22 = vld [vmem:[%s1916_s24 + $0x2ac] ss:$16 sps:$4 sm:$0xff]  }
  0x2b   : > { %1087 = vmatpush1.bf16.msra.mxu0 %v1680_v23  ;;  %v1712_v50 = vld [vmem:[%s1916_s24 + $0x184] ss:$16 sps:$4 sm:$0xff]   ;;  %v1481_v53 = vld.sshfl [vmem:[%s244_s20] sm:$0x33 pattern:$0x75316420] }
  0x2c   : > { %1128 = vmatpush1.bf16.msra.mxu1 %v1681_v24  ;;  %1088 = vmatprep.subr.bf16.mxu0 %v1682_v25  ;;  %v1714_v51 = vld [vmem:[%s1916_s24 + $0x384] ss:$16 sps:$4 sm:$0xff]   ;;  %v1716_v54 = vld [vmem:[%s1916_s24 + $0x180] ss:$16 sps:$4 sm:$0xff]   ;;  %v415_v56 = vcombine.high %v1481_v53, %v1481_v53  ;;  %v1994_v10 = vrot.slane %v1481_v53, %v1968_v52  ;;  %v1754_v23 = vld [vmem:[%s1916_s24 + $0xa8] ss:$16 sps:$4 sm:$0xff]  }
  0x2d   : > { %1129 = vmatprep.subr.bf16.mxu1 %v1684_v26  ;;  %v1717_v55 = vld [vmem:[%s1916_s24 + $0x380] ss:$16 sps:$4 sm:$0xff]   ;;  %v1718_v57 = vld [vmem:[%s1916_s24 + $0x164] ss:$16 sps:$4 sm:$0xff]   ;;  %v1757_v24 = vld [vmem:[%s1916_s24 + $0x2a8] ss:$16 sps:$4 sm:$0xff]  }
  0x2e   : > { %v1720_v58 = vld [vmem:[%s1916_s24 + $0x364] ss:$16 sps:$4 sm:$0xff]   ;;  %v429_v59 = vrot.slane %v415_v56, %v1968_v52  ;;  %v1722_v60 = vld [vmem:[%s1916_s24 + $0x160] ss:$16 sps:$4 sm:$0xff]   ;;  %v2001_v14 = vcombine.high %v1994_v10, %v1994_v10  ;;  %v1762_v25 = vld [vmem:[%s1916_s24 + $0x8c] ss:$16 sps:$4 sm:$0xff]  }
  0x2f   : > { %1089 = vmatpush1.bf16.msra.mxu0 %v1686_v27  ;;  %v1723_v61 = vld [vmem:[%s1916_s24 + $0x360] ss:$16 sps:$4 sm:$0xff]   ;;  %v1724_v63 = vld [vmem:[%s1916_s24 + $0x144] ss:$16 sps:$4 sm:$0xff]   ;;  %v1765_v26 = vld [vmem:[%s1916_s24 + $0x28c] ss:$16 sps:$4 sm:$0xff]  }
  0x30   : > { %1130 = vmatpush1.bf16.msra.mxu1 %v1687_v28  ;;  %1090 = vmatprep.subr.bf16.mxu0 %v1688_v29  ;;  %v431_v62 = vcombine.high %v429_v59, %v429_v59  ;;  %v1726_v0 = vld [vmem:[%s1916_s24 + $0x344] ss:$16 sps:$4 sm:$0xff]   ;;  %v1728_v1 = vld [vmem:[%s1916_s24 + $0x140] ss:$16 sps:$4 sm:$0xff]   ;;  %v1760_v27 = vld [vmem:[%s1916_s24 + $0x88] ss:$16 sps:$4 sm:$0xff]  }
  0x31   : > { %1131 = vmatprep.subr.bf16.mxu1 %v1690_v30  ;;  %1108 = vmatprep.mubr.bf16.mxu0 %v429_v59  ;;  %v1729_v2 = vld [vmem:[%s1916_s24 + $0x340] ss:$16 sps:$4 sm:$0xff]   ;;  %v1730_v3 = vld [vmem:[%s1916_s24 + $0x124] ss:$16 sps:$4 sm:$0xff]   ;;  %v1763_v28 = vld [vmem:[%s1916_s24 + $0x288] ss:$16 sps:$4 sm:$0xff]  }
  0x32   : > { %1149 = vmatprep.mubr.bf16.mxu1 %v431_v62  ;;  %v1732_v4 = vld [vmem:[%s1916_s24 + $0x324] ss:$16 sps:$4 sm:$0xff]   ;;  %v1734_v5 = vld [vmem:[%s1916_s24 + $0x120] ss:$16 sps:$4 sm:$0xff]   ;;  %v1768_v29 = vld [vmem:[%s1916_s24 + $0x6c] ss:$16 sps:$4 sm:$0xff]  }
  0x33   : > { %1091 = vmatpush1.bf16.msra.mxu0 %v1692_v31  ;;  %v1735_v6 = vld [vmem:[%s1916_s24 + $0x320] ss:$16 sps:$4 sm:$0xff]   ;;  %v1736_v7 = vld [vmem:[%s1916_s24 + $0x104] ss:$16 sps:$4 sm:$0xff]   ;;  %v1771_v30 = vld [vmem:[%s1916_s24 + $0x26c] ss:$16 sps:$4 sm:$0xff]  }
  0x34   : > { %1132 = vmatpush1.bf16.msra.mxu1 %v1693_v32  ;;  %1092 = vmatprep.subr.bf16.mxu0 %v1694_v33  ;;  %v1738_v8 = vld [vmem:[%s1916_s24 + $0x304] ss:$16 sps:$4 sm:$0xff]   ;;  %v1740_v9 = vld [vmem:[%s1916_s24 + $0x100] ss:$16 sps:$4 sm:$0xff]   ;;  %v1766_v31 = vld [vmem:[%s1916_s24 + $0x68] ss:$16 sps:$4 sm:$0xff]  }
  0x35   : > { %1133 = vmatprep.subr.bf16.mxu1 %v1696_v34  ;;  %v1741_v11 = vld [vmem:[%s1916_s24 + $0x300] ss:$16 sps:$4 sm:$0xff]   ;;  %v1769_v32 = vld [vmem:[%s1916_s24 + $0x268] ss:$16 sps:$4 sm:$0xff]   ;;  %v1774_v33 = vld [vmem:[%s1916_s24 + $0x4c] ss:$16 sps:$4 sm:$0xff]  }
  0x36   : > { %v1777_v34 = vld [vmem:[%s1916_s24 + $0x24c] ss:$16 sps:$4 sm:$0xff]   ;;  %v1796_v53 = vld [vmem:[%s1916_s24 + $0x1c8] ss:$16 sps:$4 sm:$0xff]  }
  0x37   : > { %1093 = vmatpush2.bf16.msra.mxu0 %v1698_v35  ;;  %v1772_v35 = vld [vmem:[%s1916_s24 + $0x48] ss:$16 sps:$4 sm:$0xff]   ;;  %v1807_v56 = vld [vmem:[%s1916_s24 + $0x3ac] ss:$16 sps:$4 sm:$0xff]  }
  0x38   : > { %1134 = vmatpush2.bf16.msra.mxu1 %v1699_v36  ;;  %1094 = vmatprep.subr.bf16.mxu0 %v1700_v37  ;;  %v1775_v36 = vld [vmem:[%s1916_s24 + $0x248] ss:$16 sps:$4 sm:$0xff]   ;;  %v1780_v37 = vld [vmem:[%s1916_s24 + $0x2c] ss:$16 sps:$4 sm:$0xff]  }
  0x39   : > { %1135 = vmatprep.subr.bf16.mxu1 %v1702_v38  ;;  %v1783_v38 = vld [vmem:[%s1916_s24 + $0x22c] ss:$16 sps:$4 sm:$0xff]  }
  0x3b   : > { %1095 = vmatpush2.bf16.msra.mxu0 %v1704_v42  ;;  %v1789_v42 = vld [vmem:[%s1916_s24 + $0x20c] ss:$16 sps:$4 sm:$0xff]  }
  0x3c   : > { %1136 = vmatpush2.bf16.msra.mxu1 %v1705_v43  ;;  %1096 = vmatprep.subr.bf16.mxu0 %v1706_v44  ;;  %v1784_v43 = vld [vmem:[%s1916_s24 + $0x8] ss:$16 sps:$4 sm:$0xff]  }
  0x3d   : > { %1137 = vmatprep.subr.bf16.mxu1 %v1708_v45  ;;  %v1787_v44 = vld [vmem:[%s1916_s24 + $0x208] ss:$16 sps:$4 sm:$0xff]   ;;  %v1792_v45 = vld [vmem:[%s1916_s24 + $0x1ec] ss:$16 sps:$4 sm:$0xff]  }
  0x3f   : > { %1097 = vmatpush2.bf16.msra.mxu0 %v1710_v48  ;;  %v1790_v48 = vld [vmem:[%s1916_s24 + $0x1e8] ss:$16 sps:$4 sm:$0xff]  }
  0x40   : > { %1138 = vmatpush2.bf16.msra.mxu1 %v1711_v49  ;;  %1098 = vmatprep.subr.bf16.mxu0 %v1712_v50  ;;  %v1793_v49 = vld [vmem:[%s1916_s24 + $0x3e8] ss:$16 sps:$4 sm:$0xff]   ;;  %v1798_v50 = vld [vmem:[%s1916_s24 + $0x1cc] ss:$16 sps:$4 sm:$0xff]  }
  0x41   : > { %1139 = vmatprep.subr.bf16.mxu1 %v1714_v51  ;;  %v1801_v51 = vld [vmem:[%s1916_s24 + $0x3cc] ss:$16 sps:$4 sm:$0xff]  }
  0x43   : > { %1099 = vmatpush2.bf16.msra.mxu0 %v1716_v54  ;;  %v1799_v54 = vld [vmem:[%s1916_s24 + $0x3c8] ss:$16 sps:$4 sm:$0xff]  }
  0x44   : > { %1140 = vmatpush2.bf16.msra.mxu1 %v1717_v55  ;;  %1100 = vmatprep.subr.bf16.mxu0 %v1718_v57  ;;  %v1804_v55 = vld [vmem:[%s1916_s24 + $0x1ac] ss:$16 sps:$4 sm:$0xff]   ;;  %v1802_v57 = vld [vmem:[%s1916_s24 + $0x1a8] ss:$16 sps:$4 sm:$0xff]  }
  0x45   : > { %1141 = vmatprep.subr.bf16.mxu1 %v1720_v58  ;;  %v1805_v58 = vld [vmem:[%s1916_s24 + $0x3a8] ss:$16 sps:$4 sm:$0xff]  }
  0x47   : > { %1101 = vmatpush2.bf16.msra.mxu0 %v1722_v60  ;;  %v1813_v60 = vld [vmem:[%s1916_s24 + $0x38c] ss:$16 sps:$4 sm:$0xff]  }
  0x48   : > { %1142 = vmatpush2.bf16.msra.mxu1 %v1723_v61  ;;  %1102 = vmatprep.subr.bf16.mxu0 %v1724_v63  ;;  %v1808_v61 = vld [vmem:[%s1916_s24 + $0x188] ss:$16 sps:$4 sm:$0xff]   ;;  %v1816_v63 = vld [vmem:[%s1916_s24 + $0x16c] ss:$16 sps:$4 sm:$0xff]  }
  0x49   : > { %1143 = vmatprep.subr.bf16.mxu1 %v1726_v0  ;;  %v1819_v0 = vld [vmem:[%s1916_s24 + $0x36c] ss:$16 sps:$4 sm:$0xff]  }
  0x4b   : > { %1103 = vmatpush2.bf16.msra.mxu0 %v1728_v1  ;;  %v1814_v1 = vld [vmem:[%s1916_s24 + $0x168] ss:$16 sps:$4 sm:$0xff]  }
  0x4c   : > { %1144 = vmatpush2.bf16.msra.mxu1 %v1729_v2  ;;  %1104 = vmatprep.subr.bf16.mxu0 %v1730_v3  ;;  %v1817_v2 = vld [vmem:[%s1916_s24 + $0x368] ss:$16 sps:$4 sm:$0xff]   ;;  %v1822_v3 = vld [vmem:[%s1916_s24 + $0x14c] ss:$16 sps:$4 sm:$0xff]  }
  0x4d   : > { %1145 = vmatprep.subr.bf16.mxu1 %v1732_v4  ;;  %v1825_v4 = vld [vmem:[%s1916_s24 + $0x34c] ss:$16 sps:$4 sm:$0xff]  }
  0x4f   : > { %1105 = vmatpush2.bf16.msra.mxu0 %v1734_v5  ;;  %v1820_v5 = vld [vmem:[%s1916_s24 + $0x148] ss:$16 sps:$4 sm:$0xff]  }
  0x50   : > { %1146 = vmatpush2.bf16.msra.mxu1 %v1735_v6  ;;  %1106 = vmatprep.subr.bf16.mxu0 %v1736_v7  ;;  %v1823_v6 = vld [vmem:[%s1916_s24 + $0x348] ss:$16 sps:$4 sm:$0xff]   ;;  %v1828_v7 = vld [vmem:[%s1916_s24 + $0x12c] ss:$16 sps:$4 sm:$0xff]  }
  0x51   : > { %1147 = vmatprep.subr.bf16.mxu1 %v1738_v8  ;;  %v1831_v8 = vld [vmem:[%s1916_s24 + $0x32c] ss:$16 sps:$4 sm:$0xff]  }
  0x53   : > { %1107 = vmatpush2.bf16.msra.mxu0 %v1740_v9  ;;  %v1826_v9 = vld [vmem:[%s1916_s24 + $0x128] ss:$16 sps:$4 sm:$0xff]  }
  0x54   : > { %1148 = vmatpush2.bf16.msra.mxu1 %v1741_v11  ;;  %1158 = vmatprep.subr.bf16.mxu0 %v1744_v12  ;;  %v1829_v11 = vld [vmem:[%s1916_s24 + $0x328] ss:$16 sps:$4 sm:$0xff]   ;;  %v1834_v12 = vld [vmem:[%s1916_s24 + $0x10c] ss:$16 sps:$4 sm:$0xff]  }
  0x55   : > { %1199 = vmatprep.subr.bf16.mxu1 %v1747_v13  ;;  %v1837_v13 = vld [vmem:[%s1916_s24 + $0x30c] ss:$16 sps:$4 sm:$0xff]  }
  0x56   : > { %1109 = vmatmul.mubr.bf16.vlgmr.msra.gmra.mxu0 %v1994_v10 }
  0x57   : > { %1150 = vmatmul.mubr.bf16.vlgmr.msra.gmra.mxu1 %v2001_v14  ;;  %1159 = vmatpush1.bf16.msra.mxu0 %v1742_v15  ;;  %v1832_v15 = vld [vmem:[%s1916_s24 + $0x108] ss:$16 sps:$4 sm:$0xff]  }
  0x58   : > { %1200 = vmatpush1.bf16.msra.mxu1 %v1745_v16  ;;  %1160 = vmatprep.subr.bf16.mxu0 %v1750_v17  ;;  %v1835_v16 = vld [vmem:[%s1916_s24 + $0x308] ss:$16 sps:$4 sm:$0xff]  }
  0x59   : > { %1201 = vmatprep.subr.bf16.mxu1 %v1753_v18  ;;  %1190 = vmatprep.mubr.bf16.mxu0 %v429_v59  ;;  %v1810_v59 = vld [vmem:[%s1916_s24 + $0x18c] ss:$16 sps:$4 sm:$0xff]  }
  0x5a   : > { %1231 = vmatprep.mubr.bf16.mxu1 %v431_v62  ;;  %v1811_v62 = vld [vmem:[%s1916_s24 + $0x388] ss:$16 sps:$4 sm:$0xff]  }
  0x5b   : > { %1161 = vmatpush1.bf16.msra.mxu0 %v1748_v19 }
  0x5c   : > { %1202 = vmatpush1.bf16.msra.mxu1 %v1751_v20  ;;  %1162 = vmatprep.subr.bf16.mxu0 %v1756_v21 }
  0x5d   : > { %1203 = vmatprep.subr.bf16.mxu1 %v1759_v22 }
  0x5f   : > { %1163 = vmatpush1.bf16.msra.mxu0 %v1754_v23 }
  0x60   : > { %1204 = vmatpush1.bf16.msra.mxu1 %v1757_v24  ;;  %1164 = vmatprep.subr.bf16.mxu0 %v1762_v25 }
  0x61   : > { %1205 = vmatprep.subr.bf16.mxu1 %v1765_v26 }
  0x63   : > { %1165 = vmatpush1.bf16.msra.mxu0 %v1760_v27 }
  0x64   : > { %1206 = vmatpush1.bf16.msra.mxu1 %v1763_v28  ;;  %1166 = vmatprep.subr.bf16.mxu0 %v1768_v29  ;;  %v1864_v28 = vmov 1983009808  }
  0x65   : > { %1207 = vmatprep.subr.bf16.mxu1 %v1771_v30  ;;  %v1247_v29 = vunpack.c.l.s4 %v1864_v28 }
  0x67   : > { %1167 = vmatpush1.bf16.msra.mxu0 %v1766_v31  ;;  %v1248_v30 = vunpack.c.0.s8 %v1247_v29 }
  0x68   : > { %1208 = vmatpush1.bf16.msra.mxu1 %v1769_v32  ;;  %1168 = vmatprep.subr.bf16.mxu0 %v1774_v33 }
  0x69   : > { %1209 = vmatprep.subr.bf16.mxu1 %v1777_v34 }
  0x6b   : > { %1169 = vmatpush1.bf16.msra.mxu0 %v1772_v35 }
  0x6c   : > { %1210 = vmatpush1.bf16.msra.mxu1 %v1775_v36  ;;  %1170 = vmatprep.subr.bf16.mxu0 %v1780_v37 }
  0x6d   : > { %1211 = vmatprep.subr.bf16.mxu1 %v1783_v38 }
  0x6f   : > { %1171 = vmatpush1.bf16.msra.mxu0 %v1778_v39 }
  0x70   : > { %1212 = vmatpush1.bf16.msra.mxu1 %v1781_v40  ;;  %1172 = vmatprep.subr.bf16.mxu0 %v1786_v41 }
  0x71   : > { %1213 = vmatprep.subr.bf16.mxu1 %v1789_v42 }
  0x73   : > { %1173 = vmatpush1.bf16.msra.mxu0 %v1784_v43  ;;  %v277_v43 = vld [vmem:[#allocation2] sm:$0xff] }
  0x74   : > { %1214 = vmatpush1.bf16.msra.mxu1 %v1787_v44  ;;  %1174 = vmatprep.subr.bf16.mxu0 %v1792_v45 }
  0x75   : > { %1215 = vmatprep.subr.bf16.mxu1 %v1795_v46 }
  0x77   : > { %1175 = vmatpush2.bf16.msra.mxu0 %v1790_v48 }
  0x78   : > { %1216 = vmatpush2.bf16.msra.mxu1 %v1793_v49  ;;  %1176 = vmatprep.subr.bf16.mxu0 %v1798_v50 }
  0x79   : > { %1217 = vmatprep.subr.bf16.mxu1 %v1801_v51 }
  0x7b   : > { %1177 = vmatpush2.bf16.msra.mxu0 %v1796_v53 }
  0x7c   : > { %1218 = vmatpush2.bf16.msra.mxu1 %v1799_v54  ;;  %1178 = vmatprep.subr.bf16.mxu0 %v1804_v55 }
  0x7d   : > { %1219 = vmatprep.subr.bf16.mxu1 %v1807_v56 }
  0x7f   : > { %1179 = vmatpush2.bf16.msra.mxu0 %v1802_v57 }
  0x80   : > { %1220 = vmatpush2.bf16.msra.mxu1 %v1805_v58  ;;  %1180 = vmatprep.subr.bf16.mxu0 %v1810_v59 }
  0x81   : > { %1221 = vmatprep.subr.bf16.mxu1 %v1813_v60 }
  0x83   : > { %1181 = vmatpush2.bf16.msra.mxu0 %v1808_v61 }
  0x84   : > { %1222 = vmatpush2.bf16.msra.mxu1 %v1811_v62  ;;  %1182 = vmatprep.subr.bf16.mxu0 %v1816_v63 }
  0x85   : > { %1223 = vmatprep.subr.bf16.mxu1 %v1819_v0 }
  0x87   : > { %1183 = vmatpush2.bf16.msra.mxu0 %v1814_v1 }
  0x88   : > { %1224 = vmatpush2.bf16.msra.mxu1 %v1817_v2  ;;  %1184 = vmatprep.subr.bf16.mxu0 %v1822_v3 }
  0x89   : > { %1225 = vmatprep.subr.bf16.mxu1 %v1825_v4 }
  0x8b   : > { %1185 = vmatpush2.bf16.msra.mxu0 %v1820_v5 }
  0x8c   : > { %1226 = vmatpush2.bf16.msra.mxu1 %v1823_v6  ;;  %1186 = vmatprep.subr.bf16.mxu0 %v1828_v7 }
  0x8d   : > { %1227 = vmatprep.subr.bf16.mxu1 %v1831_v8 }
  0x8f   : > { %1187 = vmatpush2.bf16.msra.mxu0 %v1826_v9 }
  0x90   : > { %1228 = vmatpush2.bf16.msra.mxu1 %v1829_v11  ;;  %1188 = vmatprep.subr.bf16.mxu0 %v1834_v12 }
  0x91   : > { %1229 = vmatprep.subr.bf16.mxu1 %v1837_v13 }
  0x93   : > { %1189 = vmatpush2.bf16.msra.mxu0 %v1832_v15 }
  0x94   : > { %1230 = vmatpush2.bf16.msra.mxu1 %v1835_v16 }
  0x96   : > { %1191 = vmatmul.mubr.bf16.vlgmr.msra.gmra.mxu0 %v1994_v10 }
  0x97   : > { %1232 = vmatmul.mubr.bf16.vlgmr.msra.gmra.mxu1 %v2001_v14  ;;  %v1251_v14 = vsub.s32 %v1248_v30, %v1961_v47 }
 0x116   : > { %v1110_v17 = vpop.f32.mrf.mxu0 }
 0x117   : > { %v1151_v18 = vpop.f32.mrf.mxu1 }
 0x118   : > { %v1152_v19 = vadd.f32 %v1151_v18, %v1110_v17  ;;  %v1112_v20 = vpop.f32.mrf.mxu0 }
 0x119   : > { %v1153_v21 = vpop.f32.mrf.mxu1 }
 0x11a   : > { %v1154_v22 = vadd.f32 %v1153_v21, %v1112_v20  ;;  %v1114_v23 = vpop.f32.mrf.mxu0 }
 0x11b   : > { %v1155_v24 = vpop.f32.mrf.mxu1 }
 0x11c   : > { %v1244_v25 = vcombine.low %v1152_v19, %v1154_v22  ;;  %v1115_v26 = vpop.f32.mrf.mxu0 }
 0x11d   : > { %v1156_v27 = vpop.f32.mrf.mxu1 }
 0x11e   : > { %v1252_v41 = vrot.slane %v1244_v25, %v1251_v14 }
 0x156   : > { %v1192_v31 = vpop.f32.mrf.mxu0 }
 0x157   : > { %v1233_v32 = vpop.f32.mrf.mxu1 }
 0x158   : > { %v1194_v33 = vpop.f32.mrf.mxu0  ;;  %v1234_v34 = vadd.f32 %v1233_v32, %v1192_v31 }
 0x159   : > { %v1235_v10 = vpop.f32.mrf.mxu1 }
 0x15a   : > { %v1236_v35 = vadd.f32 %v1235_v10, %v1194_v33  ;;  %v1196_v36 = vpop.f32.mrf.mxu0 }
 0x15b   : > { %v1237_v37 = vpop.f32.mrf.mxu1 }
 0x15c   : > { %v1245_v38 = vcombine.low %v1234_v34, %v1236_v35  ;;  %v1197_v39 = vpop.f32.mrf.mxu0 }
 0x15d   : > { %v1238_v40 = vpop.f32.mrf.mxu1 }
 0x15e   : > { %v1259_v42 = vrot.slane %v1245_v38, %v1251_v14 }
 0x160   : > { %v1260_v44 = vcombine.low %v1252_v41, %v1259_v42  ;;  %1267 = sbr.rel (%p1610_p7) target bundleno = 384 (0x180), region = 40 }
 0x162   : > { %v1262_v45 = vadd.f32 %v1260_v44, %v277_v43 }
 0x164   : > { %1263 = vst [vmem:[#allocation2] sm:$0xff] %v1262_v45 }
 0x165   : > { %v1269_v46 = vld [vmem:[%s2094_s2] sm:$0xf]  ;;  %v1273_v48 = vsub.s32 0, %v1961_v47  ;;  %v1277_v49 = vsub.s32 1, %v1961_v47  ;;  %v1281_v50 = vsub.s32 2, %v1961_v47  ;;  %v1285_v51 = vsub.s32 3, %v1961_v47 }
 0x167   : > { %v1274_v53 = vrot.slane %v1269_v46, %v1273_v48  ;;  %v1278_v54 = vrot.slane %v1269_v46, %v1277_v49  ;;  %v1282_v55 = vrot.slane %v1269_v46, %v1281_v50  ;;  %v1286_v56 = vrot.slane %v1269_v46, %v1285_v51 }
 0x169   : > { %v1287_v57 = vcombine.low %v1274_v53, %v1278_v54  ;;  %v1288_v58 = vcombine.low %v1282_v55, %v1286_v56 }
 0x16b   : > { %v1295_v59 = vrot.slane %v1287_v57, %v1251_v14  ;;  %v1302_v60 = vrot.slane %v1288_v58, %v1251_v14  ;;  %v1268_v61 = vld [vmem:[#allocation2] sm:$0xff] }
 0x16d   : > { %v1303_v62 = vcombine.low %v1295_v59, %v1302_v60 }
 0x16f   : > { %v1305_v63 = vadd.f32 %v1303_v62, %v1268_v61 }
 0x171   : > { %v1306_v0 = vmax.f32 %v1305_v63, 0.0 }
 0x173   : > { %v1308_v1 = vcombine.high %v1306_v0, %v1306_v0  ;;  %v1315_v2 = vrot.slane %v1306_v0, %v1251_v14 }
 0x175   : > { %v1322_v3 = vrot.slane %v1308_v1, %v1251_v14  ;;  %v1323_v4 = vcombine.high %v1315_v2, %v1315_v2 }
 0x177   : > { %v1324_v5 = vcombine.high %v1322_v3, %v1322_v3  ;;  %v1611_v6 = vpack.c.bf16 %v1323_v4, %v1315_v2 }
 0x179   : > { %v1612_v7 = vpack.c.bf16 %v1324_v5, %v1322_v3  ;;  %v1345_v47 = vrot.slane %v1611_v6, %v1968_v52 }
 0x17b   : > { %v1352_v8 = vrot.slane %v1612_v7, %v1968_v52 }
 0x17d   : > { %v1353_v9 = vcombine.low %v1345_v47, %v1352_v8 }
 0x17f   : > { %1613 = vst.sshfl [vmem:[%s2095_s3] sm:$0x55 pattern:$0x73625140] %v1353_v9 }
 0x180 PF: > { %s13_s14 = sadd.s32 1, %s1860_s14   ;;  %s2096_s12 = smov %s1856_s13 }
 0x181   : > { %p10_p8 = scmp.ge.s32.totalorder %s13_s14, 11   ;;  %s2097_s13 = smov %s2099_s15 }
 0x183   :  { %12 = sbr.rel (!%p10_p8) target bundleno = 2 (0x2), region = 76 }

// kernel: _lambda_.43
= control target key start
LH: loop header
LB: loop body
LE: loop exit
PB: predicated region body
PF: predicated region fallthrough
CT: control target
= control target key end

     0   :  { %v24_v23 = vlaneseq  ;;  %s729_s0 = inlined_call_operand.vmem [shape: bf16[2,1,512], index: 0, kind: input, shape index: {}]   ;;  %s730_s1 = inlined_call_operand.vmem [shape: bf16[512,128], index: 1, kind: input, shape index: {}]   ;;  %s731_s2 = inlined_call_operand.vmem [shape: f32[1,128], index: 2, kind: input, shape index: {}]   ;;  %s732_s3 = inlined_call_operand.hbm [shape: f32[2,128], index: 3, kind: output, shape index: {}]  }
   0x1   :  { %v545_v0 = vld [vmem:[%s730_s1 + $0x78] sm:$0xff]   ;;  %v549_v4 = vld [vmem:[%s730_s1 + $0x70] sm:$0xff]   ;;  %v553_v8 = vld [vmem:[%s730_s1 + $0x68] sm:$0xff]  }
   0x2   :  { %v546_v1 = vld [vmem:[%s730_s1 + $0xf8] sm:$0xff]   ;;  %500 = vmatprep.subr.bf16.mxu0 %v545_v0  ;;  %v550_v5 = vld [vmem:[%s730_s1 + $0xf0] sm:$0xff]   ;;  %v554_v9 = vld [vmem:[%s730_s1 + $0xe8] sm:$0xff]   ;;  %v25_v28 = vshrl.u32 %v24_v23, 7 }
   0x3   :  { %v547_v2 = vld [vmem:[%s730_s1 + $0x38] sm:$0xff]   ;;  %522 = vmatprep.subr.bf16.mxu1 %v546_v1  ;;  %v551_v6 = vld [vmem:[%s730_s1 + $0x30] sm:$0xff]   ;;  %v555_v10 = vld [vmem:[%s730_s1 + $0x28] sm:$0xff]  }
   0x4   :  { %v548_v3 = vld [vmem:[%s730_s1 + $0xb8] sm:$0xff]   ;;  %501 = vmatpush3.bf16.msra.mxu0 %v547_v2  ;;  %v552_v7 = vld [vmem:[%s730_s1 + $0xb0] sm:$0xff]   ;;  %v556_v11 = vld [vmem:[%s730_s1 + $0xa8] sm:$0xff]   ;;  %v30_v33 = vsub.s32 2, %v25_v28  ;;  %v38_v35 = vsub.s32 6, %v25_v28  ;;  %v26_v37 = vsub.s32 0, %v25_v28 }
   0x5   :  { %523 = vmatpush3.bf16.msra.mxu1 %v548_v3  ;;  %502 = vmatprep.subr.bf16.mxu0 %v549_v4  ;;  %v557_v12 = vld [vmem:[%s730_s1 + $0x60] sm:$0xff]   ;;  %v561_v16 = vld [vmem:[%s730_s1 + $0x58] sm:$0xff]   ;;  %v565_v20 = vld [vmem:[%s730_s1 + $0x50] sm:$0xff]   ;;  %v34_v38 = vsub.s32 4, %v25_v28 }
   0x6   :  { %524 = vmatprep.subr.bf16.mxu1 %v550_v5  ;;  %v558_v13 = vld [vmem:[%s730_s1 + $0xe0] sm:$0xff]   ;;  %v562_v17 = vld [vmem:[%s730_s1 + $0xd8] sm:$0xff]   ;;  %v566_v21 = vld [vmem:[%s730_s1 + $0xd0] sm:$0xff]  }
   0x7   :  { %v559_v14 = vld [vmem:[%s730_s1 + $0x20] sm:$0xff]   ;;  %v563_v18 = vld [vmem:[%s730_s1 + $0x18] sm:$0xff]   ;;  %v567_v22 = vld [vmem:[%s730_s1 + $0x10] sm:$0xff]  }
   0x8   :  { %503 = vmatpush3.bf16.msra.mxu0 %v551_v6  ;;  %v560_v15 = vld [vmem:[%s730_s1 + $0xa0] sm:$0xff]   ;;  %v564_v19 = vld [vmem:[%s730_s1 + $0x98] sm:$0xff]   ;;  %v568_v24 = vld [vmem:[%s730_s1 + $0x90] sm:$0xff]  }
   0x9   :  { %525 = vmatpush3.bf16.msra.mxu1 %v552_v7  ;;  %504 = vmatprep.subr.bf16.mxu0 %v553_v8  ;;  %v569_v25 = vld [vmem:[%s730_s1 + $0x48] sm:$0xff]   ;;  %v573_v30 = vld [vmem:[%s730_s1 + $0x40] sm:$0xff]  }
   0xa   :  { %526 = vmatprep.subr.bf16.mxu1 %v554_v9  ;;  %v570_v26 = vld [vmem:[%s730_s1 + $0xc8] sm:$0xff]   ;;  %v574_v31 = vld [vmem:[%s730_s1 + $0xc0] sm:$0xff]  }
   0xb   :  { %v571_v27 = vld [vmem:[%s730_s1 + $0x8] sm:$0xff]   ;;  %v575_v32 = vld [vmem:[%s730_s1] sm:$0xff]  }
   0xc   :  { %505 = vmatpush3.bf16.msra.mxu0 %v555_v10  ;;  %v572_v29 = vld [vmem:[%s730_s1 + $0x88] sm:$0xff]   ;;  %v576_v34 = vld [vmem:[%s730_s1 + $0x80] sm:$0xff]  }
   0xd   :  { %527 = vmatpush3.bf16.msra.mxu1 %v556_v11  ;;  %506 = vmatprep.subr.bf16.mxu0 %v557_v12  ;;  %v497_v36 = vld [vmem:[%s729_s0] sm:$0xff]  }
   0xe   :  { %528 = vmatprep.subr.bf16.mxu1 %v558_v13 }
  0x10   :  { %507 = vmatpush3.bf16.msra.mxu0 %v559_v14 }
  0x11   :  { %529 = vmatpush3.bf16.msra.mxu1 %v560_v15  ;;  %508 = vmatprep.subr.bf16.mxu0 %v561_v16 }
  0x12   :  { %530 = vmatprep.subr.bf16.mxu1 %v562_v17 }
  0x14   :  { %509 = vmatpush3.bf16.msra.mxu0 %v563_v18 }
  0x15   :  { %531 = vmatpush3.bf16.msra.mxu1 %v564_v19  ;;  %510 = vmatprep.subr.bf16.mxu0 %v565_v20 }
  0x16   :  { %532 = vmatprep.subr.bf16.mxu1 %v566_v21 }
  0x18   :  { %511 = vmatpush3.bf16.msra.mxu0 %v567_v22 }
  0x19   :  { %533 = vmatpush3.bf16.msra.mxu1 %v568_v24  ;;  %512 = vmatprep.subr.bf16.mxu0 %v569_v25 }
  0x1a   :  { %534 = vmatprep.subr.bf16.mxu1 %v570_v26 }
  0x1c   :  { %513 = vmatpush3.bf16.msra.mxu0 %v571_v27 }
  0x1d   :  { %535 = vmatpush3.bf16.msra.mxu1 %v572_v29  ;;  %514 = vmatprep.subr.bf16.mxu0 %v573_v30 }
  0x1e   :  { %536 = vmatprep.subr.bf16.mxu1 %v574_v31 }
  0x20   :  { %515 = vmatpush3.bf16.msra.mxu0 %v575_v32 }
  0x21   :  { %8 = vsyncpa [#allocation3], 0  ;;  %537 = vmatpush3.bf16.msra.mxu1 %v576_v34  ;;  %v498_v39 = vunpack.c.l.bf16 %v497_v36  ;;  %v499_v40 = vunpack.c.h.bf16 %v497_v36  ;;  %vm160_vm0 = vcmask 1041409   ;;  %v463_v15 = vld [vmem:[%s731_s2] ss:$0 sm:$0xff]  ;;  %s599_s24 = smov [#allocation2]  }
  0x22   :  { %s455_s25 = sshll.u32 %s599_s24, 4  ;;  %s456_s25 = int_to_ptr.vmem [resolvable:$true] %s455_s25 }
  0x23   :  { %v31_v41 = vrot.slane %v498_v39, %v30_v33  ;;  %v47_v42 = vrot.slane %v499_v40, %v30_v33  ;;  %v39_v43 = vrot.slane %v498_v39, %v38_v35  ;;  %v55_v44 = vrot.slane %v499_v40, %v38_v35  ;;  %s577_s26 = scalar_lea.vmem %s456_s25, 32  ;;  %p582_p1 = scmp.lt.s32.totalorder %s456_s25, %s456_s25 }
  0x24   :  { %v27_v45 = vrot.slane %v498_v39, %v26_v37  ;;  %v43_v46 = vrot.slane %v499_v40, %v26_v37  ;;  %v35_v47 = vrot.slane %v498_v39, %v34_v38  ;;  %v51_v48 = vrot.slane %v499_v40, %v34_v38  ;;  %p578_p0 = scmp.ne.s32.totalorder %s456_s25, %s577_s26  ;;  %p583_p2 = scmp.lt.s32.totalorder %s577_s26, %s577_s26 }
  0x25   :  { %v65_v49 = vpack.c.bf16 %v31_v41, %v31_v41  ;;  %v69_v50 = vpack.c.bf16 %v47_v42, %v47_v42  ;;  %v67_v51 = vpack.c.bf16 %v39_v43, %v39_v43  ;;  %v71_v52 = vpack.c.bf16 %v55_v44, %v55_v44 }
  0x26   :  { %v64_v53 = vpack.c.bf16 %v27_v45, %v27_v45  ;;  %v68_v54 = vpack.c.bf16 %v43_v46, %v43_v46  ;;  %v66_v55 = vpack.c.bf16 %v35_v47, %v35_v47  ;;  %v70_v56 = vpack.c.bf16 %v51_v48, %v51_v48  ;;  %p584_p3 = por %p583_p2, %p582_p1 }
  0x27   :  { %v152_v57 = vunpack.c.l.b16 %v65_v49  ;;  %v156_v58 = vunpack.c.l.b16 %v69_v50  ;;  %v154_v59 = vunpack.c.l.b16 %v67_v51  ;;  %v158_v60 = vunpack.c.l.b16 %v71_v52 }
  0x28   :  { %v151_v61 = vunpack.c.l.b16 %v64_v53  ;;  %v155_v62 = vunpack.c.l.b16 %v68_v54  ;;  %v153_v63 = vunpack.c.l.b16 %v66_v55  ;;  %v157_v0 = vunpack.c.l.b16 %v70_v56  ;;  %p585_p4 = pnand %p584_p3, %p578_p0 }
  0x29   :  { %v162_v1 = vrot.slane %v156_v58, 7  ;;  %v166_v2 = vrot.slane %v158_v60, 7 }
  0x2a   :  { %v159_v3 = vrot.slane %v155_v62, 7  ;;  %v164_v4 = vrot.slane %v157_v0, 7 }
  0x2b   :  { %v163_v5 = vsel %vm160_vm0, %v162_v1, %v152_v57  ;;  %v167_v6 = vsel %vm160_vm0, %v166_v2, %v154_v59 }
  0x2c   :  { %v169_v7 = vpack.c.b16 %v163_v5, %v163_v5  ;;  %v171_v8 = vpack.c.b16 %v167_v6, %v167_v6  ;;  %v161_v9 = vsel %vm160_vm0, %v159_v3, %v151_v61  ;;  %v165_v10 = vsel %vm160_vm0, %v164_v4, %v153_v63 }
  0x2d   :  { %v168_v11 = vpack.c.b16 %v161_v9, %v161_v9  ;;  %v170_v12 = vpack.c.b16 %v165_v10, %v165_v10 }
  0x2e   :  { %400 = vmatprep.mubr.bf16.mxu0 %v169_v7  ;;  %440 = vmatprep.mubr.bf16.mxu1 %v171_v8 }
  0x2f   :  { %401 = vmatmul.mubr.bf16.vlgmr.msra.gmra.mxu0 %v168_v11  ;;  %441 = vmatmul.mubr.bf16.vlgmr.msra.gmra.mxu1 %v170_v12 }
  0xef   :  { %v516_v13 = vpop.f32.mrf.mxu0  ;;  %v538_v14 = vpop.f32.mrf.mxu1 }
  0xf1   :  { %v517_v16 = vpop.f32.mrf.mxu0  ;;  %v539_v17 = vpop.f32.mrf.mxu1 }
  0xf2   :  { %v518_v18 = vadd.f32 %v517_v16, %v516_v13  ;;  %v540_v22 = vadd.f32 %v539_v17, %v538_v14 }
  0xf3   :  { %v519_v19 = vpop.f32.mrf.mxu0  ;;  %v541_v20 = vpop.f32.mrf.mxu1 }
  0xf4   :  { %v403_v21 = vadd.f32 %v518_v18, %v463_v15 }
  0xf5   :  { %v520_v23 = vpop.f32.mrf.mxu0  ;;  %v542_v24 = vpop.f32.mrf.mxu1 }
  0xf6   :  { %v443_v25 = vadd.f32 %v540_v22, %v403_v21 }
  0xf8   :  { %448 = vst [vmem:[#allocation2] sm:$0x3] %v443_v25 }
  0xf9   :  { %588 = shalt.err (!%p585_p4)
}
  0xfa   :  { %458 = dma.vmem_to_hbm [thread:$0]  %s456_s25, 32, %s732_s3, [#allocation3]  }
  0xfb   :  { %597 = dma.done.wait [#allocation3], 32  }
  0xfc   :  { %598 = vsyncadd [#allocation3], 4294967264 }
  0xfd   :  { %462 = vsyncpa [#allocation3], 1 }

</bundles_post_ra>
